<compile_context>
chip_gen: v7x
topology: tpu7x:2x2x1
jax: 0.10.0
libtpu: 0.0.40
codegen_flags: <defaults>
</compile_context>

<pallas_src>
import functools

import jax
import jax.numpy as jnp
from jax.experimental import pallas as pl
from jax.experimental.pallas import tpu as pltpu

K = 7          # outer depthwise kernel; 5x5, 3x3 and identity are folded in
P = K // 2     # spatial halo (3)
PADL = 8       # 8-aligned left column padding inside the scratch


def _round_up(x, m):
    return (x + m - 1) // m * m


# ----------------------------- kernel -----------------------------------------

def ppeg_kernel(x_ref, w_ref, b_ref, o_ref, pad_ref, ybuf_ref, *, H, W, Wp, Bt):
    """Processes Bt batch elements per grid step.

    x_ref   : (Bt, 1+H*W, C) input tokens (row 0 of each element = cls token)
    w_ref   : (K*K, W, C)    fused per-channel stencil, pre-broadcast over W
    b_ref   : (1, C)         fused bias (b7 + b5 + b3)
    o_ref   : (Bt, 1+H*W, C) output tokens
    pad_ref : (H+2P, Wp, C)  zero-halo feature scratch (interior at col PADL)
    ybuf_ref: (H*W, C)       aligned staging buffer for the conv output tokens
    """
    C = x_ref.shape[-1]

    # Zero ONLY the halo of the padded scratch; all four stores are
    # sublane-aligned.  The interior is overwritten by the scatter below.
    pad_ref[0:P, :, :] = jnp.zeros((P, Wp, C), pad_ref.dtype)
    pad_ref[P + H:P + H + P, :, :] = jnp.zeros((P, Wp, C), pad_ref.dtype)
    pad_ref[P:P + H, 0:PADL, :] = jnp.zeros((H, PADL, C), pad_ref.dtype)
    pad_ref[P:P + H, PADL + W:Wp, :] = jnp.zeros((H, Wp - PADL - W, C),
                                                 pad_ref.dtype)

    # cls tokens pass through unchanged (fused concat), all Bt at once.
    o_ref[:, 0:1, :] = x_ref[:, 0:1, :]

    # Hoisted (1,C)->(W,C) bias broadcast (reused for every output row).
    bias_row = jnp.broadcast_to(b_ref[0:1, :], (W, C)).astype(jnp.float32)

    for bt in range(Bt):
        # One bulk read of the H*W feature tokens, then 8-aligned row scatter
        # into the padded scratch interior (column offset PADL is aligned).
        feat = x_ref[bt, 1:1 + H * W, :]
        for h in range(H):
            pad_ref[P + h, PADL:PADL + W, :] = feat[h * W:(h + 1) * W, :]

        # Fused 7x7 depthwise stencil (7x7 + 5x5 + 3x3 + identity), one output
        # row at a time so the live accumulator stays a handful of vregs.
        for h in range(H):
            acc = bias_row
            for dy in range(K):
                # One aligned full-width row load per dy; the 7 dx shifts are
                # generated on the XLU with pltpu.roll (no unaligned loads).
                row = pad_ref[h + dy, :, :].astype(jnp.float32)
                for dx in range(K):
                    off = PADL - P + dx          # tap column base in scratch
                    shifted = pltpu.roll(row, shift=Wp - off, axis=0)[:W, :]
                    acc = acc + w_ref[dy * K + dx, :, :] * shifted
            ybuf_ref[h * W:(h + 1) * W, :] = acc.astype(ybuf_ref.dtype)

        # Single contiguous store of all H*W conv tokens (fused flatten+concat).
        o_ref[bt, 1:1 + H * W, :] = ybuf_ref[...]


# ----------------------------- wrapper -----------------------------------------

def init_params(key, dim):
    """Raw parameters matching the PyTorch module layout."""
    ks = jax.random.split(key, 6)
    s = 0.05
    return {
        'proj_w':  (s * jax.random.normal(ks[0], (dim, 1, 7, 7))).astype(jnp.float32),
        'proj_b':  (s * jax.random.normal(ks[1], (dim,))).astype(jnp.float32),
        'proj1_w': (s * jax.random.normal(ks[2], (dim, 1, 5, 5))).astype(jnp.float32),
        'proj1_b': (s * jax.random.normal(ks[3], (dim,))).astype(jnp.float32),
        'proj2_w': (s * jax.random.normal(ks[4], (dim, 1, 3, 3))).astype(jnp.float32),
        'proj2_b': (s * jax.random.normal(ks[5], (dim,))).astype(jnp.float32),
    }


def pack_params(params, W):
    """One-time weight fusion + pre-broadcast (done at init, not per forward).

    Folds the 7x7, 5x5, 3x3 depthwise filters, the identity branch and the
    three biases into a single (K*K, W, C) stencil (each tap replicated over
    the W sublanes so it loads as a full aligned vreg) + a (1, C) bias.
    """
    C = params['proj_w'].shape[0]
    w7 = jnp.transpose(params['proj_w'][:, 0], (1, 2, 0))    # (7,7,C)
    w5 = jnp.transpose(params['proj1_w'][:, 0], (1, 2, 0))   # (5,5,C)
    w3 = jnp.transpose(params['proj2_w'][:, 0], (1, 2, 0))   # (3,3,C)
    w = w7
    w = w.at[1:6, 1:6, :].add(w5)
    w = w.at[2:5, 2:5, :].add(w3)
    w = w.at[P, P, :].add(1.0)                                # identity branch
    w = jnp.asarray(jnp.broadcast_to(w.reshape(K * K, 1, C), (K * K, W, C)))
    bias = (params['proj_b'] + params['proj1_b'] + params['proj2_b']).reshape(1, C)
    return {'w': w, 'b': bias}


def _pick_block_b(B, max_bt=8):
    """Largest batch block <= max_bt that divides B while keeping >= 2 grid
    steps on the 'parallel' axis (feeds both TensorCores on v7x)."""
    best = 1
    for bt in range(1, min(B, max_bt) + 1):
        if B % bt == 0 and (B // bt >= 2 or B == 1):
            best = bt
    return best


def ppeg_forward(packed, x, H, W, block_b=None):
    """x: (B, 1+H*W, C) -> (B, 1+H*W, C)."""
    B, N, C = x.shape
    assert N == 1 + H * W
    Hp = H + 2 * P
    Wp = _round_up(PADL + W + P, 8)           # padded scratch width (aligned)
    Bt = _pick_block_b(B) if block_b is None else block_b
    assert B % Bt == 0
    kern = functools.partial(ppeg_kernel, H=H, W=W, Wp=Wp, Bt=Bt)
    # TODO(synk): for production TransMIL shapes (C=512, H*W ~ thousands) add a
    # spatial row-block grid axis with a K-1 halo and set vmem_limit_bytes per
    # chip generation (64 MiB physical VMEM on v7x vs 128 MiB on v5e/v6e).
    return pl.pallas_call(
        kern,
        out_shape=jax.ShapeDtypeStruct((B, N, C), x.dtype),
        grid=(B // Bt,),
        in_specs=[
            pl.BlockSpec((Bt, N, C), lambda i: (i, 0, 0)),
            pl.BlockSpec((K * K, W, C), lambda i: (0, 0, 0)),   # grid-invariant
            pl.BlockSpec((1, C), lambda i: (0, 0)),             # grid-invariant
        ],
        out_specs=pl.BlockSpec((Bt, N, C), lambda i: (i, 0, 0)),
        scratch_shapes=[
            pltpu.VMEM((Hp, Wp, C), x.dtype),      # zero-halo padded features
            pltpu.VMEM((H * W, C), x.dtype),       # aligned conv-token staging
        ],
        compiler_params=pltpu.CompilerParams(
            dimension_semantics=("parallel",)),
    )(x, packed['w'], packed['b'])


# ----------------------------- pure-JAX reference ------------------------------

def _dw_conv(x_bchw, w, b, pad):
    C = x_bchw.shape[1]
    y = jax.lax.conv_general_dilated(
        x_bchw, w, window_strides=(1, 1),
        padding=((pad, pad), (pad, pad)),
        dimension_numbers=('NCHW', 'OIHW', 'NCHW'),
        feature_group_count=C)
    return y + b[None, :, None, None]


def ppeg_reference(params, x, H, W):
    B, N, C = x.shape
    cls_tok, feat = x[:, :1], x[:, 1:]
    cnn = feat.transpose(0, 2, 1).reshape(B, C, H, W)
    y = (_dw_conv(cnn, params['proj_w'], params['proj_b'], 3) + cnn
         + _dw_conv(cnn, params['proj1_w'], params['proj1_b'], 2)
         + _dw_conv(cnn, params['proj2_w'], params['proj2_b'], 1))
    y = y.reshape(B, C, H * W).transpose(0, 2, 1)
    return jnp.concatenate([cls_tok, y], axis=1)


# ----------------------------- main --------------------------------------------

if __name__ == "__main__":
    B, dim, H, W = 2, 128, 8, 8          # small shapes; PPEG default dim is 512
    N = 1 + H * W
    key = jax.random.PRNGKey(0)
    kp, kx = jax.random.split(key)

    params = init_params(kp, dim)
    packed = pack_params(params, W)      # one-time weight fusion / pre-broadcast
    x = jax.random.normal(kx, (B, N, dim), jnp.float32)

    fwd = jax.jit(functools.partial(ppeg_forward, H=H, W=W))
    out = jax.block_until_ready(fwd(packed, x))

    ref = ppeg_reference(params, x, H, W)
    assert out.shape == (B, N, dim), out.shape
    max_err = float(jnp.max(jnp.abs(out - ref)))
    assert jnp.allclose(out, ref, atol=1e-4, rtol=1e-4), max_err
    print("KERNEL_OK")
</pallas_src>

<mosaic_0001>
module attributes {stable_mosaic.version = 11 : i64} {
  func.func @ppeg_kernel(%arg0: i32, %arg1: memref<1x65x128xf32, #tpu.memory_space<vmem>>, %arg2: memref<49x8x128xf32, #tpu.memory_space<vmem>>, %arg3: memref<1x128xf32, #tpu.memory_space<vmem>>, %arg4: memref<1x65x128xf32, #tpu.memory_space<vmem>>, %arg5: memref<14x24x128xf32, #tpu.memory_space<vmem>>, %arg6: memref<64x128xf32, #tpu.memory_space<vmem>>) attributes {dimension_semantics = [#tpu.dimension_semantics<parallel>], iteration_bounds = array<i64: 2>, scalar_prefetch = 0 : i64, scratch_operands = 2 : i64, tpu.core_type = #tpu.core_type<tc>, window_params = [{transform_indices = @transform_0, window_bounds = array<i64: 1, 65, 128>}, {pipeline_mode = #tpu.pipeline_mode<synchronous>, transform_indices = @transform_1, window_bounds = array<i64: 49, 8, 128>}, {pipeline_mode = #tpu.pipeline_mode<synchronous>, transform_indices = @transform_2, window_bounds = array<i64: 1, 128>}, {transform_indices = @transform_3, window_bounds = array<i64: 1, 65, 128>}]} {
    %cst = arith.constant 0.000000e+00 : f32
    %0 = vector.broadcast %cst : f32 to vector<3x24x128xf32>
    %c0 = arith.constant 0 : index
    %c0_0 = arith.constant 0 : index
    %c0_1 = arith.constant 0 : index
    %1 = vector.load %arg5[%c0, %c0_0, %c0_1] : memref<14x24x128xf32, #tpu.memory_space<vmem>>, vector<3x24x128xf32>
    tpu.vector_store %arg5[%c0, %c0_0, %c0_1], %0 {strides = array<i32>} : memref<14x24x128xf32, #tpu.memory_space<vmem>>, vector<3x24x128xf32>,
    %cst_2 = arith.constant 0.000000e+00 : f32
    %2 = vector.broadcast %cst_2 : f32 to vector<3x24x128xf32>
    %c11 = arith.constant 11 : index
    %c0_3 = arith.constant 0 : index
    %c0_4 = arith.constant 0 : index
    %3 = vector.load %arg5[%c11, %c0_3, %c0_4] : memref<14x24x128xf32, #tpu.memory_space<vmem>>, vector<3x24x128xf32>
    tpu.vector_store %arg5[%c11, %c0_3, %c0_4], %2 {strides = array<i32>} : memref<14x24x128xf32, #tpu.memory_space<vmem>>, vector<3x24x128xf32>,
    %cst_5 = arith.constant 0.000000e+00 : f32
    %4 = vector.broadcast %cst_5 : f32 to vector<8x8x128xf32>
    %c3 = arith.constant 3 : index
    %c0_6 = arith.constant 0 : index
    %c0_7 = arith.constant 0 : index
    %5 = vector.load %arg5[%c3, %c0_6, %c0_7] : memref<14x24x128xf32, #tpu.memory_space<vmem>>, vector<8x8x128xf32>
    tpu.vector_store %arg5[%c3, %c0_6, %c0_7], %4 {strides = array<i32>} : memref<14x24x128xf32, #tpu.memory_space<vmem>>, vector<8x8x128xf32>,
    %cst_8 = arith.constant 0.000000e+00 : f32
    %6 = vector.broadcast %cst_8 : f32 to vector<8x8x128xf32>
    %c3_9 = arith.constant 3 : index
    %c16 = arith.constant 16 : index
    %c0_10 = arith.constant 0 : index
    %7 = vector.load %arg5[%c3_9, %c16, %c0_10] : memref<14x24x128xf32, #tpu.memory_space<vmem>>, vector<8x8x128xf32>
    tpu.vector_store %arg5[%c3_9, %c16, %c0_10], %6 {strides = array<i32>} : memref<14x24x128xf32, #tpu.memory_space<vmem>>, vector<8x8x128xf32>,
    %c0_11 = arith.constant 0 : index
    %c0_12 = arith.constant 0 : index
    %c0_13 = arith.constant 0 : index
    %8 = vector.load %arg1[%c0_11, %c0_12, %c0_13] : memref<1x65x128xf32, #tpu.memory_space<vmem>>, vector<1x1x128xf32>
    %c0_14 = arith.constant 0 : index
    %c0_15 = arith.constant 0 : index
    %c0_16 = arith.constant 0 : index
    %9 = vector.load %arg4[%c0_14, %c0_15, %c0_16] : memref<1x65x128xf32, #tpu.memory_space<vmem>>, vector<1x1x128xf32>
    tpu.vector_store %arg4[%c0_14, %c0_15, %c0_16], %8 {strides = array<i32>} : memref<1x65x128xf32, #tpu.memory_space<vmem>>, vector<1x1x128xf32>,
    %c0_17 = arith.constant 0 : index
    %c0_18 = arith.constant 0 : index
    %10 = vector.load %arg3[%c0_17, %c0_18] : memref<1x128xf32, #tpu.memory_space<vmem>>, vector<1x128xf32>
    %11 = vector.shape_cast %10 : vector<1x128xf32> to vector<1x128xf32>
    %12 = vector.broadcast %11 : vector<1x128xf32> to vector<8x128xf32>
    %c0_19 = arith.constant 0 : index
    %c1 = arith.constant 1 : index
    %c0_20 = arith.constant 0 : index
    %13 = vector.load %arg1[%c0_19, %c1, %c0_20] : memref<1x65x128xf32, #tpu.memory_space<vmem>>, vector<1x64x128xf32>
    %14 = vector.shape_cast %13 : vector<1x64x128xf32> to vector<64x128xf32>
    %15 = vector.extract_strided_slice %14 {offsets = [0, 0], sizes = [8, 128], strides = [1, 1]} : vector<64x128xf32> to vector<8x128xf32>
    %c3_21 = arith.constant 3 : index
    %c8 = arith.constant 8 : index
    %c0_22 = arith.constant 0 : index
    %16 = vector.load %arg5[%c3_21, %c8, %c0_22] : memref<14x24x128xf32, #tpu.memory_space<vmem>>, vector<1x8x128xf32>
    %17 = vector.shape_cast %16 : vector<1x8x128xf32> to vector<8x128xf32>
    %18 = vector.shape_cast %15 : vector<8x128xf32> to vector<1x8x128xf32>
    tpu.vector_store %arg5[%c3_21, %c8, %c0_22], %18 {strides = array<i32>} : memref<14x24x128xf32, #tpu.memory_space<vmem>>, vector<1x8x128xf32>,
    %19 = vector.extract_strided_slice %14 {offsets = [8, 0], sizes = [8, 128], strides = [1, 1]} : vector<64x128xf32> to vector<8x128xf32>
    %c4 = arith.constant 4 : index
    %c8_23 = arith.constant 8 : index
    %c0_24 = arith.constant 0 : index
    %20 = vector.load %arg5[%c4, %c8_23, %c0_24] : memref<14x24x128xf32, #tpu.memory_space<vmem>>, vector<1x8x128xf32>
    %21 = vector.shape_cast %20 : vector<1x8x128xf32> to vector<8x128xf32>
    %22 = vector.shape_cast %19 : vector<8x128xf32> to vector<1x8x128xf32>
    tpu.vector_store %arg5[%c4, %c8_23, %c0_24], %22 {strides = array<i32>} : memref<14x24x128xf32, #tpu.memory_space<vmem>>, vector<1x8x128xf32>,
    %23 = vector.extract_strided_slice %14 {offsets = [16, 0], sizes = [8, 128], strides = [1, 1]} : vector<64x128xf32> to vector<8x128xf32>
    %c5 = arith.constant 5 : index
    %c8_25 = arith.constant 8 : index
    %c0_26 = arith.constant 0 : index
    %24 = vector.load %arg5[%c5, %c8_25, %c0_26] : memref<14x24x128xf32, #tpu.memory_space<vmem>>, vector<1x8x128xf32>
    %25 = vector.shape_cast %24 : vector<1x8x128xf32> to vector<8x128xf32>
    %26 = vector.shape_cast %23 : vector<8x128xf32> to vector<1x8x128xf32>
    tpu.vector_store %arg5[%c5, %c8_25, %c0_26], %26 {strides = array<i32>} : memref<14x24x128xf32, #tpu.memory_space<vmem>>, vector<1x8x128xf32>,
    %27 = vector.extract_strided_slice %14 {offsets = [24, 0], sizes = [8, 128], strides = [1, 1]} : vector<64x128xf32> to vector<8x128xf32>
    %c6 = arith.constant 6 : index
    %c8_27 = arith.constant 8 : index
    %c0_28 = arith.constant 0 : index
    %28 = vector.load %arg5[%c6, %c8_27, %c0_28] : memref<14x24x128xf32, #tpu.memory_space<vmem>>, vector<1x8x128xf32>
    %29 = vector.shape_cast %28 : vector<1x8x128xf32> to vector<8x128xf32>
    %30 = vector.shape_cast %27 : vector<8x128xf32> to vector<1x8x128xf32>
    tpu.vector_store %arg5[%c6, %c8_27, %c0_28], %30 {strides = array<i32>} : memref<14x24x128xf32, #tpu.memory_space<vmem>>, vector<1x8x128xf32>,
    %31 = vector.extract_strided_slice %14 {offsets = [32, 0], sizes = [8, 128], strides = [1, 1]} : vector<64x128xf32> to vector<8x128xf32>
    %c7 = arith.constant 7 : index
    %c8_29 = arith.constant 8 : index
    %c0_30 = arith.constant 0 : index
    %32 = vector.load %arg5[%c7, %c8_29, %c0_30] : memref<14x24x128xf32, #tpu.memory_space<vmem>>, vector<1x8x128xf32>
    %33 = vector.shape_cast %32 : vector<1x8x128xf32> to vector<8x128xf32>
    %34 = vector.shape_cast %31 : vector<8x128xf32> to vector<1x8x128xf32>
    tpu.vector_store %arg5[%c7, %c8_29, %c0_30], %34 {strides = array<i32>} : memref<14x24x128xf32, #tpu.memory_space<vmem>>, vector<1x8x128xf32>,
    %35 = vector.extract_strided_slice %14 {offsets = [40, 0], sizes = [8, 128], strides = [1, 1]} : vector<64x128xf32> to vector<8x128xf32>
    %c8_31 = arith.constant 8 : index
    %c8_32 = arith.constant 8 : index
    %c0_33 = arith.constant 0 : index
    %36 = vector.load %arg5[%c8_31, %c8_32, %c0_33] : memref<14x24x128xf32, #tpu.memory_space<vmem>>, vector<1x8x128xf32>
    %37 = vector.shape_cast %36 : vector<1x8x128xf32> to vector<8x128xf32>
    %38 = vector.shape_cast %35 : vector<8x128xf32> to vector<1x8x128xf32>
    tpu.vector_store %arg5[%c8_31, %c8_32, %c0_33], %38 {strides = array<i32>} : memref<14x24x128xf32, #tpu.memory_space<vmem>>, vector<1x8x128xf32>,
    %39 = vector.extract_strided_slice %14 {offsets = [48, 0], sizes = [8, 128], strides = [1, 1]} : vector<64x128xf32> to vector<8x128xf32>
    %c9 = arith.constant 9 : index
    %c8_34 = arith.constant 8 : index
    %c0_35 = arith.constant 0 : index
    %40 = vector.load %arg5[%c9, %c8_34, %c0_35] : memref<14x24x128xf32, #tpu.memory_space<vmem>>, vector<1x8x128xf32>
    %41 = vector.shape_cast %40 : vector<1x8x128xf32> to vector<8x128xf32>
    %42 = vector.shape_cast %39 : vector<8x128xf32> to vector<1x8x128xf32>
    tpu.vector_store %arg5[%c9, %c8_34, %c0_35], %42 {strides = array<i32>} : memref<14x24x128xf32, #tpu.memory_space<vmem>>, vector<1x8x128xf32>,
    %43 = vector.extract_strided_slice %14 {offsets = [56, 0], sizes = [8, 128], strides = [1, 1]} : vector<64x128xf32> to vector<8x128xf32>
    %c10 = arith.constant 10 : index
    %c8_36 = arith.constant 8 : index
    %c0_37 = arith.constant 0 : index
    %44 = vector.load %arg5[%c10, %c8_36, %c0_37] : memref<14x24x128xf32, #tpu.memory_space<vmem>>, vector<1x8x128xf32>
    %45 = vector.shape_cast %44 : vector<1x8x128xf32> to vector<8x128xf32>
    %46 = vector.shape_cast %43 : vector<8x128xf32> to vector<1x8x128xf32>
    tpu.vector_store %arg5[%c10, %c8_36, %c0_37], %46 {strides = array<i32>} : memref<14x24x128xf32, #tpu.memory_space<vmem>>, vector<1x8x128xf32>,
    %c0_38 = arith.constant 0 : index
    %c0_39 = arith.constant 0 : index
    %c0_40 = arith.constant 0 : index
    %47 = vector.load %arg5[%c0_38, %c0_39, %c0_40] : memref<14x24x128xf32, #tpu.memory_space<vmem>>, vector<1x24x128xf32>
    %48 = vector.shape_cast %47 : vector<1x24x128xf32> to vector<24x128xf32>
    %c19_i32 = arith.constant 19 : i32
    %49 = tpu.dynamic_rotate %48 by %c19_i32 dim 0 : vector<24x128xf32>, i32 -> vector<24x128xf32>
    %50 = vector.extract_strided_slice %49 {offsets = [0, 0], sizes = [8, 128], strides = [1, 1]} : vector<24x128xf32> to vector<8x128xf32>
    %c0_41 = arith.constant 0 : index
    %c0_42 = arith.constant 0 : index
    %c0_43 = arith.constant 0 : index
    %51 = vector.load %arg2[%c0_41, %c0_42, %c0_43] : memref<49x8x128xf32, #tpu.memory_space<vmem>>, vector<1x8x128xf32>
    %52 = vector.shape_cast %51 : vector<1x8x128xf32> to vector<8x128xf32>
    %53 = arith.mulf %52, %50 : vector<8x128xf32>
    %54 = arith.addf %12, %53 : vector<8x128xf32>
    %c18_i32 = arith.constant 18 : i32
    %55 = tpu.dynamic_rotate %48 by %c18_i32 dim 0 : vector<24x128xf32>, i32 -> vector<24x128xf32>
    %56 = vector.extract_strided_slice %55 {offsets = [0, 0], sizes = [8, 128], strides = [1, 1]} : vector<24x128xf32> to vector<8x128xf32>
    %c1_44 = arith.constant 1 : index
    %c0_45 = arith.constant 0 : index
    %c0_46 = arith.constant 0 : index
    %57 = vector.load %arg2[%c1_44, %c0_45, %c0_46] : memref<49x8x128xf32, #tpu.memory_space<vmem>>, vector<1x8x128xf32>
    %58 = vector.shape_cast %57 : vector<1x8x128xf32> to vector<8x128xf32>
    %59 = arith.mulf %58, %56 : vector<8x128xf32>
    %60 = arith.addf %54, %59 : vector<8x128xf32>
    %c17_i32 = arith.constant 17 : i32
    %61 = tpu.dynamic_rotate %48 by %c17_i32 dim 0 : vector<24x128xf32>, i32 -> vector<24x128xf32>
    %62 = vector.extract_strided_slice %61 {offsets = [0, 0], sizes = [8, 128], strides = [1, 1]} : vector<24x128xf32> to vector<8x128xf32>
    %c2 = arith.constant 2 : index
    %c0_47 = arith.constant 0 : index
    %c0_48 = arith.constant 0 : index
    %63 = vector.load %arg2[%c2, %c0_47, %c0_48] : memref<49x8x128xf32, #tpu.memory_space<vmem>>, vector<1x8x128xf32>
    %64 = vector.shape_cast %63 : vector<1x8x128xf32> to vector<8x128xf32>
    %65 = arith.mulf %64, %62 : vector<8x128xf32>
    %66 = arith.addf %60, %65 : vector<8x128xf32>
    %c16_i32 = arith.constant 16 : i32
    %67 = tpu.dynamic_rotate %48 by %c16_i32 dim 0 : vector<24x128xf32>, i32 -> vector<24x128xf32>
    %68 = vector.extract_strided_slice %67 {offsets = [0, 0], sizes = [8, 128], strides = [1, 1]} : vector<24x128xf32> to vector<8x128xf32>
    %c3_49 = arith.constant 3 : index
    %c0_50 = arith.constant 0 : index
    %c0_51 = arith.constant 0 : index
    %69 = vector.load %arg2[%c3_49, %c0_50, %c0_51] : memref<49x8x128xf32, #tpu.memory_space<vmem>>, vector<1x8x128xf32>
    %70 = vector.shape_cast %69 : vector<1x8x128xf32> to vector<8x128xf32>
    %71 = arith.mulf %70, %68 : vector<8x128xf32>
    %72 = arith.addf %66, %71 : vector<8x128xf32>
    %c15_i32 = arith.constant 15 : i32
    %73 = tpu.dynamic_rotate %48 by %c15_i32 dim 0 : vector<24x128xf32>, i32 -> vector<24x128xf32>
    %74 = vector.extract_strided_slice %73 {offsets = [0, 0], sizes = [8, 128], strides = [1, 1]} : vector<24x128xf32> to vector<8x128xf32>
    %c4_52 = arith.constant 4 : index
    %c0_53 = arith.constant 0 : index
    %c0_54 = arith.constant 0 : index
    %75 = vector.load %arg2[%c4_52, %c0_53, %c0_54] : memref<49x8x128xf32, #tpu.memory_space<vmem>>, vector<1x8x128xf32>
    %76 = vector.shape_cast %75 : vector<1x8x128xf32> to vector<8x128xf32>
    %77 = arith.mulf %76, %74 : vector<8x128xf32>
    %78 = arith.addf %72, %77 : vector<8x128xf32>
    %c14_i32 = arith.constant 14 : i32
    %79 = tpu.dynamic_rotate %48 by %c14_i32 dim 0 : vector<24x128xf32>, i32 -> vector<24x128xf32>
    %80 = vector.extract_strided_slice %79 {offsets = [0, 0], sizes = [8, 128], strides = [1, 1]} : vector<24x128xf32> to vector<8x128xf32>
    %c5_55 = arith.constant 5 : index
    %c0_56 = arith.constant 0 : index
    %c0_57 = arith.constant 0 : index
    %81 = vector.load %arg2[%c5_55, %c0_56, %c0_57] : memref<49x8x128xf32, #tpu.memory_space<vmem>>, vector<1x8x128xf32>
    %82 = vector.shape_cast %81 : vector<1x8x128xf32> to vector<8x128xf32>
    %83 = arith.mulf %82, %80 : vector<8x128xf32>
    %84 = arith.addf %78, %83 : vector<8x128xf32>
    %c13_i32 = arith.constant 13 : i32
    %85 = tpu.dynamic_rotate %48 by %c13_i32 dim 0 : vector<24x128xf32>, i32 -> vector<24x128xf32>
    %86 = vector.extract_strided_slice %85 {offsets = [0, 0], sizes = [8, 128], strides = [1, 1]} : vector<24x128xf32> to vector<8x128xf32>
    %c6_58 = arith.constant 6 : index
    %c0_59 = arith.constant 0 : index
    %c0_60 = arith.constant 0 : index
    %87 = vector.load %arg2[%c6_58, %c0_59, %c0_60] : memref<49x8x128xf32, #tpu.memory_space<vmem>>, vector<1x8x128xf32>
    %88 = vector.shape_cast %87 : vector<1x8x128xf32> to vector<8x128xf32>
    %89 = arith.mulf %88, %86 : vector<8x128xf32>
    %90 = arith.addf %84, %89 : vector<8x128xf32>
    %c1_61 = arith.constant 1 : index
    %c0_62 = arith.constant 0 : index
    %c0_63 = arith.constant 0 : index
    %91 = vector.load %arg5[%c1_61, %c0_62, %c0_63] : memref<14x24x128xf32, #tpu.memory_space<vmem>>, vector<1x24x128xf32>
    %92 = vector.shape_cast %91 : vector<1x24x128xf32> to vector<24x128xf32>
    %c19_i32_64 = arith.constant 19 : i32
    %93 = tpu.dynamic_rotate %92 by %c19_i32_64 dim 0 : vector<24x128xf32>, i32 -> vector<24x128xf32>
    %94 = vector.extract_strided_slice %93 {offsets = [0, 0], sizes = [8, 128], strides = [1, 1]} : vector<24x128xf32> to vector<8x128xf32>
    %c7_65 = arith.constant 7 : index
    %c0_66 = arith.constant 0 : index
    %c0_67 = arith.constant 0 : index
    %95 = vector.load %arg2[%c7_65, %c0_66, %c0_67] : memref<49x8x128xf32, #tpu.memory_space<vmem>>, vector<1x8x128xf32>
    %96 = vector.shape_cast %95 : vector<1x8x128xf32> to vector<8x128xf32>
    %97 = arith.mulf %96, %94 : vector<8x128xf32>
    %98 = arith.addf %90, %97 : vector<8x128xf32>
    %c18_i32_68 = arith.constant 18 : i32
    %99 = tpu.dynamic_rotate %92 by %c18_i32_68 dim 0 : vector<24x128xf32>, i32 -> vector<24x128xf32>
    %100 = vector.extract_strided_slice %99 {offsets = [0, 0], sizes = [8, 128], strides = [1, 1]} : vector<24x128xf32> to vector<8x128xf32>
    %c8_69 = arith.constant 8 : index
    %c0_70 = arith.constant 0 : index
    %c0_71 = arith.constant 0 : index
    %101 = vector.load %arg2[%c8_69, %c0_70, %c0_71] : memref<49x8x128xf32, #tpu.memory_space<vmem>>, vector<1x8x128xf32>
    %102 = vector.shape_cast %101 : vector<1x8x128xf32> to vector<8x128xf32>
    %103 = arith.mulf %102, %100 : vector<8x128xf32>
    %104 = arith.addf %98, %103 : vector<8x128xf32>
    %c17_i32_72 = arith.constant 17 : i32
    %105 = tpu.dynamic_rotate %92 by %c17_i32_72 dim 0 : vector<24x128xf32>, i32 -> vector<24x128xf32>
    %106 = vector.extract_strided_slice %105 {offsets = [0, 0], sizes = [8, 128], strides = [1, 1]} : vector<24x128xf32> to vector<8x128xf32>
    %c9_73 = arith.constant 9 : index
    %c0_74 = arith.constant 0 : index
    %c0_75 = arith.constant 0 : index
    %107 = vector.load %arg2[%c9_73, %c0_74, %c0_75] : memref<49x8x128xf32, #tpu.memory_space<vmem>>, vector<1x8x128xf32>
    %108 = vector.shape_cast %107 : vector<1x8x128xf32> to vector<8x128xf32>
    %109 = arith.mulf %108, %106 : vector<8x128xf32>
    %110 = arith.addf %104, %109 : vector<8x128xf32>
    %c16_i32_76 = arith.constant 16 : i32
    %111 = tpu.dynamic_rotate %92 by %c16_i32_76 dim 0 : vector<24x128xf32>, i32 -> vector<24x128xf32>
    %112 = vector.extract_strided_slice %111 {offsets = [0, 0], sizes = [8, 128], strides = [1, 1]} : vector<24x128xf32> to vector<8x128xf32>
    %c10_77 = arith.constant 10 : index
    %c0_78 = arith.constant 0 : index
    %c0_79 = arith.constant 0 : index
    %113 = vector.load %arg2[%c10_77, %c0_78, %c0_79] : memref<49x8x128xf32, #tpu.memory_space<vmem>>, vector<1x8x128xf32>
    %114 = vector.shape_cast %113 : vector<1x8x128xf32> to vector<8x128xf32>
    %115 = arith.mulf %114, %112 : vector<8x128xf32>
    %116 = arith.addf %110, %115 : vector<8x128xf32>
    %c15_i32_80 = arith.constant 15 : i32
    %117 = tpu.dynamic_rotate %92 by %c15_i32_80 dim 0 : vector<24x128xf32>, i32 -> vector<24x128xf32>
    %118 = vector.extract_strided_slice %117 {offsets = [0, 0], sizes = [8, 128], strides = [1, 1]} : vector<24x128xf32> to vector<8x128xf32>
    %c11_81 = arith.constant 11 : index
    %c0_82 = arith.constant 0 : index
    %c0_83 = arith.constant 0 : index
    %119 = vector.load %arg2[%c11_81, %c0_82, %c0_83] : memref<49x8x128xf32, #tpu.memory_space<vmem>>, vector<1x8x128xf32>
    %120 = vector.shape_cast %119 : vector<1x8x128xf32> to vector<8x128xf32>
    %121 = arith.mulf %120, %118 : vector<8x128xf32>
    %122 = arith.addf %116, %121 : vector<8x128xf32>
    %c14_i32_84 = arith.constant 14 : i32
    %123 = tpu.dynamic_rotate %92 by %c14_i32_84 dim 0 : vector<24x128xf32>, i32 -> vector<24x128xf32>
    %124 = vector.extract_strided_slice %123 {offsets = [0, 0], sizes = [8, 128], strides = [1, 1]} : vector<24x128xf32> to vector<8x128xf32>
    %c12 = arith.constant 12 : index
    %c0_85 = arith.constant 0 : index
    %c0_86 = arith.constant 0 : index
    %125 = vector.load %arg2[%c12, %c0_85, %c0_86] : memref<49x8x128xf32, #tpu.memory_space<vmem>>, vector<1x8x128xf32>
    %126 = vector.shape_cast %125 : vector<1x8x128xf32> to vector<8x128xf32>
    %127 = arith.mulf %126, %124 : vector<8x128xf32>
    %128 = arith.addf %122, %127 : vector<8x128xf32>
    %c13_i32_87 = arith.constant 13 : i32
    %129 = tpu.dynamic_rotate %92 by %c13_i32_87 dim 0 : vector<24x128xf32>, i32 -> vector<24x128xf32>
    %130 = vector.extract_strided_slice %129 {offsets = [0, 0], sizes = [8, 128], strides = [1, 1]} : vector<24x128xf32> to vector<8x128xf32>
    %c13 = arith.constant 13 : index
    %c0_88 = arith.constant 0 : index
    %c0_89 = arith.constant 0 : index
    %131 = vector.load %arg2[%c13, %c0_88, %c0_89] : memref<49x8x128xf32, #tpu.memory_space<vmem>>, vector<1x8x128xf32>
    %132 = vector.shape_cast %131 : vector<1x8x128xf32> to vector<8x128xf32>
    %133 = arith.mulf %132, %130 : vector<8x128xf32>
    %134 = arith.addf %128, %133 : vector<8x128xf32>
    %c2_90 = arith.constant 2 : index
    %c0_91 = arith.constant 0 : index
    %c0_92 = arith.constant 0 : index
    %135 = vector.load %arg5[%c2_90, %c0_91, %c0_92] : memref<14x24x128xf32, #tpu.memory_space<vmem>>, vector<1x24x128xf32>
    %136 = vector.shape_cast %135 : vector<1x24x128xf32> to vector<24x128xf32>
    %c19_i32_93 = arith.constant 19 : i32
    %137 = tpu.dynamic_rotate %136 by %c19_i32_93 dim 0 : vector<24x128xf32>, i32 -> vector<24x128xf32>
    %138 = vector.extract_strided_slice %137 {offsets = [0, 0], sizes = [8, 128], strides = [1, 1]} : vector<24x128xf32> to vector<8x128xf32>
    %c14 = arith.constant 14 : index
    %c0_94 = arith.constant 0 : index
    %c0_95 = arith.constant 0 : index
    %139 = vector.load %arg2[%c14, %c0_94, %c0_95] : memref<49x8x128xf32, #tpu.memory_space<vmem>>, vector<1x8x128xf32>
    %140 = vector.shape_cast %139 : vector<1x8x128xf32> to vector<8x128xf32>
    %141 = arith.mulf %140, %138 : vector<8x128xf32>
    %142 = arith.addf %134, %141 : vector<8x128xf32>
    %c18_i32_96 = arith.constant 18 : i32
    %143 = tpu.dynamic_rotate %136 by %c18_i32_96 dim 0 : vector<24x128xf32>, i32 -> vector<24x128xf32>
    %144 = vector.extract_strided_slice %143 {offsets = [0, 0], sizes = [8, 128], strides = [1, 1]} : vector<24x128xf32> to vector<8x128xf32>
    %c15 = arith.constant 15 : index
    %c0_97 = arith.constant 0 : index
    %c0_98 = arith.constant 0 : index
    %145 = vector.load %arg2[%c15, %c0_97, %c0_98] : memref<49x8x128xf32, #tpu.memory_space<vmem>>, vector<1x8x128xf32>
    %146 = vector.shape_cast %145 : vector<1x8x128xf32> to vector<8x128xf32>
    %147 = arith.mulf %146, %144 : vector<8x128xf32>
    %148 = arith.addf %142, %147 : vector<8x128xf32>
    %c17_i32_99 = arith.constant 17 : i32
    %149 = tpu.dynamic_rotate %136 by %c17_i32_99 dim 0 : vector<24x128xf32>, i32 -> vector<24x128xf32>
    %150 = vector.extract_strided_slice %149 {offsets = [0, 0], sizes = [8, 128], strides = [1, 1]} : vector<24x128xf32> to vector<8x128xf32>
    %c16_100 = arith.constant 16 : index
    %c0_101 = arith.constant 0 : index
    %c0_102 = arith.constant 0 : index
    %151 = vector.load %arg2[%c16_100, %c0_101, %c0_102] : memref<49x8x128xf32, #tpu.memory_space<vmem>>, vector<1x8x128xf32>
    %152 = vector.shape_cast %151 : vector<1x8x128xf32> to vector<8x128xf32>
    %153 = arith.mulf %152, %150 : vector<8x128xf32>
    %154 = arith.addf %148, %153 : vector<8x128xf32>
    %c16_i32_103 = arith.constant 16 : i32
    %155 = tpu.dynamic_rotate %136 by %c16_i32_103 dim 0 : vector<24x128xf32>, i32 -> vector<24x128xf32>
    %156 = vector.extract_strided_slice %155 {offsets = [0, 0], sizes = [8, 128], strides = [1, 1]} : vector<24x128xf32> to vector<8x128xf32>
    %c17 = arith.constant 17 : index
    %c0_104 = arith.constant 0 : index
    %c0_105 = arith.constant 0 : index
    %157 = vector.load %arg2[%c17, %c0_104, %c0_105] : memref<49x8x128xf32, #tpu.memory_space<vmem>>, vector<1x8x128xf32>
    %158 = vector.shape_cast %157 : vector<1x8x128xf32> to vector<8x128xf32>
    %159 = arith.mulf %158, %156 : vector<8x128xf32>
    %160 = arith.addf %154, %159 : vector<8x128xf32>
    %c15_i32_106 = arith.constant 15 : i32
    %161 = tpu.dynamic_rotate %136 by %c15_i32_106 dim 0 : vector<24x128xf32>, i32 -> vector<24x128xf32>
    %162 = vector.extract_strided_slice %161 {offsets = [0, 0], sizes = [8, 128], strides = [1, 1]} : vector<24x128xf32> to vector<8x128xf32>
    %c18 = arith.constant 18 : index
    %c0_107 = arith.constant 0 : index
    %c0_108 = arith.constant 0 : index
    %163 = vector.load %arg2[%c18, %c0_107, %c0_108] : memref<49x8x128xf32, #tpu.memory_space<vmem>>, vector<1x8x128xf32>
    %164 = vector.shape_cast %163 : vector<1x8x128xf32> to vector<8x128xf32>
    %165 = arith.mulf %164, %162 : vector<8x128xf32>
    %166 = arith.addf %160, %165 : vector<8x128xf32>
    %c14_i32_109 = arith.constant 14 : i32
    %167 = tpu.dynamic_rotate %136 by %c14_i32_109 dim 0 : vector<24x128xf32>, i32 -> vector<24x128xf32>
    %168 = vector.extract_strided_slice %167 {offsets = [0, 0], sizes = [8, 128], strides = [1, 1]} : vector<24x128xf32> to vector<8x128xf32>
    %c19 = arith.constant 19 : index
    %c0_110 = arith.constant 0 : index
    %c0_111 = arith.constant 0 : index
    %169 = vector.load %arg2[%c19, %c0_110, %c0_111] : memref<49x8x128xf32, #tpu.memory_space<vmem>>, vector<1x8x128xf32>
    %170 = vector.shape_cast %169 : vector<1x8x128xf32> to vector<8x128xf32>
    %171 = arith.mulf %170, %168 : vector<8x128xf32>
    %172 = arith.addf %166, %171 : vector<8x128xf32>
    %c13_i32_112 = arith.constant 13 : i32
    %173 = tpu.dynamic_rotate %136 by %c13_i32_112 dim 0 : vector<24x128xf32>, i32 -> vector<24x128xf32>
    %174 = vector.extract_strided_slice %173 {offsets = [0, 0], sizes = [8, 128], strides = [1, 1]} : vector<24x128xf32> to vector<8x128xf32>
    %c20 = arith.constant 20 : index
    %c0_113 = arith.constant 0 : index
    %c0_114 = arith.constant 0 : index
    %175 = vector.load %arg2[%c20, %c0_113, %c0_114] : memref<49x8x128xf32, #tpu.memory_space<vmem>>, vector<1x8x128xf32>
    %176 = vector.shape_cast %175 : vector<1x8x128xf32> to vector<8x128xf32>
    %177 = arith.mulf %176, %174 : vector<8x128xf32>
    %178 = arith.addf %172, %177 : vector<8x128xf32>
    %c3_115 = arith.constant 3 : index
    %c0_116 = arith.constant 0 : index
    %c0_117 = arith.constant 0 : index
    %179 = vector.load %arg5[%c3_115, %c0_116, %c0_117] : memref<14x24x128xf32, #tpu.memory_space<vmem>>, vector<1x24x128xf32>
    %180 = vector.shape_cast %179 : vector<1x24x128xf32> to vector<24x128xf32>
    %c19_i32_118 = arith.constant 19 : i32
    %181 = tpu.dynamic_rotate %180 by %c19_i32_118 dim 0 : vector<24x128xf32>, i32 -> vector<24x128xf32>
    %182 = vector.extract_strided_slice %181 {offsets = [0, 0], sizes = [8, 128], strides = [1, 1]} : vector<24x128xf32> to vector<8x128xf32>
    %c21 = arith.constant 21 : index
    %c0_119 = arith.constant 0 : index
    %c0_120 = arith.constant 0 : index
    %183 = vector.load %arg2[%c21, %c0_119, %c0_120] : memref<49x8x128xf32, #tpu.memory_space<vmem>>, vector<1x8x128xf32>
    %184 = vector.shape_cast %183 : vector<1x8x128xf32> to vector<8x128xf32>
    %185 = arith.mulf %184, %182 : vector<8x128xf32>
    %186 = arith.addf %178, %185 : vector<8x128xf32>
    %c18_i32_121 = arith.constant 18 : i32
    %187 = tpu.dynamic_rotate %180 by %c18_i32_121 dim 0 : vector<24x128xf32>, i32 -> vector<24x128xf32>
    %188 = vector.extract_strided_slice %187 {offsets = [0, 0], sizes = [8, 128], strides = [1, 1]} : vector<24x128xf32> to vector<8x128xf32>
    %c22 = arith.constant 22 : index
    %c0_122 = arith.constant 0 : index
    %c0_123 = arith.constant 0 : index
    %189 = vector.load %arg2[%c22, %c0_122, %c0_123] : memref<49x8x128xf32, #tpu.memory_space<vmem>>, vector<1x8x128xf32>
    %190 = vector.shape_cast %189 : vector<1x8x128xf32> to vector<8x128xf32>
    %191 = arith.mulf %190, %188 : vector<8x128xf32>
    %192 = arith.addf %186, %191 : vector<8x128xf32>
    %c17_i32_124 = arith.constant 17 : i32
    %193 = tpu.dynamic_rotate %180 by %c17_i32_124 dim 0 : vector<24x128xf32>, i32 -> vector<24x128xf32>
    %194 = vector.extract_strided_slice %193 {offsets = [0, 0], sizes = [8, 128], strides = [1, 1]} : vector<24x128xf32> to vector<8x128xf32>
    %c23 = arith.constant 23 : index
    %c0_125 = arith.constant 0 : index
    %c0_126 = arith.constant 0 : index
    %195 = vector.load %arg2[%c23, %c0_125, %c0_126] : memref<49x8x128xf32, #tpu.memory_space<vmem>>, vector<1x8x128xf32>
    %196 = vector.shape_cast %195 : vector<1x8x128xf32> to vector<8x128xf32>
    %197 = arith.mulf %196, %194 : vector<8x128xf32>
    %198 = arith.addf %192, %197 : vector<8x128xf32>
    %c16_i32_127 = arith.constant 16 : i32
    %199 = tpu.dynamic_rotate %180 by %c16_i32_127 dim 0 : vector<24x128xf32>, i32 -> vector<24x128xf32>
    %200 = vector.extract_strided_slice %199 {offsets = [0, 0], sizes = [8, 128], strides = [1, 1]} : vector<24x128xf32> to vector<8x128xf32>
    %c24 = arith.constant 24 : index
    %c0_128 = arith.constant 0 : index
    %c0_129 = arith.constant 0 : index
    %201 = vector.load %arg2[%c24, %c0_128, %c0_129] : memref<49x8x128xf32, #tpu.memory_space<vmem>>, vector<1x8x128xf32>
    %202 = vector.shape_cast %201 : vector<1x8x128xf32> to vector<8x128xf32>
    %203 = arith.mulf %202, %200 : vector<8x128xf32>
    %204 = arith.addf %198, %203 : vector<8x128xf32>
    %c15_i32_130 = arith.constant 15 : i32
    %205 = tpu.dynamic_rotate %180 by %c15_i32_130 dim 0 : vector<24x128xf32>, i32 -> vector<24x128xf32>
    %206 = vector.extract_strided_slice %205 {offsets = [0, 0], sizes = [8, 128], strides = [1, 1]} : vector<24x128xf32> to vector<8x128xf32>
    %c25 = arith.constant 25 : index
    %c0_131 = arith.constant 0 : index
    %c0_132 = arith.constant 0 : index
    %207 = vector.load %arg2[%c25, %c0_131, %c0_132] : memref<49x8x128xf32, #tpu.memory_space<vmem>>, vector<1x8x128xf32>
    %208 = vector.shape_cast %207 : vector<1x8x128xf32> to vector<8x128xf32>
    %209 = arith.mulf %208, %206 : vector<8x128xf32>
    %210 = arith.addf %204, %209 : vector<8x128xf32>
    %c14_i32_133 = arith.constant 14 : i32
    %211 = tpu.dynamic_rotate %180 by %c14_i32_133 dim 0 : vector<24x128xf32>, i32 -> vector<24x128xf32>
    %212 = vector.extract_strided_slice %211 {offsets = [0, 0], sizes = [8, 128], strides = [1, 1]} : vector<24x128xf32> to vector<8x128xf32>
    %c26 = arith.constant 26 : index
    %c0_134 = arith.constant 0 : index
    %c0_135 = arith.constant 0 : index
    %213 = vector.load %arg2[%c26, %c0_134, %c0_135] : memref<49x8x128xf32, #tpu.memory_space<vmem>>, vector<1x8x128xf32>
    %214 = vector.shape_cast %213 : vector<1x8x128xf32> to vector<8x128xf32>
    %215 = arith.mulf %214, %212 : vector<8x128xf32>
    %216 = arith.addf %210, %215 : vector<8x128xf32>
    %c13_i32_136 = arith.constant 13 : i32
    %217 = tpu.dynamic_rotate %180 by %c13_i32_136 dim 0 : vector<24x128xf32>, i32 -> vector<24x128xf32>
    %218 = vector.extract_strided_slice %217 {offsets = [0, 0], sizes = [8, 128], strides = [1, 1]} : vector<24x128xf32> to vector<8x128xf32>
    %c27 = arith.constant 27 : index
    %c0_137 = arith.constant 0 : index
    %c0_138 = arith.constant 0 : index
    %219 = vector.load %arg2[%c27, %c0_137, %c0_138] : memref<49x8x128xf32, #tpu.memory_space<vmem>>, vector<1x8x128xf32>
    %220 = vector.shape_cast %219 : vector<1x8x128xf32> to vector<8x128xf32>
    %221 = arith.mulf %220, %218 : vector<8x128xf32>
    %222 = arith.addf %216, %221 : vector<8x128xf32>
    %c4_139 = arith.constant 4 : index
    %c0_140 = arith.constant 0 : index
    %c0_141 = arith.constant 0 : index
    %223 = vector.load %arg5[%c4_139, %c0_140, %c0_141] : memref<14x24x128xf32, #tpu.memory_space<vmem>>, vector<1x24x128xf32>
    %224 = vector.shape_cast %223 : vector<1x24x128xf32> to vector<24x128xf32>
    %c19_i32_142 = arith.constant 19 : i32
    %225 = tpu.dynamic_rotate %224 by %c19_i32_142 dim 0 : vector<24x128xf32>, i32 -> vector<24x128xf32>
    %226 = vector.extract_strided_slice %225 {offsets = [0, 0], sizes = [8, 128], strides = [1, 1]} : vector<24x128xf32> to vector<8x128xf32>
    %c28 = arith.constant 28 : index
    %c0_143 = arith.constant 0 : index
    %c0_144 = arith.constant 0 : index
    %227 = vector.load %arg2[%c28, %c0_143, %c0_144] : memref<49x8x128xf32, #tpu.memory_space<vmem>>, vector<1x8x128xf32>
    %228 = vector.shape_cast %227 : vector<1x8x128xf32> to vector<8x128xf32>
    %229 = arith.mulf %228, %226 : vector<8x128xf32>
    %230 = arith.addf %222, %229 : vector<8x128xf32>
    %c18_i32_145 = arith.constant 18 : i32
    %231 = tpu.dynamic_rotate %224 by %c18_i32_145 dim 0 : vector<24x128xf32>, i32 -> vector<24x128xf32>
    %232 = vector.extract_strided_slice %231 {offsets = [0, 0], sizes = [8, 128], strides = [1, 1]} : vector<24x128xf32> to vector<8x128xf32>
    %c29 = arith.constant 29 : index
    %c0_146 = arith.constant 0 : index
    %c0_147 = arith.constant 0 : index
    %233 = vector.load %arg2[%c29, %c0_146, %c0_147] : memref<49x8x128xf32, #tpu.memory_space<vmem>>, vector<1x8x128xf32>
    %234 = vector.shape_cast %233 : vector<1x8x128xf32> to vector<8x128xf32>
    %235 = arith.mulf %234, %232 : vector<8x128xf32>
    %236 = arith.addf %230, %235 : vector<8x128xf32>
    %c17_i32_148 = arith.constant 17 : i32
    %237 = tpu.dynamic_rotate %224 by %c17_i32_148 dim 0 : vector<24x128xf32>, i32 -> vector<24x128xf32>
    %238 = vector.extract_strided_slice %237 {offsets = [0, 0], sizes = [8, 128], strides = [1, 1]} : vector<24x128xf32> to vector<8x128xf32>
    %c30 = arith.constant 30 : index
    %c0_149 = arith.constant 0 : index
    %c0_150 = arith.constant 0 : index
    %239 = vector.load %arg2[%c30, %c0_149, %c0_150] : memref<49x8x128xf32, #tpu.memory_space<vmem>>, vector<1x8x128xf32>
    %240 = vector.shape_cast %239 : vector<1x8x128xf32> to vector<8x128xf32>
    %241 = arith.mulf %240, %238 : vector<8x128xf32>
    %242 = arith.addf %236, %241 : vector<8x128xf32>
    %c16_i32_151 = arith.constant 16 : i32
    %243 = tpu.dynamic_rotate %224 by %c16_i32_151 dim 0 : vector<24x128xf32>, i32 -> vector<24x128xf32>
    %244 = vector.extract_strided_slice %243 {offsets = [0, 0], sizes = [8, 128], strides = [1, 1]} : vector<24x128xf32> to vector<8x128xf32>
    %c31 = arith.constant 31 : index
    %c0_152 = arith.constant 0 : index
    %c0_153 = arith.constant 0 : index
    %245 = vector.load %arg2[%c31, %c0_152, %c0_153] : memref<49x8x128xf32, #tpu.memory_space<vmem>>, vector<1x8x128xf32>
    %246 = vector.shape_cast %245 : vector<1x8x128xf32> to vector<8x128xf32>
    %247 = arith.mulf %246, %244 : vector<8x128xf32>
    %248 = arith.addf %242, %247 : vector<8x128xf32>
    %c15_i32_154 = arith.constant 15 : i32
    %249 = tpu.dynamic_rotate %224 by %c15_i32_154 dim 0 : vector<24x128xf32>, i32 -> vector<24x128xf32>
    %250 = vector.extract_strided_slice %249 {offsets = [0, 0], sizes = [8, 128], strides = [1, 1]} : vector<24x128xf32> to vector<8x128xf32>
    %c32 = arith.constant 32 : index
    %c0_155 = arith.constant 0 : index
    %c0_156 = arith.constant 0 : index
    %251 = vector.load %arg2[%c32, %c0_155, %c0_156] : memref<49x8x128xf32, #tpu.memory_space<vmem>>, vector<1x8x128xf32>
    %252 = vector.shape_cast %251 : vector<1x8x128xf32> to vector<8x128xf32>
    %253 = arith.mulf %252, %250 : vector<8x128xf32>
    %254 = arith.addf %248, %253 : vector<8x128xf32>
    %c14_i32_157 = arith.constant 14 : i32
    %255 = tpu.dynamic_rotate %224 by %c14_i32_157 dim 0 : vector<24x128xf32>, i32 -> vector<24x128xf32>
    %256 = vector.extract_strided_slice %255 {offsets = [0, 0], sizes = [8, 128], strides = [1, 1]} : vector<24x128xf32> to vector<8x128xf32>
    %c33 = arith.constant 33 : index
    %c0_158 = arith.constant 0 : index
    %c0_159 = arith.constant 0 : index
    %257 = vector.load %arg2[%c33, %c0_158, %c0_159] : memref<49x8x128xf32, #tpu.memory_space<vmem>>, vector<1x8x128xf32>
    %258 = vector.shape_cast %257 : vector<1x8x128xf32> to vector<8x128xf32>
    %259 = arith.mulf %258, %256 : vector<8x128xf32>
    %260 = arith.addf %254, %259 : vector<8x128xf32>
    %c13_i32_160 = arith.constant 13 : i32
    %261 = tpu.dynamic_rotate %224 by %c13_i32_160 dim 0 : vector<24x128xf32>, i32 -> vector<24x128xf32>
    %262 = vector.extract_strided_slice %261 {offsets = [0, 0], sizes = [8, 128], strides = [1, 1]} : vector<24x128xf32> to vector<8x128xf32>
    %c34 = arith.constant 34 : index
    %c0_161 = arith.constant 0 : index
    %c0_162 = arith.constant 0 : index
    %263 = vector.load %arg2[%c34, %c0_161, %c0_162] : memref<49x8x128xf32, #tpu.memory_space<vmem>>, vector<1x8x128xf32>
    %264 = vector.shape_cast %263 : vector<1x8x128xf32> to vector<8x128xf32>
    %265 = arith.mulf %264, %262 : vector<8x128xf32>
    %266 = arith.addf %260, %265 : vector<8x128xf32>
    %c5_163 = arith.constant 5 : index
    %c0_164 = arith.constant 0 : index
    %c0_165 = arith.constant 0 : index
    %267 = vector.load %arg5[%c5_163, %c0_164, %c0_165] : memref<14x24x128xf32, #tpu.memory_space<vmem>>, vector<1x24x128xf32>
    %268 = vector.shape_cast %267 : vector<1x24x128xf32> to vector<24x128xf32>
    %c19_i32_166 = arith.constant 19 : i32
    %269 = tpu.dynamic_rotate %268 by %c19_i32_166 dim 0 : vector<24x128xf32>, i32 -> vector<24x128xf32>
    %270 = vector.extract_strided_slice %269 {offsets = [0, 0], sizes = [8, 128], strides = [1, 1]} : vector<24x128xf32> to vector<8x128xf32>
    %c35 = arith.constant 35 : index
    %c0_167 = arith.constant 0 : index
    %c0_168 = arith.constant 0 : index
    %271 = vector.load %arg2[%c35, %c0_167, %c0_168] : memref<49x8x128xf32, #tpu.memory_space<vmem>>, vector<1x8x128xf32>
    %272 = vector.shape_cast %271 : vector<1x8x128xf32> to vector<8x128xf32>
    %273 = arith.mulf %272, %270 : vector<8x128xf32>
    %274 = arith.addf %266, %273 : vector<8x128xf32>
    %c18_i32_169 = arith.constant 18 : i32
    %275 = tpu.dynamic_rotate %268 by %c18_i32_169 dim 0 : vector<24x128xf32>, i32 -> vector<24x128xf32>
    %276 = vector.extract_strided_slice %275 {offsets = [0, 0], sizes = [8, 128], strides = [1, 1]} : vector<24x128xf32> to vector<8x128xf32>
    %c36 = arith.constant 36 : index
    %c0_170 = arith.constant 0 : index
    %c0_171 = arith.constant 0 : index
    %277 = vector.load %arg2[%c36, %c0_170, %c0_171] : memref<49x8x128xf32, #tpu.memory_space<vmem>>, vector<1x8x128xf32>
    %278 = vector.shape_cast %277 : vector<1x8x128xf32> to vector<8x128xf32>
    %279 = arith.mulf %278, %276 : vector<8x128xf32>
    %280 = arith.addf %274, %279 : vector<8x128xf32>
    %c17_i32_172 = arith.constant 17 : i32
    %281 = tpu.dynamic_rotate %268 by %c17_i32_172 dim 0 : vector<24x128xf32>, i32 -> vector<24x128xf32>
    %282 = vector.extract_strided_slice %281 {offsets = [0, 0], sizes = [8, 128], strides = [1, 1]} : vector<24x128xf32> to vector<8x128xf32>
    %c37 = arith.constant 37 : index
    %c0_173 = arith.constant 0 : index
    %c0_174 = arith.constant 0 : index
    %283 = vector.load %arg2[%c37, %c0_173, %c0_174] : memref<49x8x128xf32, #tpu.memory_space<vmem>>, vector<1x8x128xf32>
    %284 = vector.shape_cast %283 : vector<1x8x128xf32> to vector<8x128xf32>
    %285 = arith.mulf %284, %282 : vector<8x128xf32>
    %286 = arith.addf %280, %285 : vector<8x128xf32>
    %c16_i32_175 = arith.constant 16 : i32
    %287 = tpu.dynamic_rotate %268 by %c16_i32_175 dim 0 : vector<24x128xf32>, i32 -> vector<24x128xf32>
    %288 = vector.extract_strided_slice %287 {offsets = [0, 0], sizes = [8, 128], strides = [1, 1]} : vector<24x128xf32> to vector<8x128xf32>
    %c38 = arith.constant 38 : index
    %c0_176 = arith.constant 0 : index
    %c0_177 = arith.constant 0 : index
    %289 = vector.load %arg2[%c38, %c0_176, %c0_177] : memref<49x8x128xf32, #tpu.memory_space<vmem>>, vector<1x8x128xf32>
    %290 = vector.shape_cast %289 : vector<1x8x128xf32> to vector<8x128xf32>
    %291 = arith.mulf %290, %288 : vector<8x128xf32>
    %292 = arith.addf %286, %291 : vector<8x128xf32>
    %c15_i32_178 = arith.constant 15 : i32
    %293 = tpu.dynamic_rotate %268 by %c15_i32_178 dim 0 : vector<24x128xf32>, i32 -> vector<24x128xf32>
    %294 = vector.extract_strided_slice %293 {offsets = [0, 0], sizes = [8, 128], strides = [1, 1]} : vector<24x128xf32> to vector<8x128xf32>
    %c39 = arith.constant 39 : index
    %c0_179 = arith.constant 0 : index
    %c0_180 = arith.constant 0 : index
    %295 = vector.load %arg2[%c39, %c0_179, %c0_180] : memref<49x8x128xf32, #tpu.memory_space<vmem>>, vector<1x8x128xf32>
    %296 = vector.shape_cast %295 : vector<1x8x128xf32> to vector<8x128xf32>
    %297 = arith.mulf %296, %294 : vector<8x128xf32>
    %298 = arith.addf %292, %297 : vector<8x128xf32>
    %c14_i32_181 = arith.constant 14 : i32
    %299 = tpu.dynamic_rotate %268 by %c14_i32_181 dim 0 : vector<24x128xf32>, i32 -> vector<24x128xf32>
    %300 = vector.extract_strided_slice %299 {offsets = [0, 0], sizes = [8, 128], strides = [1, 1]} : vector<24x128xf32> to vector<8x128xf32>
    %c40 = arith.constant 40 : index
    %c0_182 = arith.constant 0 : index
    %c0_183 = arith.constant 0 : index
    %301 = vector.load %arg2[%c40, %c0_182, %c0_183] : memref<49x8x128xf32, #tpu.memory_space<vmem>>, vector<1x8x128xf32>
    %302 = vector.shape_cast %301 : vector<1x8x128xf32> to vector<8x128xf32>
    %303 = arith.mulf %302, %300 : vector<8x128xf32>
    %304 = arith.addf %298, %303 : vector<8x128xf32>
    %c13_i32_184 = arith.constant 13 : i32
    %305 = tpu.dynamic_rotate %268 by %c13_i32_184 dim 0 : vector<24x128xf32>, i32 -> vector<24x128xf32>
    %306 = vector.extract_strided_slice %305 {offsets = [0, 0], sizes = [8, 128], strides = [1, 1]} : vector<24x128xf32> to vector<8x128xf32>
    %c41 = arith.constant 41 : index
    %c0_185 = arith.constant 0 : index
    %c0_186 = arith.constant 0 : index
    %307 = vector.load %arg2[%c41, %c0_185, %c0_186] : memref<49x8x128xf32, #tpu.memory_space<vmem>>, vector<1x8x128xf32>
    %308 = vector.shape_cast %307 : vector<1x8x128xf32> to vector<8x128xf32>
    %309 = arith.mulf %308, %306 : vector<8x128xf32>
    %310 = arith.addf %304, %309 : vector<8x128xf32>
    %c6_187 = arith.constant 6 : index
    %c0_188 = arith.constant 0 : index
    %c0_189 = arith.constant 0 : index
    %311 = vector.load %arg5[%c6_187, %c0_188, %c0_189] : memref<14x24x128xf32, #tpu.memory_space<vmem>>, vector<1x24x128xf32>
    %312 = vector.shape_cast %311 : vector<1x24x128xf32> to vector<24x128xf32>
    %c19_i32_190 = arith.constant 19 : i32
    %313 = tpu.dynamic_rotate %312 by %c19_i32_190 dim 0 : vector<24x128xf32>, i32 -> vector<24x128xf32>
    %314 = vector.extract_strided_slice %313 {offsets = [0, 0], sizes = [8, 128], strides = [1, 1]} : vector<24x128xf32> to vector<8x128xf32>
    %c42 = arith.constant 42 : index
    %c0_191 = arith.constant 0 : index
    %c0_192 = arith.constant 0 : index
    %315 = vector.load %arg2[%c42, %c0_191, %c0_192] : memref<49x8x128xf32, #tpu.memory_space<vmem>>, vector<1x8x128xf32>
    %316 = vector.shape_cast %315 : vector<1x8x128xf32> to vector<8x128xf32>
    %317 = arith.mulf %316, %314 : vector<8x128xf32>
    %318 = arith.addf %310, %317 : vector<8x128xf32>
    %c18_i32_193 = arith.constant 18 : i32
    %319 = tpu.dynamic_rotate %312 by %c18_i32_193 dim 0 : vector<24x128xf32>, i32 -> vector<24x128xf32>
    %320 = vector.extract_strided_slice %319 {offsets = [0, 0], sizes = [8, 128], strides = [1, 1]} : vector<24x128xf32> to vector<8x128xf32>
    %c43 = arith.constant 43 : index
    %c0_194 = arith.constant 0 : index
    %c0_195 = arith.constant 0 : index
    %321 = vector.load %arg2[%c43, %c0_194, %c0_195] : memref<49x8x128xf32, #tpu.memory_space<vmem>>, vector<1x8x128xf32>
    %322 = vector.shape_cast %321 : vector<1x8x128xf32> to vector<8x128xf32>
    %323 = arith.mulf %322, %320 : vector<8x128xf32>
    %324 = arith.addf %318, %323 : vector<8x128xf32>
    %c17_i32_196 = arith.constant 17 : i32
    %325 = tpu.dynamic_rotate %312 by %c17_i32_196 dim 0 : vector<24x128xf32>, i32 -> vector<24x128xf32>
    %326 = vector.extract_strided_slice %325 {offsets = [0, 0], sizes = [8, 128], strides = [1, 1]} : vector<24x128xf32> to vector<8x128xf32>
    %c44 = arith.constant 44 : index
    %c0_197 = arith.constant 0 : index
    %c0_198 = arith.constant 0 : index
    %327 = vector.load %arg2[%c44, %c0_197, %c0_198] : memref<49x8x128xf32, #tpu.memory_space<vmem>>, vector<1x8x128xf32>
    %328 = vector.shape_cast %327 : vector<1x8x128xf32> to vector<8x128xf32>
    %329 = arith.mulf %328, %326 : vector<8x128xf32>
    %330 = arith.addf %324, %329 : vector<8x128xf32>
    %c16_i32_199 = arith.constant 16 : i32
    %331 = tpu.dynamic_rotate %312 by %c16_i32_199 dim 0 : vector<24x128xf32>, i32 -> vector<24x128xf32>
    %332 = vector.extract_strided_slice %331 {offsets = [0, 0], sizes = [8, 128], strides = [1, 1]} : vector<24x128xf32> to vector<8x128xf32>
    %c45 = arith.constant 45 : index
    %c0_200 = arith.constant 0 : index
    %c0_201 = arith.constant 0 : index
    %333 = vector.load %arg2[%c45, %c0_200, %c0_201] : memref<49x8x128xf32, #tpu.memory_space<vmem>>, vector<1x8x128xf32>
    %334 = vector.shape_cast %333 : vector<1x8x128xf32> to vector<8x128xf32>
    %335 = arith.mulf %334, %332 : vector<8x128xf32>
    %336 = arith.addf %330, %335 : vector<8x128xf32>
    %c15_i32_202 = arith.constant 15 : i32
    %337 = tpu.dynamic_rotate %312 by %c15_i32_202 dim 0 : vector<24x128xf32>, i32 -> vector<24x128xf32>
    %338 = vector.extract_strided_slice %337 {offsets = [0, 0], sizes = [8, 128], strides = [1, 1]} : vector<24x128xf32> to vector<8x128xf32>
    %c46 = arith.constant 46 : index
    %c0_203 = arith.constant 0 : index
    %c0_204 = arith.constant 0 : index
    %339 = vector.load %arg2[%c46, %c0_203, %c0_204] : memref<49x8x128xf32, #tpu.memory_space<vmem>>, vector<1x8x128xf32>
    %340 = vector.shape_cast %339 : vector<1x8x128xf32> to vector<8x128xf32>
    %341 = arith.mulf %340, %338 : vector<8x128xf32>
    %342 = arith.addf %336, %341 : vector<8x128xf32>
    %c14_i32_205 = arith.constant 14 : i32
    %343 = tpu.dynamic_rotate %312 by %c14_i32_205 dim 0 : vector<24x128xf32>, i32 -> vector<24x128xf32>
    %344 = vector.extract_strided_slice %343 {offsets = [0, 0], sizes = [8, 128], strides = [1, 1]} : vector<24x128xf32> to vector<8x128xf32>
    %c47 = arith.constant 47 : index
    %c0_206 = arith.constant 0 : index
    %c0_207 = arith.constant 0 : index
    %345 = vector.load %arg2[%c47, %c0_206, %c0_207] : memref<49x8x128xf32, #tpu.memory_space<vmem>>, vector<1x8x128xf32>
    %346 = vector.shape_cast %345 : vector<1x8x128xf32> to vector<8x128xf32>
    %347 = arith.mulf %346, %344 : vector<8x128xf32>
    %348 = arith.addf %342, %347 : vector<8x128xf32>
    %c13_i32_208 = arith.constant 13 : i32
    %349 = tpu.dynamic_rotate %312 by %c13_i32_208 dim 0 : vector<24x128xf32>, i32 -> vector<24x128xf32>
    %350 = vector.extract_strided_slice %349 {offsets = [0, 0], sizes = [8, 128], strides = [1, 1]} : vector<24x128xf32> to vector<8x128xf32>
    %c48 = arith.constant 48 : index
    %c0_209 = arith.constant 0 : index
    %c0_210 = arith.constant 0 : index
    %351 = vector.load %arg2[%c48, %c0_209, %c0_210] : memref<49x8x128xf32, #tpu.memory_space<vmem>>, vector<1x8x128xf32>
    %352 = vector.shape_cast %351 : vector<1x8x128xf32> to vector<8x128xf32>
    %353 = arith.mulf %352, %350 : vector<8x128xf32>
    %354 = arith.addf %348, %353 : vector<8x128xf32>
    %c0_211 = arith.constant 0 : index
    %c0_212 = arith.constant 0 : index
    %355 = vector.load %arg6[%c0_211, %c0_212] : memref<64x128xf32, #tpu.memory_space<vmem>>, vector<8x128xf32>
    tpu.vector_store %arg6[%c0_211, %c0_212], %354 {strides = array<i32>} : memref<64x128xf32, #tpu.memory_space<vmem>>, vector<8x128xf32>,
    %c1_213 = arith.constant 1 : index
    %c0_214 = arith.constant 0 : index
    %c0_215 = arith.constant 0 : index
    %356 = vector.load %arg5[%c1_213, %c0_214, %c0_215] : memref<14x24x128xf32, #tpu.memory_space<vmem>>, vector<1x24x128xf32>
    %357 = vector.shape_cast %356 : vector<1x24x128xf32> to vector<24x128xf32>
    %c19_i32_216 = arith.constant 19 : i32
    %358 = tpu.dynamic_rotate %357 by %c19_i32_216 dim 0 : vector<24x128xf32>, i32 -> vector<24x128xf32>
    %359 = vector.extract_strided_slice %358 {offsets = [0, 0], sizes = [8, 128], strides = [1, 1]} : vector<24x128xf32> to vector<8x128xf32>
    %c0_217 = arith.constant 0 : index
    %c0_218 = arith.constant 0 : index
    %c0_219 = arith.constant 0 : index
    %360 = vector.load %arg2[%c0_217, %c0_218, %c0_219] : memref<49x8x128xf32, #tpu.memory_space<vmem>>, vector<1x8x128xf32>
    %361 = vector.shape_cast %360 : vector<1x8x128xf32> to vector<8x128xf32>
    %362 = arith.mulf %361, %359 : vector<8x128xf32>
    %363 = arith.addf %12, %362 : vector<8x128xf32>
    %c18_i32_220 = arith.constant 18 : i32
    %364 = tpu.dynamic_rotate %357 by %c18_i32_220 dim 0 : vector<24x128xf32>, i32 -> vector<24x128xf32>
    %365 = vector.extract_strided_slice %364 {offsets = [0, 0], sizes = [8, 128], strides = [1, 1]} : vector<24x128xf32> to vector<8x128xf32>
    %c1_221 = arith.constant 1 : index
    %c0_222 = arith.constant 0 : index
    %c0_223 = arith.constant 0 : index
    %366 = vector.load %arg2[%c1_221, %c0_222, %c0_223] : memref<49x8x128xf32, #tpu.memory_space<vmem>>, vector<1x8x128xf32>
    %367 = vector.shape_cast %366 : vector<1x8x128xf32> to vector<8x128xf32>
    %368 = arith.mulf %367, %365 : vector<8x128xf32>
    %369 = arith.addf %363, %368 : vector<8x128xf32>
    %c17_i32_224 = arith.constant 17 : i32
    %370 = tpu.dynamic_rotate %357 by %c17_i32_224 dim 0 : vector<24x128xf32>, i32 -> vector<24x128xf32>
    %371 = vector.extract_strided_slice %370 {offsets = [0, 0], sizes = [8, 128], strides = [1, 1]} : vector<24x128xf32> to vector<8x128xf32>
    %c2_225 = arith.constant 2 : index
    %c0_226 = arith.constant 0 : index
    %c0_227 = arith.constant 0 : index
    %372 = vector.load %arg2[%c2_225, %c0_226, %c0_227] : memref<49x8x128xf32, #tpu.memory_space<vmem>>, vector<1x8x128xf32>
    %373 = vector.shape_cast %372 : vector<1x8x128xf32> to vector<8x128xf32>
    %374 = arith.mulf %373, %371 : vector<8x128xf32>
    %375 = arith.addf %369, %374 : vector<8x128xf32>
    %c16_i32_228 = arith.constant 16 : i32
    %376 = tpu.dynamic_rotate %357 by %c16_i32_228 dim 0 : vector<24x128xf32>, i32 -> vector<24x128xf32>
    %377 = vector.extract_strided_slice %376 {offsets = [0, 0], sizes = [8, 128], strides = [1, 1]} : vector<24x128xf32> to vector<8x128xf32>
    %c3_229 = arith.constant 3 : index
    %c0_230 = arith.constant 0 : index
    %c0_231 = arith.constant 0 : index
    %378 = vector.load %arg2[%c3_229, %c0_230, %c0_231] : memref<49x8x128xf32, #tpu.memory_space<vmem>>, vector<1x8x128xf32>
    %379 = vector.shape_cast %378 : vector<1x8x128xf32> to vector<8x128xf32>
    %380 = arith.mulf %379, %377 : vector<8x128xf32>
    %381 = arith.addf %375, %380 : vector<8x128xf32>
    %c15_i32_232 = arith.constant 15 : i32
    %382 = tpu.dynamic_rotate %357 by %c15_i32_232 dim 0 : vector<24x128xf32>, i32 -> vector<24x128xf32>
    %383 = vector.extract_strided_slice %382 {offsets = [0, 0], sizes = [8, 128], strides = [1, 1]} : vector<24x128xf32> to vector<8x128xf32>
    %c4_233 = arith.constant 4 : index
    %c0_234 = arith.constant 0 : index
    %c0_235 = arith.constant 0 : index
    %384 = vector.load %arg2[%c4_233, %c0_234, %c0_235] : memref<49x8x128xf32, #tpu.memory_space<vmem>>, vector<1x8x128xf32>
    %385 = vector.shape_cast %384 : vector<1x8x128xf32> to vector<8x128xf32>
    %386 = arith.mulf %385, %383 : vector<8x128xf32>
    %387 = arith.addf %381, %386 : vector<8x128xf32>
    %c14_i32_236 = arith.constant 14 : i32
    %388 = tpu.dynamic_rotate %357 by %c14_i32_236 dim 0 : vector<24x128xf32>, i32 -> vector<24x128xf32>
    %389 = vector.extract_strided_slice %388 {offsets = [0, 0], sizes = [8, 128], strides = [1, 1]} : vector<24x128xf32> to vector<8x128xf32>
    %c5_237 = arith.constant 5 : index
    %c0_238 = arith.constant 0 : index
    %c0_239 = arith.constant 0 : index
    %390 = vector.load %arg2[%c5_237, %c0_238, %c0_239] : memref<49x8x128xf32, #tpu.memory_space<vmem>>, vector<1x8x128xf32>
    %391 = vector.shape_cast %390 : vector<1x8x128xf32> to vector<8x128xf32>
    %392 = arith.mulf %391, %389 : vector<8x128xf32>
    %393 = arith.addf %387, %392 : vector<8x128xf32>
    %c13_i32_240 = arith.constant 13 : i32
    %394 = tpu.dynamic_rotate %357 by %c13_i32_240 dim 0 : vector<24x128xf32>, i32 -> vector<24x128xf32>
    %395 = vector.extract_strided_slice %394 {offsets = [0, 0], sizes = [8, 128], strides = [1, 1]} : vector<24x128xf32> to vector<8x128xf32>
    %c6_241 = arith.constant 6 : index
    %c0_242 = arith.constant 0 : index
    %c0_243 = arith.constant 0 : index
    %396 = vector.load %arg2[%c6_241, %c0_242, %c0_243] : memref<49x8x128xf32, #tpu.memory_space<vmem>>, vector<1x8x128xf32>
    %397 = vector.shape_cast %396 : vector<1x8x128xf32> to vector<8x128xf32>
    %398 = arith.mulf %397, %395 : vector<8x128xf32>
    %399 = arith.addf %393, %398 : vector<8x128xf32>
    %c2_244 = arith.constant 2 : index
    %c0_245 = arith.constant 0 : index
    %c0_246 = arith.constant 0 : index
    %400 = vector.load %arg5[%c2_244, %c0_245, %c0_246] : memref<14x24x128xf32, #tpu.memory_space<vmem>>, vector<1x24x128xf32>
    %401 = vector.shape_cast %400 : vector<1x24x128xf32> to vector<24x128xf32>
    %c19_i32_247 = arith.constant 19 : i32
    %402 = tpu.dynamic_rotate %401 by %c19_i32_247 dim 0 : vector<24x128xf32>, i32 -> vector<24x128xf32>
    %403 = vector.extract_strided_slice %402 {offsets = [0, 0], sizes = [8, 128], strides = [1, 1]} : vector<24x128xf32> to vector<8x128xf32>
    %c7_248 = arith.constant 7 : index
    %c0_249 = arith.constant 0 : index
    %c0_250 = arith.constant 0 : index
    %404 = vector.load %arg2[%c7_248, %c0_249, %c0_250] : memref<49x8x128xf32, #tpu.memory_space<vmem>>, vector<1x8x128xf32>
    %405 = vector.shape_cast %404 : vector<1x8x128xf32> to vector<8x128xf32>
    %406 = arith.mulf %405, %403 : vector<8x128xf32>
    %407 = arith.addf %399, %406 : vector<8x128xf32>
    %c18_i32_251 = arith.constant 18 : i32
    %408 = tpu.dynamic_rotate %401 by %c18_i32_251 dim 0 : vector<24x128xf32>, i32 -> vector<24x128xf32>
    %409 = vector.extract_strided_slice %408 {offsets = [0, 0], sizes = [8, 128], strides = [1, 1]} : vector<24x128xf32> to vector<8x128xf32>
    %c8_252 = arith.constant 8 : index
    %c0_253 = arith.constant 0 : index
    %c0_254 = arith.constant 0 : index
    %410 = vector.load %arg2[%c8_252, %c0_253, %c0_254] : memref<49x8x128xf32, #tpu.memory_space<vmem>>, vector<1x8x128xf32>
    %411 = vector.shape_cast %410 : vector<1x8x128xf32> to vector<8x128xf32>
    %412 = arith.mulf %411, %409 : vector<8x128xf32>
    %413 = arith.addf %407, %412 : vector<8x128xf32>
    %c17_i32_255 = arith.constant 17 : i32
    %414 = tpu.dynamic_rotate %401 by %c17_i32_255 dim 0 : vector<24x128xf32>, i32 -> vector<24x128xf32>
    %415 = vector.extract_strided_slice %414 {offsets = [0, 0], sizes = [8, 128], strides = [1, 1]} : vector<24x128xf32> to vector<8x128xf32>
    %c9_256 = arith.constant 9 : index
    %c0_257 = arith.constant 0 : index
    %c0_258 = arith.constant 0 : index
    %416 = vector.load %arg2[%c9_256, %c0_257, %c0_258] : memref<49x8x128xf32, #tpu.memory_space<vmem>>, vector<1x8x128xf32>
    %417 = vector.shape_cast %416 : vector<1x8x128xf32> to vector<8x128xf32>
    %418 = arith.mulf %417, %415 : vector<8x128xf32>
    %419 = arith.addf %413, %418 : vector<8x128xf32>
    %c16_i32_259 = arith.constant 16 : i32
    %420 = tpu.dynamic_rotate %401 by %c16_i32_259 dim 0 : vector<24x128xf32>, i32 -> vector<24x128xf32>
    %421 = vector.extract_strided_slice %420 {offsets = [0, 0], sizes = [8, 128], strides = [1, 1]} : vector<24x128xf32> to vector<8x128xf32>
    %c10_260 = arith.constant 10 : index
    %c0_261 = arith.constant 0 : index
    %c0_262 = arith.constant 0 : index
    %422 = vector.load %arg2[%c10_260, %c0_261, %c0_262] : memref<49x8x128xf32, #tpu.memory_space<vmem>>, vector<1x8x128xf32>
    %423 = vector.shape_cast %422 : vector<1x8x128xf32> to vector<8x128xf32>
    %424 = arith.mulf %423, %421 : vector<8x128xf32>
    %425 = arith.addf %419, %424 : vector<8x128xf32>
    %c15_i32_263 = arith.constant 15 : i32
    %426 = tpu.dynamic_rotate %401 by %c15_i32_263 dim 0 : vector<24x128xf32>, i32 -> vector<24x128xf32>
    %427 = vector.extract_strided_slice %426 {offsets = [0, 0], sizes = [8, 128], strides = [1, 1]} : vector<24x128xf32> to vector<8x128xf32>
    %c11_264 = arith.constant 11 : index
    %c0_265 = arith.constant 0 : index
    %c0_266 = arith.constant 0 : index
    %428 = vector.load %arg2[%c11_264, %c0_265, %c0_266] : memref<49x8x128xf32, #tpu.memory_space<vmem>>, vector<1x8x128xf32>
    %429 = vector.shape_cast %428 : vector<1x8x128xf32> to vector<8x128xf32>
    %430 = arith.mulf %429, %427 : vector<8x128xf32>
    %431 = arith.addf %425, %430 : vector<8x128xf32>
    %c14_i32_267 = arith.constant 14 : i32
    %432 = tpu.dynamic_rotate %401 by %c14_i32_267 dim 0 : vector<24x128xf32>, i32 -> vector<24x128xf32>
    %433 = vector.extract_strided_slice %432 {offsets = [0, 0], sizes = [8, 128], strides = [1, 1]} : vector<24x128xf32> to vector<8x128xf32>
    %c12_268 = arith.constant 12 : index
    %c0_269 = arith.constant 0 : index
    %c0_270 = arith.constant 0 : index
    %434 = vector.load %arg2[%c12_268, %c0_269, %c0_270] : memref<49x8x128xf32, #tpu.memory_space<vmem>>, vector<1x8x128xf32>
    %435 = vector.shape_cast %434 : vector<1x8x128xf32> to vector<8x128xf32>
    %436 = arith.mulf %435, %433 : vector<8x128xf32>
    %437 = arith.addf %431, %436 : vector<8x128xf32>
    %c13_i32_271 = arith.constant 13 : i32
    %438 = tpu.dynamic_rotate %401 by %c13_i32_271 dim 0 : vector<24x128xf32>, i32 -> vector<24x128xf32>
    %439 = vector.extract_strided_slice %438 {offsets = [0, 0], sizes = [8, 128], strides = [1, 1]} : vector<24x128xf32> to vector<8x128xf32>
    %c13_272 = arith.constant 13 : index
    %c0_273 = arith.constant 0 : index
    %c0_274 = arith.constant 0 : index
    %440 = vector.load %arg2[%c13_272, %c0_273, %c0_274] : memref<49x8x128xf32, #tpu.memory_space<vmem>>, vector<1x8x128xf32>
    %441 = vector.shape_cast %440 : vector<1x8x128xf32> to vector<8x128xf32>
    %442 = arith.mulf %441, %439 : vector<8x128xf32>
    %443 = arith.addf %437, %442 : vector<8x128xf32>
    %c3_275 = arith.constant 3 : index
    %c0_276 = arith.constant 0 : index
    %c0_277 = arith.constant 0 : index
    %444 = vector.load %arg5[%c3_275, %c0_276, %c0_277] : memref<14x24x128xf32, #tpu.memory_space<vmem>>, vector<1x24x128xf32>
    %445 = vector.shape_cast %444 : vector<1x24x128xf32> to vector<24x128xf32>
    %c19_i32_278 = arith.constant 19 : i32
    %446 = tpu.dynamic_rotate %445 by %c19_i32_278 dim 0 : vector<24x128xf32>, i32 -> vector<24x128xf32>
    %447 = vector.extract_strided_slice %446 {offsets = [0, 0], sizes = [8, 128], strides = [1, 1]} : vector<24x128xf32> to vector<8x128xf32>
    %c14_279 = arith.constant 14 : index
    %c0_280 = arith.constant 0 : index
    %c0_281 = arith.constant 0 : index
    %448 = vector.load %arg2[%c14_279, %c0_280, %c0_281] : memref<49x8x128xf32, #tpu.memory_space<vmem>>, vector<1x8x128xf32>
    %449 = vector.shape_cast %448 : vector<1x8x128xf32> to vector<8x128xf32>
    %450 = arith.mulf %449, %447 : vector<8x128xf32>
    %451 = arith.addf %443, %450 : vector<8x128xf32>
    %c18_i32_282 = arith.constant 18 : i32
    %452 = tpu.dynamic_rotate %445 by %c18_i32_282 dim 0 : vector<24x128xf32>, i32 -> vector<24x128xf32>
    %453 = vector.extract_strided_slice %452 {offsets = [0, 0], sizes = [8, 128], strides = [1, 1]} : vector<24x128xf32> to vector<8x128xf32>
    %c15_283 = arith.constant 15 : index
    %c0_284 = arith.constant 0 : index
    %c0_285 = arith.constant 0 : index
    %454 = vector.load %arg2[%c15_283, %c0_284, %c0_285] : memref<49x8x128xf32, #tpu.memory_space<vmem>>, vector<1x8x128xf32>
    %455 = vector.shape_cast %454 : vector<1x8x128xf32> to vector<8x128xf32>
    %456 = arith.mulf %455, %453 : vector<8x128xf32>
    %457 = arith.addf %451, %456 : vector<8x128xf32>
    %c17_i32_286 = arith.constant 17 : i32
    %458 = tpu.dynamic_rotate %445 by %c17_i32_286 dim 0 : vector<24x128xf32>, i32 -> vector<24x128xf32>
    %459 = vector.extract_strided_slice %458 {offsets = [0, 0], sizes = [8, 128], strides = [1, 1]} : vector<24x128xf32> to vector<8x128xf32>
    %c16_287 = arith.constant 16 : index
    %c0_288 = arith.constant 0 : index
    %c0_289 = arith.constant 0 : index
    %460 = vector.load %arg2[%c16_287, %c0_288, %c0_289] : memref<49x8x128xf32, #tpu.memory_space<vmem>>, vector<1x8x128xf32>
    %461 = vector.shape_cast %460 : vector<1x8x128xf32> to vector<8x128xf32>
    %462 = arith.mulf %461, %459 : vector<8x128xf32>
    %463 = arith.addf %457, %462 : vector<8x128xf32>
    %c16_i32_290 = arith.constant 16 : i32
    %464 = tpu.dynamic_rotate %445 by %c16_i32_290 dim 0 : vector<24x128xf32>, i32 -> vector<24x128xf32>
    %465 = vector.extract_strided_slice %464 {offsets = [0, 0], sizes = [8, 128], strides = [1, 1]} : vector<24x128xf32> to vector<8x128xf32>
    %c17_291 = arith.constant 17 : index
    %c0_292 = arith.constant 0 : index
    %c0_293 = arith.constant 0 : index
    %466 = vector.load %arg2[%c17_291, %c0_292, %c0_293] : memref<49x8x128xf32, #tpu.memory_space<vmem>>, vector<1x8x128xf32>
    %467 = vector.shape_cast %466 : vector<1x8x128xf32> to vector<8x128xf32>
    %468 = arith.mulf %467, %465 : vector<8x128xf32>
    %469 = arith.addf %463, %468 : vector<8x128xf32>
    %c15_i32_294 = arith.constant 15 : i32
    %470 = tpu.dynamic_rotate %445 by %c15_i32_294 dim 0 : vector<24x128xf32>, i32 -> vector<24x128xf32>
    %471 = vector.extract_strided_slice %470 {offsets = [0, 0], sizes = [8, 128], strides = [1, 1]} : vector<24x128xf32> to vector<8x128xf32>
    %c18_295 = arith.constant 18 : index
    %c0_296 = arith.constant 0 : index
    %c0_297 = arith.constant 0 : index
    %472 = vector.load %arg2[%c18_295, %c0_296, %c0_297] : memref<49x8x128xf32, #tpu.memory_space<vmem>>, vector<1x8x128xf32>
    %473 = vector.shape_cast %472 : vector<1x8x128xf32> to vector<8x128xf32>
    %474 = arith.mulf %473, %471 : vector<8x128xf32>
    %475 = arith.addf %469, %474 : vector<8x128xf32>
    %c14_i32_298 = arith.constant 14 : i32
    %476 = tpu.dynamic_rotate %445 by %c14_i32_298 dim 0 : vector<24x128xf32>, i32 -> vector<24x128xf32>
    %477 = vector.extract_strided_slice %476 {offsets = [0, 0], sizes = [8, 128], strides = [1, 1]} : vector<24x128xf32> to vector<8x128xf32>
    %c19_299 = arith.constant 19 : index
    %c0_300 = arith.constant 0 : index
    %c0_301 = arith.constant 0 : index
    %478 = vector.load %arg2[%c19_299, %c0_300, %c0_301] : memref<49x8x128xf32, #tpu.memory_space<vmem>>, vector<1x8x128xf32>
    %479 = vector.shape_cast %478 : vector<1x8x128xf32> to vector<8x128xf32>
    %480 = arith.mulf %479, %477 : vector<8x128xf32>
    %481 = arith.addf %475, %480 : vector<8x128xf32>
    %c13_i32_302 = arith.constant 13 : i32
    %482 = tpu.dynamic_rotate %445 by %c13_i32_302 dim 0 : vector<24x128xf32>, i32 -> vector<24x128xf32>
    %483 = vector.extract_strided_slice %482 {offsets = [0, 0], sizes = [8, 128], strides = [1, 1]} : vector<24x128xf32> to vector<8x128xf32>
    %c20_303 = arith.constant 20 : index
    %c0_304 = arith.constant 0 : index
    %c0_305 = arith.constant 0 : index
    %484 = vector.load %arg2[%c20_303, %c0_304, %c0_305] : memref<49x8x128xf32, #tpu.memory_space<vmem>>, vector<1x8x128xf32>
    %485 = vector.shape_cast %484 : vector<1x8x128xf32> to vector<8x128xf32>
    %486 = arith.mulf %485, %483 : vector<8x128xf32>
    %487 = arith.addf %481, %486 : vector<8x128xf32>
    %c4_306 = arith.constant 4 : index
    %c0_307 = arith.constant 0 : index
    %c0_308 = arith.constant 0 : index
    %488 = vector.load %arg5[%c4_306, %c0_307, %c0_308] : memref<14x24x128xf32, #tpu.memory_space<vmem>>, vector<1x24x128xf32>
    %489 = vector.shape_cast %488 : vector<1x24x128xf32> to vector<24x128xf32>
    %c19_i32_309 = arith.constant 19 : i32
    %490 = tpu.dynamic_rotate %489 by %c19_i32_309 dim 0 : vector<24x128xf32>, i32 -> vector<24x128xf32>
    %491 = vector.extract_strided_slice %490 {offsets = [0, 0], sizes = [8, 128], strides = [1, 1]} : vector<24x128xf32> to vector<8x128xf32>
    %c21_310 = arith.constant 21 : index
    %c0_311 = arith.constant 0 : index
    %c0_312 = arith.constant 0 : index
    %492 = vector.load %arg2[%c21_310, %c0_311, %c0_312] : memref<49x8x128xf32, #tpu.memory_space<vmem>>, vector<1x8x128xf32>
    %493 = vector.shape_cast %492 : vector<1x8x128xf32> to vector<8x128xf32>
    %494 = arith.mulf %493, %491 : vector<8x128xf32>
    %495 = arith.addf %487, %494 : vector<8x128xf32>
    %c18_i32_313 = arith.constant 18 : i32
    %496 = tpu.dynamic_rotate %489 by %c18_i32_313 dim 0 : vector<24x128xf32>, i32 -> vector<24x128xf32>
    %497 = vector.extract_strided_slice %496 {offsets = [0, 0], sizes = [8, 128], strides = [1, 1]} : vector<24x128xf32> to vector<8x128xf32>
    %c22_314 = arith.constant 22 : index
    %c0_315 = arith.constant 0 : index
    %c0_316 = arith.constant 0 : index
    %498 = vector.load %arg2[%c22_314, %c0_315, %c0_316] : memref<49x8x128xf32, #tpu.memory_space<vmem>>, vector<1x8x128xf32>
    %499 = vector.shape_cast %498 : vector<1x8x128xf32> to vector<8x128xf32>
    %500 = arith.mulf %499, %497 : vector<8x128xf32>
    %501 = arith.addf %495, %500 : vector<8x128xf32>
    %c17_i32_317 = arith.constant 17 : i32
    %502 = tpu.dynamic_rotate %489 by %c17_i32_317 dim 0 : vector<24x128xf32>, i32 -> vector<24x128xf32>
    %503 = vector.extract_strided_slice %502 {offsets = [0, 0], sizes = [8, 128], strides = [1, 1]} : vector<24x128xf32> to vector<8x128xf32>
    %c23_318 = arith.constant 23 : index
    %c0_319 = arith.constant 0 : index
    %c0_320 = arith.constant 0 : index
    %504 = vector.load %arg2[%c23_318, %c0_319, %c0_320] : memref<49x8x128xf32, #tpu.memory_space<vmem>>, vector<1x8x128xf32>
    %505 = vector.shape_cast %504 : vector<1x8x128xf32> to vector<8x128xf32>
    %506 = arith.mulf %505, %503 : vector<8x128xf32>
    %507 = arith.addf %501, %506 : vector<8x128xf32>
    %c16_i32_321 = arith.constant 16 : i32
    %508 = tpu.dynamic_rotate %489 by %c16_i32_321 dim 0 : vector<24x128xf32>, i32 -> vector<24x128xf32>
    %509 = vector.extract_strided_slice %508 {offsets = [0, 0], sizes = [8, 128], strides = [1, 1]} : vector<24x128xf32> to vector<8x128xf32>
    %c24_322 = arith.constant 24 : index
    %c0_323 = arith.constant 0 : index
    %c0_324 = arith.constant 0 : index
    %510 = vector.load %arg2[%c24_322, %c0_323, %c0_324] : memref<49x8x128xf32, #tpu.memory_space<vmem>>, vector<1x8x128xf32>
    %511 = vector.shape_cast %510 : vector<1x8x128xf32> to vector<8x128xf32>
    %512 = arith.mulf %511, %509 : vector<8x128xf32>
    %513 = arith.addf %507, %512 : vector<8x128xf32>
    %c15_i32_325 = arith.constant 15 : i32
    %514 = tpu.dynamic_rotate %489 by %c15_i32_325 dim 0 : vector<24x128xf32>, i32 -> vector<24x128xf32>
    %515 = vector.extract_strided_slice %514 {offsets = [0, 0], sizes = [8, 128], strides = [1, 1]} : vector<24x128xf32> to vector<8x128xf32>
    %c25_326 = arith.constant 25 : index
    %c0_327 = arith.constant 0 : index
    %c0_328 = arith.constant 0 : index
    %516 = vector.load %arg2[%c25_326, %c0_327, %c0_328] : memref<49x8x128xf32, #tpu.memory_space<vmem>>, vector<1x8x128xf32>
    %517 = vector.shape_cast %516 : vector<1x8x128xf32> to vector<8x128xf32>
    %518 = arith.mulf %517, %515 : vector<8x128xf32>
    %519 = arith.addf %513, %518 : vector<8x128xf32>
    %c14_i32_329 = arith.constant 14 : i32
    %520 = tpu.dynamic_rotate %489 by %c14_i32_329 dim 0 : vector<24x128xf32>, i32 -> vector<24x128xf32>
    %521 = vector.extract_strided_slice %520 {offsets = [0, 0], sizes = [8, 128], strides = [1, 1]} : vector<24x128xf32> to vector<8x128xf32>
    %c26_330 = arith.constant 26 : index
    %c0_331 = arith.constant 0 : index
    %c0_332 = arith.constant 0 : index
    %522 = vector.load %arg2[%c26_330, %c0_331, %c0_332] : memref<49x8x128xf32, #tpu.memory_space<vmem>>, vector<1x8x128xf32>
    %523 = vector.shape_cast %522 : vector<1x8x128xf32> to vector<8x128xf32>
    %524 = arith.mulf %523, %521 : vector<8x128xf32>
    %525 = arith.addf %519, %524 : vector<8x128xf32>
    %c13_i32_333 = arith.constant 13 : i32
    %526 = tpu.dynamic_rotate %489 by %c13_i32_333 dim 0 : vector<24x128xf32>, i32 -> vector<24x128xf32>
    %527 = vector.extract_strided_slice %526 {offsets = [0, 0], sizes = [8, 128], strides = [1, 1]} : vector<24x128xf32> to vector<8x128xf32>
    %c27_334 = arith.constant 27 : index
    %c0_335 = arith.constant 0 : index
    %c0_336 = arith.constant 0 : index
    %528 = vector.load %arg2[%c27_334, %c0_335, %c0_336] : memref<49x8x128xf32, #tpu.memory_space<vmem>>, vector<1x8x128xf32>
    %529 = vector.shape_cast %528 : vector<1x8x128xf32> to vector<8x128xf32>
    %530 = arith.mulf %529, %527 : vector<8x128xf32>
    %531 = arith.addf %525, %530 : vector<8x128xf32>
    %c5_337 = arith.constant 5 : index
    %c0_338 = arith.constant 0 : index
    %c0_339 = arith.constant 0 : index
    %532 = vector.load %arg5[%c5_337, %c0_338, %c0_339] : memref<14x24x128xf32, #tpu.memory_space<vmem>>, vector<1x24x128xf32>
    %533 = vector.shape_cast %532 : vector<1x24x128xf32> to vector<24x128xf32>
    %c19_i32_340 = arith.constant 19 : i32
    %534 = tpu.dynamic_rotate %533 by %c19_i32_340 dim 0 : vector<24x128xf32>, i32 -> vector<24x128xf32>
    %535 = vector.extract_strided_slice %534 {offsets = [0, 0], sizes = [8, 128], strides = [1, 1]} : vector<24x128xf32> to vector<8x128xf32>
    %c28_341 = arith.constant 28 : index
    %c0_342 = arith.constant 0 : index
    %c0_343 = arith.constant 0 : index
    %536 = vector.load %arg2[%c28_341, %c0_342, %c0_343] : memref<49x8x128xf32, #tpu.memory_space<vmem>>, vector<1x8x128xf32>
    %537 = vector.shape_cast %536 : vector<1x8x128xf32> to vector<8x128xf32>
    %538 = arith.mulf %537, %535 : vector<8x128xf32>
    %539 = arith.addf %531, %538 : vector<8x128xf32>
    %c18_i32_344 = arith.constant 18 : i32
    %540 = tpu.dynamic_rotate %533 by %c18_i32_344 dim 0 : vector<24x128xf32>, i32 -> vector<24x128xf32>
    %541 = vector.extract_strided_slice %540 {offsets = [0, 0], sizes = [8, 128], strides = [1, 1]} : vector<24x128xf32> to vector<8x128xf32>
    %c29_345 = arith.constant 29 : index
    %c0_346 = arith.constant 0 : index
    %c0_347 = arith.constant 0 : index
    %542 = vector.load %arg2[%c29_345, %c0_346, %c0_347] : memref<49x8x128xf32, #tpu.memory_space<vmem>>, vector<1x8x128xf32>
    %543 = vector.shape_cast %542 : vector<1x8x128xf32> to vector<8x128xf32>
    %544 = arith.mulf %543, %541 : vector<8x128xf32>
    %545 = arith.addf %539, %544 : vector<8x128xf32>
    %c17_i32_348 = arith.constant 17 : i32
    %546 = tpu.dynamic_rotate %533 by %c17_i32_348 dim 0 : vector<24x128xf32>, i32 -> vector<24x128xf32>
    %547 = vector.extract_strided_slice %546 {offsets = [0, 0], sizes = [8, 128], strides = [1, 1]} : vector<24x128xf32> to vector<8x128xf32>
    %c30_349 = arith.constant 30 : index
    %c0_350 = arith.constant 0 : index
    %c0_351 = arith.constant 0 : index
    %548 = vector.load %arg2[%c30_349, %c0_350, %c0_351] : memref<49x8x128xf32, #tpu.memory_space<vmem>>, vector<1x8x128xf32>
    %549 = vector.shape_cast %548 : vector<1x8x128xf32> to vector<8x128xf32>
    %550 = arith.mulf %549, %547 : vector<8x128xf32>
    %551 = arith.addf %545, %550 : vector<8x128xf32>
    %c16_i32_352 = arith.constant 16 : i32
    %552 = tpu.dynamic_rotate %533 by %c16_i32_352 dim 0 : vector<24x128xf32>, i32 -> vector<24x128xf32>
    %553 = vector.extract_strided_slice %552 {offsets = [0, 0], sizes = [8, 128], strides = [1, 1]} : vector<24x128xf32> to vector<8x128xf32>
    %c31_353 = arith.constant 31 : index
    %c0_354 = arith.constant 0 : index
    %c0_355 = arith.constant 0 : index
    %554 = vector.load %arg2[%c31_353, %c0_354, %c0_355] : memref<49x8x128xf32, #tpu.memory_space<vmem>>, vector<1x8x128xf32>
    %555 = vector.shape_cast %554 : vector<1x8x128xf32> to vector<8x128xf32>
    %556 = arith.mulf %555, %553 : vector<8x128xf32>
    %557 = arith.addf %551, %556 : vector<8x128xf32>
    %c15_i32_356 = arith.constant 15 : i32
    %558 = tpu.dynamic_rotate %533 by %c15_i32_356 dim 0 : vector<24x128xf32>, i32 -> vector<24x128xf32>
    %559 = vector.extract_strided_slice %558 {offsets = [0, 0], sizes = [8, 128], strides = [1, 1]} : vector<24x128xf32> to vector<8x128xf32>
    %c32_357 = arith.constant 32 : index
    %c0_358 = arith.constant 0 : index
    %c0_359 = arith.constant 0 : index
    %560 = vector.load %arg2[%c32_357, %c0_358, %c0_359] : memref<49x8x128xf32, #tpu.memory_space<vmem>>, vector<1x8x128xf32>
    %561 = vector.shape_cast %560 : vector<1x8x128xf32> to vector<8x128xf32>
    %562 = arith.mulf %561, %559 : vector<8x128xf32>
    %563 = arith.addf %557, %562 : vector<8x128xf32>
    %c14_i32_360 = arith.constant 14 : i32
    %564 = tpu.dynamic_rotate %533 by %c14_i32_360 dim 0 : vector<24x128xf32>, i32 -> vector<24x128xf32>
    %565 = vector.extract_strided_slice %564 {offsets = [0, 0], sizes = [8, 128], strides = [1, 1]} : vector<24x128xf32> to vector<8x128xf32>
    %c33_361 = arith.constant 33 : index
    %c0_362 = arith.constant 0 : index
    %c0_363 = arith.constant 0 : index
    %566 = vector.load %arg2[%c33_361, %c0_362, %c0_363] : memref<49x8x128xf32, #tpu.memory_space<vmem>>, vector<1x8x128xf32>
    %567 = vector.shape_cast %566 : vector<1x8x128xf32> to vector<8x128xf32>
    %568 = arith.mulf %567, %565 : vector<8x128xf32>
    %569 = arith.addf %563, %568 : vector<8x128xf32>
    %c13_i32_364 = arith.constant 13 : i32
    %570 = tpu.dynamic_rotate %533 by %c13_i32_364 dim 0 : vector<24x128xf32>, i32 -> vector<24x128xf32>
    %571 = vector.extract_strided_slice %570 {offsets = [0, 0], sizes = [8, 128], strides = [1, 1]} : vector<24x128xf32> to vector<8x128xf32>
    %c34_365 = arith.constant 34 : index
    %c0_366 = arith.constant 0 : index
    %c0_367 = arith.constant 0 : index
    %572 = vector.load %arg2[%c34_365, %c0_366, %c0_367] : memref<49x8x128xf32, #tpu.memory_space<vmem>>, vector<1x8x128xf32>
    %573 = vector.shape_cast %572 : vector<1x8x128xf32> to vector<8x128xf32>
    %574 = arith.mulf %573, %571 : vector<8x128xf32>
    %575 = arith.addf %569, %574 : vector<8x128xf32>
    %c6_368 = arith.constant 6 : index
    %c0_369 = arith.constant 0 : index
    %c0_370 = arith.constant 0 : index
    %576 = vector.load %arg5[%c6_368, %c0_369, %c0_370] : memref<14x24x128xf32, #tpu.memory_space<vmem>>, vector<1x24x128xf32>
    %577 = vector.shape_cast %576 : vector<1x24x128xf32> to vector<24x128xf32>
    %c19_i32_371 = arith.constant 19 : i32
    %578 = tpu.dynamic_rotate %577 by %c19_i32_371 dim 0 : vector<24x128xf32>, i32 -> vector<24x128xf32>
    %579 = vector.extract_strided_slice %578 {offsets = [0, 0], sizes = [8, 128], strides = [1, 1]} : vector<24x128xf32> to vector<8x128xf32>
    %c35_372 = arith.constant 35 : index
    %c0_373 = arith.constant 0 : index
    %c0_374 = arith.constant 0 : index
    %580 = vector.load %arg2[%c35_372, %c0_373, %c0_374] : memref<49x8x128xf32, #tpu.memory_space<vmem>>, vector<1x8x128xf32>
    %581 = vector.shape_cast %580 : vector<1x8x128xf32> to vector<8x128xf32>
    %582 = arith.mulf %581, %579 : vector<8x128xf32>
    %583 = arith.addf %575, %582 : vector<8x128xf32>
    %c18_i32_375 = arith.constant 18 : i32
    %584 = tpu.dynamic_rotate %577 by %c18_i32_375 dim 0 : vector<24x128xf32>, i32 -> vector<24x128xf32>
    %585 = vector.extract_strided_slice %584 {offsets = [0, 0], sizes = [8, 128], strides = [1, 1]} : vector<24x128xf32> to vector<8x128xf32>
    %c36_376 = arith.constant 36 : index
    %c0_377 = arith.constant 0 : index
    %c0_378 = arith.constant 0 : index
    %586 = vector.load %arg2[%c36_376, %c0_377, %c0_378] : memref<49x8x128xf32, #tpu.memory_space<vmem>>, vector<1x8x128xf32>
    %587 = vector.shape_cast %586 : vector<1x8x128xf32> to vector<8x128xf32>
    %588 = arith.mulf %587, %585 : vector<8x128xf32>
    %589 = arith.addf %583, %588 : vector<8x128xf32>
    %c17_i32_379 = arith.constant 17 : i32
    %590 = tpu.dynamic_rotate %577 by %c17_i32_379 dim 0 : vector<24x128xf32>, i32 -> vector<24x128xf32>
    %591 = vector.extract_strided_slice %590 {offsets = [0, 0], sizes = [8, 128], strides = [1, 1]} : vector<24x128xf32> to vector<8x128xf32>
    %c37_380 = arith.constant 37 : index
    %c0_381 = arith.constant 0 : index
    %c0_382 = arith.constant 0 : index
    %592 = vector.load %arg2[%c37_380, %c0_381, %c0_382] : memref<49x8x128xf32, #tpu.memory_space<vmem>>, vector<1x8x128xf32>
    %593 = vector.shape_cast %592 : vector<1x8x128xf32> to vector<8x128xf32>
    %594 = arith.mulf %593, %591 : vector<8x128xf32>
    %595 = arith.addf %589, %594 : vector<8x128xf32>
    %c16_i32_383 = arith.constant 16 : i32
    %596 = tpu.dynamic_rotate %577 by %c16_i32_383 dim 0 : vector<24x128xf32>, i32 -> vector<24x128xf32>
    %597 = vector.extract_strided_slice %596 {offsets = [0, 0], sizes = [8, 128], strides = [1, 1]} : vector<24x128xf32> to vector<8x128xf32>
    %c38_384 = arith.constant 38 : index
    %c0_385 = arith.constant 0 : index
    %c0_386 = arith.constant 0 : index
    %598 = vector.load %arg2[%c38_384, %c0_385, %c0_386] : memref<49x8x128xf32, #tpu.memory_space<vmem>>, vector<1x8x128xf32>
    %599 = vector.shape_cast %598 : vector<1x8x128xf32> to vector<8x128xf32>
    %600 = arith.mulf %599, %597 : vector<8x128xf32>
    %601 = arith.addf %595, %600 : vector<8x128xf32>
    %c15_i32_387 = arith.constant 15 : i32
    %602 = tpu.dynamic_rotate %577 by %c15_i32_387 dim 0 : vector<24x128xf32>, i32 -> vector<24x128xf32>
    %603 = vector.extract_strided_slice %602 {offsets = [0, 0], sizes = [8, 128], strides = [1, 1]} : vector<24x128xf32> to vector<8x128xf32>
    %c39_388 = arith.constant 39 : index
    %c0_389 = arith.constant 0 : index
    %c0_390 = arith.constant 0 : index
    %604 = vector.load %arg2[%c39_388, %c0_389, %c0_390] : memref<49x8x128xf32, #tpu.memory_space<vmem>>, vector<1x8x128xf32>
    %605 = vector.shape_cast %604 : vector<1x8x128xf32> to vector<8x128xf32>
    %606 = arith.mulf %605, %603 : vector<8x128xf32>
    %607 = arith.addf %601, %606 : vector<8x128xf32>
    %c14_i32_391 = arith.constant 14 : i32
    %608 = tpu.dynamic_rotate %577 by %c14_i32_391 dim 0 : vector<24x128xf32>, i32 -> vector<24x128xf32>
    %609 = vector.extract_strided_slice %608 {offsets = [0, 0], sizes = [8, 128], strides = [1, 1]} : vector<24x128xf32> to vector<8x128xf32>
    %c40_392 = arith.constant 40 : index
    %c0_393 = arith.constant 0 : index
    %c0_394 = arith.constant 0 : index
    %610 = vector.load %arg2[%c40_392, %c0_393, %c0_394] : memref<49x8x128xf32, #tpu.memory_space<vmem>>, vector<1x8x128xf32>
    %611 = vector.shape_cast %610 : vector<1x8x128xf32> to vector<8x128xf32>
    %612 = arith.mulf %611, %609 : vector<8x128xf32>
    %613 = arith.addf %607, %612 : vector<8x128xf32>
    %c13_i32_395 = arith.constant 13 : i32
    %614 = tpu.dynamic_rotate %577 by %c13_i32_395 dim 0 : vector<24x128xf32>, i32 -> vector<24x128xf32>
    %615 = vector.extract_strided_slice %614 {offsets = [0, 0], sizes = [8, 128], strides = [1, 1]} : vector<24x128xf32> to vector<8x128xf32>
    %c41_396 = arith.constant 41 : index
    %c0_397 = arith.constant 0 : index
    %c0_398 = arith.constant 0 : index
    %616 = vector.load %arg2[%c41_396, %c0_397, %c0_398] : memref<49x8x128xf32, #tpu.memory_space<vmem>>, vector<1x8x128xf32>
    %617 = vector.shape_cast %616 : vector<1x8x128xf32> to vector<8x128xf32>
    %618 = arith.mulf %617, %615 : vector<8x128xf32>
    %619 = arith.addf %613, %618 : vector<8x128xf32>
    %c7_399 = arith.constant 7 : index
    %c0_400 = arith.constant 0 : index
    %c0_401 = arith.constant 0 : index
    %620 = vector.load %arg5[%c7_399, %c0_400, %c0_401] : memref<14x24x128xf32, #tpu.memory_space<vmem>>, vector<1x24x128xf32>
    %621 = vector.shape_cast %620 : vector<1x24x128xf32> to vector<24x128xf32>
    %c19_i32_402 = arith.constant 19 : i32
    %622 = tpu.dynamic_rotate %621 by %c19_i32_402 dim 0 : vector<24x128xf32>, i32 -> vector<24x128xf32>
    %623 = vector.extract_strided_slice %622 {offsets = [0, 0], sizes = [8, 128], strides = [1, 1]} : vector<24x128xf32> to vector<8x128xf32>
    %c42_403 = arith.constant 42 : index
    %c0_404 = arith.constant 0 : index
    %c0_405 = arith.constant 0 : index
    %624 = vector.load %arg2[%c42_403, %c0_404, %c0_405] : memref<49x8x128xf32, #tpu.memory_space<vmem>>, vector<1x8x128xf32>
    %625 = vector.shape_cast %624 : vector<1x8x128xf32> to vector<8x128xf32>
    %626 = arith.mulf %625, %623 : vector<8x128xf32>
    %627 = arith.addf %619, %626 : vector<8x128xf32>
    %c18_i32_406 = arith.constant 18 : i32
    %628 = tpu.dynamic_rotate %621 by %c18_i32_406 dim 0 : vector<24x128xf32>, i32 -> vector<24x128xf32>
    %629 = vector.extract_strided_slice %628 {offsets = [0, 0], sizes = [8, 128], strides = [1, 1]} : vector<24x128xf32> to vector<8x128xf32>
    %c43_407 = arith.constant 43 : index
    %c0_408 = arith.constant 0 : index
    %c0_409 = arith.constant 0 : index
    %630 = vector.load %arg2[%c43_407, %c0_408, %c0_409] : memref<49x8x128xf32, #tpu.memory_space<vmem>>, vector<1x8x128xf32>
    %631 = vector.shape_cast %630 : vector<1x8x128xf32> to vector<8x128xf32>
    %632 = arith.mulf %631, %629 : vector<8x128xf32>
    %633 = arith.addf %627, %632 : vector<8x128xf32>
    %c17_i32_410 = arith.constant 17 : i32
    %634 = tpu.dynamic_rotate %621 by %c17_i32_410 dim 0 : vector<24x128xf32>, i32 -> vector<24x128xf32>
    %635 = vector.extract_strided_slice %634 {offsets = [0, 0], sizes = [8, 128], strides = [1, 1]} : vector<24x128xf32> to vector<8x128xf32>
    %c44_411 = arith.constant 44 : index
    %c0_412 = arith.constant 0 : index
    %c0_413 = arith.constant 0 : index
    %636 = vector.load %arg2[%c44_411, %c0_412, %c0_413] : memref<49x8x128xf32, #tpu.memory_space<vmem>>, vector<1x8x128xf32>
    %637 = vector.shape_cast %636 : vector<1x8x128xf32> to vector<8x128xf32>
    %638 = arith.mulf %637, %635 : vector<8x128xf32>
    %639 = arith.addf %633, %638 : vector<8x128xf32>
    %c16_i32_414 = arith.constant 16 : i32
    %640 = tpu.dynamic_rotate %621 by %c16_i32_414 dim 0 : vector<24x128xf32>, i32 -> vector<24x128xf32>
    %641 = vector.extract_strided_slice %640 {offsets = [0, 0], sizes = [8, 128], strides = [1, 1]} : vector<24x128xf32> to vector<8x128xf32>
    %c45_415 = arith.constant 45 : index
    %c0_416 = arith.constant 0 : index
    %c0_417 = arith.constant 0 : index
    %642 = vector.load %arg2[%c45_415, %c0_416, %c0_417] : memref<49x8x128xf32, #tpu.memory_space<vmem>>, vector<1x8x128xf32>
    %643 = vector.shape_cast %642 : vector<1x8x128xf32> to vector<8x128xf32>
    %644 = arith.mulf %643, %641 : vector<8x128xf32>
    %645 = arith.addf %639, %644 : vector<8x128xf32>
    %c15_i32_418 = arith.constant 15 : i32
    %646 = tpu.dynamic_rotate %621 by %c15_i32_418 dim 0 : vector<24x128xf32>, i32 -> vector<24x128xf32>
    %647 = vector.extract_strided_slice %646 {offsets = [0, 0], sizes = [8, 128], strides = [1, 1]} : vector<24x128xf32> to vector<8x128xf32>
    %c46_419 = arith.constant 46 : index
    %c0_420 = arith.constant 0 : index
    %c0_421 = arith.constant 0 : index
    %648 = vector.load %arg2[%c46_419, %c0_420, %c0_421] : memref<49x8x128xf32, #tpu.memory_space<vmem>>, vector<1x8x128xf32>
    %649 = vector.shape_cast %648 : vector<1x8x128xf32> to vector<8x128xf32>
    %650 = arith.mulf %649, %647 : vector<8x128xf32>
    %651 = arith.addf %645, %650 : vector<8x128xf32>
    %c14_i32_422 = arith.constant 14 : i32
    %652 = tpu.dynamic_rotate %621 by %c14_i32_422 dim 0 : vector<24x128xf32>, i32 -> vector<24x128xf32>
    %653 = vector.extract_strided_slice %652 {offsets = [0, 0], sizes = [8, 128], strides = [1, 1]} : vector<24x128xf32> to vector<8x128xf32>
    %c47_423 = arith.constant 47 : index
    %c0_424 = arith.constant 0 : index
    %c0_425 = arith.constant 0 : index
    %654 = vector.load %arg2[%c47_423, %c0_424, %c0_425] : memref<49x8x128xf32, #tpu.memory_space<vmem>>, vector<1x8x128xf32>
    %655 = vector.shape_cast %654 : vector<1x8x128xf32> to vector<8x128xf32>
    %656 = arith.mulf %655, %653 : vector<8x128xf32>
    %657 = arith.addf %651, %656 : vector<8x128xf32>
    %c13_i32_426 = arith.constant 13 : i32
    %658 = tpu.dynamic_rotate %621 by %c13_i32_426 dim 0 : vector<24x128xf32>, i32 -> vector<24x128xf32>
    %659 = vector.extract_strided_slice %658 {offsets = [0, 0], sizes = [8, 128], strides = [1, 1]} : vector<24x128xf32> to vector<8x128xf32>
    %c48_427 = arith.constant 48 : index
    %c0_428 = arith.constant 0 : index
    %c0_429 = arith.constant 0 : index
    %660 = vector.load %arg2[%c48_427, %c0_428, %c0_429] : memref<49x8x128xf32, #tpu.memory_space<vmem>>, vector<1x8x128xf32>
    %661 = vector.shape_cast %660 : vector<1x8x128xf32> to vector<8x128xf32>
    %662 = arith.mulf %661, %659 : vector<8x128xf32>
    %663 = arith.addf %657, %662 : vector<8x128xf32>
    %c8_430 = arith.constant 8 : index
    %c0_431 = arith.constant 0 : index
    %664 = vector.load %arg6[%c8_430, %c0_431] : memref<64x128xf32, #tpu.memory_space<vmem>>, vector<8x128xf32>
    tpu.vector_store %arg6[%c8_430, %c0_431], %663 {strides = array<i32>} : memref<64x128xf32, #tpu.memory_space<vmem>>, vector<8x128xf32>,
    %c2_432 = arith.constant 2 : index
    %c0_433 = arith.constant 0 : index
    %c0_434 = arith.constant 0 : index
    %665 = vector.load %arg5[%c2_432, %c0_433, %c0_434] : memref<14x24x128xf32, #tpu.memory_space<vmem>>, vector<1x24x128xf32>
    %666 = vector.shape_cast %665 : vector<1x24x128xf32> to vector<24x128xf32>
    %c19_i32_435 = arith.constant 19 : i32
    %667 = tpu.dynamic_rotate %666 by %c19_i32_435 dim 0 : vector<24x128xf32>, i32 -> vector<24x128xf32>
    %668 = vector.extract_strided_slice %667 {offsets = [0, 0], sizes = [8, 128], strides = [1, 1]} : vector<24x128xf32> to vector<8x128xf32>
    %c0_436 = arith.constant 0 : index
    %c0_437 = arith.constant 0 : index
    %c0_438 = arith.constant 0 : index
    %669 = vector.load %arg2[%c0_436, %c0_437, %c0_438] : memref<49x8x128xf32, #tpu.memory_space<vmem>>, vector<1x8x128xf32>
    %670 = vector.shape_cast %669 : vector<1x8x128xf32> to vector<8x128xf32>
    %671 = arith.mulf %670, %668 : vector<8x128xf32>
    %672 = arith.addf %12, %671 : vector<8x128xf32>
    %c18_i32_439 = arith.constant 18 : i32
    %673 = tpu.dynamic_rotate %666 by %c18_i32_439 dim 0 : vector<24x128xf32>, i32 -> vector<24x128xf32>
    %674 = vector.extract_strided_slice %673 {offsets = [0, 0], sizes = [8, 128], strides = [1, 1]} : vector<24x128xf32> to vector<8x128xf32>
    %c1_440 = arith.constant 1 : index
    %c0_441 = arith.constant 0 : index
    %c0_442 = arith.constant 0 : index
    %675 = vector.load %arg2[%c1_440, %c0_441, %c0_442] : memref<49x8x128xf32, #tpu.memory_space<vmem>>, vector<1x8x128xf32>
    %676 = vector.shape_cast %675 : vector<1x8x128xf32> to vector<8x128xf32>
    %677 = arith.mulf %676, %674 : vector<8x128xf32>
    %678 = arith.addf %672, %677 : vector<8x128xf32>
    %c17_i32_443 = arith.constant 17 : i32
    %679 = tpu.dynamic_rotate %666 by %c17_i32_443 dim 0 : vector<24x128xf32>, i32 -> vector<24x128xf32>
    %680 = vector.extract_strided_slice %679 {offsets = [0, 0], sizes = [8, 128], strides = [1, 1]} : vector<24x128xf32> to vector<8x128xf32>
    %c2_444 = arith.constant 2 : index
    %c0_445 = arith.constant 0 : index
    %c0_446 = arith.constant 0 : index
    %681 = vector.load %arg2[%c2_444, %c0_445, %c0_446] : memref<49x8x128xf32, #tpu.memory_space<vmem>>, vector<1x8x128xf32>
    %682 = vector.shape_cast %681 : vector<1x8x128xf32> to vector<8x128xf32>
    %683 = arith.mulf %682, %680 : vector<8x128xf32>
    %684 = arith.addf %678, %683 : vector<8x128xf32>
    %c16_i32_447 = arith.constant 16 : i32
    %685 = tpu.dynamic_rotate %666 by %c16_i32_447 dim 0 : vector<24x128xf32>, i32 -> vector<24x128xf32>
    %686 = vector.extract_strided_slice %685 {offsets = [0, 0], sizes = [8, 128], strides = [1, 1]} : vector<24x128xf32> to vector<8x128xf32>
    %c3_448 = arith.constant 3 : index
    %c0_449 = arith.constant 0 : index
    %c0_450 = arith.constant 0 : index
    %687 = vector.load %arg2[%c3_448, %c0_449, %c0_450] : memref<49x8x128xf32, #tpu.memory_space<vmem>>, vector<1x8x128xf32>
    %688 = vector.shape_cast %687 : vector<1x8x128xf32> to vector<8x128xf32>
    %689 = arith.mulf %688, %686 : vector<8x128xf32>
    %690 = arith.addf %684, %689 : vector<8x128xf32>
    %c15_i32_451 = arith.constant 15 : i32
    %691 = tpu.dynamic_rotate %666 by %c15_i32_451 dim 0 : vector<24x128xf32>, i32 -> vector<24x128xf32>
    %692 = vector.extract_strided_slice %691 {offsets = [0, 0], sizes = [8, 128], strides = [1, 1]} : vector<24x128xf32> to vector<8x128xf32>
    %c4_452 = arith.constant 4 : index
    %c0_453 = arith.constant 0 : index
    %c0_454 = arith.constant 0 : index
    %693 = vector.load %arg2[%c4_452, %c0_453, %c0_454] : memref<49x8x128xf32, #tpu.memory_space<vmem>>, vector<1x8x128xf32>
    %694 = vector.shape_cast %693 : vector<1x8x128xf32> to vector<8x128xf32>
    %695 = arith.mulf %694, %692 : vector<8x128xf32>
    %696 = arith.addf %690, %695 : vector<8x128xf32>
    %c14_i32_455 = arith.constant 14 : i32
    %697 = tpu.dynamic_rotate %666 by %c14_i32_455 dim 0 : vector<24x128xf32>, i32 -> vector<24x128xf32>
    %698 = vector.extract_strided_slice %697 {offsets = [0, 0], sizes = [8, 128], strides = [1, 1]} : vector<24x128xf32> to vector<8x128xf32>
    %c5_456 = arith.constant 5 : index
    %c0_457 = arith.constant 0 : index
    %c0_458 = arith.constant 0 : index
    %699 = vector.load %arg2[%c5_456, %c0_457, %c0_458] : memref<49x8x128xf32, #tpu.memory_space<vmem>>, vector<1x8x128xf32>
    %700 = vector.shape_cast %699 : vector<1x8x128xf32> to vector<8x128xf32>
    %701 = arith.mulf %700, %698 : vector<8x128xf32>
    %702 = arith.addf %696, %701 : vector<8x128xf32>
    %c13_i32_459 = arith.constant 13 : i32
    %703 = tpu.dynamic_rotate %666 by %c13_i32_459 dim 0 : vector<24x128xf32>, i32 -> vector<24x128xf32>
    %704 = vector.extract_strided_slice %703 {offsets = [0, 0], sizes = [8, 128], strides = [1, 1]} : vector<24x128xf32> to vector<8x128xf32>
    %c6_460 = arith.constant 6 : index
    %c0_461 = arith.constant 0 : index
    %c0_462 = arith.constant 0 : index
    %705 = vector.load %arg2[%c6_460, %c0_461, %c0_462] : memref<49x8x128xf32, #tpu.memory_space<vmem>>, vector<1x8x128xf32>
    %706 = vector.shape_cast %705 : vector<1x8x128xf32> to vector<8x128xf32>
    %707 = arith.mulf %706, %704 : vector<8x128xf32>
    %708 = arith.addf %702, %707 : vector<8x128xf32>
    %c3_463 = arith.constant 3 : index
    %c0_464 = arith.constant 0 : index
    %c0_465 = arith.constant 0 : index
    %709 = vector.load %arg5[%c3_463, %c0_464, %c0_465] : memref<14x24x128xf32, #tpu.memory_space<vmem>>, vector<1x24x128xf32>
    %710 = vector.shape_cast %709 : vector<1x24x128xf32> to vector<24x128xf32>
    %c19_i32_466 = arith.constant 19 : i32
    %711 = tpu.dynamic_rotate %710 by %c19_i32_466 dim 0 : vector<24x128xf32>, i32 -> vector<24x128xf32>
    %712 = vector.extract_strided_slice %711 {offsets = [0, 0], sizes = [8, 128], strides = [1, 1]} : vector<24x128xf32> to vector<8x128xf32>
    %c7_467 = arith.constant 7 : index
    %c0_468 = arith.constant 0 : index
    %c0_469 = arith.constant 0 : index
    %713 = vector.load %arg2[%c7_467, %c0_468, %c0_469] : memref<49x8x128xf32, #tpu.memory_space<vmem>>, vector<1x8x128xf32>
    %714 = vector.shape_cast %713 : vector<1x8x128xf32> to vector<8x128xf32>
    %715 = arith.mulf %714, %712 : vector<8x128xf32>
    %716 = arith.addf %708, %715 : vector<8x128xf32>
    %c18_i32_470 = arith.constant 18 : i32
    %717 = tpu.dynamic_rotate %710 by %c18_i32_470 dim 0 : vector<24x128xf32>, i32 -> vector<24x128xf32>
    %718 = vector.extract_strided_slice %717 {offsets = [0, 0], sizes = [8, 128], strides = [1, 1]} : vector<24x128xf32> to vector<8x128xf32>
    %c8_471 = arith.constant 8 : index
    %c0_472 = arith.constant 0 : index
    %c0_473 = arith.constant 0 : index
    %719 = vector.load %arg2[%c8_471, %c0_472, %c0_473] : memref<49x8x128xf32, #tpu.memory_space<vmem>>, vector<1x8x128xf32>
    %720 = vector.shape_cast %719 : vector<1x8x128xf32> to vector<8x128xf32>
    %721 = arith.mulf %720, %718 : vector<8x128xf32>
    %722 = arith.addf %716, %721 : vector<8x128xf32>
    %c17_i32_474 = arith.constant 17 : i32
    %723 = tpu.dynamic_rotate %710 by %c17_i32_474 dim 0 : vector<24x128xf32>, i32 -> vector<24x128xf32>
    %724 = vector.extract_strided_slice %723 {offsets = [0, 0], sizes = [8, 128], strides = [1, 1]} : vector<24x128xf32> to vector<8x128xf32>
    %c9_475 = arith.constant 9 : index
    %c0_476 = arith.constant 0 : index
    %c0_477 = arith.constant 0 : index
    %725 = vector.load %arg2[%c9_475, %c0_476, %c0_477] : memref<49x8x128xf32, #tpu.memory_space<vmem>>, vector<1x8x128xf32>
    %726 = vector.shape_cast %725 : vector<1x8x128xf32> to vector<8x128xf32>
    %727 = arith.mulf %726, %724 : vector<8x128xf32>
    %728 = arith.addf %722, %727 : vector<8x128xf32>
    %c16_i32_478 = arith.constant 16 : i32
    %729 = tpu.dynamic_rotate %710 by %c16_i32_478 dim 0 : vector<24x128xf32>, i32 -> vector<24x128xf32>
    %730 = vector.extract_strided_slice %729 {offsets = [0, 0], sizes = [8, 128], strides = [1, 1]} : vector<24x128xf32> to vector<8x128xf32>
    %c10_479 = arith.constant 10 : index
    %c0_480 = arith.constant 0 : index
    %c0_481 = arith.constant 0 : index
    %731 = vector.load %arg2[%c10_479, %c0_480, %c0_481] : memref<49x8x128xf32, #tpu.memory_space<vmem>>, vector<1x8x128xf32>
    %732 = vector.shape_cast %731 : vector<1x8x128xf32> to vector<8x128xf32>
    %733 = arith.mulf %732, %730 : vector<8x128xf32>
    %734 = arith.addf %728, %733 : vector<8x128xf32>
    %c15_i32_482 = arith.constant 15 : i32
    %735 = tpu.dynamic_rotate %710 by %c15_i32_482 dim 0 : vector<24x128xf32>, i32 -> vector<24x128xf32>
    %736 = vector.extract_strided_slice %735 {offsets = [0, 0], sizes = [8, 128], strides = [1, 1]} : vector<24x128xf32> to vector<8x128xf32>
    %c11_483 = arith.constant 11 : index
    %c0_484 = arith.constant 0 : index
    %c0_485 = arith.constant 0 : index
    %737 = vector.load %arg2[%c11_483, %c0_484, %c0_485] : memref<49x8x128xf32, #tpu.memory_space<vmem>>, vector<1x8x128xf32>
    %738 = vector.shape_cast %737 : vector<1x8x128xf32> to vector<8x128xf32>
    %739 = arith.mulf %738, %736 : vector<8x128xf32>
    %740 = arith.addf %734, %739 : vector<8x128xf32>
    %c14_i32_486 = arith.constant 14 : i32
    %741 = tpu.dynamic_rotate %710 by %c14_i32_486 dim 0 : vector<24x128xf32>, i32 -> vector<24x128xf32>
    %742 = vector.extract_strided_slice %741 {offsets = [0, 0], sizes = [8, 128], strides = [1, 1]} : vector<24x128xf32> to vector<8x128xf32>
    %c12_487 = arith.constant 12 : index
    %c0_488 = arith.constant 0 : index
    %c0_489 = arith.constant 0 : index
    %743 = vector.load %arg2[%c12_487, %c0_488, %c0_489] : memref<49x8x128xf32, #tpu.memory_space<vmem>>, vector<1x8x128xf32>
    %744 = vector.shape_cast %743 : vector<1x8x128xf32> to vector<8x128xf32>
    %745 = arith.mulf %744, %742 : vector<8x128xf32>
    %746 = arith.addf %740, %745 : vector<8x128xf32>
    %c13_i32_490 = arith.constant 13 : i32
    %747 = tpu.dynamic_rotate %710 by %c13_i32_490 dim 0 : vector<24x128xf32>, i32 -> vector<24x128xf32>
    %748 = vector.extract_strided_slice %747 {offsets = [0, 0], sizes = [8, 128], strides = [1, 1]} : vector<24x128xf32> to vector<8x128xf32>
    %c13_491 = arith.constant 13 : index
    %c0_492 = arith.constant 0 : index
    %c0_493 = arith.constant 0 : index
    %749 = vector.load %arg2[%c13_491, %c0_492, %c0_493] : memref<49x8x128xf32, #tpu.memory_space<vmem>>, vector<1x8x128xf32>
    %750 = vector.shape_cast %749 : vector<1x8x128xf32> to vector<8x128xf32>
    %751 = arith.mulf %750, %748 : vector<8x128xf32>
    %752 = arith.addf %746, %751 : vector<8x128xf32>
    %c4_494 = arith.constant 4 : index
    %c0_495 = arith.constant 0 : index
    %c0_496 = arith.constant 0 : index
    %753 = vector.load %arg5[%c4_494, %c0_495, %c0_496] : memref<14x24x128xf32, #tpu.memory_space<vmem>>, vector<1x24x128xf32>
    %754 = vector.shape_cast %753 : vector<1x24x128xf32> to vector<24x128xf32>
    %c19_i32_497 = arith.constant 19 : i32
    %755 = tpu.dynamic_rotate %754 by %c19_i32_497 dim 0 : vector<24x128xf32>, i32 -> vector<24x128xf32>
    %756 = vector.extract_strided_slice %755 {offsets = [0, 0], sizes = [8, 128], strides = [1, 1]} : vector<24x128xf32> to vector<8x128xf32>
    %c14_498 = arith.constant 14 : index
    %c0_499 = arith.constant 0 : index
    %c0_500 = arith.constant 0 : index
    %757 = vector.load %arg2[%c14_498, %c0_499, %c0_500] : memref<49x8x128xf32, #tpu.memory_space<vmem>>, vector<1x8x128xf32>
    %758 = vector.shape_cast %757 : vector<1x8x128xf32> to vector<8x128xf32>
    %759 = arith.mulf %758, %756 : vector<8x128xf32>
    %760 = arith.addf %752, %759 : vector<8x128xf32>
    %c18_i32_501 = arith.constant 18 : i32
    %761 = tpu.dynamic_rotate %754 by %c18_i32_501 dim 0 : vector<24x128xf32>, i32 -> vector<24x128xf32>
    %762 = vector.extract_strided_slice %761 {offsets = [0, 0], sizes = [8, 128], strides = [1, 1]} : vector<24x128xf32> to vector<8x128xf32>
    %c15_502 = arith.constant 15 : index
    %c0_503 = arith.constant 0 : index
    %c0_504 = arith.constant 0 : index
    %763 = vector.load %arg2[%c15_502, %c0_503, %c0_504] : memref<49x8x128xf32, #tpu.memory_space<vmem>>, vector<1x8x128xf32>
    %764 = vector.shape_cast %763 : vector<1x8x128xf32> to vector<8x128xf32>
    %765 = arith.mulf %764, %762 : vector<8x128xf32>
    %766 = arith.addf %760, %765 : vector<8x128xf32>
    %c17_i32_505 = arith.constant 17 : i32
    %767 = tpu.dynamic_rotate %754 by %c17_i32_505 dim 0 : vector<24x128xf32>, i32 -> vector<24x128xf32>
    %768 = vector.extract_strided_slice %767 {offsets = [0, 0], sizes = [8, 128], strides = [1, 1]} : vector<24x128xf32> to vector<8x128xf32>
    %c16_506 = arith.constant 16 : index
    %c0_507 = arith.constant 0 : index
    %c0_508 = arith.constant 0 : index
    %769 = vector.load %arg2[%c16_506, %c0_507, %c0_508] : memref<49x8x128xf32, #tpu.memory_space<vmem>>, vector<1x8x128xf32>
    %770 = vector.shape_cast %769 : vector<1x8x128xf32> to vector<8x128xf32>
    %771 = arith.mulf %770, %768 : vector<8x128xf32>
    %772 = arith.addf %766, %771 : vector<8x128xf32>
    %c16_i32_509 = arith.constant 16 : i32
    %773 = tpu.dynamic_rotate %754 by %c16_i32_509 dim 0 : vector<24x128xf32>, i32 -> vector<24x128xf32>
    %774 = vector.extract_strided_slice %773 {offsets = [0, 0], sizes = [8, 128], strides = [1, 1]} : vector<24x128xf32> to vector<8x128xf32>
    %c17_510 = arith.constant 17 : index
    %c0_511 = arith.constant 0 : index
    %c0_512 = arith.constant 0 : index
    %775 = vector.load %arg2[%c17_510, %c0_511, %c0_512] : memref<49x8x128xf32, #tpu.memory_space<vmem>>, vector<1x8x128xf32>
    %776 = vector.shape_cast %775 : vector<1x8x128xf32> to vector<8x128xf32>
    %777 = arith.mulf %776, %774 : vector<8x128xf32>
    %778 = arith.addf %772, %777 : vector<8x128xf32>
    %c15_i32_513 = arith.constant 15 : i32
    %779 = tpu.dynamic_rotate %754 by %c15_i32_513 dim 0 : vector<24x128xf32>, i32 -> vector<24x128xf32>
    %780 = vector.extract_strided_slice %779 {offsets = [0, 0], sizes = [8, 128], strides = [1, 1]} : vector<24x128xf32> to vector<8x128xf32>
    %c18_514 = arith.constant 18 : index
    %c0_515 = arith.constant 0 : index
    %c0_516 = arith.constant 0 : index
    %781 = vector.load %arg2[%c18_514, %c0_515, %c0_516] : memref<49x8x128xf32, #tpu.memory_space<vmem>>, vector<1x8x128xf32>
    %782 = vector.shape_cast %781 : vector<1x8x128xf32> to vector<8x128xf32>
    %783 = arith.mulf %782, %780 : vector<8x128xf32>
    %784 = arith.addf %778, %783 : vector<8x128xf32>
    %c14_i32_517 = arith.constant 14 : i32
    %785 = tpu.dynamic_rotate %754 by %c14_i32_517 dim 0 : vector<24x128xf32>, i32 -> vector<24x128xf32>
    %786 = vector.extract_strided_slice %785 {offsets = [0, 0], sizes = [8, 128], strides = [1, 1]} : vector<24x128xf32> to vector<8x128xf32>
    %c19_518 = arith.constant 19 : index
    %c0_519 = arith.constant 0 : index
    %c0_520 = arith.constant 0 : index
    %787 = vector.load %arg2[%c19_518, %c0_519, %c0_520] : memref<49x8x128xf32, #tpu.memory_space<vmem>>, vector<1x8x128xf32>
    %788 = vector.shape_cast %787 : vector<1x8x128xf32> to vector<8x128xf32>
    %789 = arith.mulf %788, %786 : vector<8x128xf32>
    %790 = arith.addf %784, %789 : vector<8x128xf32>
    %c13_i32_521 = arith.constant 13 : i32
    %791 = tpu.dynamic_rotate %754 by %c13_i32_521 dim 0 : vector<24x128xf32>, i32 -> vector<24x128xf32>
    %792 = vector.extract_strided_slice %791 {offsets = [0, 0], sizes = [8, 128], strides = [1, 1]} : vector<24x128xf32> to vector<8x128xf32>
    %c20_522 = arith.constant 20 : index
    %c0_523 = arith.constant 0 : index
    %c0_524 = arith.constant 0 : index
    %793 = vector.load %arg2[%c20_522, %c0_523, %c0_524] : memref<49x8x128xf32, #tpu.memory_space<vmem>>, vector<1x8x128xf32>
    %794 = vector.shape_cast %793 : vector<1x8x128xf32> to vector<8x128xf32>
    %795 = arith.mulf %794, %792 : vector<8x128xf32>
    %796 = arith.addf %790, %795 : vector<8x128xf32>
    %c5_525 = arith.constant 5 : index
    %c0_526 = arith.constant 0 : index
    %c0_527 = arith.constant 0 : index
    %797 = vector.load %arg5[%c5_525, %c0_526, %c0_527] : memref<14x24x128xf32, #tpu.memory_space<vmem>>, vector<1x24x128xf32>
    %798 = vector.shape_cast %797 : vector<1x24x128xf32> to vector<24x128xf32>
    %c19_i32_528 = arith.constant 19 : i32
    %799 = tpu.dynamic_rotate %798 by %c19_i32_528 dim 0 : vector<24x128xf32>, i32 -> vector<24x128xf32>
    %800 = vector.extract_strided_slice %799 {offsets = [0, 0], sizes = [8, 128], strides = [1, 1]} : vector<24x128xf32> to vector<8x128xf32>
    %c21_529 = arith.constant 21 : index
    %c0_530 = arith.constant 0 : index
    %c0_531 = arith.constant 0 : index
    %801 = vector.load %arg2[%c21_529, %c0_530, %c0_531] : memref<49x8x128xf32, #tpu.memory_space<vmem>>, vector<1x8x128xf32>
    %802 = vector.shape_cast %801 : vector<1x8x128xf32> to vector<8x128xf32>
    %803 = arith.mulf %802, %800 : vector<8x128xf32>
    %804 = arith.addf %796, %803 : vector<8x128xf32>
    %c18_i32_532 = arith.constant 18 : i32
    %805 = tpu.dynamic_rotate %798 by %c18_i32_532 dim 0 : vector<24x128xf32>, i32 -> vector<24x128xf32>
    %806 = vector.extract_strided_slice %805 {offsets = [0, 0], sizes = [8, 128], strides = [1, 1]} : vector<24x128xf32> to vector<8x128xf32>
    %c22_533 = arith.constant 22 : index
    %c0_534 = arith.constant 0 : index
    %c0_535 = arith.constant 0 : index
    %807 = vector.load %arg2[%c22_533, %c0_534, %c0_535] : memref<49x8x128xf32, #tpu.memory_space<vmem>>, vector<1x8x128xf32>
    %808 = vector.shape_cast %807 : vector<1x8x128xf32> to vector<8x128xf32>
    %809 = arith.mulf %808, %806 : vector<8x128xf32>
    %810 = arith.addf %804, %809 : vector<8x128xf32>
    %c17_i32_536 = arith.constant 17 : i32
    %811 = tpu.dynamic_rotate %798 by %c17_i32_536 dim 0 : vector<24x128xf32>, i32 -> vector<24x128xf32>
    %812 = vector.extract_strided_slice %811 {offsets = [0, 0], sizes = [8, 128], strides = [1, 1]} : vector<24x128xf32> to vector<8x128xf32>
    %c23_537 = arith.constant 23 : index
    %c0_538 = arith.constant 0 : index
    %c0_539 = arith.constant 0 : index
    %813 = vector.load %arg2[%c23_537, %c0_538, %c0_539] : memref<49x8x128xf32, #tpu.memory_space<vmem>>, vector<1x8x128xf32>
    %814 = vector.shape_cast %813 : vector<1x8x128xf32> to vector<8x128xf32>
    %815 = arith.mulf %814, %812 : vector<8x128xf32>
    %816 = arith.addf %810, %815 : vector<8x128xf32>
    %c16_i32_540 = arith.constant 16 : i32
    %817 = tpu.dynamic_rotate %798 by %c16_i32_540 dim 0 : vector<24x128xf32>, i32 -> vector<24x128xf32>
    %818 = vector.extract_strided_slice %817 {offsets = [0, 0], sizes = [8, 128], strides = [1, 1]} : vector<24x128xf32> to vector<8x128xf32>
    %c24_541 = arith.constant 24 : index
    %c0_542 = arith.constant 0 : index
    %c0_543 = arith.constant 0 : index
    %819 = vector.load %arg2[%c24_541, %c0_542, %c0_543] : memref<49x8x128xf32, #tpu.memory_space<vmem>>, vector<1x8x128xf32>
    %820 = vector.shape_cast %819 : vector<1x8x128xf32> to vector<8x128xf32>
    %821 = arith.mulf %820, %818 : vector<8x128xf32>
    %822 = arith.addf %816, %821 : vector<8x128xf32>
    %c15_i32_544 = arith.constant 15 : i32
    %823 = tpu.dynamic_rotate %798 by %c15_i32_544 dim 0 : vector<24x128xf32>, i32 -> vector<24x128xf32>
    %824 = vector.extract_strided_slice %823 {offsets = [0, 0], sizes = [8, 128], strides = [1, 1]} : vector<24x128xf32> to vector<8x128xf32>
    %c25_545 = arith.constant 25 : index
    %c0_546 = arith.constant 0 : index
    %c0_547 = arith.constant 0 : index
    %825 = vector.load %arg2[%c25_545, %c0_546, %c0_547] : memref<49x8x128xf32, #tpu.memory_space<vmem>>, vector<1x8x128xf32>
    %826 = vector.shape_cast %825 : vector<1x8x128xf32> to vector<8x128xf32>
    %827 = arith.mulf %826, %824 : vector<8x128xf32>
    %828 = arith.addf %822, %827 : vector<8x128xf32>
    %c14_i32_548 = arith.constant 14 : i32
    %829 = tpu.dynamic_rotate %798 by %c14_i32_548 dim 0 : vector<24x128xf32>, i32 -> vector<24x128xf32>
    %830 = vector.extract_strided_slice %829 {offsets = [0, 0], sizes = [8, 128], strides = [1, 1]} : vector<24x128xf32> to vector<8x128xf32>
    %c26_549 = arith.constant 26 : index
    %c0_550 = arith.constant 0 : index
    %c0_551 = arith.constant 0 : index
    %831 = vector.load %arg2[%c26_549, %c0_550, %c0_551] : memref<49x8x128xf32, #tpu.memory_space<vmem>>, vector<1x8x128xf32>
    %832 = vector.shape_cast %831 : vector<1x8x128xf32> to vector<8x128xf32>
    %833 = arith.mulf %832, %830 : vector<8x128xf32>
    %834 = arith.addf %828, %833 : vector<8x128xf32>
    %c13_i32_552 = arith.constant 13 : i32
    %835 = tpu.dynamic_rotate %798 by %c13_i32_552 dim 0 : vector<24x128xf32>, i32 -> vector<24x128xf32>
    %836 = vector.extract_strided_slice %835 {offsets = [0, 0], sizes = [8, 128], strides = [1, 1]} : vector<24x128xf32> to vector<8x128xf32>
    %c27_553 = arith.constant 27 : index
    %c0_554 = arith.constant 0 : index
    %c0_555 = arith.constant 0 : index
    %837 = vector.load %arg2[%c27_553, %c0_554, %c0_555] : memref<49x8x128xf32, #tpu.memory_space<vmem>>, vector<1x8x128xf32>
    %838 = vector.shape_cast %837 : vector<1x8x128xf32> to vector<8x128xf32>
    %839 = arith.mulf %838, %836 : vector<8x128xf32>
    %840 = arith.addf %834, %839 : vector<8x128xf32>
    %c6_556 = arith.constant 6 : index
    %c0_557 = arith.constant 0 : index
    %c0_558 = arith.constant 0 : index
    %841 = vector.load %arg5[%c6_556, %c0_557, %c0_558] : memref<14x24x128xf32, #tpu.memory_space<vmem>>, vector<1x24x128xf32>
    %842 = vector.shape_cast %841 : vector<1x24x128xf32> to vector<24x128xf32>
    %c19_i32_559 = arith.constant 19 : i32
    %843 = tpu.dynamic_rotate %842 by %c19_i32_559 dim 0 : vector<24x128xf32>, i32 -> vector<24x128xf32>
    %844 = vector.extract_strided_slice %843 {offsets = [0, 0], sizes = [8, 128], strides = [1, 1]} : vector<24x128xf32> to vector<8x128xf32>
    %c28_560 = arith.constant 28 : index
    %c0_561 = arith.constant 0 : index
    %c0_562 = arith.constant 0 : index
    %845 = vector.load %arg2[%c28_560, %c0_561, %c0_562] : memref<49x8x128xf32, #tpu.memory_space<vmem>>, vector<1x8x128xf32>
    %846 = vector.shape_cast %845 : vector<1x8x128xf32> to vector<8x128xf32>
    %847 = arith.mulf %846, %844 : vector<8x128xf32>
    %848 = arith.addf %840, %847 : vector<8x128xf32>
    %c18_i32_563 = arith.constant 18 : i32
    %849 = tpu.dynamic_rotate %842 by %c18_i32_563 dim 0 : vector<24x128xf32>, i32 -> vector<24x128xf32>
    %850 = vector.extract_strided_slice %849 {offsets = [0, 0], sizes = [8, 128], strides = [1, 1]} : vector<24x128xf32> to vector<8x128xf32>
    %c29_564 = arith.constant 29 : index
    %c0_565 = arith.constant 0 : index
    %c0_566 = arith.constant 0 : index
    %851 = vector.load %arg2[%c29_564, %c0_565, %c0_566] : memref<49x8x128xf32, #tpu.memory_space<vmem>>, vector<1x8x128xf32>
    %852 = vector.shape_cast %851 : vector<1x8x128xf32> to vector<8x128xf32>
    %853 = arith.mulf %852, %850 : vector<8x128xf32>
    %854 = arith.addf %848, %853 : vector<8x128xf32>
    %c17_i32_567 = arith.constant 17 : i32
    %855 = tpu.dynamic_rotate %842 by %c17_i32_567 dim 0 : vector<24x128xf32>, i32 -> vector<24x128xf32>
    %856 = vector.extract_strided_slice %855 {offsets = [0, 0], sizes = [8, 128], strides = [1, 1]} : vector<24x128xf32> to vector<8x128xf32>
    %c30_568 = arith.constant 30 : index
    %c0_569 = arith.constant 0 : index
    %c0_570 = arith.constant 0 : index
    %857 = vector.load %arg2[%c30_568, %c0_569, %c0_570] : memref<49x8x128xf32, #tpu.memory_space<vmem>>, vector<1x8x128xf32>
    %858 = vector.shape_cast %857 : vector<1x8x128xf32> to vector<8x128xf32>
    %859 = arith.mulf %858, %856 : vector<8x128xf32>
    %860 = arith.addf %854, %859 : vector<8x128xf32>
    %c16_i32_571 = arith.constant 16 : i32
    %861 = tpu.dynamic_rotate %842 by %c16_i32_571 dim 0 : vector<24x128xf32>, i32 -> vector<24x128xf32>
    %862 = vector.extract_strided_slice %861 {offsets = [0, 0], sizes = [8, 128], strides = [1, 1]} : vector<24x128xf32> to vector<8x128xf32>
    %c31_572 = arith.constant 31 : index
    %c0_573 = arith.constant 0 : index
    %c0_574 = arith.constant 0 : index
    %863 = vector.load %arg2[%c31_572, %c0_573, %c0_574] : memref<49x8x128xf32, #tpu.memory_space<vmem>>, vector<1x8x128xf32>
    %864 = vector.shape_cast %863 : vector<1x8x128xf32> to vector<8x128xf32>
    %865 = arith.mulf %864, %862 : vector<8x128xf32>
    %866 = arith.addf %860, %865 : vector<8x128xf32>
    %c15_i32_575 = arith.constant 15 : i32
    %867 = tpu.dynamic_rotate %842 by %c15_i32_575 dim 0 : vector<24x128xf32>, i32 -> vector<24x128xf32>
    %868 = vector.extract_strided_slice %867 {offsets = [0, 0], sizes = [8, 128], strides = [1, 1]} : vector<24x128xf32> to vector<8x128xf32>
    %c32_576 = arith.constant 32 : index
    %c0_577 = arith.constant 0 : index
    %c0_578 = arith.constant 0 : index
    %869 = vector.load %arg2[%c32_576, %c0_577, %c0_578] : memref<49x8x128xf32, #tpu.memory_space<vmem>>, vector<1x8x128xf32>
    %870 = vector.shape_cast %869 : vector<1x8x128xf32> to vector<8x128xf32>
    %871 = arith.mulf %870, %868 : vector<8x128xf32>
    %872 = arith.addf %866, %871 : vector<8x128xf32>
    %c14_i32_579 = arith.constant 14 : i32
    %873 = tpu.dynamic_rotate %842 by %c14_i32_579 dim 0 : vector<24x128xf32>, i32 -> vector<24x128xf32>
    %874 = vector.extract_strided_slice %873 {offsets = [0, 0], sizes = [8, 128], strides = [1, 1]} : vector<24x128xf32> to vector<8x128xf32>
    %c33_580 = arith.constant 33 : index
    %c0_581 = arith.constant 0 : index
    %c0_582 = arith.constant 0 : index
    %875 = vector.load %arg2[%c33_580, %c0_581, %c0_582] : memref<49x8x128xf32, #tpu.memory_space<vmem>>, vector<1x8x128xf32>
    %876 = vector.shape_cast %875 : vector<1x8x128xf32> to vector<8x128xf32>
    %877 = arith.mulf %876, %874 : vector<8x128xf32>
    %878 = arith.addf %872, %877 : vector<8x128xf32>
    %c13_i32_583 = arith.constant 13 : i32
    %879 = tpu.dynamic_rotate %842 by %c13_i32_583 dim 0 : vector<24x128xf32>, i32 -> vector<24x128xf32>
    %880 = vector.extract_strided_slice %879 {offsets = [0, 0], sizes = [8, 128], strides = [1, 1]} : vector<24x128xf32> to vector<8x128xf32>
    %c34_584 = arith.constant 34 : index
    %c0_585 = arith.constant 0 : index
    %c0_586 = arith.constant 0 : index
    %881 = vector.load %arg2[%c34_584, %c0_585, %c0_586] : memref<49x8x128xf32, #tpu.memory_space<vmem>>, vector<1x8x128xf32>
    %882 = vector.shape_cast %881 : vector<1x8x128xf32> to vector<8x128xf32>
    %883 = arith.mulf %882, %880 : vector<8x128xf32>
    %884 = arith.addf %878, %883 : vector<8x128xf32>
    %c7_587 = arith.constant 7 : index
    %c0_588 = arith.constant 0 : index
    %c0_589 = arith.constant 0 : index
    %885 = vector.load %arg5[%c7_587, %c0_588, %c0_589] : memref<14x24x128xf32, #tpu.memory_space<vmem>>, vector<1x24x128xf32>
    %886 = vector.shape_cast %885 : vector<1x24x128xf32> to vector<24x128xf32>
    %c19_i32_590 = arith.constant 19 : i32
    %887 = tpu.dynamic_rotate %886 by %c19_i32_590 dim 0 : vector<24x128xf32>, i32 -> vector<24x128xf32>
    %888 = vector.extract_strided_slice %887 {offsets = [0, 0], sizes = [8, 128], strides = [1, 1]} : vector<24x128xf32> to vector<8x128xf32>
    %c35_591 = arith.constant 35 : index
    %c0_592 = arith.constant 0 : index
    %c0_593 = arith.constant 0 : index
    %889 = vector.load %arg2[%c35_591, %c0_592, %c0_593] : memref<49x8x128xf32, #tpu.memory_space<vmem>>, vector<1x8x128xf32>
    %890 = vector.shape_cast %889 : vector<1x8x128xf32> to vector<8x128xf32>
    %891 = arith.mulf %890, %888 : vector<8x128xf32>
    %892 = arith.addf %884, %891 : vector<8x128xf32>
    %c18_i32_594 = arith.constant 18 : i32
    %893 = tpu.dynamic_rotate %886 by %c18_i32_594 dim 0 : vector<24x128xf32>, i32 -> vector<24x128xf32>
    %894 = vector.extract_strided_slice %893 {offsets = [0, 0], sizes = [8, 128], strides = [1, 1]} : vector<24x128xf32> to vector<8x128xf32>
    %c36_595 = arith.constant 36 : index
    %c0_596 = arith.constant 0 : index
    %c0_597 = arith.constant 0 : index
    %895 = vector.load %arg2[%c36_595, %c0_596, %c0_597] : memref<49x8x128xf32, #tpu.memory_space<vmem>>, vector<1x8x128xf32>
    %896 = vector.shape_cast %895 : vector<1x8x128xf32> to vector<8x128xf32>
    %897 = arith.mulf %896, %894 : vector<8x128xf32>
    %898 = arith.addf %892, %897 : vector<8x128xf32>
    %c17_i32_598 = arith.constant 17 : i32
    %899 = tpu.dynamic_rotate %886 by %c17_i32_598 dim 0 : vector<24x128xf32>, i32 -> vector<24x128xf32>
    %900 = vector.extract_strided_slice %899 {offsets = [0, 0], sizes = [8, 128], strides = [1, 1]} : vector<24x128xf32> to vector<8x128xf32>
    %c37_599 = arith.constant 37 : index
    %c0_600 = arith.constant 0 : index
    %c0_601 = arith.constant 0 : index
    %901 = vector.load %arg2[%c37_599, %c0_600, %c0_601] : memref<49x8x128xf32, #tpu.memory_space<vmem>>, vector<1x8x128xf32>
    %902 = vector.shape_cast %901 : vector<1x8x128xf32> to vector<8x128xf32>
    %903 = arith.mulf %902, %900 : vector<8x128xf32>
    %904 = arith.addf %898, %903 : vector<8x128xf32>
    %c16_i32_602 = arith.constant 16 : i32
    %905 = tpu.dynamic_rotate %886 by %c16_i32_602 dim 0 : vector<24x128xf32>, i32 -> vector<24x128xf32>
    %906 = vector.extract_strided_slice %905 {offsets = [0, 0], sizes = [8, 128], strides = [1, 1]} : vector<24x128xf32> to vector<8x128xf32>
    %c38_603 = arith.constant 38 : index
    %c0_604 = arith.constant 0 : index
    %c0_605 = arith.constant 0 : index
    %907 = vector.load %arg2[%c38_603, %c0_604, %c0_605] : memref<49x8x128xf32, #tpu.memory_space<vmem>>, vector<1x8x128xf32>
    %908 = vector.shape_cast %907 : vector<1x8x128xf32> to vector<8x128xf32>
    %909 = arith.mulf %908, %906 : vector<8x128xf32>
    %910 = arith.addf %904, %909 : vector<8x128xf32>
    %c15_i32_606 = arith.constant 15 : i32
    %911 = tpu.dynamic_rotate %886 by %c15_i32_606 dim 0 : vector<24x128xf32>, i32 -> vector<24x128xf32>
    %912 = vector.extract_strided_slice %911 {offsets = [0, 0], sizes = [8, 128], strides = [1, 1]} : vector<24x128xf32> to vector<8x128xf32>
    %c39_607 = arith.constant 39 : index
    %c0_608 = arith.constant 0 : index
    %c0_609 = arith.constant 0 : index
    %913 = vector.load %arg2[%c39_607, %c0_608, %c0_609] : memref<49x8x128xf32, #tpu.memory_space<vmem>>, vector<1x8x128xf32>
    %914 = vector.shape_cast %913 : vector<1x8x128xf32> to vector<8x128xf32>
    %915 = arith.mulf %914, %912 : vector<8x128xf32>
    %916 = arith.addf %910, %915 : vector<8x128xf32>
    %c14_i32_610 = arith.constant 14 : i32
    %917 = tpu.dynamic_rotate %886 by %c14_i32_610 dim 0 : vector<24x128xf32>, i32 -> vector<24x128xf32>
    %918 = vector.extract_strided_slice %917 {offsets = [0, 0], sizes = [8, 128], strides = [1, 1]} : vector<24x128xf32> to vector<8x128xf32>
    %c40_611 = arith.constant 40 : index
    %c0_612 = arith.constant 0 : index
    %c0_613 = arith.constant 0 : index
    %919 = vector.load %arg2[%c40_611, %c0_612, %c0_613] : memref<49x8x128xf32, #tpu.memory_space<vmem>>, vector<1x8x128xf32>
    %920 = vector.shape_cast %919 : vector<1x8x128xf32> to vector<8x128xf32>
    %921 = arith.mulf %920, %918 : vector<8x128xf32>
    %922 = arith.addf %916, %921 : vector<8x128xf32>
    %c13_i32_614 = arith.constant 13 : i32
    %923 = tpu.dynamic_rotate %886 by %c13_i32_614 dim 0 : vector<24x128xf32>, i32 -> vector<24x128xf32>
    %924 = vector.extract_strided_slice %923 {offsets = [0, 0], sizes = [8, 128], strides = [1, 1]} : vector<24x128xf32> to vector<8x128xf32>
    %c41_615 = arith.constant 41 : index
    %c0_616 = arith.constant 0 : index
    %c0_617 = arith.constant 0 : index
    %925 = vector.load %arg2[%c41_615, %c0_616, %c0_617] : memref<49x8x128xf32, #tpu.memory_space<vmem>>, vector<1x8x128xf32>
    %926 = vector.shape_cast %925 : vector<1x8x128xf32> to vector<8x128xf32>
    %927 = arith.mulf %926, %924 : vector<8x128xf32>
    %928 = arith.addf %922, %927 : vector<8x128xf32>
    %c8_618 = arith.constant 8 : index
    %c0_619 = arith.constant 0 : index
    %c0_620 = arith.constant 0 : index
    %929 = vector.load %arg5[%c8_618, %c0_619, %c0_620] : memref<14x24x128xf32, #tpu.memory_space<vmem>>, vector<1x24x128xf32>
    %930 = vector.shape_cast %929 : vector<1x24x128xf32> to vector<24x128xf32>
    %c19_i32_621 = arith.constant 19 : i32
    %931 = tpu.dynamic_rotate %930 by %c19_i32_621 dim 0 : vector<24x128xf32>, i32 -> vector<24x128xf32>
    %932 = vector.extract_strided_slice %931 {offsets = [0, 0], sizes = [8, 128], strides = [1, 1]} : vector<24x128xf32> to vector<8x128xf32>
    %c42_622 = arith.constant 42 : index
    %c0_623 = arith.constant 0 : index
    %c0_624 = arith.constant 0 : index
    %933 = vector.load %arg2[%c42_622, %c0_623, %c0_624] : memref<49x8x128xf32, #tpu.memory_space<vmem>>, vector<1x8x128xf32>
    %934 = vector.shape_cast %933 : vector<1x8x128xf32> to vector<8x128xf32>
    %935 = arith.mulf %934, %932 : vector<8x128xf32>
    %936 = arith.addf %928, %935 : vector<8x128xf32>
    %c18_i32_625 = arith.constant 18 : i32
    %937 = tpu.dynamic_rotate %930 by %c18_i32_625 dim 0 : vector<24x128xf32>, i32 -> vector<24x128xf32>
    %938 = vector.extract_strided_slice %937 {offsets = [0, 0], sizes = [8, 128], strides = [1, 1]} : vector<24x128xf32> to vector<8x128xf32>
    %c43_626 = arith.constant 43 : index
    %c0_627 = arith.constant 0 : index
    %c0_628 = arith.constant 0 : index
    %939 = vector.load %arg2[%c43_626, %c0_627, %c0_628] : memref<49x8x128xf32, #tpu.memory_space<vmem>>, vector<1x8x128xf32>
    %940 = vector.shape_cast %939 : vector<1x8x128xf32> to vector<8x128xf32>
    %941 = arith.mulf %940, %938 : vector<8x128xf32>
    %942 = arith.addf %936, %941 : vector<8x128xf32>
    %c17_i32_629 = arith.constant 17 : i32
    %943 = tpu.dynamic_rotate %930 by %c17_i32_629 dim 0 : vector<24x128xf32>, i32 -> vector<24x128xf32>
    %944 = vector.extract_strided_slice %943 {offsets = [0, 0], sizes = [8, 128], strides = [1, 1]} : vector<24x128xf32> to vector<8x128xf32>
    %c44_630 = arith.constant 44 : index
    %c0_631 = arith.constant 0 : index
    %c0_632 = arith.constant 0 : index
    %945 = vector.load %arg2[%c44_630, %c0_631, %c0_632] : memref<49x8x128xf32, #tpu.memory_space<vmem>>, vector<1x8x128xf32>
    %946 = vector.shape_cast %945 : vector<1x8x128xf32> to vector<8x128xf32>
    %947 = arith.mulf %946, %944 : vector<8x128xf32>
    %948 = arith.addf %942, %947 : vector<8x128xf32>
    %c16_i32_633 = arith.constant 16 : i32
    %949 = tpu.dynamic_rotate %930 by %c16_i32_633 dim 0 : vector<24x128xf32>, i32 -> vector<24x128xf32>
    %950 = vector.extract_strided_slice %949 {offsets = [0, 0], sizes = [8, 128], strides = [1, 1]} : vector<24x128xf32> to vector<8x128xf32>
    %c45_634 = arith.constant 45 : index
    %c0_635 = arith.constant 0 : index
    %c0_636 = arith.constant 0 : index
    %951 = vector.load %arg2[%c45_634, %c0_635, %c0_636] : memref<49x8x128xf32, #tpu.memory_space<vmem>>, vector<1x8x128xf32>
    %952 = vector.shape_cast %951 : vector<1x8x128xf32> to vector<8x128xf32>
    %953 = arith.mulf %952, %950 : vector<8x128xf32>
    %954 = arith.addf %948, %953 : vector<8x128xf32>
    %c15_i32_637 = arith.constant 15 : i32
    %955 = tpu.dynamic_rotate %930 by %c15_i32_637 dim 0 : vector<24x128xf32>, i32 -> vector<24x128xf32>
    %956 = vector.extract_strided_slice %955 {offsets = [0, 0], sizes = [8, 128], strides = [1, 1]} : vector<24x128xf32> to vector<8x128xf32>
    %c46_638 = arith.constant 46 : index
    %c0_639 = arith.constant 0 : index
    %c0_640 = arith.constant 0 : index
    %957 = vector.load %arg2[%c46_638, %c0_639, %c0_640] : memref<49x8x128xf32, #tpu.memory_space<vmem>>, vector<1x8x128xf32>
    %958 = vector.shape_cast %957 : vector<1x8x128xf32> to vector<8x128xf32>
    %959 = arith.mulf %958, %956 : vector<8x128xf32>
    %960 = arith.addf %954, %959 : vector<8x128xf32>
    %c14_i32_641 = arith.constant 14 : i32
    %961 = tpu.dynamic_rotate %930 by %c14_i32_641 dim 0 : vector<24x128xf32>, i32 -> vector<24x128xf32>
    %962 = vector.extract_strided_slice %961 {offsets = [0, 0], sizes = [8, 128], strides = [1, 1]} : vector<24x128xf32> to vector<8x128xf32>
    %c47_642 = arith.constant 47 : index
    %c0_643 = arith.constant 0 : index
    %c0_644 = arith.constant 0 : index
    %963 = vector.load %arg2[%c47_642, %c0_643, %c0_644] : memref<49x8x128xf32, #tpu.memory_space<vmem>>, vector<1x8x128xf32>
    %964 = vector.shape_cast %963 : vector<1x8x128xf32> to vector<8x128xf32>
    %965 = arith.mulf %964, %962 : vector<8x128xf32>
    %966 = arith.addf %960, %965 : vector<8x128xf32>
    %c13_i32_645 = arith.constant 13 : i32
    %967 = tpu.dynamic_rotate %930 by %c13_i32_645 dim 0 : vector<24x128xf32>, i32 -> vector<24x128xf32>
    %968 = vector.extract_strided_slice %967 {offsets = [0, 0], sizes = [8, 128], strides = [1, 1]} : vector<24x128xf32> to vector<8x128xf32>
    %c48_646 = arith.constant 48 : index
    %c0_647 = arith.constant 0 : index
    %c0_648 = arith.constant 0 : index
    %969 = vector.load %arg2[%c48_646, %c0_647, %c0_648] : memref<49x8x128xf32, #tpu.memory_space<vmem>>, vector<1x8x128xf32>
    %970 = vector.shape_cast %969 : vector<1x8x128xf32> to vector<8x128xf32>
    %971 = arith.mulf %970, %968 : vector<8x128xf32>
    %972 = arith.addf %966, %971 : vector<8x128xf32>
    %c16_649 = arith.constant 16 : index
    %c0_650 = arith.constant 0 : index
    %973 = vector.load %arg6[%c16_649, %c0_650] : memref<64x128xf32, #tpu.memory_space<vmem>>, vector<8x128xf32>
    tpu.vector_store %arg6[%c16_649, %c0_650], %972 {strides = array<i32>} : memref<64x128xf32, #tpu.memory_space<vmem>>, vector<8x128xf32>,
    %c3_651 = arith.constant 3 : index
    %c0_652 = arith.constant 0 : index
    %c0_653 = arith.constant 0 : index
    %974 = vector.load %arg5[%c3_651, %c0_652, %c0_653] : memref<14x24x128xf32, #tpu.memory_space<vmem>>, vector<1x24x128xf32>
    %975 = vector.shape_cast %974 : vector<1x24x128xf32> to vector<24x128xf32>
    %c19_i32_654 = arith.constant 19 : i32
    %976 = tpu.dynamic_rotate %975 by %c19_i32_654 dim 0 : vector<24x128xf32>, i32 -> vector<24x128xf32>
    %977 = vector.extract_strided_slice %976 {offsets = [0, 0], sizes = [8, 128], strides = [1, 1]} : vector<24x128xf32> to vector<8x128xf32>
    %c0_655 = arith.constant 0 : index
    %c0_656 = arith.constant 0 : index
    %c0_657 = arith.constant 0 : index
    %978 = vector.load %arg2[%c0_655, %c0_656, %c0_657] : memref<49x8x128xf32, #tpu.memory_space<vmem>>, vector<1x8x128xf32>
    %979 = vector.shape_cast %978 : vector<1x8x128xf32> to vector<8x128xf32>
    %980 = arith.mulf %979, %977 : vector<8x128xf32>
    %981 = arith.addf %12, %980 : vector<8x128xf32>
    %c18_i32_658 = arith.constant 18 : i32
    %982 = tpu.dynamic_rotate %975 by %c18_i32_658 dim 0 : vector<24x128xf32>, i32 -> vector<24x128xf32>
    %983 = vector.extract_strided_slice %982 {offsets = [0, 0], sizes = [8, 128], strides = [1, 1]} : vector<24x128xf32> to vector<8x128xf32>
    %c1_659 = arith.constant 1 : index
    %c0_660 = arith.constant 0 : index
    %c0_661 = arith.constant 0 : index
    %984 = vector.load %arg2[%c1_659, %c0_660, %c0_661] : memref<49x8x128xf32, #tpu.memory_space<vmem>>, vector<1x8x128xf32>
    %985 = vector.shape_cast %984 : vector<1x8x128xf32> to vector<8x128xf32>
    %986 = arith.mulf %985, %983 : vector<8x128xf32>
    %987 = arith.addf %981, %986 : vector<8x128xf32>
    %c17_i32_662 = arith.constant 17 : i32
    %988 = tpu.dynamic_rotate %975 by %c17_i32_662 dim 0 : vector<24x128xf32>, i32 -> vector<24x128xf32>
    %989 = vector.extract_strided_slice %988 {offsets = [0, 0], sizes = [8, 128], strides = [1, 1]} : vector<24x128xf32> to vector<8x128xf32>
    %c2_663 = arith.constant 2 : index
    %c0_664 = arith.constant 0 : index
    %c0_665 = arith.constant 0 : index
    %990 = vector.load %arg2[%c2_663, %c0_664, %c0_665] : memref<49x8x128xf32, #tpu.memory_space<vmem>>, vector<1x8x128xf32>
    %991 = vector.shape_cast %990 : vector<1x8x128xf32> to vector<8x128xf32>
    %992 = arith.mulf %991, %989 : vector<8x128xf32>
    %993 = arith.addf %987, %992 : vector<8x128xf32>
    %c16_i32_666 = arith.constant 16 : i32
    %994 = tpu.dynamic_rotate %975 by %c16_i32_666 dim 0 : vector<24x128xf32>, i32 -> vector<24x128xf32>
    %995 = vector.extract_strided_slice %994 {offsets = [0, 0], sizes = [8, 128], strides = [1, 1]} : vector<24x128xf32> to vector<8x128xf32>
    %c3_667 = arith.constant 3 : index
    %c0_668 = arith.constant 0 : index
    %c0_669 = arith.constant 0 : index
    %996 = vector.load %arg2[%c3_667, %c0_668, %c0_669] : memref<49x8x128xf32, #tpu.memory_space<vmem>>, vector<1x8x128xf32>
    %997 = vector.shape_cast %996 : vector<1x8x128xf32> to vector<8x128xf32>
    %998 = arith.mulf %997, %995 : vector<8x128xf32>
    %999 = arith.addf %993, %998 : vector<8x128xf32>
    %c15_i32_670 = arith.constant 15 : i32
    %1000 = tpu.dynamic_rotate %975 by %c15_i32_670 dim 0 : vector<24x128xf32>, i32 -> vector<24x128xf32>
    %1001 = vector.extract_strided_slice %1000 {offsets = [0, 0], sizes = [8, 128], strides = [1, 1]} : vector<24x128xf32> to vector<8x128xf32>
    %c4_671 = arith.constant 4 : index
    %c0_672 = arith.constant 0 : index
    %c0_673 = arith.constant 0 : index
    %1002 = vector.load %arg2[%c4_671, %c0_672, %c0_673] : memref<49x8x128xf32, #tpu.memory_space<vmem>>, vector<1x8x128xf32>
    %1003 = vector.shape_cast %1002 : vector<1x8x128xf32> to vector<8x128xf32>
    %1004 = arith.mulf %1003, %1001 : vector<8x128xf32>
    %1005 = arith.addf %999, %1004 : vector<8x128xf32>
    %c14_i32_674 = arith.constant 14 : i32
    %1006 = tpu.dynamic_rotate %975 by %c14_i32_674 dim 0 : vector<24x128xf32>, i32 -> vector<24x128xf32>
    %1007 = vector.extract_strided_slice %1006 {offsets = [0, 0], sizes = [8, 128], strides = [1, 1]} : vector<24x128xf32> to vector<8x128xf32>
    %c5_675 = arith.constant 5 : index
    %c0_676 = arith.constant 0 : index
    %c0_677 = arith.constant 0 : index
    %1008 = vector.load %arg2[%c5_675, %c0_676, %c0_677] : memref<49x8x128xf32, #tpu.memory_space<vmem>>, vector<1x8x128xf32>
    %1009 = vector.shape_cast %1008 : vector<1x8x128xf32> to vector<8x128xf32>
    %1010 = arith.mulf %1009, %1007 : vector<8x128xf32>
    %1011 = arith.addf %1005, %1010 : vector<8x128xf32>
    %c13_i32_678 = arith.constant 13 : i32
    %1012 = tpu.dynamic_rotate %975 by %c13_i32_678 dim 0 : vector<24x128xf32>, i32 -> vector<24x128xf32>
    %1013 = vector.extract_strided_slice %1012 {offsets = [0, 0], sizes = [8, 128], strides = [1, 1]} : vector<24x128xf32> to vector<8x128xf32>
    %c6_679 = arith.constant 6 : index
    %c0_680 = arith.constant 0 : index
    %c0_681 = arith.constant 0 : index
    %1014 = vector.load %arg2[%c6_679, %c0_680, %c0_681] : memref<49x8x128xf32, #tpu.memory_space<vmem>>, vector<1x8x128xf32>
    %1015 = vector.shape_cast %1014 : vector<1x8x128xf32> to vector<8x128xf32>
    %1016 = arith.mulf %1015, %1013 : vector<8x128xf32>
    %1017 = arith.addf %1011, %1016 : vector<8x128xf32>
    %c4_682 = arith.constant 4 : index
    %c0_683 = arith.constant 0 : index
    %c0_684 = arith.constant 0 : index
    %1018 = vector.load %arg5[%c4_682, %c0_683, %c0_684] : memref<14x24x128xf32, #tpu.memory_space<vmem>>, vector<1x24x128xf32>
    %1019 = vector.shape_cast %1018 : vector<1x24x128xf32> to vector<24x128xf32>
    %c19_i32_685 = arith.constant 19 : i32
    %1020 = tpu.dynamic_rotate %1019 by %c19_i32_685 dim 0 : vector<24x128xf32>, i32 -> vector<24x128xf32>
    %1021 = vector.extract_strided_slice %1020 {offsets = [0, 0], sizes = [8, 128], strides = [1, 1]} : vector<24x128xf32> to vector<8x128xf32>
    %c7_686 = arith.constant 7 : index
    %c0_687 = arith.constant 0 : index
    %c0_688 = arith.constant 0 : index
    %1022 = vector.load %arg2[%c7_686, %c0_687, %c0_688] : memref<49x8x128xf32, #tpu.memory_space<vmem>>, vector<1x8x128xf32>
    %1023 = vector.shape_cast %1022 : vector<1x8x128xf32> to vector<8x128xf32>
    %1024 = arith.mulf %1023, %1021 : vector<8x128xf32>
    %1025 = arith.addf %1017, %1024 : vector<8x128xf32>
    %c18_i32_689 = arith.constant 18 : i32
    %1026 = tpu.dynamic_rotate %1019 by %c18_i32_689 dim 0 : vector<24x128xf32>, i32 -> vector<24x128xf32>
    %1027 = vector.extract_strided_slice %1026 {offsets = [0, 0], sizes = [8, 128], strides = [1, 1]} : vector<24x128xf32> to vector<8x128xf32>
    %c8_690 = arith.constant 8 : index
    %c0_691 = arith.constant 0 : index
    %c0_692 = arith.constant 0 : index
    %1028 = vector.load %arg2[%c8_690, %c0_691, %c0_692] : memref<49x8x128xf32, #tpu.memory_space<vmem>>, vector<1x8x128xf32>
    %1029 = vector.shape_cast %1028 : vector<1x8x128xf32> to vector<8x128xf32>
    %1030 = arith.mulf %1029, %1027 : vector<8x128xf32>
    %1031 = arith.addf %1025, %1030 : vector<8x128xf32>
    %c17_i32_693 = arith.constant 17 : i32
    %1032 = tpu.dynamic_rotate %1019 by %c17_i32_693 dim 0 : vector<24x128xf32>, i32 -> vector<24x128xf32>
    %1033 = vector.extract_strided_slice %1032 {offsets = [0, 0], sizes = [8, 128], strides = [1, 1]} : vector<24x128xf32> to vector<8x128xf32>
    %c9_694 = arith.constant 9 : index
    %c0_695 = arith.constant 0 : index
    %c0_696 = arith.constant 0 : index
    %1034 = vector.load %arg2[%c9_694, %c0_695, %c0_696] : memref<49x8x128xf32, #tpu.memory_space<vmem>>, vector<1x8x128xf32>
    %1035 = vector.shape_cast %1034 : vector<1x8x128xf32> to vector<8x128xf32>
    %1036 = arith.mulf %1035, %1033 : vector<8x128xf32>
    %1037 = arith.addf %1031, %1036 : vector<8x128xf32>
    %c16_i32_697 = arith.constant 16 : i32
    %1038 = tpu.dynamic_rotate %1019 by %c16_i32_697 dim 0 : vector<24x128xf32>, i32 -> vector<24x128xf32>
    %1039 = vector.extract_strided_slice %1038 {offsets = [0, 0], sizes = [8, 128], strides = [1, 1]} : vector<24x128xf32> to vector<8x128xf32>
    %c10_698 = arith.constant 10 : index
    %c0_699 = arith.constant 0 : index
    %c0_700 = arith.constant 0 : index
    %1040 = vector.load %arg2[%c10_698, %c0_699, %c0_700] : memref<49x8x128xf32, #tpu.memory_space<vmem>>, vector<1x8x128xf32>
    %1041 = vector.shape_cast %1040 : vector<1x8x128xf32> to vector<8x128xf32>
    %1042 = arith.mulf %1041, %1039 : vector<8x128xf32>
    %1043 = arith.addf %1037, %1042 : vector<8x128xf32>
    %c15_i32_701 = arith.constant 15 : i32
    %1044 = tpu.dynamic_rotate %1019 by %c15_i32_701 dim 0 : vector<24x128xf32>, i32 -> vector<24x128xf32>
    %1045 = vector.extract_strided_slice %1044 {offsets = [0, 0], sizes = [8, 128], strides = [1, 1]} : vector<24x128xf32> to vector<8x128xf32>
    %c11_702 = arith.constant 11 : index
    %c0_703 = arith.constant 0 : index
    %c0_704 = arith.constant 0 : index
    %1046 = vector.load %arg2[%c11_702, %c0_703, %c0_704] : memref<49x8x128xf32, #tpu.memory_space<vmem>>, vector<1x8x128xf32>
    %1047 = vector.shape_cast %1046 : vector<1x8x128xf32> to vector<8x128xf32>
    %1048 = arith.mulf %1047, %1045 : vector<8x128xf32>
    %1049 = arith.addf %1043, %1048 : vector<8x128xf32>
    %c14_i32_705 = arith.constant 14 : i32
    %1050 = tpu.dynamic_rotate %1019 by %c14_i32_705 dim 0 : vector<24x128xf32>, i32 -> vector<24x128xf32>
    %1051 = vector.extract_strided_slice %1050 {offsets = [0, 0], sizes = [8, 128], strides = [1, 1]} : vector<24x128xf32> to vector<8x128xf32>
    %c12_706 = arith.constant 12 : index
    %c0_707 = arith.constant 0 : index
    %c0_708 = arith.constant 0 : index
    %1052 = vector.load %arg2[%c12_706, %c0_707, %c0_708] : memref<49x8x128xf32, #tpu.memory_space<vmem>>, vector<1x8x128xf32>
    %1053 = vector.shape_cast %1052 : vector<1x8x128xf32> to vector<8x128xf32>
    %1054 = arith.mulf %1053, %1051 : vector<8x128xf32>
    %1055 = arith.addf %1049, %1054 : vector<8x128xf32>
    %c13_i32_709 = arith.constant 13 : i32
    %1056 = tpu.dynamic_rotate %1019 by %c13_i32_709 dim 0 : vector<24x128xf32>, i32 -> vector<24x128xf32>
    %1057 = vector.extract_strided_slice %1056 {offsets = [0, 0], sizes = [8, 128], strides = [1, 1]} : vector<24x128xf32> to vector<8x128xf32>
    %c13_710 = arith.constant 13 : index
    %c0_711 = arith.constant 0 : index
    %c0_712 = arith.constant 0 : index
    %1058 = vector.load %arg2[%c13_710, %c0_711, %c0_712] : memref<49x8x128xf32, #tpu.memory_space<vmem>>, vector<1x8x128xf32>
    %1059 = vector.shape_cast %1058 : vector<1x8x128xf32> to vector<8x128xf32>
    %1060 = arith.mulf %1059, %1057 : vector<8x128xf32>
    %1061 = arith.addf %1055, %1060 : vector<8x128xf32>
    %c5_713 = arith.constant 5 : index
    %c0_714 = arith.constant 0 : index
    %c0_715 = arith.constant 0 : index
    %1062 = vector.load %arg5[%c5_713, %c0_714, %c0_715] : memref<14x24x128xf32, #tpu.memory_space<vmem>>, vector<1x24x128xf32>
    %1063 = vector.shape_cast %1062 : vector<1x24x128xf32> to vector<24x128xf32>
    %c19_i32_716 = arith.constant 19 : i32
    %1064 = tpu.dynamic_rotate %1063 by %c19_i32_716 dim 0 : vector<24x128xf32>, i32 -> vector<24x128xf32>
    %1065 = vector.extract_strided_slice %1064 {offsets = [0, 0], sizes = [8, 128], strides = [1, 1]} : vector<24x128xf32> to vector<8x128xf32>
    %c14_717 = arith.constant 14 : index
    %c0_718 = arith.constant 0 : index
    %c0_719 = arith.constant 0 : index
    %1066 = vector.load %arg2[%c14_717, %c0_718, %c0_719] : memref<49x8x128xf32, #tpu.memory_space<vmem>>, vector<1x8x128xf32>
    %1067 = vector.shape_cast %1066 : vector<1x8x128xf32> to vector<8x128xf32>
    %1068 = arith.mulf %1067, %1065 : vector<8x128xf32>
    %1069 = arith.addf %1061, %1068 : vector<8x128xf32>
    %c18_i32_720 = arith.constant 18 : i32
    %1070 = tpu.dynamic_rotate %1063 by %c18_i32_720 dim 0 : vector<24x128xf32>, i32 -> vector<24x128xf32>
    %1071 = vector.extract_strided_slice %1070 {offsets = [0, 0], sizes = [8, 128], strides = [1, 1]} : vector<24x128xf32> to vector<8x128xf32>
    %c15_721 = arith.constant 15 : index
    %c0_722 = arith.constant 0 : index
    %c0_723 = arith.constant 0 : index
    %1072 = vector.load %arg2[%c15_721, %c0_722, %c0_723] : memref<49x8x128xf32, #tpu.memory_space<vmem>>, vector<1x8x128xf32>
    %1073 = vector.shape_cast %1072 : vector<1x8x128xf32> to vector<8x128xf32>
    %1074 = arith.mulf %1073, %1071 : vector<8x128xf32>
    %1075 = arith.addf %1069, %1074 : vector<8x128xf32>
    %c17_i32_724 = arith.constant 17 : i32
    %1076 = tpu.dynamic_rotate %1063 by %c17_i32_724 dim 0 : vector<24x128xf32>, i32 -> vector<24x128xf32>
    %1077 = vector.extract_strided_slice %1076 {offsets = [0, 0], sizes = [8, 128], strides = [1, 1]} : vector<24x128xf32> to vector<8x128xf32>
    %c16_725 = arith.constant 16 : index
    %c0_726 = arith.constant 0 : index
    %c0_727 = arith.constant 0 : index
    %1078 = vector.load %arg2[%c16_725, %c0_726, %c0_727] : memref<49x8x128xf32, #tpu.memory_space<vmem>>, vector<1x8x128xf32>
    %1079 = vector.shape_cast %1078 : vector<1x8x128xf32> to vector<8x128xf32>
    %1080 = arith.mulf %1079, %1077 : vector<8x128xf32>
    %1081 = arith.addf %1075, %1080 : vector<8x128xf32>
    %c16_i32_728 = arith.constant 16 : i32
    %1082 = tpu.dynamic_rotate %1063 by %c16_i32_728 dim 0 : vector<24x128xf32>, i32 -> vector<24x128xf32>
    %1083 = vector.extract_strided_slice %1082 {offsets = [0, 0], sizes = [8, 128], strides = [1, 1]} : vector<24x128xf32> to vector<8x128xf32>
    %c17_729 = arith.constant 17 : index
    %c0_730 = arith.constant 0 : index
    %c0_731 = arith.constant 0 : index
    %1084 = vector.load %arg2[%c17_729, %c0_730, %c0_731] : memref<49x8x128xf32, #tpu.memory_space<vmem>>, vector<1x8x128xf32>
    %1085 = vector.shape_cast %1084 : vector<1x8x128xf32> to vector<8x128xf32>
    %1086 = arith.mulf %1085, %1083 : vector<8x128xf32>
    %1087 = arith.addf %1081, %1086 : vector<8x128xf32>
    %c15_i32_732 = arith.constant 15 : i32
    %1088 = tpu.dynamic_rotate %1063 by %c15_i32_732 dim 0 : vector<24x128xf32>, i32 -> vector<24x128xf32>
    %1089 = vector.extract_strided_slice %1088 {offsets = [0, 0], sizes = [8, 128], strides = [1, 1]} : vector<24x128xf32> to vector<8x128xf32>
    %c18_733 = arith.constant 18 : index
    %c0_734 = arith.constant 0 : index
    %c0_735 = arith.constant 0 : index
    %1090 = vector.load %arg2[%c18_733, %c0_734, %c0_735] : memref<49x8x128xf32, #tpu.memory_space<vmem>>, vector<1x8x128xf32>
    %1091 = vector.shape_cast %1090 : vector<1x8x128xf32> to vector<8x128xf32>
    %1092 = arith.mulf %1091, %1089 : vector<8x128xf32>
    %1093 = arith.addf %1087, %1092 : vector<8x128xf32>
    %c14_i32_736 = arith.constant 14 : i32
    %1094 = tpu.dynamic_rotate %1063 by %c14_i32_736 dim 0 : vector<24x128xf32>, i32 -> vector<24x128xf32>
    %1095 = vector.extract_strided_slice %1094 {offsets = [0, 0], sizes = [8, 128], strides = [1, 1]} : vector<24x128xf32> to vector<8x128xf32>
    %c19_737 = arith.constant 19 : index
    %c0_738 = arith.constant 0 : index
    %c0_739 = arith.constant 0 : index
    %1096 = vector.load %arg2[%c19_737, %c0_738, %c0_739] : memref<49x8x128xf32, #tpu.memory_space<vmem>>, vector<1x8x128xf32>
    %1097 = vector.shape_cast %1096 : vector<1x8x128xf32> to vector<8x128xf32>
    %1098 = arith.mulf %1097, %1095 : vector<8x128xf32>
    %1099 = arith.addf %1093, %1098 : vector<8x128xf32>
    %c13_i32_740 = arith.constant 13 : i32
    %1100 = tpu.dynamic_rotate %1063 by %c13_i32_740 dim 0 : vector<24x128xf32>, i32 -> vector<24x128xf32>
    %1101 = vector.extract_strided_slice %1100 {offsets = [0, 0], sizes = [8, 128], strides = [1, 1]} : vector<24x128xf32> to vector<8x128xf32>
    %c20_741 = arith.constant 20 : index
    %c0_742 = arith.constant 0 : index
    %c0_743 = arith.constant 0 : index
    %1102 = vector.load %arg2[%c20_741, %c0_742, %c0_743] : memref<49x8x128xf32, #tpu.memory_space<vmem>>, vector<1x8x128xf32>
    %1103 = vector.shape_cast %1102 : vector<1x8x128xf32> to vector<8x128xf32>
    %1104 = arith.mulf %1103, %1101 : vector<8x128xf32>
    %1105 = arith.addf %1099, %1104 : vector<8x128xf32>
    %c6_744 = arith.constant 6 : index
    %c0_745 = arith.constant 0 : index
    %c0_746 = arith.constant 0 : index
    %1106 = vector.load %arg5[%c6_744, %c0_745, %c0_746] : memref<14x24x128xf32, #tpu.memory_space<vmem>>, vector<1x24x128xf32>
    %1107 = vector.shape_cast %1106 : vector<1x24x128xf32> to vector<24x128xf32>
    %c19_i32_747 = arith.constant 19 : i32
    %1108 = tpu.dynamic_rotate %1107 by %c19_i32_747 dim 0 : vector<24x128xf32>, i32 -> vector<24x128xf32>
    %1109 = vector.extract_strided_slice %1108 {offsets = [0, 0], sizes = [8, 128], strides = [1, 1]} : vector<24x128xf32> to vector<8x128xf32>
    %c21_748 = arith.constant 21 : index
    %c0_749 = arith.constant 0 : index
    %c0_750 = arith.constant 0 : index
    %1110 = vector.load %arg2[%c21_748, %c0_749, %c0_750] : memref<49x8x128xf32, #tpu.memory_space<vmem>>, vector<1x8x128xf32>
    %1111 = vector.shape_cast %1110 : vector<1x8x128xf32> to vector<8x128xf32>
    %1112 = arith.mulf %1111, %1109 : vector<8x128xf32>
    %1113 = arith.addf %1105, %1112 : vector<8x128xf32>
    %c18_i32_751 = arith.constant 18 : i32
    %1114 = tpu.dynamic_rotate %1107 by %c18_i32_751 dim 0 : vector<24x128xf32>, i32 -> vector<24x128xf32>
    %1115 = vector.extract_strided_slice %1114 {offsets = [0, 0], sizes = [8, 128], strides = [1, 1]} : vector<24x128xf32> to vector<8x128xf32>
    %c22_752 = arith.constant 22 : index
    %c0_753 = arith.constant 0 : index
    %c0_754 = arith.constant 0 : index
    %1116 = vector.load %arg2[%c22_752, %c0_753, %c0_754] : memref<49x8x128xf32, #tpu.memory_space<vmem>>, vector<1x8x128xf32>
    %1117 = vector.shape_cast %1116 : vector<1x8x128xf32> to vector<8x128xf32>
    %1118 = arith.mulf %1117, %1115 : vector<8x128xf32>
    %1119 = arith.addf %1113, %1118 : vector<8x128xf32>
    %c17_i32_755 = arith.constant 17 : i32
    %1120 = tpu.dynamic_rotate %1107 by %c17_i32_755 dim 0 : vector<24x128xf32>, i32 -> vector<24x128xf32>
    %1121 = vector.extract_strided_slice %1120 {offsets = [0, 0], sizes = [8, 128], strides = [1, 1]} : vector<24x128xf32> to vector<8x128xf32>
    %c23_756 = arith.constant 23 : index
    %c0_757 = arith.constant 0 : index
    %c0_758 = arith.constant 0 : index
    %1122 = vector.load %arg2[%c23_756, %c0_757, %c0_758] : memref<49x8x128xf32, #tpu.memory_space<vmem>>, vector<1x8x128xf32>
    %1123 = vector.shape_cast %1122 : vector<1x8x128xf32> to vector<8x128xf32>
    %1124 = arith.mulf %1123, %1121 : vector<8x128xf32>
    %1125 = arith.addf %1119, %1124 : vector<8x128xf32>
    %c16_i32_759 = arith.constant 16 : i32
    %1126 = tpu.dynamic_rotate %1107 by %c16_i32_759 dim 0 : vector<24x128xf32>, i32 -> vector<24x128xf32>
    %1127 = vector.extract_strided_slice %1126 {offsets = [0, 0], sizes = [8, 128], strides = [1, 1]} : vector<24x128xf32> to vector<8x128xf32>
    %c24_760 = arith.constant 24 : index
    %c0_761 = arith.constant 0 : index
    %c0_762 = arith.constant 0 : index
    %1128 = vector.load %arg2[%c24_760, %c0_761, %c0_762] : memref<49x8x128xf32, #tpu.memory_space<vmem>>, vector<1x8x128xf32>
    %1129 = vector.shape_cast %1128 : vector<1x8x128xf32> to vector<8x128xf32>
    %1130 = arith.mulf %1129, %1127 : vector<8x128xf32>
    %1131 = arith.addf %1125, %1130 : vector<8x128xf32>
    %c15_i32_763 = arith.constant 15 : i32
    %1132 = tpu.dynamic_rotate %1107 by %c15_i32_763 dim 0 : vector<24x128xf32>, i32 -> vector<24x128xf32>
    %1133 = vector.extract_strided_slice %1132 {offsets = [0, 0], sizes = [8, 128], strides = [1, 1]} : vector<24x128xf32> to vector<8x128xf32>
    %c25_764 = arith.constant 25 : index
    %c0_765 = arith.constant 0 : index
    %c0_766 = arith.constant 0 : index
    %1134 = vector.load %arg2[%c25_764, %c0_765, %c0_766] : memref<49x8x128xf32, #tpu.memory_space<vmem>>, vector<1x8x128xf32>
    %1135 = vector.shape_cast %1134 : vector<1x8x128xf32> to vector<8x128xf32>
    %1136 = arith.mulf %1135, %1133 : vector<8x128xf32>
    %1137 = arith.addf %1131, %1136 : vector<8x128xf32>
    %c14_i32_767 = arith.constant 14 : i32
    %1138 = tpu.dynamic_rotate %1107 by %c14_i32_767 dim 0 : vector<24x128xf32>, i32 -> vector<24x128xf32>
    %1139 = vector.extract_strided_slice %1138 {offsets = [0, 0], sizes = [8, 128], strides = [1, 1]} : vector<24x128xf32> to vector<8x128xf32>
    %c26_768 = arith.constant 26 : index
    %c0_769 = arith.constant 0 : index
    %c0_770 = arith.constant 0 : index
    %1140 = vector.load %arg2[%c26_768, %c0_769, %c0_770] : memref<49x8x128xf32, #tpu.memory_space<vmem>>, vector<1x8x128xf32>
    %1141 = vector.shape_cast %1140 : vector<1x8x128xf32> to vector<8x128xf32>
    %1142 = arith.mulf %1141, %1139 : vector<8x128xf32>
    %1143 = arith.addf %1137, %1142 : vector<8x128xf32>
    %c13_i32_771 = arith.constant 13 : i32
    %1144 = tpu.dynamic_rotate %1107 by %c13_i32_771 dim 0 : vector<24x128xf32>, i32 -> vector<24x128xf32>
    %1145 = vector.extract_strided_slice %1144 {offsets = [0, 0], sizes = [8, 128], strides = [1, 1]} : vector<24x128xf32> to vector<8x128xf32>
    %c27_772 = arith.constant 27 : index
    %c0_773 = arith.constant 0 : index
    %c0_774 = arith.constant 0 : index
    %1146 = vector.load %arg2[%c27_772, %c0_773, %c0_774] : memref<49x8x128xf32, #tpu.memory_space<vmem>>, vector<1x8x128xf32>
    %1147 = vector.shape_cast %1146 : vector<1x8x128xf32> to vector<8x128xf32>
    %1148 = arith.mulf %1147, %1145 : vector<8x128xf32>
    %1149 = arith.addf %1143, %1148 : vector<8x128xf32>
    %c7_775 = arith.constant 7 : index
    %c0_776 = arith.constant 0 : index
    %c0_777 = arith.constant 0 : index
    %1150 = vector.load %arg5[%c7_775, %c0_776, %c0_777] : memref<14x24x128xf32, #tpu.memory_space<vmem>>, vector<1x24x128xf32>
    %1151 = vector.shape_cast %1150 : vector<1x24x128xf32> to vector<24x128xf32>
    %c19_i32_778 = arith.constant 19 : i32
    %1152 = tpu.dynamic_rotate %1151 by %c19_i32_778 dim 0 : vector<24x128xf32>, i32 -> vector<24x128xf32>
    %1153 = vector.extract_strided_slice %1152 {offsets = [0, 0], sizes = [8, 128], strides = [1, 1]} : vector<24x128xf32> to vector<8x128xf32>
    %c28_779 = arith.constant 28 : index
    %c0_780 = arith.constant 0 : index
    %c0_781 = arith.constant 0 : index
    %1154 = vector.load %arg2[%c28_779, %c0_780, %c0_781] : memref<49x8x128xf32, #tpu.memory_space<vmem>>, vector<1x8x128xf32>
    %1155 = vector.shape_cast %1154 : vector<1x8x128xf32> to vector<8x128xf32>
    %1156 = arith.mulf %1155, %1153 : vector<8x128xf32>
    %1157 = arith.addf %1149, %1156 : vector<8x128xf32>
    %c18_i32_782 = arith.constant 18 : i32
    %1158 = tpu.dynamic_rotate %1151 by %c18_i32_782 dim 0 : vector<24x128xf32>, i32 -> vector<24x128xf32>
    %1159 = vector.extract_strided_slice %1158 {offsets = [0, 0], sizes = [8, 128], strides = [1, 1]} : vector<24x128xf32> to vector<8x128xf32>
    %c29_783 = arith.constant 29 : index
    %c0_784 = arith.constant 0 : index
    %c0_785 = arith.constant 0 : index
    %1160 = vector.load %arg2[%c29_783, %c0_784, %c0_785] : memref<49x8x128xf32, #tpu.memory_space<vmem>>, vector<1x8x128xf32>
    %1161 = vector.shape_cast %1160 : vector<1x8x128xf32> to vector<8x128xf32>
    %1162 = arith.mulf %1161, %1159 : vector<8x128xf32>
    %1163 = arith.addf %1157, %1162 : vector<8x128xf32>
    %c17_i32_786 = arith.constant 17 : i32
    %1164 = tpu.dynamic_rotate %1151 by %c17_i32_786 dim 0 : vector<24x128xf32>, i32 -> vector<24x128xf32>
    %1165 = vector.extract_strided_slice %1164 {offsets = [0, 0], sizes = [8, 128], strides = [1, 1]} : vector<24x128xf32> to vector<8x128xf32>
    %c30_787 = arith.constant 30 : index
    %c0_788 = arith.constant 0 : index
    %c0_789 = arith.constant 0 : index
    %1166 = vector.load %arg2[%c30_787, %c0_788, %c0_789] : memref<49x8x128xf32, #tpu.memory_space<vmem>>, vector<1x8x128xf32>
    %1167 = vector.shape_cast %1166 : vector<1x8x128xf32> to vector<8x128xf32>
    %1168 = arith.mulf %1167, %1165 : vector<8x128xf32>
    %1169 = arith.addf %1163, %1168 : vector<8x128xf32>
    %c16_i32_790 = arith.constant 16 : i32
    %1170 = tpu.dynamic_rotate %1151 by %c16_i32_790 dim 0 : vector<24x128xf32>, i32 -> vector<24x128xf32>
    %1171 = vector.extract_strided_slice %1170 {offsets = [0, 0], sizes = [8, 128], strides = [1, 1]} : vector<24x128xf32> to vector<8x128xf32>
    %c31_791 = arith.constant 31 : index
    %c0_792 = arith.constant 0 : index
    %c0_793 = arith.constant 0 : index
    %1172 = vector.load %arg2[%c31_791, %c0_792, %c0_793] : memref<49x8x128xf32, #tpu.memory_space<vmem>>, vector<1x8x128xf32>
    %1173 = vector.shape_cast %1172 : vector<1x8x128xf32> to vector<8x128xf32>
    %1174 = arith.mulf %1173, %1171 : vector<8x128xf32>
    %1175 = arith.addf %1169, %1174 : vector<8x128xf32>
    %c15_i32_794 = arith.constant 15 : i32
    %1176 = tpu.dynamic_rotate %1151 by %c15_i32_794 dim 0 : vector<24x128xf32>, i32 -> vector<24x128xf32>
    %1177 = vector.extract_strided_slice %1176 {offsets = [0, 0], sizes = [8, 128], strides = [1, 1]} : vector<24x128xf32> to vector<8x128xf32>
    %c32_795 = arith.constant 32 : index
    %c0_796 = arith.constant 0 : index
    %c0_797 = arith.constant 0 : index
    %1178 = vector.load %arg2[%c32_795, %c0_796, %c0_797] : memref<49x8x128xf32, #tpu.memory_space<vmem>>, vector<1x8x128xf32>
    %1179 = vector.shape_cast %1178 : vector<1x8x128xf32> to vector<8x128xf32>
    %1180 = arith.mulf %1179, %1177 : vector<8x128xf32>
    %1181 = arith.addf %1175, %1180 : vector<8x128xf32>
    %c14_i32_798 = arith.constant 14 : i32
    %1182 = tpu.dynamic_rotate %1151 by %c14_i32_798 dim 0 : vector<24x128xf32>, i32 -> vector<24x128xf32>
    %1183 = vector.extract_strided_slice %1182 {offsets = [0, 0], sizes = [8, 128], strides = [1, 1]} : vector<24x128xf32> to vector<8x128xf32>
    %c33_799 = arith.constant 33 : index
    %c0_800 = arith.constant 0 : index
    %c0_801 = arith.constant 0 : index
    %1184 = vector.load %arg2[%c33_799, %c0_800, %c0_801] : memref<49x8x128xf32, #tpu.memory_space<vmem>>, vector<1x8x128xf32>
    %1185 = vector.shape_cast %1184 : vector<1x8x128xf32> to vector<8x128xf32>
    %1186 = arith.mulf %1185, %1183 : vector<8x128xf32>
    %1187 = arith.addf %1181, %1186 : vector<8x128xf32>
    %c13_i32_802 = arith.constant 13 : i32
    %1188 = tpu.dynamic_rotate %1151 by %c13_i32_802 dim 0 : vector<24x128xf32>, i32 -> vector<24x128xf32>
    %1189 = vector.extract_strided_slice %1188 {offsets = [0, 0], sizes = [8, 128], strides = [1, 1]} : vector<24x128xf32> to vector<8x128xf32>
    %c34_803 = arith.constant 34 : index
    %c0_804 = arith.constant 0 : index
    %c0_805 = arith.constant 0 : index
    %1190 = vector.load %arg2[%c34_803, %c0_804, %c0_805] : memref<49x8x128xf32, #tpu.memory_space<vmem>>, vector<1x8x128xf32>
    %1191 = vector.shape_cast %1190 : vector<1x8x128xf32> to vector<8x128xf32>
    %1192 = arith.mulf %1191, %1189 : vector<8x128xf32>
    %1193 = arith.addf %1187, %1192 : vector<8x128xf32>
    %c8_806 = arith.constant 8 : index
    %c0_807 = arith.constant 0 : index
    %c0_808 = arith.constant 0 : index
    %1194 = vector.load %arg5[%c8_806, %c0_807, %c0_808] : memref<14x24x128xf32, #tpu.memory_space<vmem>>, vector<1x24x128xf32>
    %1195 = vector.shape_cast %1194 : vector<1x24x128xf32> to vector<24x128xf32>
    %c19_i32_809 = arith.constant 19 : i32
    %1196 = tpu.dynamic_rotate %1195 by %c19_i32_809 dim 0 : vector<24x128xf32>, i32 -> vector<24x128xf32>
    %1197 = vector.extract_strided_slice %1196 {offsets = [0, 0], sizes = [8, 128], strides = [1, 1]} : vector<24x128xf32> to vector<8x128xf32>
    %c35_810 = arith.constant 35 : index
    %c0_811 = arith.constant 0 : index
    %c0_812 = arith.constant 0 : index
    %1198 = vector.load %arg2[%c35_810, %c0_811, %c0_812] : memref<49x8x128xf32, #tpu.memory_space<vmem>>, vector<1x8x128xf32>
    %1199 = vector.shape_cast %1198 : vector<1x8x128xf32> to vector<8x128xf32>
    %1200 = arith.mulf %1199, %1197 : vector<8x128xf32>
    %1201 = arith.addf %1193, %1200 : vector<8x128xf32>
    %c18_i32_813 = arith.constant 18 : i32
    %1202 = tpu.dynamic_rotate %1195 by %c18_i32_813 dim 0 : vector<24x128xf32>, i32 -> vector<24x128xf32>
    %1203 = vector.extract_strided_slice %1202 {offsets = [0, 0], sizes = [8, 128], strides = [1, 1]} : vector<24x128xf32> to vector<8x128xf32>
    %c36_814 = arith.constant 36 : index
    %c0_815 = arith.constant 0 : index
    %c0_816 = arith.constant 0 : index
    %1204 = vector.load %arg2[%c36_814, %c0_815, %c0_816] : memref<49x8x128xf32, #tpu.memory_space<vmem>>, vector<1x8x128xf32>
    %1205 = vector.shape_cast %1204 : vector<1x8x128xf32> to vector<8x128xf32>
    %1206 = arith.mulf %1205, %1203 : vector<8x128xf32>
    %1207 = arith.addf %1201, %1206 : vector<8x128xf32>
    %c17_i32_817 = arith.constant 17 : i32
    %1208 = tpu.dynamic_rotate %1195 by %c17_i32_817 dim 0 : vector<24x128xf32>, i32 -> vector<24x128xf32>
    %1209 = vector.extract_strided_slice %1208 {offsets = [0, 0], sizes = [8, 128], strides = [1, 1]} : vector<24x128xf32> to vector<8x128xf32>
    %c37_818 = arith.constant 37 : index
    %c0_819 = arith.constant 0 : index
    %c0_820 = arith.constant 0 : index
    %1210 = vector.load %arg2[%c37_818, %c0_819, %c0_820] : memref<49x8x128xf32, #tpu.memory_space<vmem>>, vector<1x8x128xf32>
    %1211 = vector.shape_cast %1210 : vector<1x8x128xf32> to vector<8x128xf32>
    %1212 = arith.mulf %1211, %1209 : vector<8x128xf32>
    %1213 = arith.addf %1207, %1212 : vector<8x128xf32>
    %c16_i32_821 = arith.constant 16 : i32
    %1214 = tpu.dynamic_rotate %1195 by %c16_i32_821 dim 0 : vector<24x128xf32>, i32 -> vector<24x128xf32>
    %1215 = vector.extract_strided_slice %1214 {offsets = [0, 0], sizes = [8, 128], strides = [1, 1]} : vector<24x128xf32> to vector<8x128xf32>
    %c38_822 = arith.constant 38 : index
    %c0_823 = arith.constant 0 : index
    %c0_824 = arith.constant 0 : index
    %1216 = vector.load %arg2[%c38_822, %c0_823, %c0_824] : memref<49x8x128xf32, #tpu.memory_space<vmem>>, vector<1x8x128xf32>
    %1217 = vector.shape_cast %1216 : vector<1x8x128xf32> to vector<8x128xf32>
    %1218 = arith.mulf %1217, %1215 : vector<8x128xf32>
    %1219 = arith.addf %1213, %1218 : vector<8x128xf32>
    %c15_i32_825 = arith.constant 15 : i32
    %1220 = tpu.dynamic_rotate %1195 by %c15_i32_825 dim 0 : vector<24x128xf32>, i32 -> vector<24x128xf32>
    %1221 = vector.extract_strided_slice %1220 {offsets = [0, 0], sizes = [8, 128], strides = [1, 1]} : vector<24x128xf32> to vector<8x128xf32>
    %c39_826 = arith.constant 39 : index
    %c0_827 = arith.constant 0 : index
    %c0_828 = arith.constant 0 : index
    %1222 = vector.load %arg2[%c39_826, %c0_827, %c0_828] : memref<49x8x128xf32, #tpu.memory_space<vmem>>, vector<1x8x128xf32>
    %1223 = vector.shape_cast %1222 : vector<1x8x128xf32> to vector<8x128xf32>
    %1224 = arith.mulf %1223, %1221 : vector<8x128xf32>
    %1225 = arith.addf %1219, %1224 : vector<8x128xf32>
    %c14_i32_829 = arith.constant 14 : i32
    %1226 = tpu.dynamic_rotate %1195 by %c14_i32_829 dim 0 : vector<24x128xf32>, i32 -> vector<24x128xf32>
    %1227 = vector.extract_strided_slice %1226 {offsets = [0, 0], sizes = [8, 128], strides = [1, 1]} : vector<24x128xf32> to vector<8x128xf32>
    %c40_830 = arith.constant 40 : index
    %c0_831 = arith.constant 0 : index
    %c0_832 = arith.constant 0 : index
    %1228 = vector.load %arg2[%c40_830, %c0_831, %c0_832] : memref<49x8x128xf32, #tpu.memory_space<vmem>>, vector<1x8x128xf32>
    %1229 = vector.shape_cast %1228 : vector<1x8x128xf32> to vector<8x128xf32>
    %1230 = arith.mulf %1229, %1227 : vector<8x128xf32>
    %1231 = arith.addf %1225, %1230 : vector<8x128xf32>
    %c13_i32_833 = arith.constant 13 : i32
    %1232 = tpu.dynamic_rotate %1195 by %c13_i32_833 dim 0 : vector<24x128xf32>, i32 -> vector<24x128xf32>
    %1233 = vector.extract_strided_slice %1232 {offsets = [0, 0], sizes = [8, 128], strides = [1, 1]} : vector<24x128xf32> to vector<8x128xf32>
    %c41_834 = arith.constant 41 : index
    %c0_835 = arith.constant 0 : index
    %c0_836 = arith.constant 0 : index
    %1234 = vector.load %arg2[%c41_834, %c0_835, %c0_836] : memref<49x8x128xf32, #tpu.memory_space<vmem>>, vector<1x8x128xf32>
    %1235 = vector.shape_cast %1234 : vector<1x8x128xf32> to vector<8x128xf32>
    %1236 = arith.mulf %1235, %1233 : vector<8x128xf32>
    %1237 = arith.addf %1231, %1236 : vector<8x128xf32>
    %c9_837 = arith.constant 9 : index
    %c0_838 = arith.constant 0 : index
    %c0_839 = arith.constant 0 : index
    %1238 = vector.load %arg5[%c9_837, %c0_838, %c0_839] : memref<14x24x128xf32, #tpu.memory_space<vmem>>, vector<1x24x128xf32>
    %1239 = vector.shape_cast %1238 : vector<1x24x128xf32> to vector<24x128xf32>
    %c19_i32_840 = arith.constant 19 : i32
    %1240 = tpu.dynamic_rotate %1239 by %c19_i32_840 dim 0 : vector<24x128xf32>, i32 -> vector<24x128xf32>
    %1241 = vector.extract_strided_slice %1240 {offsets = [0, 0], sizes = [8, 128], strides = [1, 1]} : vector<24x128xf32> to vector<8x128xf32>
    %c42_841 = arith.constant 42 : index
    %c0_842 = arith.constant 0 : index
    %c0_843 = arith.constant 0 : index
    %1242 = vector.load %arg2[%c42_841, %c0_842, %c0_843] : memref<49x8x128xf32, #tpu.memory_space<vmem>>, vector<1x8x128xf32>
    %1243 = vector.shape_cast %1242 : vector<1x8x128xf32> to vector<8x128xf32>
    %1244 = arith.mulf %1243, %1241 : vector<8x128xf32>
    %1245 = arith.addf %1237, %1244 : vector<8x128xf32>
    %c18_i32_844 = arith.constant 18 : i32
    %1246 = tpu.dynamic_rotate %1239 by %c18_i32_844 dim 0 : vector<24x128xf32>, i32 -> vector<24x128xf32>
    %1247 = vector.extract_strided_slice %1246 {offsets = [0, 0], sizes = [8, 128], strides = [1, 1]} : vector<24x128xf32> to vector<8x128xf32>
    %c43_845 = arith.constant 43 : index
    %c0_846 = arith.constant 0 : index
    %c0_847 = arith.constant 0 : index
    %1248 = vector.load %arg2[%c43_845, %c0_846, %c0_847] : memref<49x8x128xf32, #tpu.memory_space<vmem>>, vector<1x8x128xf32>
    %1249 = vector.shape_cast %1248 : vector<1x8x128xf32> to vector<8x128xf32>
    %1250 = arith.mulf %1249, %1247 : vector<8x128xf32>
    %1251 = arith.addf %1245, %1250 : vector<8x128xf32>
    %c17_i32_848 = arith.constant 17 : i32
    %1252 = tpu.dynamic_rotate %1239 by %c17_i32_848 dim 0 : vector<24x128xf32>, i32 -> vector<24x128xf32>
    %1253 = vector.extract_strided_slice %1252 {offsets = [0, 0], sizes = [8, 128], strides = [1, 1]} : vector<24x128xf32> to vector<8x128xf32>
    %c44_849 = arith.constant 44 : index
    %c0_850 = arith.constant 0 : index
    %c0_851 = arith.constant 0 : index
    %1254 = vector.load %arg2[%c44_849, %c0_850, %c0_851] : memref<49x8x128xf32, #tpu.memory_space<vmem>>, vector<1x8x128xf32>
    %1255 = vector.shape_cast %1254 : vector<1x8x128xf32> to vector<8x128xf32>
    %1256 = arith.mulf %1255, %1253 : vector<8x128xf32>
    %1257 = arith.addf %1251, %1256 : vector<8x128xf32>
    %c16_i32_852 = arith.constant 16 : i32
    %1258 = tpu.dynamic_rotate %1239 by %c16_i32_852 dim 0 : vector<24x128xf32>, i32 -> vector<24x128xf32>
    %1259 = vector.extract_strided_slice %1258 {offsets = [0, 0], sizes = [8, 128], strides = [1, 1]} : vector<24x128xf32> to vector<8x128xf32>
    %c45_853 = arith.constant 45 : index
    %c0_854 = arith.constant 0 : index
    %c0_855 = arith.constant 0 : index
    %1260 = vector.load %arg2[%c45_853, %c0_854, %c0_855] : memref<49x8x128xf32, #tpu.memory_space<vmem>>, vector<1x8x128xf32>
    %1261 = vector.shape_cast %1260 : vector<1x8x128xf32> to vector<8x128xf32>
    %1262 = arith.mulf %1261, %1259 : vector<8x128xf32>
    %1263 = arith.addf %1257, %1262 : vector<8x128xf32>
    %c15_i32_856 = arith.constant 15 : i32
    %1264 = tpu.dynamic_rotate %1239 by %c15_i32_856 dim 0 : vector<24x128xf32>, i32 -> vector<24x128xf32>
    %1265 = vector.extract_strided_slice %1264 {offsets = [0, 0], sizes = [8, 128], strides = [1, 1]} : vector<24x128xf32> to vector<8x128xf32>
    %c46_857 = arith.constant 46 : index
    %c0_858 = arith.constant 0 : index
    %c0_859 = arith.constant 0 : index
    %1266 = vector.load %arg2[%c46_857, %c0_858, %c0_859] : memref<49x8x128xf32, #tpu.memory_space<vmem>>, vector<1x8x128xf32>
    %1267 = vector.shape_cast %1266 : vector<1x8x128xf32> to vector<8x128xf32>
    %1268 = arith.mulf %1267, %1265 : vector<8x128xf32>
    %1269 = arith.addf %1263, %1268 : vector<8x128xf32>
    %c14_i32_860 = arith.constant 14 : i32
    %1270 = tpu.dynamic_rotate %1239 by %c14_i32_860 dim 0 : vector<24x128xf32>, i32 -> vector<24x128xf32>
    %1271 = vector.extract_strided_slice %1270 {offsets = [0, 0], sizes = [8, 128], strides = [1, 1]} : vector<24x128xf32> to vector<8x128xf32>
    %c47_861 = arith.constant 47 : index
    %c0_862 = arith.constant 0 : index
    %c0_863 = arith.constant 0 : index
    %1272 = vector.load %arg2[%c47_861, %c0_862, %c0_863] : memref<49x8x128xf32, #tpu.memory_space<vmem>>, vector<1x8x128xf32>
    %1273 = vector.shape_cast %1272 : vector<1x8x128xf32> to vector<8x128xf32>
    %1274 = arith.mulf %1273, %1271 : vector<8x128xf32>
    %1275 = arith.addf %1269, %1274 : vector<8x128xf32>
    %c13_i32_864 = arith.constant 13 : i32
    %1276 = tpu.dynamic_rotate %1239 by %c13_i32_864 dim 0 : vector<24x128xf32>, i32 -> vector<24x128xf32>
    %1277 = vector.extract_strided_slice %1276 {offsets = [0, 0], sizes = [8, 128], strides = [1, 1]} : vector<24x128xf32> to vector<8x128xf32>
    %c48_865 = arith.constant 48 : index
    %c0_866 = arith.constant 0 : index
    %c0_867 = arith.constant 0 : index
    %1278 = vector.load %arg2[%c48_865, %c0_866, %c0_867] : memref<49x8x128xf32, #tpu.memory_space<vmem>>, vector<1x8x128xf32>
    %1279 = vector.shape_cast %1278 : vector<1x8x128xf32> to vector<8x128xf32>
    %1280 = arith.mulf %1279, %1277 : vector<8x128xf32>
    %1281 = arith.addf %1275, %1280 : vector<8x128xf32>
    %c24_868 = arith.constant 24 : index
    %c0_869 = arith.constant 0 : index
    %1282 = vector.load %arg6[%c24_868, %c0_869] : memref<64x128xf32, #tpu.memory_space<vmem>>, vector<8x128xf32>
    tpu.vector_store %arg6[%c24_868, %c0_869], %1281 {strides = array<i32>} : memref<64x128xf32, #tpu.memory_space<vmem>>, vector<8x128xf32>,
    %c4_870 = arith.constant 4 : index
    %c0_871 = arith.constant 0 : index
    %c0_872 = arith.constant 0 : index
    %1283 = vector.load %arg5[%c4_870, %c0_871, %c0_872] : memref<14x24x128xf32, #tpu.memory_space<vmem>>, vector<1x24x128xf32>
    %1284 = vector.shape_cast %1283 : vector<1x24x128xf32> to vector<24x128xf32>
    %c19_i32_873 = arith.constant 19 : i32
    %1285 = tpu.dynamic_rotate %1284 by %c19_i32_873 dim 0 : vector<24x128xf32>, i32 -> vector<24x128xf32>
    %1286 = vector.extract_strided_slice %1285 {offsets = [0, 0], sizes = [8, 128], strides = [1, 1]} : vector<24x128xf32> to vector<8x128xf32>
    %c0_874 = arith.constant 0 : index
    %c0_875 = arith.constant 0 : index
    %c0_876 = arith.constant 0 : index
    %1287 = vector.load %arg2[%c0_874, %c0_875, %c0_876] : memref<49x8x128xf32, #tpu.memory_space<vmem>>, vector<1x8x128xf32>
    %1288 = vector.shape_cast %1287 : vector<1x8x128xf32> to vector<8x128xf32>
    %1289 = arith.mulf %1288, %1286 : vector<8x128xf32>
    %1290 = arith.addf %12, %1289 : vector<8x128xf32>
    %c18_i32_877 = arith.constant 18 : i32
    %1291 = tpu.dynamic_rotate %1284 by %c18_i32_877 dim 0 : vector<24x128xf32>, i32 -> vector<24x128xf32>
    %1292 = vector.extract_strided_slice %1291 {offsets = [0, 0], sizes = [8, 128], strides = [1, 1]} : vector<24x128xf32> to vector<8x128xf32>
    %c1_878 = arith.constant 1 : index
    %c0_879 = arith.constant 0 : index
    %c0_880 = arith.constant 0 : index
    %1293 = vector.load %arg2[%c1_878, %c0_879, %c0_880] : memref<49x8x128xf32, #tpu.memory_space<vmem>>, vector<1x8x128xf32>
    %1294 = vector.shape_cast %1293 : vector<1x8x128xf32> to vector<8x128xf32>
    %1295 = arith.mulf %1294, %1292 : vector<8x128xf32>
    %1296 = arith.addf %1290, %1295 : vector<8x128xf32>
    %c17_i32_881 = arith.constant 17 : i32
    %1297 = tpu.dynamic_rotate %1284 by %c17_i32_881 dim 0 : vector<24x128xf32>, i32 -> vector<24x128xf32>
    %1298 = vector.extract_strided_slice %1297 {offsets = [0, 0], sizes = [8, 128], strides = [1, 1]} : vector<24x128xf32> to vector<8x128xf32>
    %c2_882 = arith.constant 2 : index
    %c0_883 = arith.constant 0 : index
    %c0_884 = arith.constant 0 : index
    %1299 = vector.load %arg2[%c2_882, %c0_883, %c0_884] : memref<49x8x128xf32, #tpu.memory_space<vmem>>, vector<1x8x128xf32>
    %1300 = vector.shape_cast %1299 : vector<1x8x128xf32> to vector<8x128xf32>
    %1301 = arith.mulf %1300, %1298 : vector<8x128xf32>
    %1302 = arith.addf %1296, %1301 : vector<8x128xf32>
    %c16_i32_885 = arith.constant 16 : i32
    %1303 = tpu.dynamic_rotate %1284 by %c16_i32_885 dim 0 : vector<24x128xf32>, i32 -> vector<24x128xf32>
    %1304 = vector.extract_strided_slice %1303 {offsets = [0, 0], sizes = [8, 128], strides = [1, 1]} : vector<24x128xf32> to vector<8x128xf32>
    %c3_886 = arith.constant 3 : index
    %c0_887 = arith.constant 0 : index
    %c0_888 = arith.constant 0 : index
    %1305 = vector.load %arg2[%c3_886, %c0_887, %c0_888] : memref<49x8x128xf32, #tpu.memory_space<vmem>>, vector<1x8x128xf32>
    %1306 = vector.shape_cast %1305 : vector<1x8x128xf32> to vector<8x128xf32>
    %1307 = arith.mulf %1306, %1304 : vector<8x128xf32>
    %1308 = arith.addf %1302, %1307 : vector<8x128xf32>
    %c15_i32_889 = arith.constant 15 : i32
    %1309 = tpu.dynamic_rotate %1284 by %c15_i32_889 dim 0 : vector<24x128xf32>, i32 -> vector<24x128xf32>
    %1310 = vector.extract_strided_slice %1309 {offsets = [0, 0], sizes = [8, 128], strides = [1, 1]} : vector<24x128xf32> to vector<8x128xf32>
    %c4_890 = arith.constant 4 : index
    %c0_891 = arith.constant 0 : index
    %c0_892 = arith.constant 0 : index
    %1311 = vector.load %arg2[%c4_890, %c0_891, %c0_892] : memref<49x8x128xf32, #tpu.memory_space<vmem>>, vector<1x8x128xf32>
    %1312 = vector.shape_cast %1311 : vector<1x8x128xf32> to vector<8x128xf32>
    %1313 = arith.mulf %1312, %1310 : vector<8x128xf32>
    %1314 = arith.addf %1308, %1313 : vector<8x128xf32>
    %c14_i32_893 = arith.constant 14 : i32
    %1315 = tpu.dynamic_rotate %1284 by %c14_i32_893 dim 0 : vector<24x128xf32>, i32 -> vector<24x128xf32>
    %1316 = vector.extract_strided_slice %1315 {offsets = [0, 0], sizes = [8, 128], strides = [1, 1]} : vector<24x128xf32> to vector<8x128xf32>
    %c5_894 = arith.constant 5 : index
    %c0_895 = arith.constant 0 : index
    %c0_896 = arith.constant 0 : index
    %1317 = vector.load %arg2[%c5_894, %c0_895, %c0_896] : memref<49x8x128xf32, #tpu.memory_space<vmem>>, vector<1x8x128xf32>
    %1318 = vector.shape_cast %1317 : vector<1x8x128xf32> to vector<8x128xf32>
    %1319 = arith.mulf %1318, %1316 : vector<8x128xf32>
    %1320 = arith.addf %1314, %1319 : vector<8x128xf32>
    %c13_i32_897 = arith.constant 13 : i32
    %1321 = tpu.dynamic_rotate %1284 by %c13_i32_897 dim 0 : vector<24x128xf32>, i32 -> vector<24x128xf32>
    %1322 = vector.extract_strided_slice %1321 {offsets = [0, 0], sizes = [8, 128], strides = [1, 1]} : vector<24x128xf32> to vector<8x128xf32>
    %c6_898 = arith.constant 6 : index
    %c0_899 = arith.constant 0 : index
    %c0_900 = arith.constant 0 : index
    %1323 = vector.load %arg2[%c6_898, %c0_899, %c0_900] : memref<49x8x128xf32, #tpu.memory_space<vmem>>, vector<1x8x128xf32>
    %1324 = vector.shape_cast %1323 : vector<1x8x128xf32> to vector<8x128xf32>
    %1325 = arith.mulf %1324, %1322 : vector<8x128xf32>
    %1326 = arith.addf %1320, %1325 : vector<8x128xf32>
    %c5_901 = arith.constant 5 : index
    %c0_902 = arith.constant 0 : index
    %c0_903 = arith.constant 0 : index
    %1327 = vector.load %arg5[%c5_901, %c0_902, %c0_903] : memref<14x24x128xf32, #tpu.memory_space<vmem>>, vector<1x24x128xf32>
    %1328 = vector.shape_cast %1327 : vector<1x24x128xf32> to vector<24x128xf32>
    %c19_i32_904 = arith.constant 19 : i32
    %1329 = tpu.dynamic_rotate %1328 by %c19_i32_904 dim 0 : vector<24x128xf32>, i32 -> vector<24x128xf32>
    %1330 = vector.extract_strided_slice %1329 {offsets = [0, 0], sizes = [8, 128], strides = [1, 1]} : vector<24x128xf32> to vector<8x128xf32>
    %c7_905 = arith.constant 7 : index
    %c0_906 = arith.constant 0 : index
    %c0_907 = arith.constant 0 : index
    %1331 = vector.load %arg2[%c7_905, %c0_906, %c0_907] : memref<49x8x128xf32, #tpu.memory_space<vmem>>, vector<1x8x128xf32>
    %1332 = vector.shape_cast %1331 : vector<1x8x128xf32> to vector<8x128xf32>
    %1333 = arith.mulf %1332, %1330 : vector<8x128xf32>
    %1334 = arith.addf %1326, %1333 : vector<8x128xf32>
    %c18_i32_908 = arith.constant 18 : i32
    %1335 = tpu.dynamic_rotate %1328 by %c18_i32_908 dim 0 : vector<24x128xf32>, i32 -> vector<24x128xf32>
    %1336 = vector.extract_strided_slice %1335 {offsets = [0, 0], sizes = [8, 128], strides = [1, 1]} : vector<24x128xf32> to vector<8x128xf32>
    %c8_909 = arith.constant 8 : index
    %c0_910 = arith.constant 0 : index
    %c0_911 = arith.constant 0 : index
    %1337 = vector.load %arg2[%c8_909, %c0_910, %c0_911] : memref<49x8x128xf32, #tpu.memory_space<vmem>>, vector<1x8x128xf32>
    %1338 = vector.shape_cast %1337 : vector<1x8x128xf32> to vector<8x128xf32>
    %1339 = arith.mulf %1338, %1336 : vector<8x128xf32>
    %1340 = arith.addf %1334, %1339 : vector<8x128xf32>
    %c17_i32_912 = arith.constant 17 : i32
    %1341 = tpu.dynamic_rotate %1328 by %c17_i32_912 dim 0 : vector<24x128xf32>, i32 -> vector<24x128xf32>
    %1342 = vector.extract_strided_slice %1341 {offsets = [0, 0], sizes = [8, 128], strides = [1, 1]} : vector<24x128xf32> to vector<8x128xf32>
    %c9_913 = arith.constant 9 : index
    %c0_914 = arith.constant 0 : index
    %c0_915 = arith.constant 0 : index
    %1343 = vector.load %arg2[%c9_913, %c0_914, %c0_915] : memref<49x8x128xf32, #tpu.memory_space<vmem>>, vector<1x8x128xf32>
    %1344 = vector.shape_cast %1343 : vector<1x8x128xf32> to vector<8x128xf32>
    %1345 = arith.mulf %1344, %1342 : vector<8x128xf32>
    %1346 = arith.addf %1340, %1345 : vector<8x128xf32>
    %c16_i32_916 = arith.constant 16 : i32
    %1347 = tpu.dynamic_rotate %1328 by %c16_i32_916 dim 0 : vector<24x128xf32>, i32 -> vector<24x128xf32>
    %1348 = vector.extract_strided_slice %1347 {offsets = [0, 0], sizes = [8, 128], strides = [1, 1]} : vector<24x128xf32> to vector<8x128xf32>
    %c10_917 = arith.constant 10 : index
    %c0_918 = arith.constant 0 : index
    %c0_919 = arith.constant 0 : index
    %1349 = vector.load %arg2[%c10_917, %c0_918, %c0_919] : memref<49x8x128xf32, #tpu.memory_space<vmem>>, vector<1x8x128xf32>
    %1350 = vector.shape_cast %1349 : vector<1x8x128xf32> to vector<8x128xf32>
    %1351 = arith.mulf %1350, %1348 : vector<8x128xf32>
    %1352 = arith.addf %1346, %1351 : vector<8x128xf32>
    %c15_i32_920 = arith.constant 15 : i32
    %1353 = tpu.dynamic_rotate %1328 by %c15_i32_920 dim 0 : vector<24x128xf32>, i32 -> vector<24x128xf32>
    %1354 = vector.extract_strided_slice %1353 {offsets = [0, 0], sizes = [8, 128], strides = [1, 1]} : vector<24x128xf32> to vector<8x128xf32>
    %c11_921 = arith.constant 11 : index
    %c0_922 = arith.constant 0 : index
    %c0_923 = arith.constant 0 : index
    %1355 = vector.load %arg2[%c11_921, %c0_922, %c0_923] : memref<49x8x128xf32, #tpu.memory_space<vmem>>, vector<1x8x128xf32>
    %1356 = vector.shape_cast %1355 : vector<1x8x128xf32> to vector<8x128xf32>
    %1357 = arith.mulf %1356, %1354 : vector<8x128xf32>
    %1358 = arith.addf %1352, %1357 : vector<8x128xf32>
    %c14_i32_924 = arith.constant 14 : i32
    %1359 = tpu.dynamic_rotate %1328 by %c14_i32_924 dim 0 : vector<24x128xf32>, i32 -> vector<24x128xf32>
    %1360 = vector.extract_strided_slice %1359 {offsets = [0, 0], sizes = [8, 128], strides = [1, 1]} : vector<24x128xf32> to vector<8x128xf32>
    %c12_925 = arith.constant 12 : index
    %c0_926 = arith.constant 0 : index
    %c0_927 = arith.constant 0 : index
    %1361 = vector.load %arg2[%c12_925, %c0_926, %c0_927] : memref<49x8x128xf32, #tpu.memory_space<vmem>>, vector<1x8x128xf32>
    %1362 = vector.shape_cast %1361 : vector<1x8x128xf32> to vector<8x128xf32>
    %1363 = arith.mulf %1362, %1360 : vector<8x128xf32>
    %1364 = arith.addf %1358, %1363 : vector<8x128xf32>
    %c13_i32_928 = arith.constant 13 : i32
    %1365 = tpu.dynamic_rotate %1328 by %c13_i32_928 dim 0 : vector<24x128xf32>, i32 -> vector<24x128xf32>
    %1366 = vector.extract_strided_slice %1365 {offsets = [0, 0], sizes = [8, 128], strides = [1, 1]} : vector<24x128xf32> to vector<8x128xf32>
    %c13_929 = arith.constant 13 : index
    %c0_930 = arith.constant 0 : index
    %c0_931 = arith.constant 0 : index
    %1367 = vector.load %arg2[%c13_929, %c0_930, %c0_931] : memref<49x8x128xf32, #tpu.memory_space<vmem>>, vector<1x8x128xf32>
    %1368 = vector.shape_cast %1367 : vector<1x8x128xf32> to vector<8x128xf32>
    %1369 = arith.mulf %1368, %1366 : vector<8x128xf32>
    %1370 = arith.addf %1364, %1369 : vector<8x128xf32>
    %c6_932 = arith.constant 6 : index
    %c0_933 = arith.constant 0 : index
    %c0_934 = arith.constant 0 : index
    %1371 = vector.load %arg5[%c6_932, %c0_933, %c0_934] : memref<14x24x128xf32, #tpu.memory_space<vmem>>, vector<1x24x128xf32>
    %1372 = vector.shape_cast %1371 : vector<1x24x128xf32> to vector<24x128xf32>
    %c19_i32_935 = arith.constant 19 : i32
    %1373 = tpu.dynamic_rotate %1372 by %c19_i32_935 dim 0 : vector<24x128xf32>, i32 -> vector<24x128xf32>
    %1374 = vector.extract_strided_slice %1373 {offsets = [0, 0], sizes = [8, 128], strides = [1, 1]} : vector<24x128xf32> to vector<8x128xf32>
    %c14_936 = arith.constant 14 : index
    %c0_937 = arith.constant 0 : index
    %c0_938 = arith.constant 0 : index
    %1375 = vector.load %arg2[%c14_936, %c0_937, %c0_938] : memref<49x8x128xf32, #tpu.memory_space<vmem>>, vector<1x8x128xf32>
    %1376 = vector.shape_cast %1375 : vector<1x8x128xf32> to vector<8x128xf32>
    %1377 = arith.mulf %1376, %1374 : vector<8x128xf32>
    %1378 = arith.addf %1370, %1377 : vector<8x128xf32>
    %c18_i32_939 = arith.constant 18 : i32
    %1379 = tpu.dynamic_rotate %1372 by %c18_i32_939 dim 0 : vector<24x128xf32>, i32 -> vector<24x128xf32>
    %1380 = vector.extract_strided_slice %1379 {offsets = [0, 0], sizes = [8, 128], strides = [1, 1]} : vector<24x128xf32> to vector<8x128xf32>
    %c15_940 = arith.constant 15 : index
    %c0_941 = arith.constant 0 : index
    %c0_942 = arith.constant 0 : index
    %1381 = vector.load %arg2[%c15_940, %c0_941, %c0_942] : memref<49x8x128xf32, #tpu.memory_space<vmem>>, vector<1x8x128xf32>
    %1382 = vector.shape_cast %1381 : vector<1x8x128xf32> to vector<8x128xf32>
    %1383 = arith.mulf %1382, %1380 : vector<8x128xf32>
    %1384 = arith.addf %1378, %1383 : vector<8x128xf32>
    %c17_i32_943 = arith.constant 17 : i32
    %1385 = tpu.dynamic_rotate %1372 by %c17_i32_943 dim 0 : vector<24x128xf32>, i32 -> vector<24x128xf32>
    %1386 = vector.extract_strided_slice %1385 {offsets = [0, 0], sizes = [8, 128], strides = [1, 1]} : vector<24x128xf32> to vector<8x128xf32>
    %c16_944 = arith.constant 16 : index
    %c0_945 = arith.constant 0 : index
    %c0_946 = arith.constant 0 : index
    %1387 = vector.load %arg2[%c16_944, %c0_945, %c0_946] : memref<49x8x128xf32, #tpu.memory_space<vmem>>, vector<1x8x128xf32>
    %1388 = vector.shape_cast %1387 : vector<1x8x128xf32> to vector<8x128xf32>
    %1389 = arith.mulf %1388, %1386 : vector<8x128xf32>
    %1390 = arith.addf %1384, %1389 : vector<8x128xf32>
    %c16_i32_947 = arith.constant 16 : i32
    %1391 = tpu.dynamic_rotate %1372 by %c16_i32_947 dim 0 : vector<24x128xf32>, i32 -> vector<24x128xf32>
    %1392 = vector.extract_strided_slice %1391 {offsets = [0, 0], sizes = [8, 128], strides = [1, 1]} : vector<24x128xf32> to vector<8x128xf32>
    %c17_948 = arith.constant 17 : index
    %c0_949 = arith.constant 0 : index
    %c0_950 = arith.constant 0 : index
    %1393 = vector.load %arg2[%c17_948, %c0_949, %c0_950] : memref<49x8x128xf32, #tpu.memory_space<vmem>>, vector<1x8x128xf32>
    %1394 = vector.shape_cast %1393 : vector<1x8x128xf32> to vector<8x128xf32>
    %1395 = arith.mulf %1394, %1392 : vector<8x128xf32>
    %1396 = arith.addf %1390, %1395 : vector<8x128xf32>
    %c15_i32_951 = arith.constant 15 : i32
    %1397 = tpu.dynamic_rotate %1372 by %c15_i32_951 dim 0 : vector<24x128xf32>, i32 -> vector<24x128xf32>
    %1398 = vector.extract_strided_slice %1397 {offsets = [0, 0], sizes = [8, 128], strides = [1, 1]} : vector<24x128xf32> to vector<8x128xf32>
    %c18_952 = arith.constant 18 : index
    %c0_953 = arith.constant 0 : index
    %c0_954 = arith.constant 0 : index
    %1399 = vector.load %arg2[%c18_952, %c0_953, %c0_954] : memref<49x8x128xf32, #tpu.memory_space<vmem>>, vector<1x8x128xf32>
    %1400 = vector.shape_cast %1399 : vector<1x8x128xf32> to vector<8x128xf32>
    %1401 = arith.mulf %1400, %1398 : vector<8x128xf32>
    %1402 = arith.addf %1396, %1401 : vector<8x128xf32>
    %c14_i32_955 = arith.constant 14 : i32
    %1403 = tpu.dynamic_rotate %1372 by %c14_i32_955 dim 0 : vector<24x128xf32>, i32 -> vector<24x128xf32>
    %1404 = vector.extract_strided_slice %1403 {offsets = [0, 0], sizes = [8, 128], strides = [1, 1]} : vector<24x128xf32> to vector<8x128xf32>
    %c19_956 = arith.constant 19 : index
    %c0_957 = arith.constant 0 : index
    %c0_958 = arith.constant 0 : index
    %1405 = vector.load %arg2[%c19_956, %c0_957, %c0_958] : memref<49x8x128xf32, #tpu.memory_space<vmem>>, vector<1x8x128xf32>
    %1406 = vector.shape_cast %1405 : vector<1x8x128xf32> to vector<8x128xf32>
    %1407 = arith.mulf %1406, %1404 : vector<8x128xf32>
    %1408 = arith.addf %1402, %1407 : vector<8x128xf32>
    %c13_i32_959 = arith.constant 13 : i32
    %1409 = tpu.dynamic_rotate %1372 by %c13_i32_959 dim 0 : vector<24x128xf32>, i32 -> vector<24x128xf32>
    %1410 = vector.extract_strided_slice %1409 {offsets = [0, 0], sizes = [8, 128], strides = [1, 1]} : vector<24x128xf32> to vector<8x128xf32>
    %c20_960 = arith.constant 20 : index
    %c0_961 = arith.constant 0 : index
    %c0_962 = arith.constant 0 : index
    %1411 = vector.load %arg2[%c20_960, %c0_961, %c0_962] : memref<49x8x128xf32, #tpu.memory_space<vmem>>, vector<1x8x128xf32>
    %1412 = vector.shape_cast %1411 : vector<1x8x128xf32> to vector<8x128xf32>
    %1413 = arith.mulf %1412, %1410 : vector<8x128xf32>
    %1414 = arith.addf %1408, %1413 : vector<8x128xf32>
    %c7_963 = arith.constant 7 : index
    %c0_964 = arith.constant 0 : index
    %c0_965 = arith.constant 0 : index
    %1415 = vector.load %arg5[%c7_963, %c0_964, %c0_965] : memref<14x24x128xf32, #tpu.memory_space<vmem>>, vector<1x24x128xf32>
    %1416 = vector.shape_cast %1415 : vector<1x24x128xf32> to vector<24x128xf32>
    %c19_i32_966 = arith.constant 19 : i32
    %1417 = tpu.dynamic_rotate %1416 by %c19_i32_966 dim 0 : vector<24x128xf32>, i32 -> vector<24x128xf32>
    %1418 = vector.extract_strided_slice %1417 {offsets = [0, 0], sizes = [8, 128], strides = [1, 1]} : vector<24x128xf32> to vector<8x128xf32>
    %c21_967 = arith.constant 21 : index
    %c0_968 = arith.constant 0 : index
    %c0_969 = arith.constant 0 : index
    %1419 = vector.load %arg2[%c21_967, %c0_968, %c0_969] : memref<49x8x128xf32, #tpu.memory_space<vmem>>, vector<1x8x128xf32>
    %1420 = vector.shape_cast %1419 : vector<1x8x128xf32> to vector<8x128xf32>
    %1421 = arith.mulf %1420, %1418 : vector<8x128xf32>
    %1422 = arith.addf %1414, %1421 : vector<8x128xf32>
    %c18_i32_970 = arith.constant 18 : i32
    %1423 = tpu.dynamic_rotate %1416 by %c18_i32_970 dim 0 : vector<24x128xf32>, i32 -> vector<24x128xf32>
    %1424 = vector.extract_strided_slice %1423 {offsets = [0, 0], sizes = [8, 128], strides = [1, 1]} : vector<24x128xf32> to vector<8x128xf32>
    %c22_971 = arith.constant 22 : index
    %c0_972 = arith.constant 0 : index
    %c0_973 = arith.constant 0 : index
    %1425 = vector.load %arg2[%c22_971, %c0_972, %c0_973] : memref<49x8x128xf32, #tpu.memory_space<vmem>>, vector<1x8x128xf32>
    %1426 = vector.shape_cast %1425 : vector<1x8x128xf32> to vector<8x128xf32>
    %1427 = arith.mulf %1426, %1424 : vector<8x128xf32>
    %1428 = arith.addf %1422, %1427 : vector<8x128xf32>
    %c17_i32_974 = arith.constant 17 : i32
    %1429 = tpu.dynamic_rotate %1416 by %c17_i32_974 dim 0 : vector<24x128xf32>, i32 -> vector<24x128xf32>
    %1430 = vector.extract_strided_slice %1429 {offsets = [0, 0], sizes = [8, 128], strides = [1, 1]} : vector<24x128xf32> to vector<8x128xf32>
    %c23_975 = arith.constant 23 : index
    %c0_976 = arith.constant 0 : index
    %c0_977 = arith.constant 0 : index
    %1431 = vector.load %arg2[%c23_975, %c0_976, %c0_977] : memref<49x8x128xf32, #tpu.memory_space<vmem>>, vector<1x8x128xf32>
    %1432 = vector.shape_cast %1431 : vector<1x8x128xf32> to vector<8x128xf32>
    %1433 = arith.mulf %1432, %1430 : vector<8x128xf32>
    %1434 = arith.addf %1428, %1433 : vector<8x128xf32>
    %c16_i32_978 = arith.constant 16 : i32
    %1435 = tpu.dynamic_rotate %1416 by %c16_i32_978 dim 0 : vector<24x128xf32>, i32 -> vector<24x128xf32>
    %1436 = vector.extract_strided_slice %1435 {offsets = [0, 0], sizes = [8, 128], strides = [1, 1]} : vector<24x128xf32> to vector<8x128xf32>
    %c24_979 = arith.constant 24 : index
    %c0_980 = arith.constant 0 : index
    %c0_981 = arith.constant 0 : index
    %1437 = vector.load %arg2[%c24_979, %c0_980, %c0_981] : memref<49x8x128xf32, #tpu.memory_space<vmem>>, vector<1x8x128xf32>
    %1438 = vector.shape_cast %1437 : vector<1x8x128xf32> to vector<8x128xf32>
    %1439 = arith.mulf %1438, %1436 : vector<8x128xf32>
    %1440 = arith.addf %1434, %1439 : vector<8x128xf32>
    %c15_i32_982 = arith.constant 15 : i32
    %1441 = tpu.dynamic_rotate %1416 by %c15_i32_982 dim 0 : vector<24x128xf32>, i32 -> vector<24x128xf32>
    %1442 = vector.extract_strided_slice %1441 {offsets = [0, 0], sizes = [8, 128], strides = [1, 1]} : vector<24x128xf32> to vector<8x128xf32>
    %c25_983 = arith.constant 25 : index
    %c0_984 = arith.constant 0 : index
    %c0_985 = arith.constant 0 : index
    %1443 = vector.load %arg2[%c25_983, %c0_984, %c0_985] : memref<49x8x128xf32, #tpu.memory_space<vmem>>, vector<1x8x128xf32>
    %1444 = vector.shape_cast %1443 : vector<1x8x128xf32> to vector<8x128xf32>
    %1445 = arith.mulf %1444, %1442 : vector<8x128xf32>
    %1446 = arith.addf %1440, %1445 : vector<8x128xf32>
    %c14_i32_986 = arith.constant 14 : i32
    %1447 = tpu.dynamic_rotate %1416 by %c14_i32_986 dim 0 : vector<24x128xf32>, i32 -> vector<24x128xf32>
    %1448 = vector.extract_strided_slice %1447 {offsets = [0, 0], sizes = [8, 128], strides = [1, 1]} : vector<24x128xf32> to vector<8x128xf32>
    %c26_987 = arith.constant 26 : index
    %c0_988 = arith.constant 0 : index
    %c0_989 = arith.constant 0 : index
    %1449 = vector.load %arg2[%c26_987, %c0_988, %c0_989] : memref<49x8x128xf32, #tpu.memory_space<vmem>>, vector<1x8x128xf32>
    %1450 = vector.shape_cast %1449 : vector<1x8x128xf32> to vector<8x128xf32>
    %1451 = arith.mulf %1450, %1448 : vector<8x128xf32>
    %1452 = arith.addf %1446, %1451 : vector<8x128xf32>
    %c13_i32_990 = arith.constant 13 : i32
    %1453 = tpu.dynamic_rotate %1416 by %c13_i32_990 dim 0 : vector<24x128xf32>, i32 -> vector<24x128xf32>
    %1454 = vector.extract_strided_slice %1453 {offsets = [0, 0], sizes = [8, 128], strides = [1, 1]} : vector<24x128xf32> to vector<8x128xf32>
    %c27_991 = arith.constant 27 : index
    %c0_992 = arith.constant 0 : index
    %c0_993 = arith.constant 0 : index
    %1455 = vector.load %arg2[%c27_991, %c0_992, %c0_993] : memref<49x8x128xf32, #tpu.memory_space<vmem>>, vector<1x8x128xf32>
    %1456 = vector.shape_cast %1455 : vector<1x8x128xf32> to vector<8x128xf32>
    %1457 = arith.mulf %1456, %1454 : vector<8x128xf32>
    %1458 = arith.addf %1452, %1457 : vector<8x128xf32>
    %c8_994 = arith.constant 8 : index
    %c0_995 = arith.constant 0 : index
    %c0_996 = arith.constant 0 : index
    %1459 = vector.load %arg5[%c8_994, %c0_995, %c0_996] : memref<14x24x128xf32, #tpu.memory_space<vmem>>, vector<1x24x128xf32>
    %1460 = vector.shape_cast %1459 : vector<1x24x128xf32> to vector<24x128xf32>
    %c19_i32_997 = arith.constant 19 : i32
    %1461 = tpu.dynamic_rotate %1460 by %c19_i32_997 dim 0 : vector<24x128xf32>, i32 -> vector<24x128xf32>
    %1462 = vector.extract_strided_slice %1461 {offsets = [0, 0], sizes = [8, 128], strides = [1, 1]} : vector<24x128xf32> to vector<8x128xf32>
    %c28_998 = arith.constant 28 : index
    %c0_999 = arith.constant 0 : index
    %c0_1000 = arith.constant 0 : index
    %1463 = vector.load %arg2[%c28_998, %c0_999, %c0_1000] : memref<49x8x128xf32, #tpu.memory_space<vmem>>, vector<1x8x128xf32>
    %1464 = vector.shape_cast %1463 : vector<1x8x128xf32> to vector<8x128xf32>
    %1465 = arith.mulf %1464, %1462 : vector<8x128xf32>
    %1466 = arith.addf %1458, %1465 : vector<8x128xf32>
    %c18_i32_1001 = arith.constant 18 : i32
    %1467 = tpu.dynamic_rotate %1460 by %c18_i32_1001 dim 0 : vector<24x128xf32>, i32 -> vector<24x128xf32>
    %1468 = vector.extract_strided_slice %1467 {offsets = [0, 0], sizes = [8, 128], strides = [1, 1]} : vector<24x128xf32> to vector<8x128xf32>
    %c29_1002 = arith.constant 29 : index
    %c0_1003 = arith.constant 0 : index
    %c0_1004 = arith.constant 0 : index
    %1469 = vector.load %arg2[%c29_1002, %c0_1003, %c0_1004] : memref<49x8x128xf32, #tpu.memory_space<vmem>>, vector<1x8x128xf32>
    %1470 = vector.shape_cast %1469 : vector<1x8x128xf32> to vector<8x128xf32>
    %1471 = arith.mulf %1470, %1468 : vector<8x128xf32>
    %1472 = arith.addf %1466, %1471 : vector<8x128xf32>
    %c17_i32_1005 = arith.constant 17 : i32
    %1473 = tpu.dynamic_rotate %1460 by %c17_i32_1005 dim 0 : vector<24x128xf32>, i32 -> vector<24x128xf32>
    %1474 = vector.extract_strided_slice %1473 {offsets = [0, 0], sizes = [8, 128], strides = [1, 1]} : vector<24x128xf32> to vector<8x128xf32>
    %c30_1006 = arith.constant 30 : index
    %c0_1007 = arith.constant 0 : index
    %c0_1008 = arith.constant 0 : index
    %1475 = vector.load %arg2[%c30_1006, %c0_1007, %c0_1008] : memref<49x8x128xf32, #tpu.memory_space<vmem>>, vector<1x8x128xf32>
    %1476 = vector.shape_cast %1475 : vector<1x8x128xf32> to vector<8x128xf32>
    %1477 = arith.mulf %1476, %1474 : vector<8x128xf32>
    %1478 = arith.addf %1472, %1477 : vector<8x128xf32>
    %c16_i32_1009 = arith.constant 16 : i32
    %1479 = tpu.dynamic_rotate %1460 by %c16_i32_1009 dim 0 : vector<24x128xf32>, i32 -> vector<24x128xf32>
    %1480 = vector.extract_strided_slice %1479 {offsets = [0, 0], sizes = [8, 128], strides = [1, 1]} : vector<24x128xf32> to vector<8x128xf32>
    %c31_1010 = arith.constant 31 : index
    %c0_1011 = arith.constant 0 : index
    %c0_1012 = arith.constant 0 : index
    %1481 = vector.load %arg2[%c31_1010, %c0_1011, %c0_1012] : memref<49x8x128xf32, #tpu.memory_space<vmem>>, vector<1x8x128xf32>
    %1482 = vector.shape_cast %1481 : vector<1x8x128xf32> to vector<8x128xf32>
    %1483 = arith.mulf %1482, %1480 : vector<8x128xf32>
    %1484 = arith.addf %1478, %1483 : vector<8x128xf32>
    %c15_i32_1013 = arith.constant 15 : i32
    %1485 = tpu.dynamic_rotate %1460 by %c15_i32_1013 dim 0 : vector<24x128xf32>, i32 -> vector<24x128xf32>
    %1486 = vector.extract_strided_slice %1485 {offsets = [0, 0], sizes = [8, 128], strides = [1, 1]} : vector<24x128xf32> to vector<8x128xf32>
    %c32_1014 = arith.constant 32 : index
    %c0_1015 = arith.constant 0 : index
    %c0_1016 = arith.constant 0 : index
    %1487 = vector.load %arg2[%c32_1014, %c0_1015, %c0_1016] : memref<49x8x128xf32, #tpu.memory_space<vmem>>, vector<1x8x128xf32>
    %1488 = vector.shape_cast %1487 : vector<1x8x128xf32> to vector<8x128xf32>
    %1489 = arith.mulf %1488, %1486 : vector<8x128xf32>
    %1490 = arith.addf %1484, %1489 : vector<8x128xf32>
    %c14_i32_1017 = arith.constant 14 : i32
    %1491 = tpu.dynamic_rotate %1460 by %c14_i32_1017 dim 0 : vector<24x128xf32>, i32 -> vector<24x128xf32>
    %1492 = vector.extract_strided_slice %1491 {offsets = [0, 0], sizes = [8, 128], strides = [1, 1]} : vector<24x128xf32> to vector<8x128xf32>
    %c33_1018 = arith.constant 33 : index
    %c0_1019 = arith.constant 0 : index
    %c0_1020 = arith.constant 0 : index
    %1493 = vector.load %arg2[%c33_1018, %c0_1019, %c0_1020] : memref<49x8x128xf32, #tpu.memory_space<vmem>>, vector<1x8x128xf32>
    %1494 = vector.shape_cast %1493 : vector<1x8x128xf32> to vector<8x128xf32>
    %1495 = arith.mulf %1494, %1492 : vector<8x128xf32>
    %1496 = arith.addf %1490, %1495 : vector<8x128xf32>
    %c13_i32_1021 = arith.constant 13 : i32
    %1497 = tpu.dynamic_rotate %1460 by %c13_i32_1021 dim 0 : vector<24x128xf32>, i32 -> vector<24x128xf32>
    %1498 = vector.extract_strided_slice %1497 {offsets = [0, 0], sizes = [8, 128], strides = [1, 1]} : vector<24x128xf32> to vector<8x128xf32>
    %c34_1022 = arith.constant 34 : index
    %c0_1023 = arith.constant 0 : index
    %c0_1024 = arith.constant 0 : index
    %1499 = vector.load %arg2[%c34_1022, %c0_1023, %c0_1024] : memref<49x8x128xf32, #tpu.memory_space<vmem>>, vector<1x8x128xf32>
    %1500 = vector.shape_cast %1499 : vector<1x8x128xf32> to vector<8x128xf32>
    %1501 = arith.mulf %1500, %1498 : vector<8x128xf32>
    %1502 = arith.addf %1496, %1501 : vector<8x128xf32>
    %c9_1025 = arith.constant 9 : index
    %c0_1026 = arith.constant 0 : index
    %c0_1027 = arith.constant 0 : index
    %1503 = vector.load %arg5[%c9_1025, %c0_1026, %c0_1027] : memref<14x24x128xf32, #tpu.memory_space<vmem>>, vector<1x24x128xf32>
    %1504 = vector.shape_cast %1503 : vector<1x24x128xf32> to vector<24x128xf32>
    %c19_i32_1028 = arith.constant 19 : i32
    %1505 = tpu.dynamic_rotate %1504 by %c19_i32_1028 dim 0 : vector<24x128xf32>, i32 -> vector<24x128xf32>
    %1506 = vector.extract_strided_slice %1505 {offsets = [0, 0], sizes = [8, 128], strides = [1, 1]} : vector<24x128xf32> to vector<8x128xf32>
    %c35_1029 = arith.constant 35 : index
    %c0_1030 = arith.constant 0 : index
    %c0_1031 = arith.constant 0 : index
    %1507 = vector.load %arg2[%c35_1029, %c0_1030, %c0_1031] : memref<49x8x128xf32, #tpu.memory_space<vmem>>, vector<1x8x128xf32>
    %1508 = vector.shape_cast %1507 : vector<1x8x128xf32> to vector<8x128xf32>
    %1509 = arith.mulf %1508, %1506 : vector<8x128xf32>
    %1510 = arith.addf %1502, %1509 : vector<8x128xf32>
    %c18_i32_1032 = arith.constant 18 : i32
    %1511 = tpu.dynamic_rotate %1504 by %c18_i32_1032 dim 0 : vector<24x128xf32>, i32 -> vector<24x128xf32>
    %1512 = vector.extract_strided_slice %1511 {offsets = [0, 0], sizes = [8, 128], strides = [1, 1]} : vector<24x128xf32> to vector<8x128xf32>
    %c36_1033 = arith.constant 36 : index
    %c0_1034 = arith.constant 0 : index
    %c0_1035 = arith.constant 0 : index
    %1513 = vector.load %arg2[%c36_1033, %c0_1034, %c0_1035] : memref<49x8x128xf32, #tpu.memory_space<vmem>>, vector<1x8x128xf32>
    %1514 = vector.shape_cast %1513 : vector<1x8x128xf32> to vector<8x128xf32>
    %1515 = arith.mulf %1514, %1512 : vector<8x128xf32>
    %1516 = arith.addf %1510, %1515 : vector<8x128xf32>
    %c17_i32_1036 = arith.constant 17 : i32
    %1517 = tpu.dynamic_rotate %1504 by %c17_i32_1036 dim 0 : vector<24x128xf32>, i32 -> vector<24x128xf32>
    %1518 = vector.extract_strided_slice %1517 {offsets = [0, 0], sizes = [8, 128], strides = [1, 1]} : vector<24x128xf32> to vector<8x128xf32>
    %c37_1037 = arith.constant 37 : index
    %c0_1038 = arith.constant 0 : index
    %c0_1039 = arith.constant 0 : index
    %1519 = vector.load %arg2[%c37_1037, %c0_1038, %c0_1039] : memref<49x8x128xf32, #tpu.memory_space<vmem>>, vector<1x8x128xf32>
    %1520 = vector.shape_cast %1519 : vector<1x8x128xf32> to vector<8x128xf32>
    %1521 = arith.mulf %1520, %1518 : vector<8x128xf32>
    %1522 = arith.addf %1516, %1521 : vector<8x128xf32>
    %c16_i32_1040 = arith.constant 16 : i32
    %1523 = tpu.dynamic_rotate %1504 by %c16_i32_1040 dim 0 : vector<24x128xf32>, i32 -> vector<24x128xf32>
    %1524 = vector.extract_strided_slice %1523 {offsets = [0, 0], sizes = [8, 128], strides = [1, 1]} : vector<24x128xf32> to vector<8x128xf32>
    %c38_1041 = arith.constant 38 : index
    %c0_1042 = arith.constant 0 : index
    %c0_1043 = arith.constant 0 : index
    %1525 = vector.load %arg2[%c38_1041, %c0_1042, %c0_1043] : memref<49x8x128xf32, #tpu.memory_space<vmem>>, vector<1x8x128xf32>
    %1526 = vector.shape_cast %1525 : vector<1x8x128xf32> to vector<8x128xf32>
    %1527 = arith.mulf %1526, %1524 : vector<8x128xf32>
    %1528 = arith.addf %1522, %1527 : vector<8x128xf32>
    %c15_i32_1044 = arith.constant 15 : i32
    %1529 = tpu.dynamic_rotate %1504 by %c15_i32_1044 dim 0 : vector<24x128xf32>, i32 -> vector<24x128xf32>
    %1530 = vector.extract_strided_slice %1529 {offsets = [0, 0], sizes = [8, 128], strides = [1, 1]} : vector<24x128xf32> to vector<8x128xf32>
    %c39_1045 = arith.constant 39 : index
    %c0_1046 = arith.constant 0 : index
    %c0_1047 = arith.constant 0 : index
    %1531 = vector.load %arg2[%c39_1045, %c0_1046, %c0_1047] : memref<49x8x128xf32, #tpu.memory_space<vmem>>, vector<1x8x128xf32>
    %1532 = vector.shape_cast %1531 : vector<1x8x128xf32> to vector<8x128xf32>
    %1533 = arith.mulf %1532, %1530 : vector<8x128xf32>
    %1534 = arith.addf %1528, %1533 : vector<8x128xf32>
    %c14_i32_1048 = arith.constant 14 : i32
    %1535 = tpu.dynamic_rotate %1504 by %c14_i32_1048 dim 0 : vector<24x128xf32>, i32 -> vector<24x128xf32>
    %1536 = vector.extract_strided_slice %1535 {offsets = [0, 0], sizes = [8, 128], strides = [1, 1]} : vector<24x128xf32> to vector<8x128xf32>
    %c40_1049 = arith.constant 40 : index
    %c0_1050 = arith.constant 0 : index
    %c0_1051 = arith.constant 0 : index
    %1537 = vector.load %arg2[%c40_1049, %c0_1050, %c0_1051] : memref<49x8x128xf32, #tpu.memory_space<vmem>>, vector<1x8x128xf32>
    %1538 = vector.shape_cast %1537 : vector<1x8x128xf32> to vector<8x128xf32>
    %1539 = arith.mulf %1538, %1536 : vector<8x128xf32>
    %1540 = arith.addf %1534, %1539 : vector<8x128xf32>
    %c13_i32_1052 = arith.constant 13 : i32
    %1541 = tpu.dynamic_rotate %1504 by %c13_i32_1052 dim 0 : vector<24x128xf32>, i32 -> vector<24x128xf32>
    %1542 = vector.extract_strided_slice %1541 {offsets = [0, 0], sizes = [8, 128], strides = [1, 1]} : vector<24x128xf32> to vector<8x128xf32>
    %c41_1053 = arith.constant 41 : index
    %c0_1054 = arith.constant 0 : index
    %c0_1055 = arith.constant 0 : index
    %1543 = vector.load %arg2[%c41_1053, %c0_1054, %c0_1055] : memref<49x8x128xf32, #tpu.memory_space<vmem>>, vector<1x8x128xf32>
    %1544 = vector.shape_cast %1543 : vector<1x8x128xf32> to vector<8x128xf32>
    %1545 = arith.mulf %1544, %1542 : vector<8x128xf32>
    %1546 = arith.addf %1540, %1545 : vector<8x128xf32>
    %c10_1056 = arith.constant 10 : index
    %c0_1057 = arith.constant 0 : index
    %c0_1058 = arith.constant 0 : index
    %1547 = vector.load %arg5[%c10_1056, %c0_1057, %c0_1058] : memref<14x24x128xf32, #tpu.memory_space<vmem>>, vector<1x24x128xf32>
    %1548 = vector.shape_cast %1547 : vector<1x24x128xf32> to vector<24x128xf32>
    %c19_i32_1059 = arith.constant 19 : i32
    %1549 = tpu.dynamic_rotate %1548 by %c19_i32_1059 dim 0 : vector<24x128xf32>, i32 -> vector<24x128xf32>
    %1550 = vector.extract_strided_slice %1549 {offsets = [0, 0], sizes = [8, 128], strides = [1, 1]} : vector<24x128xf32> to vector<8x128xf32>
    %c42_1060 = arith.constant 42 : index
    %c0_1061 = arith.constant 0 : index
    %c0_1062 = arith.constant 0 : index
    %1551 = vector.load %arg2[%c42_1060, %c0_1061, %c0_1062] : memref<49x8x128xf32, #tpu.memory_space<vmem>>, vector<1x8x128xf32>
    %1552 = vector.shape_cast %1551 : vector<1x8x128xf32> to vector<8x128xf32>
    %1553 = arith.mulf %1552, %1550 : vector<8x128xf32>
    %1554 = arith.addf %1546, %1553 : vector<8x128xf32>
    %c18_i32_1063 = arith.constant 18 : i32
    %1555 = tpu.dynamic_rotate %1548 by %c18_i32_1063 dim 0 : vector<24x128xf32>, i32 -> vector<24x128xf32>
    %1556 = vector.extract_strided_slice %1555 {offsets = [0, 0], sizes = [8, 128], strides = [1, 1]} : vector<24x128xf32> to vector<8x128xf32>
    %c43_1064 = arith.constant 43 : index
    %c0_1065 = arith.constant 0 : index
    %c0_1066 = arith.constant 0 : index
    %1557 = vector.load %arg2[%c43_1064, %c0_1065, %c0_1066] : memref<49x8x128xf32, #tpu.memory_space<vmem>>, vector<1x8x128xf32>
    %1558 = vector.shape_cast %1557 : vector<1x8x128xf32> to vector<8x128xf32>
    %1559 = arith.mulf %1558, %1556 : vector<8x128xf32>
    %1560 = arith.addf %1554, %1559 : vector<8x128xf32>
    %c17_i32_1067 = arith.constant 17 : i32
    %1561 = tpu.dynamic_rotate %1548 by %c17_i32_1067 dim 0 : vector<24x128xf32>, i32 -> vector<24x128xf32>
    %1562 = vector.extract_strided_slice %1561 {offsets = [0, 0], sizes = [8, 128], strides = [1, 1]} : vector<24x128xf32> to vector<8x128xf32>
    %c44_1068 = arith.constant 44 : index
    %c0_1069 = arith.constant 0 : index
    %c0_1070 = arith.constant 0 : index
    %1563 = vector.load %arg2[%c44_1068, %c0_1069, %c0_1070] : memref<49x8x128xf32, #tpu.memory_space<vmem>>, vector<1x8x128xf32>
    %1564 = vector.shape_cast %1563 : vector<1x8x128xf32> to vector<8x128xf32>
    %1565 = arith.mulf %1564, %1562 : vector<8x128xf32>
    %1566 = arith.addf %1560, %1565 : vector<8x128xf32>
    %c16_i32_1071 = arith.constant 16 : i32
    %1567 = tpu.dynamic_rotate %1548 by %c16_i32_1071 dim 0 : vector<24x128xf32>, i32 -> vector<24x128xf32>
    %1568 = vector.extract_strided_slice %1567 {offsets = [0, 0], sizes = [8, 128], strides = [1, 1]} : vector<24x128xf32> to vector<8x128xf32>
    %c45_1072 = arith.constant 45 : index
    %c0_1073 = arith.constant 0 : index
    %c0_1074 = arith.constant 0 : index
    %1569 = vector.load %arg2[%c45_1072, %c0_1073, %c0_1074] : memref<49x8x128xf32, #tpu.memory_space<vmem>>, vector<1x8x128xf32>
    %1570 = vector.shape_cast %1569 : vector<1x8x128xf32> to vector<8x128xf32>
    %1571 = arith.mulf %1570, %1568 : vector<8x128xf32>
    %1572 = arith.addf %1566, %1571 : vector<8x128xf32>
    %c15_i32_1075 = arith.constant 15 : i32
    %1573 = tpu.dynamic_rotate %1548 by %c15_i32_1075 dim 0 : vector<24x128xf32>, i32 -> vector<24x128xf32>
    %1574 = vector.extract_strided_slice %1573 {offsets = [0, 0], sizes = [8, 128], strides = [1, 1]} : vector<24x128xf32> to vector<8x128xf32>
    %c46_1076 = arith.constant 46 : index
    %c0_1077 = arith.constant 0 : index
    %c0_1078 = arith.constant 0 : index
    %1575 = vector.load %arg2[%c46_1076, %c0_1077, %c0_1078] : memref<49x8x128xf32, #tpu.memory_space<vmem>>, vector<1x8x128xf32>
    %1576 = vector.shape_cast %1575 : vector<1x8x128xf32> to vector<8x128xf32>
    %1577 = arith.mulf %1576, %1574 : vector<8x128xf32>
    %1578 = arith.addf %1572, %1577 : vector<8x128xf32>
    %c14_i32_1079 = arith.constant 14 : i32
    %1579 = tpu.dynamic_rotate %1548 by %c14_i32_1079 dim 0 : vector<24x128xf32>, i32 -> vector<24x128xf32>
    %1580 = vector.extract_strided_slice %1579 {offsets = [0, 0], sizes = [8, 128], strides = [1, 1]} : vector<24x128xf32> to vector<8x128xf32>
    %c47_1080 = arith.constant 47 : index
    %c0_1081 = arith.constant 0 : index
    %c0_1082 = arith.constant 0 : index
    %1581 = vector.load %arg2[%c47_1080, %c0_1081, %c0_1082] : memref<49x8x128xf32, #tpu.memory_space<vmem>>, vector<1x8x128xf32>
    %1582 = vector.shape_cast %1581 : vector<1x8x128xf32> to vector<8x128xf32>
    %1583 = arith.mulf %1582, %1580 : vector<8x128xf32>
    %1584 = arith.addf %1578, %1583 : vector<8x128xf32>
    %c13_i32_1083 = arith.constant 13 : i32
    %1585 = tpu.dynamic_rotate %1548 by %c13_i32_1083 dim 0 : vector<24x128xf32>, i32 -> vector<24x128xf32>
    %1586 = vector.extract_strided_slice %1585 {offsets = [0, 0], sizes = [8, 128], strides = [1, 1]} : vector<24x128xf32> to vector<8x128xf32>
    %c48_1084 = arith.constant 48 : index
    %c0_1085 = arith.constant 0 : index
    %c0_1086 = arith.constant 0 : index
    %1587 = vector.load %arg2[%c48_1084, %c0_1085, %c0_1086] : memref<49x8x128xf32, #tpu.memory_space<vmem>>, vector<1x8x128xf32>
    %1588 = vector.shape_cast %1587 : vector<1x8x128xf32> to vector<8x128xf32>
    %1589 = arith.mulf %1588, %1586 : vector<8x128xf32>
    %1590 = arith.addf %1584, %1589 : vector<8x128xf32>
    %c32_1087 = arith.constant 32 : index
    %c0_1088 = arith.constant 0 : index
    %1591 = vector.load %arg6[%c32_1087, %c0_1088] : memref<64x128xf32, #tpu.memory_space<vmem>>, vector<8x128xf32>
    tpu.vector_store %arg6[%c32_1087, %c0_1088], %1590 {strides = array<i32>} : memref<64x128xf32, #tpu.memory_space<vmem>>, vector<8x128xf32>,
    %c5_1089 = arith.constant 5 : index
    %c0_1090 = arith.constant 0 : index
    %c0_1091 = arith.constant 0 : index
    %1592 = vector.load %arg5[%c5_1089, %c0_1090, %c0_1091] : memref<14x24x128xf32, #tpu.memory_space<vmem>>, vector<1x24x128xf32>
    %1593 = vector.shape_cast %1592 : vector<1x24x128xf32> to vector<24x128xf32>
    %c19_i32_1092 = arith.constant 19 : i32
    %1594 = tpu.dynamic_rotate %1593 by %c19_i32_1092 dim 0 : vector<24x128xf32>, i32 -> vector<24x128xf32>
    %1595 = vector.extract_strided_slice %1594 {offsets = [0, 0], sizes = [8, 128], strides = [1, 1]} : vector<24x128xf32> to vector<8x128xf32>
    %c0_1093 = arith.constant 0 : index
    %c0_1094 = arith.constant 0 : index
    %c0_1095 = arith.constant 0 : index
    %1596 = vector.load %arg2[%c0_1093, %c0_1094, %c0_1095] : memref<49x8x128xf32, #tpu.memory_space<vmem>>, vector<1x8x128xf32>
    %1597 = vector.shape_cast %1596 : vector<1x8x128xf32> to vector<8x128xf32>
    %1598 = arith.mulf %1597, %1595 : vector<8x128xf32>
    %1599 = arith.addf %12, %1598 : vector<8x128xf32>
    %c18_i32_1096 = arith.constant 18 : i32
    %1600 = tpu.dynamic_rotate %1593 by %c18_i32_1096 dim 0 : vector<24x128xf32>, i32 -> vector<24x128xf32>
    %1601 = vector.extract_strided_slice %1600 {offsets = [0, 0], sizes = [8, 128], strides = [1, 1]} : vector<24x128xf32> to vector<8x128xf32>
    %c1_1097 = arith.constant 1 : index
    %c0_1098 = arith.constant 0 : index
    %c0_1099 = arith.constant 0 : index
    %1602 = vector.load %arg2[%c1_1097, %c0_1098, %c0_1099] : memref<49x8x128xf32, #tpu.memory_space<vmem>>, vector<1x8x128xf32>
    %1603 = vector.shape_cast %1602 : vector<1x8x128xf32> to vector<8x128xf32>
    %1604 = arith.mulf %1603, %1601 : vector<8x128xf32>
    %1605 = arith.addf %1599, %1604 : vector<8x128xf32>
    %c17_i32_1100 = arith.constant 17 : i32
    %1606 = tpu.dynamic_rotate %1593 by %c17_i32_1100 dim 0 : vector<24x128xf32>, i32 -> vector<24x128xf32>
    %1607 = vector.extract_strided_slice %1606 {offsets = [0, 0], sizes = [8, 128], strides = [1, 1]} : vector<24x128xf32> to vector<8x128xf32>
    %c2_1101 = arith.constant 2 : index
    %c0_1102 = arith.constant 0 : index
    %c0_1103 = arith.constant 0 : index
    %1608 = vector.load %arg2[%c2_1101, %c0_1102, %c0_1103] : memref<49x8x128xf32, #tpu.memory_space<vmem>>, vector<1x8x128xf32>
    %1609 = vector.shape_cast %1608 : vector<1x8x128xf32> to vector<8x128xf32>
    %1610 = arith.mulf %1609, %1607 : vector<8x128xf32>
    %1611 = arith.addf %1605, %1610 : vector<8x128xf32>
    %c16_i32_1104 = arith.constant 16 : i32
    %1612 = tpu.dynamic_rotate %1593 by %c16_i32_1104 dim 0 : vector<24x128xf32>, i32 -> vector<24x128xf32>
    %1613 = vector.extract_strided_slice %1612 {offsets = [0, 0], sizes = [8, 128], strides = [1, 1]} : vector<24x128xf32> to vector<8x128xf32>
    %c3_1105 = arith.constant 3 : index
    %c0_1106 = arith.constant 0 : index
    %c0_1107 = arith.constant 0 : index
    %1614 = vector.load %arg2[%c3_1105, %c0_1106, %c0_1107] : memref<49x8x128xf32, #tpu.memory_space<vmem>>, vector<1x8x128xf32>
    %1615 = vector.shape_cast %1614 : vector<1x8x128xf32> to vector<8x128xf32>
    %1616 = arith.mulf %1615, %1613 : vector<8x128xf32>
    %1617 = arith.addf %1611, %1616 : vector<8x128xf32>
    %c15_i32_1108 = arith.constant 15 : i32
    %1618 = tpu.dynamic_rotate %1593 by %c15_i32_1108 dim 0 : vector<24x128xf32>, i32 -> vector<24x128xf32>
    %1619 = vector.extract_strided_slice %1618 {offsets = [0, 0], sizes = [8, 128], strides = [1, 1]} : vector<24x128xf32> to vector<8x128xf32>
    %c4_1109 = arith.constant 4 : index
    %c0_1110 = arith.constant 0 : index
    %c0_1111 = arith.constant 0 : index
    %1620 = vector.load %arg2[%c4_1109, %c0_1110, %c0_1111] : memref<49x8x128xf32, #tpu.memory_space<vmem>>, vector<1x8x128xf32>
    %1621 = vector.shape_cast %1620 : vector<1x8x128xf32> to vector<8x128xf32>
    %1622 = arith.mulf %1621, %1619 : vector<8x128xf32>
    %1623 = arith.addf %1617, %1622 : vector<8x128xf32>
    %c14_i32_1112 = arith.constant 14 : i32
    %1624 = tpu.dynamic_rotate %1593 by %c14_i32_1112 dim 0 : vector<24x128xf32>, i32 -> vector<24x128xf32>
    %1625 = vector.extract_strided_slice %1624 {offsets = [0, 0], sizes = [8, 128], strides = [1, 1]} : vector<24x128xf32> to vector<8x128xf32>
    %c5_1113 = arith.constant 5 : index
    %c0_1114 = arith.constant 0 : index
    %c0_1115 = arith.constant 0 : index
    %1626 = vector.load %arg2[%c5_1113, %c0_1114, %c0_1115] : memref<49x8x128xf32, #tpu.memory_space<vmem>>, vector<1x8x128xf32>
    %1627 = vector.shape_cast %1626 : vector<1x8x128xf32> to vector<8x128xf32>
    %1628 = arith.mulf %1627, %1625 : vector<8x128xf32>
    %1629 = arith.addf %1623, %1628 : vector<8x128xf32>
    %c13_i32_1116 = arith.constant 13 : i32
    %1630 = tpu.dynamic_rotate %1593 by %c13_i32_1116 dim 0 : vector<24x128xf32>, i32 -> vector<24x128xf32>
    %1631 = vector.extract_strided_slice %1630 {offsets = [0, 0], sizes = [8, 128], strides = [1, 1]} : vector<24x128xf32> to vector<8x128xf32>
    %c6_1117 = arith.constant 6 : index
    %c0_1118 = arith.constant 0 : index
    %c0_1119 = arith.constant 0 : index
    %1632 = vector.load %arg2[%c6_1117, %c0_1118, %c0_1119] : memref<49x8x128xf32, #tpu.memory_space<vmem>>, vector<1x8x128xf32>
    %1633 = vector.shape_cast %1632 : vector<1x8x128xf32> to vector<8x128xf32>
    %1634 = arith.mulf %1633, %1631 : vector<8x128xf32>
    %1635 = arith.addf %1629, %1634 : vector<8x128xf32>
    %c6_1120 = arith.constant 6 : index
    %c0_1121 = arith.constant 0 : index
    %c0_1122 = arith.constant 0 : index
    %1636 = vector.load %arg5[%c6_1120, %c0_1121, %c0_1122] : memref<14x24x128xf32, #tpu.memory_space<vmem>>, vector<1x24x128xf32>
    %1637 = vector.shape_cast %1636 : vector<1x24x128xf32> to vector<24x128xf32>
    %c19_i32_1123 = arith.constant 19 : i32
    %1638 = tpu.dynamic_rotate %1637 by %c19_i32_1123 dim 0 : vector<24x128xf32>, i32 -> vector<24x128xf32>
    %1639 = vector.extract_strided_slice %1638 {offsets = [0, 0], sizes = [8, 128], strides = [1, 1]} : vector<24x128xf32> to vector<8x128xf32>
    %c7_1124 = arith.constant 7 : index
    %c0_1125 = arith.constant 0 : index
    %c0_1126 = arith.constant 0 : index
    %1640 = vector.load %arg2[%c7_1124, %c0_1125, %c0_1126] : memref<49x8x128xf32, #tpu.memory_space<vmem>>, vector<1x8x128xf32>
    %1641 = vector.shape_cast %1640 : vector<1x8x128xf32> to vector<8x128xf32>
    %1642 = arith.mulf %1641, %1639 : vector<8x128xf32>
    %1643 = arith.addf %1635, %1642 : vector<8x128xf32>
    %c18_i32_1127 = arith.constant 18 : i32
    %1644 = tpu.dynamic_rotate %1637 by %c18_i32_1127 dim 0 : vector<24x128xf32>, i32 -> vector<24x128xf32>
    %1645 = vector.extract_strided_slice %1644 {offsets = [0, 0], sizes = [8, 128], strides = [1, 1]} : vector<24x128xf32> to vector<8x128xf32>
    %c8_1128 = arith.constant 8 : index
    %c0_1129 = arith.constant 0 : index
    %c0_1130 = arith.constant 0 : index
    %1646 = vector.load %arg2[%c8_1128, %c0_1129, %c0_1130] : memref<49x8x128xf32, #tpu.memory_space<vmem>>, vector<1x8x128xf32>
    %1647 = vector.shape_cast %1646 : vector<1x8x128xf32> to vector<8x128xf32>
    %1648 = arith.mulf %1647, %1645 : vector<8x128xf32>
    %1649 = arith.addf %1643, %1648 : vector<8x128xf32>
    %c17_i32_1131 = arith.constant 17 : i32
    %1650 = tpu.dynamic_rotate %1637 by %c17_i32_1131 dim 0 : vector<24x128xf32>, i32 -> vector<24x128xf32>
    %1651 = vector.extract_strided_slice %1650 {offsets = [0, 0], sizes = [8, 128], strides = [1, 1]} : vector<24x128xf32> to vector<8x128xf32>
    %c9_1132 = arith.constant 9 : index
    %c0_1133 = arith.constant 0 : index
    %c0_1134 = arith.constant 0 : index
    %1652 = vector.load %arg2[%c9_1132, %c0_1133, %c0_1134] : memref<49x8x128xf32, #tpu.memory_space<vmem>>, vector<1x8x128xf32>
    %1653 = vector.shape_cast %1652 : vector<1x8x128xf32> to vector<8x128xf32>
    %1654 = arith.mulf %1653, %1651 : vector<8x128xf32>
    %1655 = arith.addf %1649, %1654 : vector<8x128xf32>
    %c16_i32_1135 = arith.constant 16 : i32
    %1656 = tpu.dynamic_rotate %1637 by %c16_i32_1135 dim 0 : vector<24x128xf32>, i32 -> vector<24x128xf32>
    %1657 = vector.extract_strided_slice %1656 {offsets = [0, 0], sizes = [8, 128], strides = [1, 1]} : vector<24x128xf32> to vector<8x128xf32>
    %c10_1136 = arith.constant 10 : index
    %c0_1137 = arith.constant 0 : index
    %c0_1138 = arith.constant 0 : index
    %1658 = vector.load %arg2[%c10_1136, %c0_1137, %c0_1138] : memref<49x8x128xf32, #tpu.memory_space<vmem>>, vector<1x8x128xf32>
    %1659 = vector.shape_cast %1658 : vector<1x8x128xf32> to vector<8x128xf32>
    %1660 = arith.mulf %1659, %1657 : vector<8x128xf32>
    %1661 = arith.addf %1655, %1660 : vector<8x128xf32>
    %c15_i32_1139 = arith.constant 15 : i32
    %1662 = tpu.dynamic_rotate %1637 by %c15_i32_1139 dim 0 : vector<24x128xf32>, i32 -> vector<24x128xf32>
    %1663 = vector.extract_strided_slice %1662 {offsets = [0, 0], sizes = [8, 128], strides = [1, 1]} : vector<24x128xf32> to vector<8x128xf32>
    %c11_1140 = arith.constant 11 : index
    %c0_1141 = arith.constant 0 : index
    %c0_1142 = arith.constant 0 : index
    %1664 = vector.load %arg2[%c11_1140, %c0_1141, %c0_1142] : memref<49x8x128xf32, #tpu.memory_space<vmem>>, vector<1x8x128xf32>
    %1665 = vector.shape_cast %1664 : vector<1x8x128xf32> to vector<8x128xf32>
    %1666 = arith.mulf %1665, %1663 : vector<8x128xf32>
    %1667 = arith.addf %1661, %1666 : vector<8x128xf32>
    %c14_i32_1143 = arith.constant 14 : i32
    %1668 = tpu.dynamic_rotate %1637 by %c14_i32_1143 dim 0 : vector<24x128xf32>, i32 -> vector<24x128xf32>
    %1669 = vector.extract_strided_slice %1668 {offsets = [0, 0], sizes = [8, 128], strides = [1, 1]} : vector<24x128xf32> to vector<8x128xf32>
    %c12_1144 = arith.constant 12 : index
    %c0_1145 = arith.constant 0 : index
    %c0_1146 = arith.constant 0 : index
    %1670 = vector.load %arg2[%c12_1144, %c0_1145, %c0_1146] : memref<49x8x128xf32, #tpu.memory_space<vmem>>, vector<1x8x128xf32>
    %1671 = vector.shape_cast %1670 : vector<1x8x128xf32> to vector<8x128xf32>
    %1672 = arith.mulf %1671, %1669 : vector<8x128xf32>
    %1673 = arith.addf %1667, %1672 : vector<8x128xf32>
    %c13_i32_1147 = arith.constant 13 : i32
    %1674 = tpu.dynamic_rotate %1637 by %c13_i32_1147 dim 0 : vector<24x128xf32>, i32 -> vector<24x128xf32>
    %1675 = vector.extract_strided_slice %1674 {offsets = [0, 0], sizes = [8, 128], strides = [1, 1]} : vector<24x128xf32> to vector<8x128xf32>
    %c13_1148 = arith.constant 13 : index
    %c0_1149 = arith.constant 0 : index
    %c0_1150 = arith.constant 0 : index
    %1676 = vector.load %arg2[%c13_1148, %c0_1149, %c0_1150] : memref<49x8x128xf32, #tpu.memory_space<vmem>>, vector<1x8x128xf32>
    %1677 = vector.shape_cast %1676 : vector<1x8x128xf32> to vector<8x128xf32>
    %1678 = arith.mulf %1677, %1675 : vector<8x128xf32>
    %1679 = arith.addf %1673, %1678 : vector<8x128xf32>
    %c7_1151 = arith.constant 7 : index
    %c0_1152 = arith.constant 0 : index
    %c0_1153 = arith.constant 0 : index
    %1680 = vector.load %arg5[%c7_1151, %c0_1152, %c0_1153] : memref<14x24x128xf32, #tpu.memory_space<vmem>>, vector<1x24x128xf32>
    %1681 = vector.shape_cast %1680 : vector<1x24x128xf32> to vector<24x128xf32>
    %c19_i32_1154 = arith.constant 19 : i32
    %1682 = tpu.dynamic_rotate %1681 by %c19_i32_1154 dim 0 : vector<24x128xf32>, i32 -> vector<24x128xf32>
    %1683 = vector.extract_strided_slice %1682 {offsets = [0, 0], sizes = [8, 128], strides = [1, 1]} : vector<24x128xf32> to vector<8x128xf32>
    %c14_1155 = arith.constant 14 : index
    %c0_1156 = arith.constant 0 : index
    %c0_1157 = arith.constant 0 : index
    %1684 = vector.load %arg2[%c14_1155, %c0_1156, %c0_1157] : memref<49x8x128xf32, #tpu.memory_space<vmem>>, vector<1x8x128xf32>
    %1685 = vector.shape_cast %1684 : vector<1x8x128xf32> to vector<8x128xf32>
    %1686 = arith.mulf %1685, %1683 : vector<8x128xf32>
    %1687 = arith.addf %1679, %1686 : vector<8x128xf32>
    %c18_i32_1158 = arith.constant 18 : i32
    %1688 = tpu.dynamic_rotate %1681 by %c18_i32_1158 dim 0 : vector<24x128xf32>, i32 -> vector<24x128xf32>
    %1689 = vector.extract_strided_slice %1688 {offsets = [0, 0], sizes = [8, 128], strides = [1, 1]} : vector<24x128xf32> to vector<8x128xf32>
    %c15_1159 = arith.constant 15 : index
    %c0_1160 = arith.constant 0 : index
    %c0_1161 = arith.constant 0 : index
    %1690 = vector.load %arg2[%c15_1159, %c0_1160, %c0_1161] : memref<49x8x128xf32, #tpu.memory_space<vmem>>, vector<1x8x128xf32>
    %1691 = vector.shape_cast %1690 : vector<1x8x128xf32> to vector<8x128xf32>
    %1692 = arith.mulf %1691, %1689 : vector<8x128xf32>
    %1693 = arith.addf %1687, %1692 : vector<8x128xf32>
    %c17_i32_1162 = arith.constant 17 : i32
    %1694 = tpu.dynamic_rotate %1681 by %c17_i32_1162 dim 0 : vector<24x128xf32>, i32 -> vector<24x128xf32>
    %1695 = vector.extract_strided_slice %1694 {offsets = [0, 0], sizes = [8, 128], strides = [1, 1]} : vector<24x128xf32> to vector<8x128xf32>
    %c16_1163 = arith.constant 16 : index
    %c0_1164 = arith.constant 0 : index
    %c0_1165 = arith.constant 0 : index
    %1696 = vector.load %arg2[%c16_1163, %c0_1164, %c0_1165] : memref<49x8x128xf32, #tpu.memory_space<vmem>>, vector<1x8x128xf32>
    %1697 = vector.shape_cast %1696 : vector<1x8x128xf32> to vector<8x128xf32>
    %1698 = arith.mulf %1697, %1695 : vector<8x128xf32>
    %1699 = arith.addf %1693, %1698 : vector<8x128xf32>
    %c16_i32_1166 = arith.constant 16 : i32
    %1700 = tpu.dynamic_rotate %1681 by %c16_i32_1166 dim 0 : vector<24x128xf32>, i32 -> vector<24x128xf32>
    %1701 = vector.extract_strided_slice %1700 {offsets = [0, 0], sizes = [8, 128], strides = [1, 1]} : vector<24x128xf32> to vector<8x128xf32>
    %c17_1167 = arith.constant 17 : index
    %c0_1168 = arith.constant 0 : index
    %c0_1169 = arith.constant 0 : index
    %1702 = vector.load %arg2[%c17_1167, %c0_1168, %c0_1169] : memref<49x8x128xf32, #tpu.memory_space<vmem>>, vector<1x8x128xf32>
    %1703 = vector.shape_cast %1702 : vector<1x8x128xf32> to vector<8x128xf32>
    %1704 = arith.mulf %1703, %1701 : vector<8x128xf32>
    %1705 = arith.addf %1699, %1704 : vector<8x128xf32>
    %c15_i32_1170 = arith.constant 15 : i32
    %1706 = tpu.dynamic_rotate %1681 by %c15_i32_1170 dim 0 : vector<24x128xf32>, i32 -> vector<24x128xf32>
    %1707 = vector.extract_strided_slice %1706 {offsets = [0, 0], sizes = [8, 128], strides = [1, 1]} : vector<24x128xf32> to vector<8x128xf32>
    %c18_1171 = arith.constant 18 : index
    %c0_1172 = arith.constant 0 : index
    %c0_1173 = arith.constant 0 : index
    %1708 = vector.load %arg2[%c18_1171, %c0_1172, %c0_1173] : memref<49x8x128xf32, #tpu.memory_space<vmem>>, vector<1x8x128xf32>
    %1709 = vector.shape_cast %1708 : vector<1x8x128xf32> to vector<8x128xf32>
    %1710 = arith.mulf %1709, %1707 : vector<8x128xf32>
    %1711 = arith.addf %1705, %1710 : vector<8x128xf32>
    %c14_i32_1174 = arith.constant 14 : i32
    %1712 = tpu.dynamic_rotate %1681 by %c14_i32_1174 dim 0 : vector<24x128xf32>, i32 -> vector<24x128xf32>
    %1713 = vector.extract_strided_slice %1712 {offsets = [0, 0], sizes = [8, 128], strides = [1, 1]} : vector<24x128xf32> to vector<8x128xf32>
    %c19_1175 = arith.constant 19 : index
    %c0_1176 = arith.constant 0 : index
    %c0_1177 = arith.constant 0 : index
    %1714 = vector.load %arg2[%c19_1175, %c0_1176, %c0_1177] : memref<49x8x128xf32, #tpu.memory_space<vmem>>, vector<1x8x128xf32>
    %1715 = vector.shape_cast %1714 : vector<1x8x128xf32> to vector<8x128xf32>
    %1716 = arith.mulf %1715, %1713 : vector<8x128xf32>
    %1717 = arith.addf %1711, %1716 : vector<8x128xf32>
    %c13_i32_1178 = arith.constant 13 : i32
    %1718 = tpu.dynamic_rotate %1681 by %c13_i32_1178 dim 0 : vector<24x128xf32>, i32 -> vector<24x128xf32>
    %1719 = vector.extract_strided_slice %1718 {offsets = [0, 0], sizes = [8, 128], strides = [1, 1]} : vector<24x128xf32> to vector<8x128xf32>
    %c20_1179 = arith.constant 20 : index
    %c0_1180 = arith.constant 0 : index
    %c0_1181 = arith.constant 0 : index
    %1720 = vector.load %arg2[%c20_1179, %c0_1180, %c0_1181] : memref<49x8x128xf32, #tpu.memory_space<vmem>>, vector<1x8x128xf32>
    %1721 = vector.shape_cast %1720 : vector<1x8x128xf32> to vector<8x128xf32>
    %1722 = arith.mulf %1721, %1719 : vector<8x128xf32>
    %1723 = arith.addf %1717, %1722 : vector<8x128xf32>
    %c8_1182 = arith.constant 8 : index
    %c0_1183 = arith.constant 0 : index
    %c0_1184 = arith.constant 0 : index
    %1724 = vector.load %arg5[%c8_1182, %c0_1183, %c0_1184] : memref<14x24x128xf32, #tpu.memory_space<vmem>>, vector<1x24x128xf32>
    %1725 = vector.shape_cast %1724 : vector<1x24x128xf32> to vector<24x128xf32>
    %c19_i32_1185 = arith.constant 19 : i32
    %1726 = tpu.dynamic_rotate %1725 by %c19_i32_1185 dim 0 : vector<24x128xf32>, i32 -> vector<24x128xf32>
    %1727 = vector.extract_strided_slice %1726 {offsets = [0, 0], sizes = [8, 128], strides = [1, 1]} : vector<24x128xf32> to vector<8x128xf32>
    %c21_1186 = arith.constant 21 : index
    %c0_1187 = arith.constant 0 : index
    %c0_1188 = arith.constant 0 : index
    %1728 = vector.load %arg2[%c21_1186, %c0_1187, %c0_1188] : memref<49x8x128xf32, #tpu.memory_space<vmem>>, vector<1x8x128xf32>
    %1729 = vector.shape_cast %1728 : vector<1x8x128xf32> to vector<8x128xf32>
    %1730 = arith.mulf %1729, %1727 : vector<8x128xf32>
    %1731 = arith.addf %1723, %1730 : vector<8x128xf32>
    %c18_i32_1189 = arith.constant 18 : i32
    %1732 = tpu.dynamic_rotate %1725 by %c18_i32_1189 dim 0 : vector<24x128xf32>, i32 -> vector<24x128xf32>
    %1733 = vector.extract_strided_slice %1732 {offsets = [0, 0], sizes = [8, 128], strides = [1, 1]} : vector<24x128xf32> to vector<8x128xf32>
    %c22_1190 = arith.constant 22 : index
    %c0_1191 = arith.constant 0 : index
    %c0_1192 = arith.constant 0 : index
    %1734 = vector.load %arg2[%c22_1190, %c0_1191, %c0_1192] : memref<49x8x128xf32, #tpu.memory_space<vmem>>, vector<1x8x128xf32>
    %1735 = vector.shape_cast %1734 : vector<1x8x128xf32> to vector<8x128xf32>
    %1736 = arith.mulf %1735, %1733 : vector<8x128xf32>
    %1737 = arith.addf %1731, %1736 : vector<8x128xf32>
    %c17_i32_1193 = arith.constant 17 : i32
    %1738 = tpu.dynamic_rotate %1725 by %c17_i32_1193 dim 0 : vector<24x128xf32>, i32 -> vector<24x128xf32>
    %1739 = vector.extract_strided_slice %1738 {offsets = [0, 0], sizes = [8, 128], strides = [1, 1]} : vector<24x128xf32> to vector<8x128xf32>
    %c23_1194 = arith.constant 23 : index
    %c0_1195 = arith.constant 0 : index
    %c0_1196 = arith.constant 0 : index
    %1740 = vector.load %arg2[%c23_1194, %c0_1195, %c0_1196] : memref<49x8x128xf32, #tpu.memory_space<vmem>>, vector<1x8x128xf32>
    %1741 = vector.shape_cast %1740 : vector<1x8x128xf32> to vector<8x128xf32>
    %1742 = arith.mulf %1741, %1739 : vector<8x128xf32>
    %1743 = arith.addf %1737, %1742 : vector<8x128xf32>
    %c16_i32_1197 = arith.constant 16 : i32
    %1744 = tpu.dynamic_rotate %1725 by %c16_i32_1197 dim 0 : vector<24x128xf32>, i32 -> vector<24x128xf32>
    %1745 = vector.extract_strided_slice %1744 {offsets = [0, 0], sizes = [8, 128], strides = [1, 1]} : vector<24x128xf32> to vector<8x128xf32>
    %c24_1198 = arith.constant 24 : index
    %c0_1199 = arith.constant 0 : index
    %c0_1200 = arith.constant 0 : index
    %1746 = vector.load %arg2[%c24_1198, %c0_1199, %c0_1200] : memref<49x8x128xf32, #tpu.memory_space<vmem>>, vector<1x8x128xf32>
    %1747 = vector.shape_cast %1746 : vector<1x8x128xf32> to vector<8x128xf32>
    %1748 = arith.mulf %1747, %1745 : vector<8x128xf32>
    %1749 = arith.addf %1743, %1748 : vector<8x128xf32>
    %c15_i32_1201 = arith.constant 15 : i32
    %1750 = tpu.dynamic_rotate %1725 by %c15_i32_1201 dim 0 : vector<24x128xf32>, i32 -> vector<24x128xf32>
    %1751 = vector.extract_strided_slice %1750 {offsets = [0, 0], sizes = [8, 128], strides = [1, 1]} : vector<24x128xf32> to vector<8x128xf32>
    %c25_1202 = arith.constant 25 : index
    %c0_1203 = arith.constant 0 : index
    %c0_1204 = arith.constant 0 : index
    %1752 = vector.load %arg2[%c25_1202, %c0_1203, %c0_1204] : memref<49x8x128xf32, #tpu.memory_space<vmem>>, vector<1x8x128xf32>
    %1753 = vector.shape_cast %1752 : vector<1x8x128xf32> to vector<8x128xf32>
    %1754 = arith.mulf %1753, %1751 : vector<8x128xf32>
    %1755 = arith.addf %1749, %1754 : vector<8x128xf32>
    %c14_i32_1205 = arith.constant 14 : i32
    %1756 = tpu.dynamic_rotate %1725 by %c14_i32_1205 dim 0 : vector<24x128xf32>, i32 -> vector<24x128xf32>
    %1757 = vector.extract_strided_slice %1756 {offsets = [0, 0], sizes = [8, 128], strides = [1, 1]} : vector<24x128xf32> to vector<8x128xf32>
    %c26_1206 = arith.constant 26 : index
    %c0_1207 = arith.constant 0 : index
    %c0_1208 = arith.constant 0 : index
    %1758 = vector.load %arg2[%c26_1206, %c0_1207, %c0_1208] : memref<49x8x128xf32, #tpu.memory_space<vmem>>, vector<1x8x128xf32>
    %1759 = vector.shape_cast %1758 : vector<1x8x128xf32> to vector<8x128xf32>
    %1760 = arith.mulf %1759, %1757 : vector<8x128xf32>
    %1761 = arith.addf %1755, %1760 : vector<8x128xf32>
    %c13_i32_1209 = arith.constant 13 : i32
    %1762 = tpu.dynamic_rotate %1725 by %c13_i32_1209 dim 0 : vector<24x128xf32>, i32 -> vector<24x128xf32>
    %1763 = vector.extract_strided_slice %1762 {offsets = [0, 0], sizes = [8, 128], strides = [1, 1]} : vector<24x128xf32> to vector<8x128xf32>
    %c27_1210 = arith.constant 27 : index
    %c0_1211 = arith.constant 0 : index
    %c0_1212 = arith.constant 0 : index
    %1764 = vector.load %arg2[%c27_1210, %c0_1211, %c0_1212] : memref<49x8x128xf32, #tpu.memory_space<vmem>>, vector<1x8x128xf32>
    %1765 = vector.shape_cast %1764 : vector<1x8x128xf32> to vector<8x128xf32>
    %1766 = arith.mulf %1765, %1763 : vector<8x128xf32>
    %1767 = arith.addf %1761, %1766 : vector<8x128xf32>
    %c9_1213 = arith.constant 9 : index
    %c0_1214 = arith.constant 0 : index
    %c0_1215 = arith.constant 0 : index
    %1768 = vector.load %arg5[%c9_1213, %c0_1214, %c0_1215] : memref<14x24x128xf32, #tpu.memory_space<vmem>>, vector<1x24x128xf32>
    %1769 = vector.shape_cast %1768 : vector<1x24x128xf32> to vector<24x128xf32>
    %c19_i32_1216 = arith.constant 19 : i32
    %1770 = tpu.dynamic_rotate %1769 by %c19_i32_1216 dim 0 : vector<24x128xf32>, i32 -> vector<24x128xf32>
    %1771 = vector.extract_strided_slice %1770 {offsets = [0, 0], sizes = [8, 128], strides = [1, 1]} : vector<24x128xf32> to vector<8x128xf32>
    %c28_1217 = arith.constant 28 : index
    %c0_1218 = arith.constant 0 : index
    %c0_1219 = arith.constant 0 : index
    %1772 = vector.load %arg2[%c28_1217, %c0_1218, %c0_1219] : memref<49x8x128xf32, #tpu.memory_space<vmem>>, vector<1x8x128xf32>
    %1773 = vector.shape_cast %1772 : vector<1x8x128xf32> to vector<8x128xf32>
    %1774 = arith.mulf %1773, %1771 : vector<8x128xf32>
    %1775 = arith.addf %1767, %1774 : vector<8x128xf32>
    %c18_i32_1220 = arith.constant 18 : i32
    %1776 = tpu.dynamic_rotate %1769 by %c18_i32_1220 dim 0 : vector<24x128xf32>, i32 -> vector<24x128xf32>
    %1777 = vector.extract_strided_slice %1776 {offsets = [0, 0], sizes = [8, 128], strides = [1, 1]} : vector<24x128xf32> to vector<8x128xf32>
    %c29_1221 = arith.constant 29 : index
    %c0_1222 = arith.constant 0 : index
    %c0_1223 = arith.constant 0 : index
    %1778 = vector.load %arg2[%c29_1221, %c0_1222, %c0_1223] : memref<49x8x128xf32, #tpu.memory_space<vmem>>, vector<1x8x128xf32>
    %1779 = vector.shape_cast %1778 : vector<1x8x128xf32> to vector<8x128xf32>
    %1780 = arith.mulf %1779, %1777 : vector<8x128xf32>
    %1781 = arith.addf %1775, %1780 : vector<8x128xf32>
    %c17_i32_1224 = arith.constant 17 : i32
    %1782 = tpu.dynamic_rotate %1769 by %c17_i32_1224 dim 0 : vector<24x128xf32>, i32 -> vector<24x128xf32>
    %1783 = vector.extract_strided_slice %1782 {offsets = [0, 0], sizes = [8, 128], strides = [1, 1]} : vector<24x128xf32> to vector<8x128xf32>
    %c30_1225 = arith.constant 30 : index
    %c0_1226 = arith.constant 0 : index
    %c0_1227 = arith.constant 0 : index
    %1784 = vector.load %arg2[%c30_1225, %c0_1226, %c0_1227] : memref<49x8x128xf32, #tpu.memory_space<vmem>>, vector<1x8x128xf32>
    %1785 = vector.shape_cast %1784 : vector<1x8x128xf32> to vector<8x128xf32>
    %1786 = arith.mulf %1785, %1783 : vector<8x128xf32>
    %1787 = arith.addf %1781, %1786 : vector<8x128xf32>
    %c16_i32_1228 = arith.constant 16 : i32
    %1788 = tpu.dynamic_rotate %1769 by %c16_i32_1228 dim 0 : vector<24x128xf32>, i32 -> vector<24x128xf32>
    %1789 = vector.extract_strided_slice %1788 {offsets = [0, 0], sizes = [8, 128], strides = [1, 1]} : vector<24x128xf32> to vector<8x128xf32>
    %c31_1229 = arith.constant 31 : index
    %c0_1230 = arith.constant 0 : index
    %c0_1231 = arith.constant 0 : index
    %1790 = vector.load %arg2[%c31_1229, %c0_1230, %c0_1231] : memref<49x8x128xf32, #tpu.memory_space<vmem>>, vector<1x8x128xf32>
    %1791 = vector.shape_cast %1790 : vector<1x8x128xf32> to vector<8x128xf32>
    %1792 = arith.mulf %1791, %1789 : vector<8x128xf32>
    %1793 = arith.addf %1787, %1792 : vector<8x128xf32>
    %c15_i32_1232 = arith.constant 15 : i32
    %1794 = tpu.dynamic_rotate %1769 by %c15_i32_1232 dim 0 : vector<24x128xf32>, i32 -> vector<24x128xf32>
    %1795 = vector.extract_strided_slice %1794 {offsets = [0, 0], sizes = [8, 128], strides = [1, 1]} : vector<24x128xf32> to vector<8x128xf32>
    %c32_1233 = arith.constant 32 : index
    %c0_1234 = arith.constant 0 : index
    %c0_1235 = arith.constant 0 : index
    %1796 = vector.load %arg2[%c32_1233, %c0_1234, %c0_1235] : memref<49x8x128xf32, #tpu.memory_space<vmem>>, vector<1x8x128xf32>
    %1797 = vector.shape_cast %1796 : vector<1x8x128xf32> to vector<8x128xf32>
    %1798 = arith.mulf %1797, %1795 : vector<8x128xf32>
    %1799 = arith.addf %1793, %1798 : vector<8x128xf32>
    %c14_i32_1236 = arith.constant 14 : i32
    %1800 = tpu.dynamic_rotate %1769 by %c14_i32_1236 dim 0 : vector<24x128xf32>, i32 -> vector<24x128xf32>
    %1801 = vector.extract_strided_slice %1800 {offsets = [0, 0], sizes = [8, 128], strides = [1, 1]} : vector<24x128xf32> to vector<8x128xf32>
    %c33_1237 = arith.constant 33 : index
    %c0_1238 = arith.constant 0 : index
    %c0_1239 = arith.constant 0 : index
    %1802 = vector.load %arg2[%c33_1237, %c0_1238, %c0_1239] : memref<49x8x128xf32, #tpu.memory_space<vmem>>, vector<1x8x128xf32>
    %1803 = vector.shape_cast %1802 : vector<1x8x128xf32> to vector<8x128xf32>
    %1804 = arith.mulf %1803, %1801 : vector<8x128xf32>
    %1805 = arith.addf %1799, %1804 : vector<8x128xf32>
    %c13_i32_1240 = arith.constant 13 : i32
    %1806 = tpu.dynamic_rotate %1769 by %c13_i32_1240 dim 0 : vector<24x128xf32>, i32 -> vector<24x128xf32>
    %1807 = vector.extract_strided_slice %1806 {offsets = [0, 0], sizes = [8, 128], strides = [1, 1]} : vector<24x128xf32> to vector<8x128xf32>
    %c34_1241 = arith.constant 34 : index
    %c0_1242 = arith.constant 0 : index
    %c0_1243 = arith.constant 0 : index
    %1808 = vector.load %arg2[%c34_1241, %c0_1242, %c0_1243] : memref<49x8x128xf32, #tpu.memory_space<vmem>>, vector<1x8x128xf32>
    %1809 = vector.shape_cast %1808 : vector<1x8x128xf32> to vector<8x128xf32>
    %1810 = arith.mulf %1809, %1807 : vector<8x128xf32>
    %1811 = arith.addf %1805, %1810 : vector<8x128xf32>
    %c10_1244 = arith.constant 10 : index
    %c0_1245 = arith.constant 0 : index
    %c0_1246 = arith.constant 0 : index
    %1812 = vector.load %arg5[%c10_1244, %c0_1245, %c0_1246] : memref<14x24x128xf32, #tpu.memory_space<vmem>>, vector<1x24x128xf32>
    %1813 = vector.shape_cast %1812 : vector<1x24x128xf32> to vector<24x128xf32>
    %c19_i32_1247 = arith.constant 19 : i32
    %1814 = tpu.dynamic_rotate %1813 by %c19_i32_1247 dim 0 : vector<24x128xf32>, i32 -> vector<24x128xf32>
    %1815 = vector.extract_strided_slice %1814 {offsets = [0, 0], sizes = [8, 128], strides = [1, 1]} : vector<24x128xf32> to vector<8x128xf32>
    %c35_1248 = arith.constant 35 : index
    %c0_1249 = arith.constant 0 : index
    %c0_1250 = arith.constant 0 : index
    %1816 = vector.load %arg2[%c35_1248, %c0_1249, %c0_1250] : memref<49x8x128xf32, #tpu.memory_space<vmem>>, vector<1x8x128xf32>
    %1817 = vector.shape_cast %1816 : vector<1x8x128xf32> to vector<8x128xf32>
    %1818 = arith.mulf %1817, %1815 : vector<8x128xf32>
    %1819 = arith.addf %1811, %1818 : vector<8x128xf32>
    %c18_i32_1251 = arith.constant 18 : i32
    %1820 = tpu.dynamic_rotate %1813 by %c18_i32_1251 dim 0 : vector<24x128xf32>, i32 -> vector<24x128xf32>
    %1821 = vector.extract_strided_slice %1820 {offsets = [0, 0], sizes = [8, 128], strides = [1, 1]} : vector<24x128xf32> to vector<8x128xf32>
    %c36_1252 = arith.constant 36 : index
    %c0_1253 = arith.constant 0 : index
    %c0_1254 = arith.constant 0 : index
    %1822 = vector.load %arg2[%c36_1252, %c0_1253, %c0_1254] : memref<49x8x128xf32, #tpu.memory_space<vmem>>, vector<1x8x128xf32>
    %1823 = vector.shape_cast %1822 : vector<1x8x128xf32> to vector<8x128xf32>
    %1824 = arith.mulf %1823, %1821 : vector<8x128xf32>
    %1825 = arith.addf %1819, %1824 : vector<8x128xf32>
    %c17_i32_1255 = arith.constant 17 : i32
    %1826 = tpu.dynamic_rotate %1813 by %c17_i32_1255 dim 0 : vector<24x128xf32>, i32 -> vector<24x128xf32>
    %1827 = vector.extract_strided_slice %1826 {offsets = [0, 0], sizes = [8, 128], strides = [1, 1]} : vector<24x128xf32> to vector<8x128xf32>
    %c37_1256 = arith.constant 37 : index
    %c0_1257 = arith.constant 0 : index
    %c0_1258 = arith.constant 0 : index
    %1828 = vector.load %arg2[%c37_1256, %c0_1257, %c0_1258] : memref<49x8x128xf32, #tpu.memory_space<vmem>>, vector<1x8x128xf32>
    %1829 = vector.shape_cast %1828 : vector<1x8x128xf32> to vector<8x128xf32>
    %1830 = arith.mulf %1829, %1827 : vector<8x128xf32>
    %1831 = arith.addf %1825, %1830 : vector<8x128xf32>
    %c16_i32_1259 = arith.constant 16 : i32
    %1832 = tpu.dynamic_rotate %1813 by %c16_i32_1259 dim 0 : vector<24x128xf32>, i32 -> vector<24x128xf32>
    %1833 = vector.extract_strided_slice %1832 {offsets = [0, 0], sizes = [8, 128], strides = [1, 1]} : vector<24x128xf32> to vector<8x128xf32>
    %c38_1260 = arith.constant 38 : index
    %c0_1261 = arith.constant 0 : index
    %c0_1262 = arith.constant 0 : index
    %1834 = vector.load %arg2[%c38_1260, %c0_1261, %c0_1262] : memref<49x8x128xf32, #tpu.memory_space<vmem>>, vector<1x8x128xf32>
    %1835 = vector.shape_cast %1834 : vector<1x8x128xf32> to vector<8x128xf32>
    %1836 = arith.mulf %1835, %1833 : vector<8x128xf32>
    %1837 = arith.addf %1831, %1836 : vector<8x128xf32>
    %c15_i32_1263 = arith.constant 15 : i32
    %1838 = tpu.dynamic_rotate %1813 by %c15_i32_1263 dim 0 : vector<24x128xf32>, i32 -> vector<24x128xf32>
    %1839 = vector.extract_strided_slice %1838 {offsets = [0, 0], sizes = [8, 128], strides = [1, 1]} : vector<24x128xf32> to vector<8x128xf32>
    %c39_1264 = arith.constant 39 : index
    %c0_1265 = arith.constant 0 : index
    %c0_1266 = arith.constant 0 : index
    %1840 = vector.load %arg2[%c39_1264, %c0_1265, %c0_1266] : memref<49x8x128xf32, #tpu.memory_space<vmem>>, vector<1x8x128xf32>
    %1841 = vector.shape_cast %1840 : vector<1x8x128xf32> to vector<8x128xf32>
    %1842 = arith.mulf %1841, %1839 : vector<8x128xf32>
    %1843 = arith.addf %1837, %1842 : vector<8x128xf32>
    %c14_i32_1267 = arith.constant 14 : i32
    %1844 = tpu.dynamic_rotate %1813 by %c14_i32_1267 dim 0 : vector<24x128xf32>, i32 -> vector<24x128xf32>
    %1845 = vector.extract_strided_slice %1844 {offsets = [0, 0], sizes = [8, 128], strides = [1, 1]} : vector<24x128xf32> to vector<8x128xf32>
    %c40_1268 = arith.constant 40 : index
    %c0_1269 = arith.constant 0 : index
    %c0_1270 = arith.constant 0 : index
    %1846 = vector.load %arg2[%c40_1268, %c0_1269, %c0_1270] : memref<49x8x128xf32, #tpu.memory_space<vmem>>, vector<1x8x128xf32>
    %1847 = vector.shape_cast %1846 : vector<1x8x128xf32> to vector<8x128xf32>
    %1848 = arith.mulf %1847, %1845 : vector<8x128xf32>
    %1849 = arith.addf %1843, %1848 : vector<8x128xf32>
    %c13_i32_1271 = arith.constant 13 : i32
    %1850 = tpu.dynamic_rotate %1813 by %c13_i32_1271 dim 0 : vector<24x128xf32>, i32 -> vector<24x128xf32>
    %1851 = vector.extract_strided_slice %1850 {offsets = [0, 0], sizes = [8, 128], strides = [1, 1]} : vector<24x128xf32> to vector<8x128xf32>
    %c41_1272 = arith.constant 41 : index
    %c0_1273 = arith.constant 0 : index
    %c0_1274 = arith.constant 0 : index
    %1852 = vector.load %arg2[%c41_1272, %c0_1273, %c0_1274] : memref<49x8x128xf32, #tpu.memory_space<vmem>>, vector<1x8x128xf32>
    %1853 = vector.shape_cast %1852 : vector<1x8x128xf32> to vector<8x128xf32>
    %1854 = arith.mulf %1853, %1851 : vector<8x128xf32>
    %1855 = arith.addf %1849, %1854 : vector<8x128xf32>
    %c11_1275 = arith.constant 11 : index
    %c0_1276 = arith.constant 0 : index
    %c0_1277 = arith.constant 0 : index
    %1856 = vector.load %arg5[%c11_1275, %c0_1276, %c0_1277] : memref<14x24x128xf32, #tpu.memory_space<vmem>>, vector<1x24x128xf32>
    %1857 = vector.shape_cast %1856 : vector<1x24x128xf32> to vector<24x128xf32>
    %c19_i32_1278 = arith.constant 19 : i32
    %1858 = tpu.dynamic_rotate %1857 by %c19_i32_1278 dim 0 : vector<24x128xf32>, i32 -> vector<24x128xf32>
    %1859 = vector.extract_strided_slice %1858 {offsets = [0, 0], sizes = [8, 128], strides = [1, 1]} : vector<24x128xf32> to vector<8x128xf32>
    %c42_1279 = arith.constant 42 : index
    %c0_1280 = arith.constant 0 : index
    %c0_1281 = arith.constant 0 : index
    %1860 = vector.load %arg2[%c42_1279, %c0_1280, %c0_1281] : memref<49x8x128xf32, #tpu.memory_space<vmem>>, vector<1x8x128xf32>
    %1861 = vector.shape_cast %1860 : vector<1x8x128xf32> to vector<8x128xf32>
    %1862 = arith.mulf %1861, %1859 : vector<8x128xf32>
    %1863 = arith.addf %1855, %1862 : vector<8x128xf32>
    %c18_i32_1282 = arith.constant 18 : i32
    %1864 = tpu.dynamic_rotate %1857 by %c18_i32_1282 dim 0 : vector<24x128xf32>, i32 -> vector<24x128xf32>
    %1865 = vector.extract_strided_slice %1864 {offsets = [0, 0], sizes = [8, 128], strides = [1, 1]} : vector<24x128xf32> to vector<8x128xf32>
    %c43_1283 = arith.constant 43 : index
    %c0_1284 = arith.constant 0 : index
    %c0_1285 = arith.constant 0 : index
    %1866 = vector.load %arg2[%c43_1283, %c0_1284, %c0_1285] : memref<49x8x128xf32, #tpu.memory_space<vmem>>, vector<1x8x128xf32>
    %1867 = vector.shape_cast %1866 : vector<1x8x128xf32> to vector<8x128xf32>
    %1868 = arith.mulf %1867, %1865 : vector<8x128xf32>
    %1869 = arith.addf %1863, %1868 : vector<8x128xf32>
    %c17_i32_1286 = arith.constant 17 : i32
    %1870 = tpu.dynamic_rotate %1857 by %c17_i32_1286 dim 0 : vector<24x128xf32>, i32 -> vector<24x128xf32>
    %1871 = vector.extract_strided_slice %1870 {offsets = [0, 0], sizes = [8, 128], strides = [1, 1]} : vector<24x128xf32> to vector<8x128xf32>
    %c44_1287 = arith.constant 44 : index
    %c0_1288 = arith.constant 0 : index
    %c0_1289 = arith.constant 0 : index
    %1872 = vector.load %arg2[%c44_1287, %c0_1288, %c0_1289] : memref<49x8x128xf32, #tpu.memory_space<vmem>>, vector<1x8x128xf32>
    %1873 = vector.shape_cast %1872 : vector<1x8x128xf32> to vector<8x128xf32>
    %1874 = arith.mulf %1873, %1871 : vector<8x128xf32>
    %1875 = arith.addf %1869, %1874 : vector<8x128xf32>
    %c16_i32_1290 = arith.constant 16 : i32
    %1876 = tpu.dynamic_rotate %1857 by %c16_i32_1290 dim 0 : vector<24x128xf32>, i32 -> vector<24x128xf32>
    %1877 = vector.extract_strided_slice %1876 {offsets = [0, 0], sizes = [8, 128], strides = [1, 1]} : vector<24x128xf32> to vector<8x128xf32>
    %c45_1291 = arith.constant 45 : index
    %c0_1292 = arith.constant 0 : index
    %c0_1293 = arith.constant 0 : index
    %1878 = vector.load %arg2[%c45_1291, %c0_1292, %c0_1293] : memref<49x8x128xf32, #tpu.memory_space<vmem>>, vector<1x8x128xf32>
    %1879 = vector.shape_cast %1878 : vector<1x8x128xf32> to vector<8x128xf32>
    %1880 = arith.mulf %1879, %1877 : vector<8x128xf32>
    %1881 = arith.addf %1875, %1880 : vector<8x128xf32>
    %c15_i32_1294 = arith.constant 15 : i32
    %1882 = tpu.dynamic_rotate %1857 by %c15_i32_1294 dim 0 : vector<24x128xf32>, i32 -> vector<24x128xf32>
    %1883 = vector.extract_strided_slice %1882 {offsets = [0, 0], sizes = [8, 128], strides = [1, 1]} : vector<24x128xf32> to vector<8x128xf32>
    %c46_1295 = arith.constant 46 : index
    %c0_1296 = arith.constant 0 : index
    %c0_1297 = arith.constant 0 : index
    %1884 = vector.load %arg2[%c46_1295, %c0_1296, %c0_1297] : memref<49x8x128xf32, #tpu.memory_space<vmem>>, vector<1x8x128xf32>
    %1885 = vector.shape_cast %1884 : vector<1x8x128xf32> to vector<8x128xf32>
    %1886 = arith.mulf %1885, %1883 : vector<8x128xf32>
    %1887 = arith.addf %1881, %1886 : vector<8x128xf32>
    %c14_i32_1298 = arith.constant 14 : i32
    %1888 = tpu.dynamic_rotate %1857 by %c14_i32_1298 dim 0 : vector<24x128xf32>, i32 -> vector<24x128xf32>
    %1889 = vector.extract_strided_slice %1888 {offsets = [0, 0], sizes = [8, 128], strides = [1, 1]} : vector<24x128xf32> to vector<8x128xf32>
    %c47_1299 = arith.constant 47 : index
    %c0_1300 = arith.constant 0 : index
    %c0_1301 = arith.constant 0 : index
    %1890 = vector.load %arg2[%c47_1299, %c0_1300, %c0_1301] : memref<49x8x128xf32, #tpu.memory_space<vmem>>, vector<1x8x128xf32>
    %1891 = vector.shape_cast %1890 : vector<1x8x128xf32> to vector<8x128xf32>
    %1892 = arith.mulf %1891, %1889 : vector<8x128xf32>
    %1893 = arith.addf %1887, %1892 : vector<8x128xf32>
    %c13_i32_1302 = arith.constant 13 : i32
    %1894 = tpu.dynamic_rotate %1857 by %c13_i32_1302 dim 0 : vector<24x128xf32>, i32 -> vector<24x128xf32>
    %1895 = vector.extract_strided_slice %1894 {offsets = [0, 0], sizes = [8, 128], strides = [1, 1]} : vector<24x128xf32> to vector<8x128xf32>
    %c48_1303 = arith.constant 48 : index
    %c0_1304 = arith.constant 0 : index
    %c0_1305 = arith.constant 0 : index
    %1896 = vector.load %arg2[%c48_1303, %c0_1304, %c0_1305] : memref<49x8x128xf32, #tpu.memory_space<vmem>>, vector<1x8x128xf32>
    %1897 = vector.shape_cast %1896 : vector<1x8x128xf32> to vector<8x128xf32>
    %1898 = arith.mulf %1897, %1895 : vector<8x128xf32>
    %1899 = arith.addf %1893, %1898 : vector<8x128xf32>
    %c40_1306 = arith.constant 40 : index
    %c0_1307 = arith.constant 0 : index
    %1900 = vector.load %arg6[%c40_1306, %c0_1307] : memref<64x128xf32, #tpu.memory_space<vmem>>, vector<8x128xf32>
    tpu.vector_store %arg6[%c40_1306, %c0_1307], %1899 {strides = array<i32>} : memref<64x128xf32, #tpu.memory_space<vmem>>, vector<8x128xf32>,
    %c6_1308 = arith.constant 6 : index
    %c0_1309 = arith.constant 0 : index
    %c0_1310 = arith.constant 0 : index
    %1901 = vector.load %arg5[%c6_1308, %c0_1309, %c0_1310] : memref<14x24x128xf32, #tpu.memory_space<vmem>>, vector<1x24x128xf32>
    %1902 = vector.shape_cast %1901 : vector<1x24x128xf32> to vector<24x128xf32>
    %c19_i32_1311 = arith.constant 19 : i32
    %1903 = tpu.dynamic_rotate %1902 by %c19_i32_1311 dim 0 : vector<24x128xf32>, i32 -> vector<24x128xf32>
    %1904 = vector.extract_strided_slice %1903 {offsets = [0, 0], sizes = [8, 128], strides = [1, 1]} : vector<24x128xf32> to vector<8x128xf32>
    %c0_1312 = arith.constant 0 : index
    %c0_1313 = arith.constant 0 : index
    %c0_1314 = arith.constant 0 : index
    %1905 = vector.load %arg2[%c0_1312, %c0_1313, %c0_1314] : memref<49x8x128xf32, #tpu.memory_space<vmem>>, vector<1x8x128xf32>
    %1906 = vector.shape_cast %1905 : vector<1x8x128xf32> to vector<8x128xf32>
    %1907 = arith.mulf %1906, %1904 : vector<8x128xf32>
    %1908 = arith.addf %12, %1907 : vector<8x128xf32>
    %c18_i32_1315 = arith.constant 18 : i32
    %1909 = tpu.dynamic_rotate %1902 by %c18_i32_1315 dim 0 : vector<24x128xf32>, i32 -> vector<24x128xf32>
    %1910 = vector.extract_strided_slice %1909 {offsets = [0, 0], sizes = [8, 128], strides = [1, 1]} : vector<24x128xf32> to vector<8x128xf32>
    %c1_1316 = arith.constant 1 : index
    %c0_1317 = arith.constant 0 : index
    %c0_1318 = arith.constant 0 : index
    %1911 = vector.load %arg2[%c1_1316, %c0_1317, %c0_1318] : memref<49x8x128xf32, #tpu.memory_space<vmem>>, vector<1x8x128xf32>
    %1912 = vector.shape_cast %1911 : vector<1x8x128xf32> to vector<8x128xf32>
    %1913 = arith.mulf %1912, %1910 : vector<8x128xf32>
    %1914 = arith.addf %1908, %1913 : vector<8x128xf32>
    %c17_i32_1319 = arith.constant 17 : i32
    %1915 = tpu.dynamic_rotate %1902 by %c17_i32_1319 dim 0 : vector<24x128xf32>, i32 -> vector<24x128xf32>
    %1916 = vector.extract_strided_slice %1915 {offsets = [0, 0], sizes = [8, 128], strides = [1, 1]} : vector<24x128xf32> to vector<8x128xf32>
    %c2_1320 = arith.constant 2 : index
    %c0_1321 = arith.constant 0 : index
    %c0_1322 = arith.constant 0 : index
    %1917 = vector.load %arg2[%c2_1320, %c0_1321, %c0_1322] : memref<49x8x128xf32, #tpu.memory_space<vmem>>, vector<1x8x128xf32>
    %1918 = vector.shape_cast %1917 : vector<1x8x128xf32> to vector<8x128xf32>
    %1919 = arith.mulf %1918, %1916 : vector<8x128xf32>
    %1920 = arith.addf %1914, %1919 : vector<8x128xf32>
    %c16_i32_1323 = arith.constant 16 : i32
    %1921 = tpu.dynamic_rotate %1902 by %c16_i32_1323 dim 0 : vector<24x128xf32>, i32 -> vector<24x128xf32>
    %1922 = vector.extract_strided_slice %1921 {offsets = [0, 0], sizes = [8, 128], strides = [1, 1]} : vector<24x128xf32> to vector<8x128xf32>
    %c3_1324 = arith.constant 3 : index
    %c0_1325 = arith.constant 0 : index
    %c0_1326 = arith.constant 0 : index
    %1923 = vector.load %arg2[%c3_1324, %c0_1325, %c0_1326] : memref<49x8x128xf32, #tpu.memory_space<vmem>>, vector<1x8x128xf32>
    %1924 = vector.shape_cast %1923 : vector<1x8x128xf32> to vector<8x128xf32>
    %1925 = arith.mulf %1924, %1922 : vector<8x128xf32>
    %1926 = arith.addf %1920, %1925 : vector<8x128xf32>
    %c15_i32_1327 = arith.constant 15 : i32
    %1927 = tpu.dynamic_rotate %1902 by %c15_i32_1327 dim 0 : vector<24x128xf32>, i32 -> vector<24x128xf32>
    %1928 = vector.extract_strided_slice %1927 {offsets = [0, 0], sizes = [8, 128], strides = [1, 1]} : vector<24x128xf32> to vector<8x128xf32>
    %c4_1328 = arith.constant 4 : index
    %c0_1329 = arith.constant 0 : index
    %c0_1330 = arith.constant 0 : index
    %1929 = vector.load %arg2[%c4_1328, %c0_1329, %c0_1330] : memref<49x8x128xf32, #tpu.memory_space<vmem>>, vector<1x8x128xf32>
    %1930 = vector.shape_cast %1929 : vector<1x8x128xf32> to vector<8x128xf32>
    %1931 = arith.mulf %1930, %1928 : vector<8x128xf32>
    %1932 = arith.addf %1926, %1931 : vector<8x128xf32>
    %c14_i32_1331 = arith.constant 14 : i32
    %1933 = tpu.dynamic_rotate %1902 by %c14_i32_1331 dim 0 : vector<24x128xf32>, i32 -> vector<24x128xf32>
    %1934 = vector.extract_strided_slice %1933 {offsets = [0, 0], sizes = [8, 128], strides = [1, 1]} : vector<24x128xf32> to vector<8x128xf32>
    %c5_1332 = arith.constant 5 : index
    %c0_1333 = arith.constant 0 : index
    %c0_1334 = arith.constant 0 : index
    %1935 = vector.load %arg2[%c5_1332, %c0_1333, %c0_1334] : memref<49x8x128xf32, #tpu.memory_space<vmem>>, vector<1x8x128xf32>
    %1936 = vector.shape_cast %1935 : vector<1x8x128xf32> to vector<8x128xf32>
    %1937 = arith.mulf %1936, %1934 : vector<8x128xf32>
    %1938 = arith.addf %1932, %1937 : vector<8x128xf32>
    %c13_i32_1335 = arith.constant 13 : i32
    %1939 = tpu.dynamic_rotate %1902 by %c13_i32_1335 dim 0 : vector<24x128xf32>, i32 -> vector<24x128xf32>
    %1940 = vector.extract_strided_slice %1939 {offsets = [0, 0], sizes = [8, 128], strides = [1, 1]} : vector<24x128xf32> to vector<8x128xf32>
    %c6_1336 = arith.constant 6 : index
    %c0_1337 = arith.constant 0 : index
    %c0_1338 = arith.constant 0 : index
    %1941 = vector.load %arg2[%c6_1336, %c0_1337, %c0_1338] : memref<49x8x128xf32, #tpu.memory_space<vmem>>, vector<1x8x128xf32>
    %1942 = vector.shape_cast %1941 : vector<1x8x128xf32> to vector<8x128xf32>
    %1943 = arith.mulf %1942, %1940 : vector<8x128xf32>
    %1944 = arith.addf %1938, %1943 : vector<8x128xf32>
    %c7_1339 = arith.constant 7 : index
    %c0_1340 = arith.constant 0 : index
    %c0_1341 = arith.constant 0 : index
    %1945 = vector.load %arg5[%c7_1339, %c0_1340, %c0_1341] : memref<14x24x128xf32, #tpu.memory_space<vmem>>, vector<1x24x128xf32>
    %1946 = vector.shape_cast %1945 : vector<1x24x128xf32> to vector<24x128xf32>
    %c19_i32_1342 = arith.constant 19 : i32
    %1947 = tpu.dynamic_rotate %1946 by %c19_i32_1342 dim 0 : vector<24x128xf32>, i32 -> vector<24x128xf32>
    %1948 = vector.extract_strided_slice %1947 {offsets = [0, 0], sizes = [8, 128], strides = [1, 1]} : vector<24x128xf32> to vector<8x128xf32>
    %c7_1343 = arith.constant 7 : index
    %c0_1344 = arith.constant 0 : index
    %c0_1345 = arith.constant 0 : index
    %1949 = vector.load %arg2[%c7_1343, %c0_1344, %c0_1345] : memref<49x8x128xf32, #tpu.memory_space<vmem>>, vector<1x8x128xf32>
    %1950 = vector.shape_cast %1949 : vector<1x8x128xf32> to vector<8x128xf32>
    %1951 = arith.mulf %1950, %1948 : vector<8x128xf32>
    %1952 = arith.addf %1944, %1951 : vector<8x128xf32>
    %c18_i32_1346 = arith.constant 18 : i32
    %1953 = tpu.dynamic_rotate %1946 by %c18_i32_1346 dim 0 : vector<24x128xf32>, i32 -> vector<24x128xf32>
    %1954 = vector.extract_strided_slice %1953 {offsets = [0, 0], sizes = [8, 128], strides = [1, 1]} : vector<24x128xf32> to vector<8x128xf32>
    %c8_1347 = arith.constant 8 : index
    %c0_1348 = arith.constant 0 : index
    %c0_1349 = arith.constant 0 : index
    %1955 = vector.load %arg2[%c8_1347, %c0_1348, %c0_1349] : memref<49x8x128xf32, #tpu.memory_space<vmem>>, vector<1x8x128xf32>
    %1956 = vector.shape_cast %1955 : vector<1x8x128xf32> to vector<8x128xf32>
    %1957 = arith.mulf %1956, %1954 : vector<8x128xf32>
    %1958 = arith.addf %1952, %1957 : vector<8x128xf32>
    %c17_i32_1350 = arith.constant 17 : i32
    %1959 = tpu.dynamic_rotate %1946 by %c17_i32_1350 dim 0 : vector<24x128xf32>, i32 -> vector<24x128xf32>
    %1960 = vector.extract_strided_slice %1959 {offsets = [0, 0], sizes = [8, 128], strides = [1, 1]} : vector<24x128xf32> to vector<8x128xf32>
    %c9_1351 = arith.constant 9 : index
    %c0_1352 = arith.constant 0 : index
    %c0_1353 = arith.constant 0 : index
    %1961 = vector.load %arg2[%c9_1351, %c0_1352, %c0_1353] : memref<49x8x128xf32, #tpu.memory_space<vmem>>, vector<1x8x128xf32>
    %1962 = vector.shape_cast %1961 : vector<1x8x128xf32> to vector<8x128xf32>
    %1963 = arith.mulf %1962, %1960 : vector<8x128xf32>
    %1964 = arith.addf %1958, %1963 : vector<8x128xf32>
    %c16_i32_1354 = arith.constant 16 : i32
    %1965 = tpu.dynamic_rotate %1946 by %c16_i32_1354 dim 0 : vector<24x128xf32>, i32 -> vector<24x128xf32>
    %1966 = vector.extract_strided_slice %1965 {offsets = [0, 0], sizes = [8, 128], strides = [1, 1]} : vector<24x128xf32> to vector<8x128xf32>
    %c10_1355 = arith.constant 10 : index
    %c0_1356 = arith.constant 0 : index
    %c0_1357 = arith.constant 0 : index
    %1967 = vector.load %arg2[%c10_1355, %c0_1356, %c0_1357] : memref<49x8x128xf32, #tpu.memory_space<vmem>>, vector<1x8x128xf32>
    %1968 = vector.shape_cast %1967 : vector<1x8x128xf32> to vector<8x128xf32>
    %1969 = arith.mulf %1968, %1966 : vector<8x128xf32>
    %1970 = arith.addf %1964, %1969 : vector<8x128xf32>
    %c15_i32_1358 = arith.constant 15 : i32
    %1971 = tpu.dynamic_rotate %1946 by %c15_i32_1358 dim 0 : vector<24x128xf32>, i32 -> vector<24x128xf32>
    %1972 = vector.extract_strided_slice %1971 {offsets = [0, 0], sizes = [8, 128], strides = [1, 1]} : vector<24x128xf32> to vector<8x128xf32>
    %c11_1359 = arith.constant 11 : index
    %c0_1360 = arith.constant 0 : index
    %c0_1361 = arith.constant 0 : index
    %1973 = vector.load %arg2[%c11_1359, %c0_1360, %c0_1361] : memref<49x8x128xf32, #tpu.memory_space<vmem>>, vector<1x8x128xf32>
    %1974 = vector.shape_cast %1973 : vector<1x8x128xf32> to vector<8x128xf32>
    %1975 = arith.mulf %1974, %1972 : vector<8x128xf32>
    %1976 = arith.addf %1970, %1975 : vector<8x128xf32>
    %c14_i32_1362 = arith.constant 14 : i32
    %1977 = tpu.dynamic_rotate %1946 by %c14_i32_1362 dim 0 : vector<24x128xf32>, i32 -> vector<24x128xf32>
    %1978 = vector.extract_strided_slice %1977 {offsets = [0, 0], sizes = [8, 128], strides = [1, 1]} : vector<24x128xf32> to vector<8x128xf32>
    %c12_1363 = arith.constant 12 : index
    %c0_1364 = arith.constant 0 : index
    %c0_1365 = arith.constant 0 : index
    %1979 = vector.load %arg2[%c12_1363, %c0_1364, %c0_1365] : memref<49x8x128xf32, #tpu.memory_space<vmem>>, vector<1x8x128xf32>
    %1980 = vector.shape_cast %1979 : vector<1x8x128xf32> to vector<8x128xf32>
    %1981 = arith.mulf %1980, %1978 : vector<8x128xf32>
    %1982 = arith.addf %1976, %1981 : vector<8x128xf32>
    %c13_i32_1366 = arith.constant 13 : i32
    %1983 = tpu.dynamic_rotate %1946 by %c13_i32_1366 dim 0 : vector<24x128xf32>, i32 -> vector<24x128xf32>
    %1984 = vector.extract_strided_slice %1983 {offsets = [0, 0], sizes = [8, 128], strides = [1, 1]} : vector<24x128xf32> to vector<8x128xf32>
    %c13_1367 = arith.constant 13 : index
    %c0_1368 = arith.constant 0 : index
    %c0_1369 = arith.constant 0 : index
    %1985 = vector.load %arg2[%c13_1367, %c0_1368, %c0_1369] : memref<49x8x128xf32, #tpu.memory_space<vmem>>, vector<1x8x128xf32>
    %1986 = vector.shape_cast %1985 : vector<1x8x128xf32> to vector<8x128xf32>
    %1987 = arith.mulf %1986, %1984 : vector<8x128xf32>
    %1988 = arith.addf %1982, %1987 : vector<8x128xf32>
    %c8_1370 = arith.constant 8 : index
    %c0_1371 = arith.constant 0 : index
    %c0_1372 = arith.constant 0 : index
    %1989 = vector.load %arg5[%c8_1370, %c0_1371, %c0_1372] : memref<14x24x128xf32, #tpu.memory_space<vmem>>, vector<1x24x128xf32>
    %1990 = vector.shape_cast %1989 : vector<1x24x128xf32> to vector<24x128xf32>
    %c19_i32_1373 = arith.constant 19 : i32
    %1991 = tpu.dynamic_rotate %1990 by %c19_i32_1373 dim 0 : vector<24x128xf32>, i32 -> vector<24x128xf32>
    %1992 = vector.extract_strided_slice %1991 {offsets = [0, 0], sizes = [8, 128], strides = [1, 1]} : vector<24x128xf32> to vector<8x128xf32>
    %c14_1374 = arith.constant 14 : index
    %c0_1375 = arith.constant 0 : index
    %c0_1376 = arith.constant 0 : index
    %1993 = vector.load %arg2[%c14_1374, %c0_1375, %c0_1376] : memref<49x8x128xf32, #tpu.memory_space<vmem>>, vector<1x8x128xf32>
    %1994 = vector.shape_cast %1993 : vector<1x8x128xf32> to vector<8x128xf32>
    %1995 = arith.mulf %1994, %1992 : vector<8x128xf32>
    %1996 = arith.addf %1988, %1995 : vector<8x128xf32>
    %c18_i32_1377 = arith.constant 18 : i32
    %1997 = tpu.dynamic_rotate %1990 by %c18_i32_1377 dim 0 : vector<24x128xf32>, i32 -> vector<24x128xf32>
    %1998 = vector.extract_strided_slice %1997 {offsets = [0, 0], sizes = [8, 128], strides = [1, 1]} : vector<24x128xf32> to vector<8x128xf32>
    %c15_1378 = arith.constant 15 : index
    %c0_1379 = arith.constant 0 : index
    %c0_1380 = arith.constant 0 : index
    %1999 = vector.load %arg2[%c15_1378, %c0_1379, %c0_1380] : memref<49x8x128xf32, #tpu.memory_space<vmem>>, vector<1x8x128xf32>
    %2000 = vector.shape_cast %1999 : vector<1x8x128xf32> to vector<8x128xf32>
    %2001 = arith.mulf %2000, %1998 : vector<8x128xf32>
    %2002 = arith.addf %1996, %2001 : vector<8x128xf32>
    %c17_i32_1381 = arith.constant 17 : i32
    %2003 = tpu.dynamic_rotate %1990 by %c17_i32_1381 dim 0 : vector<24x128xf32>, i32 -> vector<24x128xf32>
    %2004 = vector.extract_strided_slice %2003 {offsets = [0, 0], sizes = [8, 128], strides = [1, 1]} : vector<24x128xf32> to vector<8x128xf32>
    %c16_1382 = arith.constant 16 : index
    %c0_1383 = arith.constant 0 : index
    %c0_1384 = arith.constant 0 : index
    %2005 = vector.load %arg2[%c16_1382, %c0_1383, %c0_1384] : memref<49x8x128xf32, #tpu.memory_space<vmem>>, vector<1x8x128xf32>
    %2006 = vector.shape_cast %2005 : vector<1x8x128xf32> to vector<8x128xf32>
    %2007 = arith.mulf %2006, %2004 : vector<8x128xf32>
    %2008 = arith.addf %2002, %2007 : vector<8x128xf32>
    %c16_i32_1385 = arith.constant 16 : i32
    %2009 = tpu.dynamic_rotate %1990 by %c16_i32_1385 dim 0 : vector<24x128xf32>, i32 -> vector<24x128xf32>
    %2010 = vector.extract_strided_slice %2009 {offsets = [0, 0], sizes = [8, 128], strides = [1, 1]} : vector<24x128xf32> to vector<8x128xf32>
    %c17_1386 = arith.constant 17 : index
    %c0_1387 = arith.constant 0 : index
    %c0_1388 = arith.constant 0 : index
    %2011 = vector.load %arg2[%c17_1386, %c0_1387, %c0_1388] : memref<49x8x128xf32, #tpu.memory_space<vmem>>, vector<1x8x128xf32>
    %2012 = vector.shape_cast %2011 : vector<1x8x128xf32> to vector<8x128xf32>
    %2013 = arith.mulf %2012, %2010 : vector<8x128xf32>
    %2014 = arith.addf %2008, %2013 : vector<8x128xf32>
    %c15_i32_1389 = arith.constant 15 : i32
    %2015 = tpu.dynamic_rotate %1990 by %c15_i32_1389 dim 0 : vector<24x128xf32>, i32 -> vector<24x128xf32>
    %2016 = vector.extract_strided_slice %2015 {offsets = [0, 0], sizes = [8, 128], strides = [1, 1]} : vector<24x128xf32> to vector<8x128xf32>
    %c18_1390 = arith.constant 18 : index
    %c0_1391 = arith.constant 0 : index
    %c0_1392 = arith.constant 0 : index
    %2017 = vector.load %arg2[%c18_1390, %c0_1391, %c0_1392] : memref<49x8x128xf32, #tpu.memory_space<vmem>>, vector<1x8x128xf32>
    %2018 = vector.shape_cast %2017 : vector<1x8x128xf32> to vector<8x128xf32>
    %2019 = arith.mulf %2018, %2016 : vector<8x128xf32>
    %2020 = arith.addf %2014, %2019 : vector<8x128xf32>
    %c14_i32_1393 = arith.constant 14 : i32
    %2021 = tpu.dynamic_rotate %1990 by %c14_i32_1393 dim 0 : vector<24x128xf32>, i32 -> vector<24x128xf32>
    %2022 = vector.extract_strided_slice %2021 {offsets = [0, 0], sizes = [8, 128], strides = [1, 1]} : vector<24x128xf32> to vector<8x128xf32>
    %c19_1394 = arith.constant 19 : index
    %c0_1395 = arith.constant 0 : index
    %c0_1396 = arith.constant 0 : index
    %2023 = vector.load %arg2[%c19_1394, %c0_1395, %c0_1396] : memref<49x8x128xf32, #tpu.memory_space<vmem>>, vector<1x8x128xf32>
    %2024 = vector.shape_cast %2023 : vector<1x8x128xf32> to vector<8x128xf32>
    %2025 = arith.mulf %2024, %2022 : vector<8x128xf32>
    %2026 = arith.addf %2020, %2025 : vector<8x128xf32>
    %c13_i32_1397 = arith.constant 13 : i32
    %2027 = tpu.dynamic_rotate %1990 by %c13_i32_1397 dim 0 : vector<24x128xf32>, i32 -> vector<24x128xf32>
    %2028 = vector.extract_strided_slice %2027 {offsets = [0, 0], sizes = [8, 128], strides = [1, 1]} : vector<24x128xf32> to vector<8x128xf32>
    %c20_1398 = arith.constant 20 : index
    %c0_1399 = arith.constant 0 : index
    %c0_1400 = arith.constant 0 : index
    %2029 = vector.load %arg2[%c20_1398, %c0_1399, %c0_1400] : memref<49x8x128xf32, #tpu.memory_space<vmem>>, vector<1x8x128xf32>
    %2030 = vector.shape_cast %2029 : vector<1x8x128xf32> to vector<8x128xf32>
    %2031 = arith.mulf %2030, %2028 : vector<8x128xf32>
    %2032 = arith.addf %2026, %2031 : vector<8x128xf32>
    %c9_1401 = arith.constant 9 : index
    %c0_1402 = arith.constant 0 : index
    %c0_1403 = arith.constant 0 : index
    %2033 = vector.load %arg5[%c9_1401, %c0_1402, %c0_1403] : memref<14x24x128xf32, #tpu.memory_space<vmem>>, vector<1x24x128xf32>
    %2034 = vector.shape_cast %2033 : vector<1x24x128xf32> to vector<24x128xf32>
    %c19_i32_1404 = arith.constant 19 : i32
    %2035 = tpu.dynamic_rotate %2034 by %c19_i32_1404 dim 0 : vector<24x128xf32>, i32 -> vector<24x128xf32>
    %2036 = vector.extract_strided_slice %2035 {offsets = [0, 0], sizes = [8, 128], strides = [1, 1]} : vector<24x128xf32> to vector<8x128xf32>
    %c21_1405 = arith.constant 21 : index
    %c0_1406 = arith.constant 0 : index
    %c0_1407 = arith.constant 0 : index
    %2037 = vector.load %arg2[%c21_1405, %c0_1406, %c0_1407] : memref<49x8x128xf32, #tpu.memory_space<vmem>>, vector<1x8x128xf32>
    %2038 = vector.shape_cast %2037 : vector<1x8x128xf32> to vector<8x128xf32>
    %2039 = arith.mulf %2038, %2036 : vector<8x128xf32>
    %2040 = arith.addf %2032, %2039 : vector<8x128xf32>
    %c18_i32_1408 = arith.constant 18 : i32
    %2041 = tpu.dynamic_rotate %2034 by %c18_i32_1408 dim 0 : vector<24x128xf32>, i32 -> vector<24x128xf32>
    %2042 = vector.extract_strided_slice %2041 {offsets = [0, 0], sizes = [8, 128], strides = [1, 1]} : vector<24x128xf32> to vector<8x128xf32>
    %c22_1409 = arith.constant 22 : index
    %c0_1410 = arith.constant 0 : index
    %c0_1411 = arith.constant 0 : index
    %2043 = vector.load %arg2[%c22_1409, %c0_1410, %c0_1411] : memref<49x8x128xf32, #tpu.memory_space<vmem>>, vector<1x8x128xf32>
    %2044 = vector.shape_cast %2043 : vector<1x8x128xf32> to vector<8x128xf32>
    %2045 = arith.mulf %2044, %2042 : vector<8x128xf32>
    %2046 = arith.addf %2040, %2045 : vector<8x128xf32>
    %c17_i32_1412 = arith.constant 17 : i32
    %2047 = tpu.dynamic_rotate %2034 by %c17_i32_1412 dim 0 : vector<24x128xf32>, i32 -> vector<24x128xf32>
    %2048 = vector.extract_strided_slice %2047 {offsets = [0, 0], sizes = [8, 128], strides = [1, 1]} : vector<24x128xf32> to vector<8x128xf32>
    %c23_1413 = arith.constant 23 : index
    %c0_1414 = arith.constant 0 : index
    %c0_1415 = arith.constant 0 : index
    %2049 = vector.load %arg2[%c23_1413, %c0_1414, %c0_1415] : memref<49x8x128xf32, #tpu.memory_space<vmem>>, vector<1x8x128xf32>
    %2050 = vector.shape_cast %2049 : vector<1x8x128xf32> to vector<8x128xf32>
    %2051 = arith.mulf %2050, %2048 : vector<8x128xf32>
    %2052 = arith.addf %2046, %2051 : vector<8x128xf32>
    %c16_i32_1416 = arith.constant 16 : i32
    %2053 = tpu.dynamic_rotate %2034 by %c16_i32_1416 dim 0 : vector<24x128xf32>, i32 -> vector<24x128xf32>
    %2054 = vector.extract_strided_slice %2053 {offsets = [0, 0], sizes = [8, 128], strides = [1, 1]} : vector<24x128xf32> to vector<8x128xf32>
    %c24_1417 = arith.constant 24 : index
    %c0_1418 = arith.constant 0 : index
    %c0_1419 = arith.constant 0 : index
    %2055 = vector.load %arg2[%c24_1417, %c0_1418, %c0_1419] : memref<49x8x128xf32, #tpu.memory_space<vmem>>, vector<1x8x128xf32>
    %2056 = vector.shape_cast %2055 : vector<1x8x128xf32> to vector<8x128xf32>
    %2057 = arith.mulf %2056, %2054 : vector<8x128xf32>
    %2058 = arith.addf %2052, %2057 : vector<8x128xf32>
    %c15_i32_1420 = arith.constant 15 : i32
    %2059 = tpu.dynamic_rotate %2034 by %c15_i32_1420 dim 0 : vector<24x128xf32>, i32 -> vector<24x128xf32>
    %2060 = vector.extract_strided_slice %2059 {offsets = [0, 0], sizes = [8, 128], strides = [1, 1]} : vector<24x128xf32> to vector<8x128xf32>
    %c25_1421 = arith.constant 25 : index
    %c0_1422 = arith.constant 0 : index
    %c0_1423 = arith.constant 0 : index
    %2061 = vector.load %arg2[%c25_1421, %c0_1422, %c0_1423] : memref<49x8x128xf32, #tpu.memory_space<vmem>>, vector<1x8x128xf32>
    %2062 = vector.shape_cast %2061 : vector<1x8x128xf32> to vector<8x128xf32>
    %2063 = arith.mulf %2062, %2060 : vector<8x128xf32>
    %2064 = arith.addf %2058, %2063 : vector<8x128xf32>
    %c14_i32_1424 = arith.constant 14 : i32
    %2065 = tpu.dynamic_rotate %2034 by %c14_i32_1424 dim 0 : vector<24x128xf32>, i32 -> vector<24x128xf32>
    %2066 = vector.extract_strided_slice %2065 {offsets = [0, 0], sizes = [8, 128], strides = [1, 1]} : vector<24x128xf32> to vector<8x128xf32>
    %c26_1425 = arith.constant 26 : index
    %c0_1426 = arith.constant 0 : index
    %c0_1427 = arith.constant 0 : index
    %2067 = vector.load %arg2[%c26_1425, %c0_1426, %c0_1427] : memref<49x8x128xf32, #tpu.memory_space<vmem>>, vector<1x8x128xf32>
    %2068 = vector.shape_cast %2067 : vector<1x8x128xf32> to vector<8x128xf32>
    %2069 = arith.mulf %2068, %2066 : vector<8x128xf32>
    %2070 = arith.addf %2064, %2069 : vector<8x128xf32>
    %c13_i32_1428 = arith.constant 13 : i32
    %2071 = tpu.dynamic_rotate %2034 by %c13_i32_1428 dim 0 : vector<24x128xf32>, i32 -> vector<24x128xf32>
    %2072 = vector.extract_strided_slice %2071 {offsets = [0, 0], sizes = [8, 128], strides = [1, 1]} : vector<24x128xf32> to vector<8x128xf32>
    %c27_1429 = arith.constant 27 : index
    %c0_1430 = arith.constant 0 : index
    %c0_1431 = arith.constant 0 : index
    %2073 = vector.load %arg2[%c27_1429, %c0_1430, %c0_1431] : memref<49x8x128xf32, #tpu.memory_space<vmem>>, vector<1x8x128xf32>
    %2074 = vector.shape_cast %2073 : vector<1x8x128xf32> to vector<8x128xf32>
    %2075 = arith.mulf %2074, %2072 : vector<8x128xf32>
    %2076 = arith.addf %2070, %2075 : vector<8x128xf32>
    %c10_1432 = arith.constant 10 : index
    %c0_1433 = arith.constant 0 : index
    %c0_1434 = arith.constant 0 : index
    %2077 = vector.load %arg5[%c10_1432, %c0_1433, %c0_1434] : memref<14x24x128xf32, #tpu.memory_space<vmem>>, vector<1x24x128xf32>
    %2078 = vector.shape_cast %2077 : vector<1x24x128xf32> to vector<24x128xf32>
    %c19_i32_1435 = arith.constant 19 : i32
    %2079 = tpu.dynamic_rotate %2078 by %c19_i32_1435 dim 0 : vector<24x128xf32>, i32 -> vector<24x128xf32>
    %2080 = vector.extract_strided_slice %2079 {offsets = [0, 0], sizes = [8, 128], strides = [1, 1]} : vector<24x128xf32> to vector<8x128xf32>
    %c28_1436 = arith.constant 28 : index
    %c0_1437 = arith.constant 0 : index
    %c0_1438 = arith.constant 0 : index
    %2081 = vector.load %arg2[%c28_1436, %c0_1437, %c0_1438] : memref<49x8x128xf32, #tpu.memory_space<vmem>>, vector<1x8x128xf32>
    %2082 = vector.shape_cast %2081 : vector<1x8x128xf32> to vector<8x128xf32>
    %2083 = arith.mulf %2082, %2080 : vector<8x128xf32>
    %2084 = arith.addf %2076, %2083 : vector<8x128xf32>
    %c18_i32_1439 = arith.constant 18 : i32
    %2085 = tpu.dynamic_rotate %2078 by %c18_i32_1439 dim 0 : vector<24x128xf32>, i32 -> vector<24x128xf32>
    %2086 = vector.extract_strided_slice %2085 {offsets = [0, 0], sizes = [8, 128], strides = [1, 1]} : vector<24x128xf32> to vector<8x128xf32>
    %c29_1440 = arith.constant 29 : index
    %c0_1441 = arith.constant 0 : index
    %c0_1442 = arith.constant 0 : index
    %2087 = vector.load %arg2[%c29_1440, %c0_1441, %c0_1442] : memref<49x8x128xf32, #tpu.memory_space<vmem>>, vector<1x8x128xf32>
    %2088 = vector.shape_cast %2087 : vector<1x8x128xf32> to vector<8x128xf32>
    %2089 = arith.mulf %2088, %2086 : vector<8x128xf32>
    %2090 = arith.addf %2084, %2089 : vector<8x128xf32>
    %c17_i32_1443 = arith.constant 17 : i32
    %2091 = tpu.dynamic_rotate %2078 by %c17_i32_1443 dim 0 : vector<24x128xf32>, i32 -> vector<24x128xf32>
    %2092 = vector.extract_strided_slice %2091 {offsets = [0, 0], sizes = [8, 128], strides = [1, 1]} : vector<24x128xf32> to vector<8x128xf32>
    %c30_1444 = arith.constant 30 : index
    %c0_1445 = arith.constant 0 : index
    %c0_1446 = arith.constant 0 : index
    %2093 = vector.load %arg2[%c30_1444, %c0_1445, %c0_1446] : memref<49x8x128xf32, #tpu.memory_space<vmem>>, vector<1x8x128xf32>
    %2094 = vector.shape_cast %2093 : vector<1x8x128xf32> to vector<8x128xf32>
    %2095 = arith.mulf %2094, %2092 : vector<8x128xf32>
    %2096 = arith.addf %2090, %2095 : vector<8x128xf32>
    %c16_i32_1447 = arith.constant 16 : i32
    %2097 = tpu.dynamic_rotate %2078 by %c16_i32_1447 dim 0 : vector<24x128xf32>, i32 -> vector<24x128xf32>
    %2098 = vector.extract_strided_slice %2097 {offsets = [0, 0], sizes = [8, 128], strides = [1, 1]} : vector<24x128xf32> to vector<8x128xf32>
    %c31_1448 = arith.constant 31 : index
    %c0_1449 = arith.constant 0 : index
    %c0_1450 = arith.constant 0 : index
    %2099 = vector.load %arg2[%c31_1448, %c0_1449, %c0_1450] : memref<49x8x128xf32, #tpu.memory_space<vmem>>, vector<1x8x128xf32>
    %2100 = vector.shape_cast %2099 : vector<1x8x128xf32> to vector<8x128xf32>
    %2101 = arith.mulf %2100, %2098 : vector<8x128xf32>
    %2102 = arith.addf %2096, %2101 : vector<8x128xf32>
    %c15_i32_1451 = arith.constant 15 : i32
    %2103 = tpu.dynamic_rotate %2078 by %c15_i32_1451 dim 0 : vector<24x128xf32>, i32 -> vector<24x128xf32>
    %2104 = vector.extract_strided_slice %2103 {offsets = [0, 0], sizes = [8, 128], strides = [1, 1]} : vector<24x128xf32> to vector<8x128xf32>
    %c32_1452 = arith.constant 32 : index
    %c0_1453 = arith.constant 0 : index
    %c0_1454 = arith.constant 0 : index
    %2105 = vector.load %arg2[%c32_1452, %c0_1453, %c0_1454] : memref<49x8x128xf32, #tpu.memory_space<vmem>>, vector<1x8x128xf32>
    %2106 = vector.shape_cast %2105 : vector<1x8x128xf32> to vector<8x128xf32>
    %2107 = arith.mulf %2106, %2104 : vector<8x128xf32>
    %2108 = arith.addf %2102, %2107 : vector<8x128xf32>
    %c14_i32_1455 = arith.constant 14 : i32
    %2109 = tpu.dynamic_rotate %2078 by %c14_i32_1455 dim 0 : vector<24x128xf32>, i32 -> vector<24x128xf32>
    %2110 = vector.extract_strided_slice %2109 {offsets = [0, 0], sizes = [8, 128], strides = [1, 1]} : vector<24x128xf32> to vector<8x128xf32>
    %c33_1456 = arith.constant 33 : index
    %c0_1457 = arith.constant 0 : index
    %c0_1458 = arith.constant 0 : index
    %2111 = vector.load %arg2[%c33_1456, %c0_1457, %c0_1458] : memref<49x8x128xf32, #tpu.memory_space<vmem>>, vector<1x8x128xf32>
    %2112 = vector.shape_cast %2111 : vector<1x8x128xf32> to vector<8x128xf32>
    %2113 = arith.mulf %2112, %2110 : vector<8x128xf32>
    %2114 = arith.addf %2108, %2113 : vector<8x128xf32>
    %c13_i32_1459 = arith.constant 13 : i32
    %2115 = tpu.dynamic_rotate %2078 by %c13_i32_1459 dim 0 : vector<24x128xf32>, i32 -> vector<24x128xf32>
    %2116 = vector.extract_strided_slice %2115 {offsets = [0, 0], sizes = [8, 128], strides = [1, 1]} : vector<24x128xf32> to vector<8x128xf32>
    %c34_1460 = arith.constant 34 : index
    %c0_1461 = arith.constant 0 : index
    %c0_1462 = arith.constant 0 : index
    %2117 = vector.load %arg2[%c34_1460, %c0_1461, %c0_1462] : memref<49x8x128xf32, #tpu.memory_space<vmem>>, vector<1x8x128xf32>
    %2118 = vector.shape_cast %2117 : vector<1x8x128xf32> to vector<8x128xf32>
    %2119 = arith.mulf %2118, %2116 : vector<8x128xf32>
    %2120 = arith.addf %2114, %2119 : vector<8x128xf32>
    %c11_1463 = arith.constant 11 : index
    %c0_1464 = arith.constant 0 : index
    %c0_1465 = arith.constant 0 : index
    %2121 = vector.load %arg5[%c11_1463, %c0_1464, %c0_1465] : memref<14x24x128xf32, #tpu.memory_space<vmem>>, vector<1x24x128xf32>
    %2122 = vector.shape_cast %2121 : vector<1x24x128xf32> to vector<24x128xf32>
    %c19_i32_1466 = arith.constant 19 : i32
    %2123 = tpu.dynamic_rotate %2122 by %c19_i32_1466 dim 0 : vector<24x128xf32>, i32 -> vector<24x128xf32>
    %2124 = vector.extract_strided_slice %2123 {offsets = [0, 0], sizes = [8, 128], strides = [1, 1]} : vector<24x128xf32> to vector<8x128xf32>
    %c35_1467 = arith.constant 35 : index
    %c0_1468 = arith.constant 0 : index
    %c0_1469 = arith.constant 0 : index
    %2125 = vector.load %arg2[%c35_1467, %c0_1468, %c0_1469] : memref<49x8x128xf32, #tpu.memory_space<vmem>>, vector<1x8x128xf32>
    %2126 = vector.shape_cast %2125 : vector<1x8x128xf32> to vector<8x128xf32>
    %2127 = arith.mulf %2126, %2124 : vector<8x128xf32>
    %2128 = arith.addf %2120, %2127 : vector<8x128xf32>
    %c18_i32_1470 = arith.constant 18 : i32
    %2129 = tpu.dynamic_rotate %2122 by %c18_i32_1470 dim 0 : vector<24x128xf32>, i32 -> vector<24x128xf32>
    %2130 = vector.extract_strided_slice %2129 {offsets = [0, 0], sizes = [8, 128], strides = [1, 1]} : vector<24x128xf32> to vector<8x128xf32>
    %c36_1471 = arith.constant 36 : index
    %c0_1472 = arith.constant 0 : index
    %c0_1473 = arith.constant 0 : index
    %2131 = vector.load %arg2[%c36_1471, %c0_1472, %c0_1473] : memref<49x8x128xf32, #tpu.memory_space<vmem>>, vector<1x8x128xf32>
    %2132 = vector.shape_cast %2131 : vector<1x8x128xf32> to vector<8x128xf32>
    %2133 = arith.mulf %2132, %2130 : vector<8x128xf32>
    %2134 = arith.addf %2128, %2133 : vector<8x128xf32>
    %c17_i32_1474 = arith.constant 17 : i32
    %2135 = tpu.dynamic_rotate %2122 by %c17_i32_1474 dim 0 : vector<24x128xf32>, i32 -> vector<24x128xf32>
    %2136 = vector.extract_strided_slice %2135 {offsets = [0, 0], sizes = [8, 128], strides = [1, 1]} : vector<24x128xf32> to vector<8x128xf32>
    %c37_1475 = arith.constant 37 : index
    %c0_1476 = arith.constant 0 : index
    %c0_1477 = arith.constant 0 : index
    %2137 = vector.load %arg2[%c37_1475, %c0_1476, %c0_1477] : memref<49x8x128xf32, #tpu.memory_space<vmem>>, vector<1x8x128xf32>
    %2138 = vector.shape_cast %2137 : vector<1x8x128xf32> to vector<8x128xf32>
    %2139 = arith.mulf %2138, %2136 : vector<8x128xf32>
    %2140 = arith.addf %2134, %2139 : vector<8x128xf32>
    %c16_i32_1478 = arith.constant 16 : i32
    %2141 = tpu.dynamic_rotate %2122 by %c16_i32_1478 dim 0 : vector<24x128xf32>, i32 -> vector<24x128xf32>
    %2142 = vector.extract_strided_slice %2141 {offsets = [0, 0], sizes = [8, 128], strides = [1, 1]} : vector<24x128xf32> to vector<8x128xf32>
    %c38_1479 = arith.constant 38 : index
    %c0_1480 = arith.constant 0 : index
    %c0_1481 = arith.constant 0 : index
    %2143 = vector.load %arg2[%c38_1479, %c0_1480, %c0_1481] : memref<49x8x128xf32, #tpu.memory_space<vmem>>, vector<1x8x128xf32>
    %2144 = vector.shape_cast %2143 : vector<1x8x128xf32> to vector<8x128xf32>
    %2145 = arith.mulf %2144, %2142 : vector<8x128xf32>
    %2146 = arith.addf %2140, %2145 : vector<8x128xf32>
    %c15_i32_1482 = arith.constant 15 : i32
    %2147 = tpu.dynamic_rotate %2122 by %c15_i32_1482 dim 0 : vector<24x128xf32>, i32 -> vector<24x128xf32>
    %2148 = vector.extract_strided_slice %2147 {offsets = [0, 0], sizes = [8, 128], strides = [1, 1]} : vector<24x128xf32> to vector<8x128xf32>
    %c39_1483 = arith.constant 39 : index
    %c0_1484 = arith.constant 0 : index
    %c0_1485 = arith.constant 0 : index
    %2149 = vector.load %arg2[%c39_1483, %c0_1484, %c0_1485] : memref<49x8x128xf32, #tpu.memory_space<vmem>>, vector<1x8x128xf32>
    %2150 = vector.shape_cast %2149 : vector<1x8x128xf32> to vector<8x128xf32>
    %2151 = arith.mulf %2150, %2148 : vector<8x128xf32>
    %2152 = arith.addf %2146, %2151 : vector<8x128xf32>
    %c14_i32_1486 = arith.constant 14 : i32
    %2153 = tpu.dynamic_rotate %2122 by %c14_i32_1486 dim 0 : vector<24x128xf32>, i32 -> vector<24x128xf32>
    %2154 = vector.extract_strided_slice %2153 {offsets = [0, 0], sizes = [8, 128], strides = [1, 1]} : vector<24x128xf32> to vector<8x128xf32>
    %c40_1487 = arith.constant 40 : index
    %c0_1488 = arith.constant 0 : index
    %c0_1489 = arith.constant 0 : index
    %2155 = vector.load %arg2[%c40_1487, %c0_1488, %c0_1489] : memref<49x8x128xf32, #tpu.memory_space<vmem>>, vector<1x8x128xf32>
    %2156 = vector.shape_cast %2155 : vector<1x8x128xf32> to vector<8x128xf32>
    %2157 = arith.mulf %2156, %2154 : vector<8x128xf32>
    %2158 = arith.addf %2152, %2157 : vector<8x128xf32>
    %c13_i32_1490 = arith.constant 13 : i32
    %2159 = tpu.dynamic_rotate %2122 by %c13_i32_1490 dim 0 : vector<24x128xf32>, i32 -> vector<24x128xf32>
    %2160 = vector.extract_strided_slice %2159 {offsets = [0, 0], sizes = [8, 128], strides = [1, 1]} : vector<24x128xf32> to vector<8x128xf32>
    %c41_1491 = arith.constant 41 : index
    %c0_1492 = arith.constant 0 : index
    %c0_1493 = arith.constant 0 : index
    %2161 = vector.load %arg2[%c41_1491, %c0_1492, %c0_1493] : memref<49x8x128xf32, #tpu.memory_space<vmem>>, vector<1x8x128xf32>
    %2162 = vector.shape_cast %2161 : vector<1x8x128xf32> to vector<8x128xf32>
    %2163 = arith.mulf %2162, %2160 : vector<8x128xf32>
    %2164 = arith.addf %2158, %2163 : vector<8x128xf32>
    %c12_1494 = arith.constant 12 : index
    %c0_1495 = arith.constant 0 : index
    %c0_1496 = arith.constant 0 : index
    %2165 = vector.load %arg5[%c12_1494, %c0_1495, %c0_1496] : memref<14x24x128xf32, #tpu.memory_space<vmem>>, vector<1x24x128xf32>
    %2166 = vector.shape_cast %2165 : vector<1x24x128xf32> to vector<24x128xf32>
    %c19_i32_1497 = arith.constant 19 : i32
    %2167 = tpu.dynamic_rotate %2166 by %c19_i32_1497 dim 0 : vector<24x128xf32>, i32 -> vector<24x128xf32>
    %2168 = vector.extract_strided_slice %2167 {offsets = [0, 0], sizes = [8, 128], strides = [1, 1]} : vector<24x128xf32> to vector<8x128xf32>
    %c42_1498 = arith.constant 42 : index
    %c0_1499 = arith.constant 0 : index
    %c0_1500 = arith.constant 0 : index
    %2169 = vector.load %arg2[%c42_1498, %c0_1499, %c0_1500] : memref<49x8x128xf32, #tpu.memory_space<vmem>>, vector<1x8x128xf32>
    %2170 = vector.shape_cast %2169 : vector<1x8x128xf32> to vector<8x128xf32>
    %2171 = arith.mulf %2170, %2168 : vector<8x128xf32>
    %2172 = arith.addf %2164, %2171 : vector<8x128xf32>
    %c18_i32_1501 = arith.constant 18 : i32
    %2173 = tpu.dynamic_rotate %2166 by %c18_i32_1501 dim 0 : vector<24x128xf32>, i32 -> vector<24x128xf32>
    %2174 = vector.extract_strided_slice %2173 {offsets = [0, 0], sizes = [8, 128], strides = [1, 1]} : vector<24x128xf32> to vector<8x128xf32>
    %c43_1502 = arith.constant 43 : index
    %c0_1503 = arith.constant 0 : index
    %c0_1504 = arith.constant 0 : index
    %2175 = vector.load %arg2[%c43_1502, %c0_1503, %c0_1504] : memref<49x8x128xf32, #tpu.memory_space<vmem>>, vector<1x8x128xf32>
    %2176 = vector.shape_cast %2175 : vector<1x8x128xf32> to vector<8x128xf32>
    %2177 = arith.mulf %2176, %2174 : vector<8x128xf32>
    %2178 = arith.addf %2172, %2177 : vector<8x128xf32>
    %c17_i32_1505 = arith.constant 17 : i32
    %2179 = tpu.dynamic_rotate %2166 by %c17_i32_1505 dim 0 : vector<24x128xf32>, i32 -> vector<24x128xf32>
    %2180 = vector.extract_strided_slice %2179 {offsets = [0, 0], sizes = [8, 128], strides = [1, 1]} : vector<24x128xf32> to vector<8x128xf32>
    %c44_1506 = arith.constant 44 : index
    %c0_1507 = arith.constant 0 : index
    %c0_1508 = arith.constant 0 : index
    %2181 = vector.load %arg2[%c44_1506, %c0_1507, %c0_1508] : memref<49x8x128xf32, #tpu.memory_space<vmem>>, vector<1x8x128xf32>
    %2182 = vector.shape_cast %2181 : vector<1x8x128xf32> to vector<8x128xf32>
    %2183 = arith.mulf %2182, %2180 : vector<8x128xf32>
    %2184 = arith.addf %2178, %2183 : vector<8x128xf32>
    %c16_i32_1509 = arith.constant 16 : i32
    %2185 = tpu.dynamic_rotate %2166 by %c16_i32_1509 dim 0 : vector<24x128xf32>, i32 -> vector<24x128xf32>
    %2186 = vector.extract_strided_slice %2185 {offsets = [0, 0], sizes = [8, 128], strides = [1, 1]} : vector<24x128xf32> to vector<8x128xf32>
    %c45_1510 = arith.constant 45 : index
    %c0_1511 = arith.constant 0 : index
    %c0_1512 = arith.constant 0 : index
    %2187 = vector.load %arg2[%c45_1510, %c0_1511, %c0_1512] : memref<49x8x128xf32, #tpu.memory_space<vmem>>, vector<1x8x128xf32>
    %2188 = vector.shape_cast %2187 : vector<1x8x128xf32> to vector<8x128xf32>
    %2189 = arith.mulf %2188, %2186 : vector<8x128xf32>
    %2190 = arith.addf %2184, %2189 : vector<8x128xf32>
    %c15_i32_1513 = arith.constant 15 : i32
    %2191 = tpu.dynamic_rotate %2166 by %c15_i32_1513 dim 0 : vector<24x128xf32>, i32 -> vector<24x128xf32>
    %2192 = vector.extract_strided_slice %2191 {offsets = [0, 0], sizes = [8, 128], strides = [1, 1]} : vector<24x128xf32> to vector<8x128xf32>
    %c46_1514 = arith.constant 46 : index
    %c0_1515 = arith.constant 0 : index
    %c0_1516 = arith.constant 0 : index
    %2193 = vector.load %arg2[%c46_1514, %c0_1515, %c0_1516] : memref<49x8x128xf32, #tpu.memory_space<vmem>>, vector<1x8x128xf32>
    %2194 = vector.shape_cast %2193 : vector<1x8x128xf32> to vector<8x128xf32>
    %2195 = arith.mulf %2194, %2192 : vector<8x128xf32>
    %2196 = arith.addf %2190, %2195 : vector<8x128xf32>
    %c14_i32_1517 = arith.constant 14 : i32
    %2197 = tpu.dynamic_rotate %2166 by %c14_i32_1517 dim 0 : vector<24x128xf32>, i32 -> vector<24x128xf32>
    %2198 = vector.extract_strided_slice %2197 {offsets = [0, 0], sizes = [8, 128], strides = [1, 1]} : vector<24x128xf32> to vector<8x128xf32>
    %c47_1518 = arith.constant 47 : index
    %c0_1519 = arith.constant 0 : index
    %c0_1520 = arith.constant 0 : index
    %2199 = vector.load %arg2[%c47_1518, %c0_1519, %c0_1520] : memref<49x8x128xf32, #tpu.memory_space<vmem>>, vector<1x8x128xf32>
    %2200 = vector.shape_cast %2199 : vector<1x8x128xf32> to vector<8x128xf32>
    %2201 = arith.mulf %2200, %2198 : vector<8x128xf32>
    %2202 = arith.addf %2196, %2201 : vector<8x128xf32>
    %c13_i32_1521 = arith.constant 13 : i32
    %2203 = tpu.dynamic_rotate %2166 by %c13_i32_1521 dim 0 : vector<24x128xf32>, i32 -> vector<24x128xf32>
    %2204 = vector.extract_strided_slice %2203 {offsets = [0, 0], sizes = [8, 128], strides = [1, 1]} : vector<24x128xf32> to vector<8x128xf32>
    %c48_1522 = arith.constant 48 : index
    %c0_1523 = arith.constant 0 : index
    %c0_1524 = arith.constant 0 : index
    %2205 = vector.load %arg2[%c48_1522, %c0_1523, %c0_1524] : memref<49x8x128xf32, #tpu.memory_space<vmem>>, vector<1x8x128xf32>
    %2206 = vector.shape_cast %2205 : vector<1x8x128xf32> to vector<8x128xf32>
    %2207 = arith.mulf %2206, %2204 : vector<8x128xf32>
    %2208 = arith.addf %2202, %2207 : vector<8x128xf32>
    %c48_1525 = arith.constant 48 : index
    %c0_1526 = arith.constant 0 : index
    %2209 = vector.load %arg6[%c48_1525, %c0_1526] : memref<64x128xf32, #tpu.memory_space<vmem>>, vector<8x128xf32>
    tpu.vector_store %arg6[%c48_1525, %c0_1526], %2208 {strides = array<i32>} : memref<64x128xf32, #tpu.memory_space<vmem>>, vector<8x128xf32>,
    %c7_1527 = arith.constant 7 : index
    %c0_1528 = arith.constant 0 : index
    %c0_1529 = arith.constant 0 : index
    %2210 = vector.load %arg5[%c7_1527, %c0_1528, %c0_1529] : memref<14x24x128xf32, #tpu.memory_space<vmem>>, vector<1x24x128xf32>
    %2211 = vector.shape_cast %2210 : vector<1x24x128xf32> to vector<24x128xf32>
    %c19_i32_1530 = arith.constant 19 : i32
    %2212 = tpu.dynamic_rotate %2211 by %c19_i32_1530 dim 0 : vector<24x128xf32>, i32 -> vector<24x128xf32>
    %2213 = vector.extract_strided_slice %2212 {offsets = [0, 0], sizes = [8, 128], strides = [1, 1]} : vector<24x128xf32> to vector<8x128xf32>
    %c0_1531 = arith.constant 0 : index
    %c0_1532 = arith.constant 0 : index
    %c0_1533 = arith.constant 0 : index
    %2214 = vector.load %arg2[%c0_1531, %c0_1532, %c0_1533] : memref<49x8x128xf32, #tpu.memory_space<vmem>>, vector<1x8x128xf32>
    %2215 = vector.shape_cast %2214 : vector<1x8x128xf32> to vector<8x128xf32>
    %2216 = arith.mulf %2215, %2213 : vector<8x128xf32>
    %2217 = arith.addf %12, %2216 : vector<8x128xf32>
    %c18_i32_1534 = arith.constant 18 : i32
    %2218 = tpu.dynamic_rotate %2211 by %c18_i32_1534 dim 0 : vector<24x128xf32>, i32 -> vector<24x128xf32>
    %2219 = vector.extract_strided_slice %2218 {offsets = [0, 0], sizes = [8, 128], strides = [1, 1]} : vector<24x128xf32> to vector<8x128xf32>
    %c1_1535 = arith.constant 1 : index
    %c0_1536 = arith.constant 0 : index
    %c0_1537 = arith.constant 0 : index
    %2220 = vector.load %arg2[%c1_1535, %c0_1536, %c0_1537] : memref<49x8x128xf32, #tpu.memory_space<vmem>>, vector<1x8x128xf32>
    %2221 = vector.shape_cast %2220 : vector<1x8x128xf32> to vector<8x128xf32>
    %2222 = arith.mulf %2221, %2219 : vector<8x128xf32>
    %2223 = arith.addf %2217, %2222 : vector<8x128xf32>
    %c17_i32_1538 = arith.constant 17 : i32
    %2224 = tpu.dynamic_rotate %2211 by %c17_i32_1538 dim 0 : vector<24x128xf32>, i32 -> vector<24x128xf32>
    %2225 = vector.extract_strided_slice %2224 {offsets = [0, 0], sizes = [8, 128], strides = [1, 1]} : vector<24x128xf32> to vector<8x128xf32>
    %c2_1539 = arith.constant 2 : index
    %c0_1540 = arith.constant 0 : index
    %c0_1541 = arith.constant 0 : index
    %2226 = vector.load %arg2[%c2_1539, %c0_1540, %c0_1541] : memref<49x8x128xf32, #tpu.memory_space<vmem>>, vector<1x8x128xf32>
    %2227 = vector.shape_cast %2226 : vector<1x8x128xf32> to vector<8x128xf32>
    %2228 = arith.mulf %2227, %2225 : vector<8x128xf32>
    %2229 = arith.addf %2223, %2228 : vector<8x128xf32>
    %c16_i32_1542 = arith.constant 16 : i32
    %2230 = tpu.dynamic_rotate %2211 by %c16_i32_1542 dim 0 : vector<24x128xf32>, i32 -> vector<24x128xf32>
    %2231 = vector.extract_strided_slice %2230 {offsets = [0, 0], sizes = [8, 128], strides = [1, 1]} : vector<24x128xf32> to vector<8x128xf32>
    %c3_1543 = arith.constant 3 : index
    %c0_1544 = arith.constant 0 : index
    %c0_1545 = arith.constant 0 : index
    %2232 = vector.load %arg2[%c3_1543, %c0_1544, %c0_1545] : memref<49x8x128xf32, #tpu.memory_space<vmem>>, vector<1x8x128xf32>
    %2233 = vector.shape_cast %2232 : vector<1x8x128xf32> to vector<8x128xf32>
    %2234 = arith.mulf %2233, %2231 : vector<8x128xf32>
    %2235 = arith.addf %2229, %2234 : vector<8x128xf32>
    %c15_i32_1546 = arith.constant 15 : i32
    %2236 = tpu.dynamic_rotate %2211 by %c15_i32_1546 dim 0 : vector<24x128xf32>, i32 -> vector<24x128xf32>
    %2237 = vector.extract_strided_slice %2236 {offsets = [0, 0], sizes = [8, 128], strides = [1, 1]} : vector<24x128xf32> to vector<8x128xf32>
    %c4_1547 = arith.constant 4 : index
    %c0_1548 = arith.constant 0 : index
    %c0_1549 = arith.constant 0 : index
    %2238 = vector.load %arg2[%c4_1547, %c0_1548, %c0_1549] : memref<49x8x128xf32, #tpu.memory_space<vmem>>, vector<1x8x128xf32>
    %2239 = vector.shape_cast %2238 : vector<1x8x128xf32> to vector<8x128xf32>
    %2240 = arith.mulf %2239, %2237 : vector<8x128xf32>
    %2241 = arith.addf %2235, %2240 : vector<8x128xf32>
    %c14_i32_1550 = arith.constant 14 : i32
    %2242 = tpu.dynamic_rotate %2211 by %c14_i32_1550 dim 0 : vector<24x128xf32>, i32 -> vector<24x128xf32>
    %2243 = vector.extract_strided_slice %2242 {offsets = [0, 0], sizes = [8, 128], strides = [1, 1]} : vector<24x128xf32> to vector<8x128xf32>
    %c5_1551 = arith.constant 5 : index
    %c0_1552 = arith.constant 0 : index
    %c0_1553 = arith.constant 0 : index
    %2244 = vector.load %arg2[%c5_1551, %c0_1552, %c0_1553] : memref<49x8x128xf32, #tpu.memory_space<vmem>>, vector<1x8x128xf32>
    %2245 = vector.shape_cast %2244 : vector<1x8x128xf32> to vector<8x128xf32>
    %2246 = arith.mulf %2245, %2243 : vector<8x128xf32>
    %2247 = arith.addf %2241, %2246 : vector<8x128xf32>
    %c13_i32_1554 = arith.constant 13 : i32
    %2248 = tpu.dynamic_rotate %2211 by %c13_i32_1554 dim 0 : vector<24x128xf32>, i32 -> vector<24x128xf32>
    %2249 = vector.extract_strided_slice %2248 {offsets = [0, 0], sizes = [8, 128], strides = [1, 1]} : vector<24x128xf32> to vector<8x128xf32>
    %c6_1555 = arith.constant 6 : index
    %c0_1556 = arith.constant 0 : index
    %c0_1557 = arith.constant 0 : index
    %2250 = vector.load %arg2[%c6_1555, %c0_1556, %c0_1557] : memref<49x8x128xf32, #tpu.memory_space<vmem>>, vector<1x8x128xf32>
    %2251 = vector.shape_cast %2250 : vector<1x8x128xf32> to vector<8x128xf32>
    %2252 = arith.mulf %2251, %2249 : vector<8x128xf32>
    %2253 = arith.addf %2247, %2252 : vector<8x128xf32>
    %c8_1558 = arith.constant 8 : index
    %c0_1559 = arith.constant 0 : index
    %c0_1560 = arith.constant 0 : index
    %2254 = vector.load %arg5[%c8_1558, %c0_1559, %c0_1560] : memref<14x24x128xf32, #tpu.memory_space<vmem>>, vector<1x24x128xf32>
    %2255 = vector.shape_cast %2254 : vector<1x24x128xf32> to vector<24x128xf32>
    %c19_i32_1561 = arith.constant 19 : i32
    %2256 = tpu.dynamic_rotate %2255 by %c19_i32_1561 dim 0 : vector<24x128xf32>, i32 -> vector<24x128xf32>
    %2257 = vector.extract_strided_slice %2256 {offsets = [0, 0], sizes = [8, 128], strides = [1, 1]} : vector<24x128xf32> to vector<8x128xf32>
    %c7_1562 = arith.constant 7 : index
    %c0_1563 = arith.constant 0 : index
    %c0_1564 = arith.constant 0 : index
    %2258 = vector.load %arg2[%c7_1562, %c0_1563, %c0_1564] : memref<49x8x128xf32, #tpu.memory_space<vmem>>, vector<1x8x128xf32>
    %2259 = vector.shape_cast %2258 : vector<1x8x128xf32> to vector<8x128xf32>
    %2260 = arith.mulf %2259, %2257 : vector<8x128xf32>
    %2261 = arith.addf %2253, %2260 : vector<8x128xf32>
    %c18_i32_1565 = arith.constant 18 : i32
    %2262 = tpu.dynamic_rotate %2255 by %c18_i32_1565 dim 0 : vector<24x128xf32>, i32 -> vector<24x128xf32>
    %2263 = vector.extract_strided_slice %2262 {offsets = [0, 0], sizes = [8, 128], strides = [1, 1]} : vector<24x128xf32> to vector<8x128xf32>
    %c8_1566 = arith.constant 8 : index
    %c0_1567 = arith.constant 0 : index
    %c0_1568 = arith.constant 0 : index
    %2264 = vector.load %arg2[%c8_1566, %c0_1567, %c0_1568] : memref<49x8x128xf32, #tpu.memory_space<vmem>>, vector<1x8x128xf32>
    %2265 = vector.shape_cast %2264 : vector<1x8x128xf32> to vector<8x128xf32>
    %2266 = arith.mulf %2265, %2263 : vector<8x128xf32>
    %2267 = arith.addf %2261, %2266 : vector<8x128xf32>
    %c17_i32_1569 = arith.constant 17 : i32
    %2268 = tpu.dynamic_rotate %2255 by %c17_i32_1569 dim 0 : vector<24x128xf32>, i32 -> vector<24x128xf32>
    %2269 = vector.extract_strided_slice %2268 {offsets = [0, 0], sizes = [8, 128], strides = [1, 1]} : vector<24x128xf32> to vector<8x128xf32>
    %c9_1570 = arith.constant 9 : index
    %c0_1571 = arith.constant 0 : index
    %c0_1572 = arith.constant 0 : index
    %2270 = vector.load %arg2[%c9_1570, %c0_1571, %c0_1572] : memref<49x8x128xf32, #tpu.memory_space<vmem>>, vector<1x8x128xf32>
    %2271 = vector.shape_cast %2270 : vector<1x8x128xf32> to vector<8x128xf32>
    %2272 = arith.mulf %2271, %2269 : vector<8x128xf32>
    %2273 = arith.addf %2267, %2272 : vector<8x128xf32>
    %c16_i32_1573 = arith.constant 16 : i32
    %2274 = tpu.dynamic_rotate %2255 by %c16_i32_1573 dim 0 : vector<24x128xf32>, i32 -> vector<24x128xf32>
    %2275 = vector.extract_strided_slice %2274 {offsets = [0, 0], sizes = [8, 128], strides = [1, 1]} : vector<24x128xf32> to vector<8x128xf32>
    %c10_1574 = arith.constant 10 : index
    %c0_1575 = arith.constant 0 : index
    %c0_1576 = arith.constant 0 : index
    %2276 = vector.load %arg2[%c10_1574, %c0_1575, %c0_1576] : memref<49x8x128xf32, #tpu.memory_space<vmem>>, vector<1x8x128xf32>
    %2277 = vector.shape_cast %2276 : vector<1x8x128xf32> to vector<8x128xf32>
    %2278 = arith.mulf %2277, %2275 : vector<8x128xf32>
    %2279 = arith.addf %2273, %2278 : vector<8x128xf32>
    %c15_i32_1577 = arith.constant 15 : i32
    %2280 = tpu.dynamic_rotate %2255 by %c15_i32_1577 dim 0 : vector<24x128xf32>, i32 -> vector<24x128xf32>
    %2281 = vector.extract_strided_slice %2280 {offsets = [0, 0], sizes = [8, 128], strides = [1, 1]} : vector<24x128xf32> to vector<8x128xf32>
    %c11_1578 = arith.constant 11 : index
    %c0_1579 = arith.constant 0 : index
    %c0_1580 = arith.constant 0 : index
    %2282 = vector.load %arg2[%c11_1578, %c0_1579, %c0_1580] : memref<49x8x128xf32, #tpu.memory_space<vmem>>, vector<1x8x128xf32>
    %2283 = vector.shape_cast %2282 : vector<1x8x128xf32> to vector<8x128xf32>
    %2284 = arith.mulf %2283, %2281 : vector<8x128xf32>
    %2285 = arith.addf %2279, %2284 : vector<8x128xf32>
    %c14_i32_1581 = arith.constant 14 : i32
    %2286 = tpu.dynamic_rotate %2255 by %c14_i32_1581 dim 0 : vector<24x128xf32>, i32 -> vector<24x128xf32>
    %2287 = vector.extract_strided_slice %2286 {offsets = [0, 0], sizes = [8, 128], strides = [1, 1]} : vector<24x128xf32> to vector<8x128xf32>
    %c12_1582 = arith.constant 12 : index
    %c0_1583 = arith.constant 0 : index
    %c0_1584 = arith.constant 0 : index
    %2288 = vector.load %arg2[%c12_1582, %c0_1583, %c0_1584] : memref<49x8x128xf32, #tpu.memory_space<vmem>>, vector<1x8x128xf32>
    %2289 = vector.shape_cast %2288 : vector<1x8x128xf32> to vector<8x128xf32>
    %2290 = arith.mulf %2289, %2287 : vector<8x128xf32>
    %2291 = arith.addf %2285, %2290 : vector<8x128xf32>
    %c13_i32_1585 = arith.constant 13 : i32
    %2292 = tpu.dynamic_rotate %2255 by %c13_i32_1585 dim 0 : vector<24x128xf32>, i32 -> vector<24x128xf32>
    %2293 = vector.extract_strided_slice %2292 {offsets = [0, 0], sizes = [8, 128], strides = [1, 1]} : vector<24x128xf32> to vector<8x128xf32>
    %c13_1586 = arith.constant 13 : index
    %c0_1587 = arith.constant 0 : index
    %c0_1588 = arith.constant 0 : index
    %2294 = vector.load %arg2[%c13_1586, %c0_1587, %c0_1588] : memref<49x8x128xf32, #tpu.memory_space<vmem>>, vector<1x8x128xf32>
    %2295 = vector.shape_cast %2294 : vector<1x8x128xf32> to vector<8x128xf32>
    %2296 = arith.mulf %2295, %2293 : vector<8x128xf32>
    %2297 = arith.addf %2291, %2296 : vector<8x128xf32>
    %c9_1589 = arith.constant 9 : index
    %c0_1590 = arith.constant 0 : index
    %c0_1591 = arith.constant 0 : index
    %2298 = vector.load %arg5[%c9_1589, %c0_1590, %c0_1591] : memref<14x24x128xf32, #tpu.memory_space<vmem>>, vector<1x24x128xf32>
    %2299 = vector.shape_cast %2298 : vector<1x24x128xf32> to vector<24x128xf32>
    %c19_i32_1592 = arith.constant 19 : i32
    %2300 = tpu.dynamic_rotate %2299 by %c19_i32_1592 dim 0 : vector<24x128xf32>, i32 -> vector<24x128xf32>
    %2301 = vector.extract_strided_slice %2300 {offsets = [0, 0], sizes = [8, 128], strides = [1, 1]} : vector<24x128xf32> to vector<8x128xf32>
    %c14_1593 = arith.constant 14 : index
    %c0_1594 = arith.constant 0 : index
    %c0_1595 = arith.constant 0 : index
    %2302 = vector.load %arg2[%c14_1593, %c0_1594, %c0_1595] : memref<49x8x128xf32, #tpu.memory_space<vmem>>, vector<1x8x128xf32>
    %2303 = vector.shape_cast %2302 : vector<1x8x128xf32> to vector<8x128xf32>
    %2304 = arith.mulf %2303, %2301 : vector<8x128xf32>
    %2305 = arith.addf %2297, %2304 : vector<8x128xf32>
    %c18_i32_1596 = arith.constant 18 : i32
    %2306 = tpu.dynamic_rotate %2299 by %c18_i32_1596 dim 0 : vector<24x128xf32>, i32 -> vector<24x128xf32>
    %2307 = vector.extract_strided_slice %2306 {offsets = [0, 0], sizes = [8, 128], strides = [1, 1]} : vector<24x128xf32> to vector<8x128xf32>
    %c15_1597 = arith.constant 15 : index
    %c0_1598 = arith.constant 0 : index
    %c0_1599 = arith.constant 0 : index
    %2308 = vector.load %arg2[%c15_1597, %c0_1598, %c0_1599] : memref<49x8x128xf32, #tpu.memory_space<vmem>>, vector<1x8x128xf32>
    %2309 = vector.shape_cast %2308 : vector<1x8x128xf32> to vector<8x128xf32>
    %2310 = arith.mulf %2309, %2307 : vector<8x128xf32>
    %2311 = arith.addf %2305, %2310 : vector<8x128xf32>
    %c17_i32_1600 = arith.constant 17 : i32
    %2312 = tpu.dynamic_rotate %2299 by %c17_i32_1600 dim 0 : vector<24x128xf32>, i32 -> vector<24x128xf32>
    %2313 = vector.extract_strided_slice %2312 {offsets = [0, 0], sizes = [8, 128], strides = [1, 1]} : vector<24x128xf32> to vector<8x128xf32>
    %c16_1601 = arith.constant 16 : index
    %c0_1602 = arith.constant 0 : index
    %c0_1603 = arith.constant 0 : index
    %2314 = vector.load %arg2[%c16_1601, %c0_1602, %c0_1603] : memref<49x8x128xf32, #tpu.memory_space<vmem>>, vector<1x8x128xf32>
    %2315 = vector.shape_cast %2314 : vector<1x8x128xf32> to vector<8x128xf32>
    %2316 = arith.mulf %2315, %2313 : vector<8x128xf32>
    %2317 = arith.addf %2311, %2316 : vector<8x128xf32>
    %c16_i32_1604 = arith.constant 16 : i32
    %2318 = tpu.dynamic_rotate %2299 by %c16_i32_1604 dim 0 : vector<24x128xf32>, i32 -> vector<24x128xf32>
    %2319 = vector.extract_strided_slice %2318 {offsets = [0, 0], sizes = [8, 128], strides = [1, 1]} : vector<24x128xf32> to vector<8x128xf32>
    %c17_1605 = arith.constant 17 : index
    %c0_1606 = arith.constant 0 : index
    %c0_1607 = arith.constant 0 : index
    %2320 = vector.load %arg2[%c17_1605, %c0_1606, %c0_1607] : memref<49x8x128xf32, #tpu.memory_space<vmem>>, vector<1x8x128xf32>
    %2321 = vector.shape_cast %2320 : vector<1x8x128xf32> to vector<8x128xf32>
    %2322 = arith.mulf %2321, %2319 : vector<8x128xf32>
    %2323 = arith.addf %2317, %2322 : vector<8x128xf32>
    %c15_i32_1608 = arith.constant 15 : i32
    %2324 = tpu.dynamic_rotate %2299 by %c15_i32_1608 dim 0 : vector<24x128xf32>, i32 -> vector<24x128xf32>
    %2325 = vector.extract_strided_slice %2324 {offsets = [0, 0], sizes = [8, 128], strides = [1, 1]} : vector<24x128xf32> to vector<8x128xf32>
    %c18_1609 = arith.constant 18 : index
    %c0_1610 = arith.constant 0 : index
    %c0_1611 = arith.constant 0 : index
    %2326 = vector.load %arg2[%c18_1609, %c0_1610, %c0_1611] : memref<49x8x128xf32, #tpu.memory_space<vmem>>, vector<1x8x128xf32>
    %2327 = vector.shape_cast %2326 : vector<1x8x128xf32> to vector<8x128xf32>
    %2328 = arith.mulf %2327, %2325 : vector<8x128xf32>
    %2329 = arith.addf %2323, %2328 : vector<8x128xf32>
    %c14_i32_1612 = arith.constant 14 : i32
    %2330 = tpu.dynamic_rotate %2299 by %c14_i32_1612 dim 0 : vector<24x128xf32>, i32 -> vector<24x128xf32>
    %2331 = vector.extract_strided_slice %2330 {offsets = [0, 0], sizes = [8, 128], strides = [1, 1]} : vector<24x128xf32> to vector<8x128xf32>
    %c19_1613 = arith.constant 19 : index
    %c0_1614 = arith.constant 0 : index
    %c0_1615 = arith.constant 0 : index
    %2332 = vector.load %arg2[%c19_1613, %c0_1614, %c0_1615] : memref<49x8x128xf32, #tpu.memory_space<vmem>>, vector<1x8x128xf32>
    %2333 = vector.shape_cast %2332 : vector<1x8x128xf32> to vector<8x128xf32>
    %2334 = arith.mulf %2333, %2331 : vector<8x128xf32>
    %2335 = arith.addf %2329, %2334 : vector<8x128xf32>
    %c13_i32_1616 = arith.constant 13 : i32
    %2336 = tpu.dynamic_rotate %2299 by %c13_i32_1616 dim 0 : vector<24x128xf32>, i32 -> vector<24x128xf32>
    %2337 = vector.extract_strided_slice %2336 {offsets = [0, 0], sizes = [8, 128], strides = [1, 1]} : vector<24x128xf32> to vector<8x128xf32>
    %c20_1617 = arith.constant 20 : index
    %c0_1618 = arith.constant 0 : index
    %c0_1619 = arith.constant 0 : index
    %2338 = vector.load %arg2[%c20_1617, %c0_1618, %c0_1619] : memref<49x8x128xf32, #tpu.memory_space<vmem>>, vector<1x8x128xf32>
    %2339 = vector.shape_cast %2338 : vector<1x8x128xf32> to vector<8x128xf32>
    %2340 = arith.mulf %2339, %2337 : vector<8x128xf32>
    %2341 = arith.addf %2335, %2340 : vector<8x128xf32>
    %c10_1620 = arith.constant 10 : index
    %c0_1621 = arith.constant 0 : index
    %c0_1622 = arith.constant 0 : index
    %2342 = vector.load %arg5[%c10_1620, %c0_1621, %c0_1622] : memref<14x24x128xf32, #tpu.memory_space<vmem>>, vector<1x24x128xf32>
    %2343 = vector.shape_cast %2342 : vector<1x24x128xf32> to vector<24x128xf32>
    %c19_i32_1623 = arith.constant 19 : i32
    %2344 = tpu.dynamic_rotate %2343 by %c19_i32_1623 dim 0 : vector<24x128xf32>, i32 -> vector<24x128xf32>
    %2345 = vector.extract_strided_slice %2344 {offsets = [0, 0], sizes = [8, 128], strides = [1, 1]} : vector<24x128xf32> to vector<8x128xf32>
    %c21_1624 = arith.constant 21 : index
    %c0_1625 = arith.constant 0 : index
    %c0_1626 = arith.constant 0 : index
    %2346 = vector.load %arg2[%c21_1624, %c0_1625, %c0_1626] : memref<49x8x128xf32, #tpu.memory_space<vmem>>, vector<1x8x128xf32>
    %2347 = vector.shape_cast %2346 : vector<1x8x128xf32> to vector<8x128xf32>
    %2348 = arith.mulf %2347, %2345 : vector<8x128xf32>
    %2349 = arith.addf %2341, %2348 : vector<8x128xf32>
    %c18_i32_1627 = arith.constant 18 : i32
    %2350 = tpu.dynamic_rotate %2343 by %c18_i32_1627 dim 0 : vector<24x128xf32>, i32 -> vector<24x128xf32>
    %2351 = vector.extract_strided_slice %2350 {offsets = [0, 0], sizes = [8, 128], strides = [1, 1]} : vector<24x128xf32> to vector<8x128xf32>
    %c22_1628 = arith.constant 22 : index
    %c0_1629 = arith.constant 0 : index
    %c0_1630 = arith.constant 0 : index
    %2352 = vector.load %arg2[%c22_1628, %c0_1629, %c0_1630] : memref<49x8x128xf32, #tpu.memory_space<vmem>>, vector<1x8x128xf32>
    %2353 = vector.shape_cast %2352 : vector<1x8x128xf32> to vector<8x128xf32>
    %2354 = arith.mulf %2353, %2351 : vector<8x128xf32>
    %2355 = arith.addf %2349, %2354 : vector<8x128xf32>
    %c17_i32_1631 = arith.constant 17 : i32
    %2356 = tpu.dynamic_rotate %2343 by %c17_i32_1631 dim 0 : vector<24x128xf32>, i32 -> vector<24x128xf32>
    %2357 = vector.extract_strided_slice %2356 {offsets = [0, 0], sizes = [8, 128], strides = [1, 1]} : vector<24x128xf32> to vector<8x128xf32>
    %c23_1632 = arith.constant 23 : index
    %c0_1633 = arith.constant 0 : index
    %c0_1634 = arith.constant 0 : index
    %2358 = vector.load %arg2[%c23_1632, %c0_1633, %c0_1634] : memref<49x8x128xf32, #tpu.memory_space<vmem>>, vector<1x8x128xf32>
    %2359 = vector.shape_cast %2358 : vector<1x8x128xf32> to vector<8x128xf32>
    %2360 = arith.mulf %2359, %2357 : vector<8x128xf32>
    %2361 = arith.addf %2355, %2360 : vector<8x128xf32>
    %c16_i32_1635 = arith.constant 16 : i32
    %2362 = tpu.dynamic_rotate %2343 by %c16_i32_1635 dim 0 : vector<24x128xf32>, i32 -> vector<24x128xf32>
    %2363 = vector.extract_strided_slice %2362 {offsets = [0, 0], sizes = [8, 128], strides = [1, 1]} : vector<24x128xf32> to vector<8x128xf32>
    %c24_1636 = arith.constant 24 : index
    %c0_1637 = arith.constant 0 : index
    %c0_1638 = arith.constant 0 : index
    %2364 = vector.load %arg2[%c24_1636, %c0_1637, %c0_1638] : memref<49x8x128xf32, #tpu.memory_space<vmem>>, vector<1x8x128xf32>
    %2365 = vector.shape_cast %2364 : vector<1x8x128xf32> to vector<8x128xf32>
    %2366 = arith.mulf %2365, %2363 : vector<8x128xf32>
    %2367 = arith.addf %2361, %2366 : vector<8x128xf32>
    %c15_i32_1639 = arith.constant 15 : i32
    %2368 = tpu.dynamic_rotate %2343 by %c15_i32_1639 dim 0 : vector<24x128xf32>, i32 -> vector<24x128xf32>
    %2369 = vector.extract_strided_slice %2368 {offsets = [0, 0], sizes = [8, 128], strides = [1, 1]} : vector<24x128xf32> to vector<8x128xf32>
    %c25_1640 = arith.constant 25 : index
    %c0_1641 = arith.constant 0 : index
    %c0_1642 = arith.constant 0 : index
    %2370 = vector.load %arg2[%c25_1640, %c0_1641, %c0_1642] : memref<49x8x128xf32, #tpu.memory_space<vmem>>, vector<1x8x128xf32>
    %2371 = vector.shape_cast %2370 : vector<1x8x128xf32> to vector<8x128xf32>
    %2372 = arith.mulf %2371, %2369 : vector<8x128xf32>
    %2373 = arith.addf %2367, %2372 : vector<8x128xf32>
    %c14_i32_1643 = arith.constant 14 : i32
    %2374 = tpu.dynamic_rotate %2343 by %c14_i32_1643 dim 0 : vector<24x128xf32>, i32 -> vector<24x128xf32>
    %2375 = vector.extract_strided_slice %2374 {offsets = [0, 0], sizes = [8, 128], strides = [1, 1]} : vector<24x128xf32> to vector<8x128xf32>
    %c26_1644 = arith.constant 26 : index
    %c0_1645 = arith.constant 0 : index
    %c0_1646 = arith.constant 0 : index
    %2376 = vector.load %arg2[%c26_1644, %c0_1645, %c0_1646] : memref<49x8x128xf32, #tpu.memory_space<vmem>>, vector<1x8x128xf32>
    %2377 = vector.shape_cast %2376 : vector<1x8x128xf32> to vector<8x128xf32>
    %2378 = arith.mulf %2377, %2375 : vector<8x128xf32>
    %2379 = arith.addf %2373, %2378 : vector<8x128xf32>
    %c13_i32_1647 = arith.constant 13 : i32
    %2380 = tpu.dynamic_rotate %2343 by %c13_i32_1647 dim 0 : vector<24x128xf32>, i32 -> vector<24x128xf32>
    %2381 = vector.extract_strided_slice %2380 {offsets = [0, 0], sizes = [8, 128], strides = [1, 1]} : vector<24x128xf32> to vector<8x128xf32>
    %c27_1648 = arith.constant 27 : index
    %c0_1649 = arith.constant 0 : index
    %c0_1650 = arith.constant 0 : index
    %2382 = vector.load %arg2[%c27_1648, %c0_1649, %c0_1650] : memref<49x8x128xf32, #tpu.memory_space<vmem>>, vector<1x8x128xf32>
    %2383 = vector.shape_cast %2382 : vector<1x8x128xf32> to vector<8x128xf32>
    %2384 = arith.mulf %2383, %2381 : vector<8x128xf32>
    %2385 = arith.addf %2379, %2384 : vector<8x128xf32>
    %c11_1651 = arith.constant 11 : index
    %c0_1652 = arith.constant 0 : index
    %c0_1653 = arith.constant 0 : index
    %2386 = vector.load %arg5[%c11_1651, %c0_1652, %c0_1653] : memref<14x24x128xf32, #tpu.memory_space<vmem>>, vector<1x24x128xf32>
    %2387 = vector.shape_cast %2386 : vector<1x24x128xf32> to vector<24x128xf32>
    %c19_i32_1654 = arith.constant 19 : i32
    %2388 = tpu.dynamic_rotate %2387 by %c19_i32_1654 dim 0 : vector<24x128xf32>, i32 -> vector<24x128xf32>
    %2389 = vector.extract_strided_slice %2388 {offsets = [0, 0], sizes = [8, 128], strides = [1, 1]} : vector<24x128xf32> to vector<8x128xf32>
    %c28_1655 = arith.constant 28 : index
    %c0_1656 = arith.constant 0 : index
    %c0_1657 = arith.constant 0 : index
    %2390 = vector.load %arg2[%c28_1655, %c0_1656, %c0_1657] : memref<49x8x128xf32, #tpu.memory_space<vmem>>, vector<1x8x128xf32>
    %2391 = vector.shape_cast %2390 : vector<1x8x128xf32> to vector<8x128xf32>
    %2392 = arith.mulf %2391, %2389 : vector<8x128xf32>
    %2393 = arith.addf %2385, %2392 : vector<8x128xf32>
    %c18_i32_1658 = arith.constant 18 : i32
    %2394 = tpu.dynamic_rotate %2387 by %c18_i32_1658 dim 0 : vector<24x128xf32>, i32 -> vector<24x128xf32>
    %2395 = vector.extract_strided_slice %2394 {offsets = [0, 0], sizes = [8, 128], strides = [1, 1]} : vector<24x128xf32> to vector<8x128xf32>
    %c29_1659 = arith.constant 29 : index
    %c0_1660 = arith.constant 0 : index
    %c0_1661 = arith.constant 0 : index
    %2396 = vector.load %arg2[%c29_1659, %c0_1660, %c0_1661] : memref<49x8x128xf32, #tpu.memory_space<vmem>>, vector<1x8x128xf32>
    %2397 = vector.shape_cast %2396 : vector<1x8x128xf32> to vector<8x128xf32>
    %2398 = arith.mulf %2397, %2395 : vector<8x128xf32>
    %2399 = arith.addf %2393, %2398 : vector<8x128xf32>
    %c17_i32_1662 = arith.constant 17 : i32
    %2400 = tpu.dynamic_rotate %2387 by %c17_i32_1662 dim 0 : vector<24x128xf32>, i32 -> vector<24x128xf32>
    %2401 = vector.extract_strided_slice %2400 {offsets = [0, 0], sizes = [8, 128], strides = [1, 1]} : vector<24x128xf32> to vector<8x128xf32>
    %c30_1663 = arith.constant 30 : index
    %c0_1664 = arith.constant 0 : index
    %c0_1665 = arith.constant 0 : index
    %2402 = vector.load %arg2[%c30_1663, %c0_1664, %c0_1665] : memref<49x8x128xf32, #tpu.memory_space<vmem>>, vector<1x8x128xf32>
    %2403 = vector.shape_cast %2402 : vector<1x8x128xf32> to vector<8x128xf32>
    %2404 = arith.mulf %2403, %2401 : vector<8x128xf32>
    %2405 = arith.addf %2399, %2404 : vector<8x128xf32>
    %c16_i32_1666 = arith.constant 16 : i32
    %2406 = tpu.dynamic_rotate %2387 by %c16_i32_1666 dim 0 : vector<24x128xf32>, i32 -> vector<24x128xf32>
    %2407 = vector.extract_strided_slice %2406 {offsets = [0, 0], sizes = [8, 128], strides = [1, 1]} : vector<24x128xf32> to vector<8x128xf32>
    %c31_1667 = arith.constant 31 : index
    %c0_1668 = arith.constant 0 : index
    %c0_1669 = arith.constant 0 : index
    %2408 = vector.load %arg2[%c31_1667, %c0_1668, %c0_1669] : memref<49x8x128xf32, #tpu.memory_space<vmem>>, vector<1x8x128xf32>
    %2409 = vector.shape_cast %2408 : vector<1x8x128xf32> to vector<8x128xf32>
    %2410 = arith.mulf %2409, %2407 : vector<8x128xf32>
    %2411 = arith.addf %2405, %2410 : vector<8x128xf32>
    %c15_i32_1670 = arith.constant 15 : i32
    %2412 = tpu.dynamic_rotate %2387 by %c15_i32_1670 dim 0 : vector<24x128xf32>, i32 -> vector<24x128xf32>
    %2413 = vector.extract_strided_slice %2412 {offsets = [0, 0], sizes = [8, 128], strides = [1, 1]} : vector<24x128xf32> to vector<8x128xf32>
    %c32_1671 = arith.constant 32 : index
    %c0_1672 = arith.constant 0 : index
    %c0_1673 = arith.constant 0 : index
    %2414 = vector.load %arg2[%c32_1671, %c0_1672, %c0_1673] : memref<49x8x128xf32, #tpu.memory_space<vmem>>, vector<1x8x128xf32>
    %2415 = vector.shape_cast %2414 : vector<1x8x128xf32> to vector<8x128xf32>
    %2416 = arith.mulf %2415, %2413 : vector<8x128xf32>
    %2417 = arith.addf %2411, %2416 : vector<8x128xf32>
    %c14_i32_1674 = arith.constant 14 : i32
    %2418 = tpu.dynamic_rotate %2387 by %c14_i32_1674 dim 0 : vector<24x128xf32>, i32 -> vector<24x128xf32>
    %2419 = vector.extract_strided_slice %2418 {offsets = [0, 0], sizes = [8, 128], strides = [1, 1]} : vector<24x128xf32> to vector<8x128xf32>
    %c33_1675 = arith.constant 33 : index
    %c0_1676 = arith.constant 0 : index
    %c0_1677 = arith.constant 0 : index
    %2420 = vector.load %arg2[%c33_1675, %c0_1676, %c0_1677] : memref<49x8x128xf32, #tpu.memory_space<vmem>>, vector<1x8x128xf32>
    %2421 = vector.shape_cast %2420 : vector<1x8x128xf32> to vector<8x128xf32>
    %2422 = arith.mulf %2421, %2419 : vector<8x128xf32>
    %2423 = arith.addf %2417, %2422 : vector<8x128xf32>
    %c13_i32_1678 = arith.constant 13 : i32
    %2424 = tpu.dynamic_rotate %2387 by %c13_i32_1678 dim 0 : vector<24x128xf32>, i32 -> vector<24x128xf32>
    %2425 = vector.extract_strided_slice %2424 {offsets = [0, 0], sizes = [8, 128], strides = [1, 1]} : vector<24x128xf32> to vector<8x128xf32>
    %c34_1679 = arith.constant 34 : index
    %c0_1680 = arith.constant 0 : index
    %c0_1681 = arith.constant 0 : index
    %2426 = vector.load %arg2[%c34_1679, %c0_1680, %c0_1681] : memref<49x8x128xf32, #tpu.memory_space<vmem>>, vector<1x8x128xf32>
    %2427 = vector.shape_cast %2426 : vector<1x8x128xf32> to vector<8x128xf32>
    %2428 = arith.mulf %2427, %2425 : vector<8x128xf32>
    %2429 = arith.addf %2423, %2428 : vector<8x128xf32>
    %c12_1682 = arith.constant 12 : index
    %c0_1683 = arith.constant 0 : index
    %c0_1684 = arith.constant 0 : index
    %2430 = vector.load %arg5[%c12_1682, %c0_1683, %c0_1684] : memref<14x24x128xf32, #tpu.memory_space<vmem>>, vector<1x24x128xf32>
    %2431 = vector.shape_cast %2430 : vector<1x24x128xf32> to vector<24x128xf32>
    %c19_i32_1685 = arith.constant 19 : i32
    %2432 = tpu.dynamic_rotate %2431 by %c19_i32_1685 dim 0 : vector<24x128xf32>, i32 -> vector<24x128xf32>
    %2433 = vector.extract_strided_slice %2432 {offsets = [0, 0], sizes = [8, 128], strides = [1, 1]} : vector<24x128xf32> to vector<8x128xf32>
    %c35_1686 = arith.constant 35 : index
    %c0_1687 = arith.constant 0 : index
    %c0_1688 = arith.constant 0 : index
    %2434 = vector.load %arg2[%c35_1686, %c0_1687, %c0_1688] : memref<49x8x128xf32, #tpu.memory_space<vmem>>, vector<1x8x128xf32>
    %2435 = vector.shape_cast %2434 : vector<1x8x128xf32> to vector<8x128xf32>
    %2436 = arith.mulf %2435, %2433 : vector<8x128xf32>
    %2437 = arith.addf %2429, %2436 : vector<8x128xf32>
    %c18_i32_1689 = arith.constant 18 : i32
    %2438 = tpu.dynamic_rotate %2431 by %c18_i32_1689 dim 0 : vector<24x128xf32>, i32 -> vector<24x128xf32>
    %2439 = vector.extract_strided_slice %2438 {offsets = [0, 0], sizes = [8, 128], strides = [1, 1]} : vector<24x128xf32> to vector<8x128xf32>
    %c36_1690 = arith.constant 36 : index
    %c0_1691 = arith.constant 0 : index
    %c0_1692 = arith.constant 0 : index
    %2440 = vector.load %arg2[%c36_1690, %c0_1691, %c0_1692] : memref<49x8x128xf32, #tpu.memory_space<vmem>>, vector<1x8x128xf32>
    %2441 = vector.shape_cast %2440 : vector<1x8x128xf32> to vector<8x128xf32>
    %2442 = arith.mulf %2441, %2439 : vector<8x128xf32>
    %2443 = arith.addf %2437, %2442 : vector<8x128xf32>
    %c17_i32_1693 = arith.constant 17 : i32
    %2444 = tpu.dynamic_rotate %2431 by %c17_i32_1693 dim 0 : vector<24x128xf32>, i32 -> vector<24x128xf32>
    %2445 = vector.extract_strided_slice %2444 {offsets = [0, 0], sizes = [8, 128], strides = [1, 1]} : vector<24x128xf32> to vector<8x128xf32>
    %c37_1694 = arith.constant 37 : index
    %c0_1695 = arith.constant 0 : index
    %c0_1696 = arith.constant 0 : index
    %2446 = vector.load %arg2[%c37_1694, %c0_1695, %c0_1696] : memref<49x8x128xf32, #tpu.memory_space<vmem>>, vector<1x8x128xf32>
    %2447 = vector.shape_cast %2446 : vector<1x8x128xf32> to vector<8x128xf32>
    %2448 = arith.mulf %2447, %2445 : vector<8x128xf32>
    %2449 = arith.addf %2443, %2448 : vector<8x128xf32>
    %c16_i32_1697 = arith.constant 16 : i32
    %2450 = tpu.dynamic_rotate %2431 by %c16_i32_1697 dim 0 : vector<24x128xf32>, i32 -> vector<24x128xf32>
    %2451 = vector.extract_strided_slice %2450 {offsets = [0, 0], sizes = [8, 128], strides = [1, 1]} : vector<24x128xf32> to vector<8x128xf32>
    %c38_1698 = arith.constant 38 : index
    %c0_1699 = arith.constant 0 : index
    %c0_1700 = arith.constant 0 : index
    %2452 = vector.load %arg2[%c38_1698, %c0_1699, %c0_1700] : memref<49x8x128xf32, #tpu.memory_space<vmem>>, vector<1x8x128xf32>
    %2453 = vector.shape_cast %2452 : vector<1x8x128xf32> to vector<8x128xf32>
    %2454 = arith.mulf %2453, %2451 : vector<8x128xf32>
    %2455 = arith.addf %2449, %2454 : vector<8x128xf32>
    %c15_i32_1701 = arith.constant 15 : i32
    %2456 = tpu.dynamic_rotate %2431 by %c15_i32_1701 dim 0 : vector<24x128xf32>, i32 -> vector<24x128xf32>
    %2457 = vector.extract_strided_slice %2456 {offsets = [0, 0], sizes = [8, 128], strides = [1, 1]} : vector<24x128xf32> to vector<8x128xf32>
    %c39_1702 = arith.constant 39 : index
    %c0_1703 = arith.constant 0 : index
    %c0_1704 = arith.constant 0 : index
    %2458 = vector.load %arg2[%c39_1702, %c0_1703, %c0_1704] : memref<49x8x128xf32, #tpu.memory_space<vmem>>, vector<1x8x128xf32>
    %2459 = vector.shape_cast %2458 : vector<1x8x128xf32> to vector<8x128xf32>
    %2460 = arith.mulf %2459, %2457 : vector<8x128xf32>
    %2461 = arith.addf %2455, %2460 : vector<8x128xf32>
    %c14_i32_1705 = arith.constant 14 : i32
    %2462 = tpu.dynamic_rotate %2431 by %c14_i32_1705 dim 0 : vector<24x128xf32>, i32 -> vector<24x128xf32>
    %2463 = vector.extract_strided_slice %2462 {offsets = [0, 0], sizes = [8, 128], strides = [1, 1]} : vector<24x128xf32> to vector<8x128xf32>
    %c40_1706 = arith.constant 40 : index
    %c0_1707 = arith.constant 0 : index
    %c0_1708 = arith.constant 0 : index
    %2464 = vector.load %arg2[%c40_1706, %c0_1707, %c0_1708] : memref<49x8x128xf32, #tpu.memory_space<vmem>>, vector<1x8x128xf32>
    %2465 = vector.shape_cast %2464 : vector<1x8x128xf32> to vector<8x128xf32>
    %2466 = arith.mulf %2465, %2463 : vector<8x128xf32>
    %2467 = arith.addf %2461, %2466 : vector<8x128xf32>
    %c13_i32_1709 = arith.constant 13 : i32
    %2468 = tpu.dynamic_rotate %2431 by %c13_i32_1709 dim 0 : vector<24x128xf32>, i32 -> vector<24x128xf32>
    %2469 = vector.extract_strided_slice %2468 {offsets = [0, 0], sizes = [8, 128], strides = [1, 1]} : vector<24x128xf32> to vector<8x128xf32>
    %c41_1710 = arith.constant 41 : index
    %c0_1711 = arith.constant 0 : index
    %c0_1712 = arith.constant 0 : index
    %2470 = vector.load %arg2[%c41_1710, %c0_1711, %c0_1712] : memref<49x8x128xf32, #tpu.memory_space<vmem>>, vector<1x8x128xf32>
    %2471 = vector.shape_cast %2470 : vector<1x8x128xf32> to vector<8x128xf32>
    %2472 = arith.mulf %2471, %2469 : vector<8x128xf32>
    %2473 = arith.addf %2467, %2472 : vector<8x128xf32>
    %c13_1713 = arith.constant 13 : index
    %c0_1714 = arith.constant 0 : index
    %c0_1715 = arith.constant 0 : index
    %2474 = vector.load %arg5[%c13_1713, %c0_1714, %c0_1715] : memref<14x24x128xf32, #tpu.memory_space<vmem>>, vector<1x24x128xf32>
    %2475 = vector.shape_cast %2474 : vector<1x24x128xf32> to vector<24x128xf32>
    %c19_i32_1716 = arith.constant 19 : i32
    %2476 = tpu.dynamic_rotate %2475 by %c19_i32_1716 dim 0 : vector<24x128xf32>, i32 -> vector<24x128xf32>
    %2477 = vector.extract_strided_slice %2476 {offsets = [0, 0], sizes = [8, 128], strides = [1, 1]} : vector<24x128xf32> to vector<8x128xf32>
    %c42_1717 = arith.constant 42 : index
    %c0_1718 = arith.constant 0 : index
    %c0_1719 = arith.constant 0 : index
    %2478 = vector.load %arg2[%c42_1717, %c0_1718, %c0_1719] : memref<49x8x128xf32, #tpu.memory_space<vmem>>, vector<1x8x128xf32>
    %2479 = vector.shape_cast %2478 : vector<1x8x128xf32> to vector<8x128xf32>
    %2480 = arith.mulf %2479, %2477 : vector<8x128xf32>
    %2481 = arith.addf %2473, %2480 : vector<8x128xf32>
    %c18_i32_1720 = arith.constant 18 : i32
    %2482 = tpu.dynamic_rotate %2475 by %c18_i32_1720 dim 0 : vector<24x128xf32>, i32 -> vector<24x128xf32>
    %2483 = vector.extract_strided_slice %2482 {offsets = [0, 0], sizes = [8, 128], strides = [1, 1]} : vector<24x128xf32> to vector<8x128xf32>
    %c43_1721 = arith.constant 43 : index
    %c0_1722 = arith.constant 0 : index
    %c0_1723 = arith.constant 0 : index
    %2484 = vector.load %arg2[%c43_1721, %c0_1722, %c0_1723] : memref<49x8x128xf32, #tpu.memory_space<vmem>>, vector<1x8x128xf32>
    %2485 = vector.shape_cast %2484 : vector<1x8x128xf32> to vector<8x128xf32>
    %2486 = arith.mulf %2485, %2483 : vector<8x128xf32>
    %2487 = arith.addf %2481, %2486 : vector<8x128xf32>
    %c17_i32_1724 = arith.constant 17 : i32
    %2488 = tpu.dynamic_rotate %2475 by %c17_i32_1724 dim 0 : vector<24x128xf32>, i32 -> vector<24x128xf32>
    %2489 = vector.extract_strided_slice %2488 {offsets = [0, 0], sizes = [8, 128], strides = [1, 1]} : vector<24x128xf32> to vector<8x128xf32>
    %c44_1725 = arith.constant 44 : index
    %c0_1726 = arith.constant 0 : index
    %c0_1727 = arith.constant 0 : index
    %2490 = vector.load %arg2[%c44_1725, %c0_1726, %c0_1727] : memref<49x8x128xf32, #tpu.memory_space<vmem>>, vector<1x8x128xf32>
    %2491 = vector.shape_cast %2490 : vector<1x8x128xf32> to vector<8x128xf32>
    %2492 = arith.mulf %2491, %2489 : vector<8x128xf32>
    %2493 = arith.addf %2487, %2492 : vector<8x128xf32>
    %c16_i32_1728 = arith.constant 16 : i32
    %2494 = tpu.dynamic_rotate %2475 by %c16_i32_1728 dim 0 : vector<24x128xf32>, i32 -> vector<24x128xf32>
    %2495 = vector.extract_strided_slice %2494 {offsets = [0, 0], sizes = [8, 128], strides = [1, 1]} : vector<24x128xf32> to vector<8x128xf32>
    %c45_1729 = arith.constant 45 : index
    %c0_1730 = arith.constant 0 : index
    %c0_1731 = arith.constant 0 : index
    %2496 = vector.load %arg2[%c45_1729, %c0_1730, %c0_1731] : memref<49x8x128xf32, #tpu.memory_space<vmem>>, vector<1x8x128xf32>
    %2497 = vector.shape_cast %2496 : vector<1x8x128xf32> to vector<8x128xf32>
    %2498 = arith.mulf %2497, %2495 : vector<8x128xf32>
    %2499 = arith.addf %2493, %2498 : vector<8x128xf32>
    %c15_i32_1732 = arith.constant 15 : i32
    %2500 = tpu.dynamic_rotate %2475 by %c15_i32_1732 dim 0 : vector<24x128xf32>, i32 -> vector<24x128xf32>
    %2501 = vector.extract_strided_slice %2500 {offsets = [0, 0], sizes = [8, 128], strides = [1, 1]} : vector<24x128xf32> to vector<8x128xf32>
    %c46_1733 = arith.constant 46 : index
    %c0_1734 = arith.constant 0 : index
    %c0_1735 = arith.constant 0 : index
    %2502 = vector.load %arg2[%c46_1733, %c0_1734, %c0_1735] : memref<49x8x128xf32, #tpu.memory_space<vmem>>, vector<1x8x128xf32>
    %2503 = vector.shape_cast %2502 : vector<1x8x128xf32> to vector<8x128xf32>
    %2504 = arith.mulf %2503, %2501 : vector<8x128xf32>
    %2505 = arith.addf %2499, %2504 : vector<8x128xf32>
    %c14_i32_1736 = arith.constant 14 : i32
    %2506 = tpu.dynamic_rotate %2475 by %c14_i32_1736 dim 0 : vector<24x128xf32>, i32 -> vector<24x128xf32>
    %2507 = vector.extract_strided_slice %2506 {offsets = [0, 0], sizes = [8, 128], strides = [1, 1]} : vector<24x128xf32> to vector<8x128xf32>
    %c47_1737 = arith.constant 47 : index
    %c0_1738 = arith.constant 0 : index
    %c0_1739 = arith.constant 0 : index
    %2508 = vector.load %arg2[%c47_1737, %c0_1738, %c0_1739] : memref<49x8x128xf32, #tpu.memory_space<vmem>>, vector<1x8x128xf32>
    %2509 = vector.shape_cast %2508 : vector<1x8x128xf32> to vector<8x128xf32>
    %2510 = arith.mulf %2509, %2507 : vector<8x128xf32>
    %2511 = arith.addf %2505, %2510 : vector<8x128xf32>
    %c13_i32_1740 = arith.constant 13 : i32
    %2512 = tpu.dynamic_rotate %2475 by %c13_i32_1740 dim 0 : vector<24x128xf32>, i32 -> vector<24x128xf32>
    %2513 = vector.extract_strided_slice %2512 {offsets = [0, 0], sizes = [8, 128], strides = [1, 1]} : vector<24x128xf32> to vector<8x128xf32>
    %c48_1741 = arith.constant 48 : index
    %c0_1742 = arith.constant 0 : index
    %c0_1743 = arith.constant 0 : index
    %2514 = vector.load %arg2[%c48_1741, %c0_1742, %c0_1743] : memref<49x8x128xf32, #tpu.memory_space<vmem>>, vector<1x8x128xf32>
    %2515 = vector.shape_cast %2514 : vector<1x8x128xf32> to vector<8x128xf32>
    %2516 = arith.mulf %2515, %2513 : vector<8x128xf32>
    %2517 = arith.addf %2511, %2516 : vector<8x128xf32>
    %c56 = arith.constant 56 : index
    %c0_1744 = arith.constant 0 : index
    %2518 = vector.load %arg6[%c56, %c0_1744] : memref<64x128xf32, #tpu.memory_space<vmem>>, vector<8x128xf32>
    tpu.vector_store %arg6[%c56, %c0_1744], %2517 {strides = array<i32>} : memref<64x128xf32, #tpu.memory_space<vmem>>, vector<8x128xf32>,
    %c0_1745 = arith.constant 0 : index
    %c0_1746 = arith.constant 0 : index
    %2519 = vector.load %arg6[%c0_1745, %c0_1746] : memref<64x128xf32, #tpu.memory_space<vmem>>, vector<64x128xf32>
    %c0_1747 = arith.constant 0 : index
    %c1_1748 = arith.constant 1 : index
    %c0_1749 = arith.constant 0 : index
    %2520 = vector.load %arg4[%c0_1747, %c1_1748, %c0_1749] : memref<1x65x128xf32, #tpu.memory_space<vmem>>, vector<1x64x128xf32>
    %2521 = vector.shape_cast %2520 : vector<1x64x128xf32> to vector<64x128xf32>
    %2522 = vector.shape_cast %2519 : vector<64x128xf32> to vector<1x64x128xf32>
    tpu.vector_store %arg4[%c0_1747, %c1_1748, %c0_1749], %2522 {strides = array<i32>} : memref<1x65x128xf32, #tpu.memory_space<vmem>>, vector<1x64x128xf32>,
    return
  }
  func.func @transform_0(%arg0: i32) -> (i32, i32, i32) {
    %c0_i32 = arith.constant 0 : i32
    %c0_i32_0 = arith.constant 0 : i32
    %c0_i32_1 = arith.constant 0 : i32
    return %arg0, %c0_i32, %c0_i32_0 : i32, i32, i32
  }
  func.func @transform_1(%arg0: i32) -> (i32, i32, i32) {
    %c0_i32 = arith.constant 0 : i32
    %c0_i32_0 = arith.constant 0 : i32
    %c0_i32_1 = arith.constant 0 : i32
    %c0_i32_2 = arith.constant 0 : i32
    return %c0_i32, %c0_i32_0, %c0_i32_1 : i32, i32, i32
  }
  func.func @transform_2(%arg0: i32) -> (i32, i32) {
    %c0_i32 = arith.constant 0 : i32
    %c0_i32_0 = arith.constant 0 : i32
    %c0_i32_1 = arith.constant 0 : i32
    return %c0_i32, %c0_i32_0 : i32, i32
  }
  func.func @transform_3(%arg0: i32) -> (i32, i32, i32) {
    %c0_i32 = arith.constant 0 : i32
    %c0_i32_0 = arith.constant 0 : i32
    %c0_i32_1 = arith.constant 0 : i32
    return %arg0, %c0_i32, %c0_i32_0 : i32, i32, i32
  }
}

</mosaic_0001>

<bundles_post_ra>
// kernel: ppeg_forward.1
= control target key start
LH: loop header
LB: loop body
LE: loop exit
PB: predicated region body
PF: predicated region fallthrough
CT: control target
= control target key end

     0   :  { %8 = vsyncpa [#allocation5], 0  ;;  %s2857_s12 = smov 0   ;;  %s4314_s0 = inlined_call_operand.vmem [shape: f32[2,65,128], index: 0, kind: input, shape index: {}]   ;;  %s4315_s1 = inlined_call_operand.hbm [shape: f32[49,8,128], index: 1, kind: input, shape index: {}]   ;;  %s4316_s2 = inlined_call_operand.vmem [shape: f32[1,128], index: 2, kind: input, shape index: {}]   ;;  %s4317_s3 = inlined_call_operand.vmem [shape: f32[2,65,128], index: 3, kind: output, shape index: {}]  }
   0x1 LB: > { %s2863_s13 = sadd.s32 4294967295, %s2831_s12   ;;  %p2759_p0 = scmp.ge.s32.totalorder %s2831_s12, 1  ;;  %s2831_s12 = sphi %s2857_s12, %s14_s12  }
   0x2   : > { %p113_p1 = scmp.lt.s32.totalorder %s2831_s12, 3  ;;  %s2833_s14 = smov [#allocation4]  }
   0x3   : > { %s125_s15 = sshll.u32 %s2833_s14, 4  ;;  %p4318_p3 = scmp.eq.s32.totalorder %s2863_s13, 0  ;;  %s126_s15 = int_to_ptr.vmem [resolvable:$true] %s125_s15 }
   0x4   : > { %p2867_p2 = pnand %p2759_p0, %p113_p1  ;;  %s2793_s20 = scalar_lea.hbm %s4315_s1, 6272 }
   0x5   : > { %p2794_p6 = scmp.ne.s32.totalorder %s4315_s1, %s2793_s20  ;;  %p2800_p10 = scmp.lt.u32.totalorder %s2793_s20, %s4315_s1 }
   0x6   : > { %s4490_s16 = scalar_select %p2867_p2, 1, 0 }
   0x7   : > { %p2774_p4 = pneg %p2867_p2 }
   0x9   : > { %p2876_p5 = pnand %p4318_p3, %p2774_p4 }
   0xb   : > { %p2795_p7 = pneg %p2876_p5 }
   0xd   : > { %p2796_p8 = pnand %p2795_p7, %p2794_p6 }
   0xf   : > { %p2797_p9 = pneg %p2796_p8 }
  0x11   : > { %p2802_p11 = pnand %p2800_p10, %p2797_p9 }
  0x13   : > { %2805 = shalt.err (!%p2802_p11)
}
  0x14   : > { %s2806_s25 = scalar_lea.vmem %s126_s15, 6272  ;;  %p2814_p1 = scmp.lt.s32.totalorder %s126_s15, %s126_s15 }
  0x15   : > { %p2807_p12 = scmp.ne.s32.totalorder %s126_s15, %s2806_s25  ;;  %p2815_p4 = scmp.lt.s32.totalorder %s2806_s25, %s2806_s25 }
  0x17   : > { %p2809_p13 = pnand %p2807_p12, %p2795_p7  ;;  %p2816_p3 = por %p2815_p4, %p2814_p1 }
  0x19   : > { %p2810_p0 = pneg %p2809_p13 }
  0x1b   : > { %p2817_p2 = pnand %p2816_p3, %p2810_p0 }
  0x1d   : > { %2820 = shalt.err (!%p2817_p2)
}
  0x1e   : > { %s2834_s26 = smov 128   ;;  %s2835_s27 = smov 8  }
  0x1f   : > { %2777 = dma.hbm_to_vmem [thread:$0]  (!%p2876_p5), %s4315_s1, 6272, %s126_s15, [#allocation5], %s2834_s26, %s2834_s26, %s2835_s27  }
  0x20   : > { %p4492_p6 = scmp.ne.s32.totalorder %s4490_s16, 0 }
  0x22   : > { %152 = sbr.rel (%p4492_p6) target bundleno = 309 (0x135), region = 32 }
  0x29   : > { %p4493_p8 = scmp.eq.s32.totalorder %s2863_s13, 0 }
  0x2b   : > { %2826 = dma.done.wait (%p4493_p8), [#allocation5], 6272   ;;  %p4494_p7 = pmov %p4493_p8 }
  0x2c   : > { %p176_p2 = scmp.lt.s32.totalorder %s2863_s13, 1  ;;  %v2836_v1 = vmov 0.0   ;;  %v2925_v5 = vld [vmem:[%s4316_s2] ss:$0 sm:$0xff]  ;;  %v271_v7 = vld [vmem:[#allocation4 + $0x8] sm:$0xff]  ;;  %v279_v10 = vld [vmem:[#allocation4 + $0x10] sm:$0xff]  ;;  %v259_v24 = vlaneseq }
  0x2d   : > { %2828 = vsyncadd (%p4494_p7), [#allocation5], 4294961024  ;;  %v2915_v2 = vrot.slane %v2836_v1, 5  ;;  %v2917_v3 = vrot.slane %v2836_v1, 6  ;;  %v2920_v4 = vrot.slane %v2836_v1, 7  ;;  %4498 = vst [vmem:[#allocation10_spill] sm:$0xff] %v2925_v5 }
  0x2e   : > { %s4807_s13 = smov (!%p176_p2, %s2863_s13), 1  ;;  %v263_v6 = vld [vmem:[#allocation4] sm:$0xff]  ;;  %v283_v11 = vld [vmem:[#allocation4 + $0x18] sm:$0xff]  ;;  %v2931_v14 = vrot.slane %v2836_v1, 1  ;;  %v2933_v18 = vrot.slane %v2836_v1, 2  ;;  %v299_v19 = vld [vmem:[#allocation4 + $0x28] sm:$0xff] }
  0x2f   : > { %s2769_s30 = smul.u32 72, %s4807_s13  ;;  %4495 = vst [vmem:[#allocation7_spill] sm:$0xff] %v2915_v2  ;;  %4496 = vst [vmem:[#allocation8_spill] sm:$0xff] %v2917_v3  ;;  %v264_v8 = vmul.f32 %v263_v6, %v2915_v2  ;;  %v272_v9 = vmul.f32 %v271_v7, %v2917_v3  ;;  %v280_v13 = vmul.f32 %v279_v10, %v2920_v4  ;;  %v291_v15 = vld [vmem:[#allocation4 + $0x20] sm:$0xff]  ;;  %v284_v17 = vmul.f32 0.0, %v283_v11  ;;  %v307_v23 = vld [vmem:[#allocation4 + $0x30] sm:$0xff] }
  0x30   : > { %4497 = vst [vmem:[#allocation9_spill] sm:$0xff] %v2920_v4  ;;  %4499 = vst [vmem:[#allocation11_spill] sm:$0xff] %v2931_v14  ;;  %v292_v21 = vmul.f32 %v291_v15, %v2931_v14  ;;  %v2936_v22 = vrot.slane %v2836_v1, 3  ;;  %v300_v26 = vmul.f32 %v299_v19, %v2933_v18  ;;  %v2939_v27 = vld [vmem:[#allocation4 + $0x38] sm:$0xff]  ;;  %v2942_v30 = vld [vmem:[#allocation4 + $0x40] sm:$0xff]  ;;  %v2944_v31 = vshrl.u32 %v259_v24, 7 }
  0x31   : > { %s2907_s6 = scalar_lea.vmem %s4314_s0, %s2769_s30  ;;  %s2912_s9 = scalar_lea.vmem %s4317_s3, %s2769_s30  ;;  %v265_v12 = vadd.f32 %v2925_v5, %v264_v8  ;;  %4500 = vst [vmem:[#allocation12_spill] sm:$0xff] %v2933_v18  ;;  %v319_v33 = vmul.f32 %v2939_v27, %v2915_v2  ;;  %v2948_v34 = vld [vmem:[#allocation4 + $0x48] sm:$0xff]  ;;  %v326_v37 = vmul.f32 %v2942_v30, %v2917_v3  ;;  %v2957_v38 = vld [vmem:[#allocation4 + $0x50] sm:$0xff]  ;;  %v2969_v42 = vld [vmem:[#allocation4 + $0x58] sm:$0xff] }
  0x32   : > { %v222_v0 = vld [vmem:[%s2907_s6] sm:$0x1]  ;;  %4501 = vst [vmem:[#allocation13_spill] sm:$0xff] %v2936_v22  ;;  %v308_v29 = vmul.f32 %v307_v23, %v2936_v22  ;;  %4502 = vst [vmem:[#allocation14_spill] sm:$0xff] %v2944_v31  ;;  %v2951_v35 = vld [vmem:[%s2907_s6 + $0x1] sm:$0xff]  ;;  %vm261_vm0 = vcmp.lt.s32.totalorder %v2944_v31, 3  ;;  %v333_v40 = vmul.f32 %v2948_v34, %v2920_v4  ;;  %v344_v53 = vmul.f32 %v2969_v42, %v2931_v14 }
  0x33   : > { %223 = vst [vmem:[%s2912_s9] sm:$0x1] %v222_v0  ;;  %v273_v16 = vadd.f32 %v272_v9, %v265_v12  ;;  %v2964_v41 = vld [vmem:[%s2907_s6 + $0x9] sm:$0xff]  ;;  %vm268_vm1 = vcmp.lt.s32.totalorder %v2944_v31, 2  ;;  %vm276_vm2 = vcmp.lt.s32.totalorder %v2944_v31, 1  ;;  %vm288_vm3 = vcmp.lt.s32.totalorder %v2944_v31, 7  ;;  %v2976_v48 = vld [vmem:[#allocation4 + $0x60] sm:$0xff] }
  0x34   : > { %v414_v43 = vrot.slane %v2951_v35, 5  ;;  %v337_v45 = vmul.f32 0.0, %v2957_v38  ;;  %v421_v46 = vrot.slane %v2951_v35, 6  ;;  %v428_v47 = vrot.slane %v2951_v35, 7  ;;  %v2985_v55 = vld [vmem:[#allocation4 + $0x68] sm:$0xff]  ;;  %v2987_v56 = vld [vmem:[#allocation4 + $0x70] sm:$0xff] }
  0x35   : > { %v281_v20 = vadd.f32 %v280_v13, %v273_v16  ;;  %vm296_vm4 = vcmp.lt.s32.totalorder %v2944_v31, 6  ;;  %v438_v49 = vrot.slane %v2951_v35, 1  ;;  %v445_v50 = vrot.slane %v2951_v35, 2  ;;  %4503 = vst [vmem:[#allocation15_spill] sm:$0xff] %v2987_v56  ;;  %v2989_v57 = vld [vmem:[#allocation4 + $0x78] sm:$0xff]  ;;  %v2998_v61 = vld [vmem:[#allocation4 + $0x80] sm:$0xff] }
  0x36   : > { %v452_v51 = vrot.slane %v2951_v35, 3  ;;  %vm304_vm5 = vcmp.lt.s32.totalorder %v2944_v31, 5  ;;  %v463_v54 = vrot.slane %v2964_v41, 5  ;;  %4504 = vst [vmem:[#allocation16_spill] sm:$0xff] %v2989_v57  ;;  %v2994_v58 = vsel %vm261_vm0, %v2915_v2, %v414_v43  ;;  %4505 = vst [vmem:[#allocation17_spill] sm:$0xff] %v2998_v61  ;;  %v3000_v62 = vld [vmem:[#allocation4 + $0x88] sm:$0xff] }
  0x37   : > { %v285_v25 = vadd.f32 %v284_v17, %v281_v20  ;;  %v351_v60 = vmul.f32 %v2976_v48, %v2933_v18  ;;  %4506 = vst [vmem:[#allocation18_spill] sm:$0xff] %v3000_v62  ;;  %v3002_v63 = vld [vmem:[#allocation4 + $0x90] sm:$0xff]  ;;  %v3007_v0 = vsel %vm268_vm1, %v2917_v3, %v421_v46  ;;  %v3012_v1 = vsel %vm276_vm2, %v2920_v4, %v428_v47  ;;  %v3014_v6 = vld [vmem:[#allocation4 + $0x98] sm:$0xff]  ;;  %v3016_v7 = vld [vmem:[#allocation4 + $0xa0] sm:$0xff] }
  0x38   : > { %4507 = vst [vmem:[#allocation19_spill] sm:$0xff] %v3014_v6  ;;  %v3021_v8 = vsel %vm288_vm3, %v438_v49, %v2931_v14  ;;  %v3026_v9 = vsel %vm296_vm4, %v445_v50, %v2933_v18  ;;  %v3031_v10 = vsel %vm304_vm5, %v452_v51, %v2936_v22  ;;  %v470_v11 = vrot.slane %v2964_v41, 6  ;;  %v3038_v16 = vld [vmem:[#allocation4 + $0xa8] sm:$0xff]  ;;  %v3040_v17 = vld [vmem:[#allocation4 + $0xb0] sm:$0xff]  ;;  %v3042_v19 = vld [vmem:[#allocation4 + $0xb8] sm:$0xff] }
  0x39   : > { %v293_v28 = vadd.f32 %v292_v21, %v285_v25  ;;  %v358_v13 = vmul.f32 %v2985_v55, %v2936_v22  ;;  %v369_v15 = vmul.f32 %v2987_v56, %v2915_v2  ;;  %4508 = vst [vmem:[#allocation20_spill] sm:$0xff] %v3038_v16  ;;  %4509 = vst [vmem:[#allocation21_spill] sm:$0xff] %v3042_v19  ;;  %v387_v24 = vmul.f32 0.0, %v3000_v62  ;;  %v3094_v47 = vld [vmem:[%s2907_s6 + $0x11] sm:$0xff]  ;;  %v3100_v51 = vld [vmem:[#allocation4 + $0xe0] sm:$0xff] }
  0x3a   : > { %v3047_v20 = vsel %vm261_vm0, %v2915_v2, %v463_v54  ;;  %v376_v21 = vmul.f32 %v2989_v57, %v2917_v3  ;;  %v383_v23 = vmul.f32 %v2998_v61, %v2920_v4  ;;  %v3056_v25 = vmul.f32 %v3002_v63, %v2931_v14  ;;  %4514 = vst [vmem:[#allocation26_spill] sm:$0xff] %v3100_v51  ;;  %v3122_v5 = vld [vmem:[#allocation4 + $0xf8] sm:$0xff] }
  0x3b   : > { %v301_v32 = vadd.f32 %v300_v26, %v293_v28  ;;  %v3058_v26 = vld [vmem:[#allocation4 + $0xc0] sm:$0xff]  ;;  %v3078_v43 = vmul.f32 %v3038_v16, %v2994_v58  ;;  %v3091_v46 = vsel %vm268_vm1, %v2917_v3, %v470_v11  ;;  %v704_v54 = vmul.f32 %v3007_v0, %v2989_v57  ;;  %4520 = vst [vmem:[#allocation32_spill] sm:$0xff] %v3122_v5 }
  0x3c   : > { %4510 = vst [vmem:[#allocation22_spill] sm:$0xff] %v3058_v26  ;;  %v3098_v50 = vmul.f32 %v3058_v26, %v2951_v35  ;;  %v494_v57 = vrot.slane %v2964_v41, 2 }
  0x3d   : > { %v2953_v36 = vadd.f32 %v308_v29, %v301_v32  ;;  %v3062_v29 = vmul.f32 %v3014_v6, %v2933_v18  ;;  %v3066_v32 = vmul.f32 %v3016_v7, %v2936_v22 }
  0x3f   : > { %v320_v39 = vadd.f32 %v319_v33, %v2953_v36  ;;  %v3068_v33 = vld [vmem:[#allocation4 + $0xc8] sm:$0xff] }
  0x40   : > { %4511 = vst [vmem:[#allocation23_spill] sm:$0xff] %v3068_v33 }
  0x41   : > { %v327_v44 = vadd.f32 %v326_v37, %v320_v39  ;;  %v3070_v37 = vld [vmem:[#allocation4 + $0xd0] sm:$0xff]  ;;  %v3072_v39 = vld [vmem:[#allocation4 + $0xd8] sm:$0xff] }
  0x42   : > { %4512 = vst [vmem:[#allocation24_spill] sm:$0xff] %v3070_v37  ;;  %4513 = vst [vmem:[#allocation25_spill] sm:$0xff] %v3072_v39  ;;  %v3117_v11 = vmul.f32 %v3072_v39, %v3031_v10  ;;  %v512_v39 = vrot.slane %v3094_v47, 5 }
  0x43   : > { %v334_v52 = vadd.f32 %v333_v40, %v327_v44  ;;  %v698_v40 = vmul.f32 %v2994_v58, %v2987_v56  ;;  %v3082_v44 = vmul.f32 %v3040_v17, %v3007_v0 }
  0x44   : > { %4518 = vst [vmem:[#allocation30_spill] sm:$0xff] %v3117_v11 }
  0x45   : > { %v338_v59 = vadd.f32 %v337_v45, %v334_v52  ;;  %v3086_v45 = vmul.f32 %v3042_v19, %v3012_v1  ;;  %v3102_v52 = vld [vmem:[#allocation4 + $0xe8] sm:$0xff] }
  0x46   : > { %4515 = vst [vmem:[#allocation27_spill] sm:$0xff] %v3102_v52  ;;  %v3133_v11 = vmul.f32 %v3102_v52, %v3091_v46 }
  0x47   : > { %v345_v12 = vadd.f32 %v344_v53, %v338_v59  ;;  %v477_v53 = vrot.slane %v2964_v41, 7  ;;  %v3109_v59 = vmul.f32 %v3068_v33, %v3021_v8 }
  0x48   : > { %4522 = vst [vmem:[#allocation34_spill] sm:$0xff] %v3133_v11 }
  0x49   : > { %v352_v28 = vadd.f32 %v351_v60, %v345_v12  ;;  %4516 = vst [vmem:[#allocation28_spill] sm:$0xff] %v3109_v59  ;;  %v3113_v60 = vmul.f32 %v3070_v37, %v3026_v9  ;;  %v487_v12 = vrot.slane %v2964_v41, 1  ;;  %v710_v59 = vmul.f32 %v3012_v1, %v2998_v61  ;;  %v3144_v61 = vld [vmem:[#allocation4 + $0x108] sm:$0xff] }
  0x4a   : > { %4524 = vst [vmem:[#allocation36_spill] sm:$0xff] %v3144_v61 }
  0x4b   : > { %v359_v49 = vadd.f32 %v358_v13, %v352_v28  ;;  %4517 = vst [vmem:[#allocation29_spill] sm:$0xff] %v3113_v60  ;;  %v3120_v28 = vld [vmem:[#allocation4 + $0xf0] sm:$0xff]  ;;  %v3129_v60 = vmul.f32 %v3100_v51, %v3047_v20 }
  0x4c   : > { %4519 = vst [vmem:[#allocation31_spill] sm:$0xff] %v3120_v28 }
  0x4d   : > { %v370_v13 = vadd.f32 %v369_v15, %v359_v49  ;;  %v699_v56 = vadd.f32 %v698_v40, %v359_v49  ;;  %4521 = vst [vmem:[#allocation33_spill] sm:$0xff] %v3129_v60  ;;  %v501_v15 = vrot.slane %v2964_v41, 3  ;;  %v3140_v40 = vsel %vm276_vm2, %v2920_v4, %v477_v53  ;;  %v3142_v49 = vld [vmem:[#allocation4 + $0x100] sm:$0xff] }
  0x4e   : > { %4523 = vst [vmem:[#allocation35_spill] sm:$0xff] %v3142_v49  ;;  %v713_v60 = vmul.f32 %v3000_v62, %v2951_v35  ;;  %v3150_v11 = vmul.f32 %v3120_v28, %v3140_v40  ;;  %v3159_v53 = vsel %vm288_vm3, %v487_v12, %v2931_v14  ;;  %v3167_v62 = vsel %vm296_vm4, %v494_v57, %v2933_v18 }
  0x4f   : > { %v377_v37 = vadd.f32 %v376_v21, %v370_v13  ;;  %v705_v51 = vadd.f32 %v704_v54, %v699_v56  ;;  %v3154_v21 = vmul.f32 %v3122_v5, %v2964_v41  ;;  %v3161_v13 = vld [vmem:[#allocation4 + $0x110] sm:$0xff]  ;;  %v519_v56 = vrot.slane %v3094_v47, 6 }
  0x50   : > { %4525 = vst [vmem:[#allocation37_spill] sm:$0xff] %v3150_v11  ;;  %4527 = vst [vmem:[#allocation39_spill] sm:$0xff] %v3161_v13  ;;  %v3169_v11 = vld [vmem:[#allocation4 + $0x118] sm:$0xff]  ;;  %v3175_v12 = vmul.f32 %v3142_v49, %v3159_v53  ;;  %v3179_v5 = vmul.f32 %v3144_v61, %v3167_v62  ;;  %v3189_v57 = vsel %vm261_vm0, %v2915_v2, %v512_v39 }
  0x51   : > { %4526 = vst [vmem:[#allocation38_spill] sm:$0xff] %v3154_v21  ;;  %v384_v54 = vadd.f32 %v383_v23, %v377_v37  ;;  %4528 = vst [vmem:[#allocation40_spill] sm:$0xff] %v3169_v11  ;;  %v711_v28 = vadd.f32 %v710_v59, %v705_v51  ;;  %v719_v21 = vmul.f32 %v3021_v8, %v3002_v63  ;;  %v3191_v37 = vld [vmem:[#allocation4 + $0x130] sm:$0xff] }
  0x52   : > { %4529 = vst [vmem:[#allocation41_spill] sm:$0xff] %v3175_v12  ;;  %4530 = vst [vmem:[#allocation42_spill] sm:$0xff] %v3179_v5  ;;  %v3184_v23 = vsel %vm304_vm5, %v501_v15, %v2936_v22  ;;  %v3197_v12 = vld [vmem:[#allocation4 + $0x120] sm:$0xff]  ;;  %v725_v15 = vmul.f32 %v3026_v9, %v3014_v6  ;;  %v3203_v61 = vmul.f32 %v3169_v11, %v3189_v57 }
  0x53   : > { %4531 = vst [vmem:[#allocation43_spill] sm:$0xff] %v3191_v37  ;;  %v388_v51 = vadd.f32 %v387_v24, %v384_v54  ;;  %v3195_v59 = vmul.f32 %v3161_v13, %v3184_v23  ;;  %4533 = vst [vmem:[#allocation45_spill] sm:$0xff] %v3197_v12  ;;  %v714_v5 = vadd.f32 %v713_v60, %v711_v28  ;;  %v526_v24 = vrot.slane %v3094_v47, 7 }
  0x54   : > { %4534 = vst [vmem:[#allocation46_spill] sm:$0xff] %v3203_v61  ;;  %v3208_v39 = vsel %vm268_vm1, %v2917_v3, %v519_v56  ;;  %v536_v54 = vrot.slane %v3094_v47, 1  ;;  %v3215_v60 = vmul.f32 %v3191_v37, %v3094_v47  ;;  %v731_v11 = vmul.f32 %v3031_v10, %v3016_v7  ;;  %v3220_v61 = vld [vmem:[%s2907_s6 + $0x19] sm:$0xff] }
  0x55   : > { %4532 = vst [vmem:[#allocation44_spill] sm:$0xff] %v3195_v59  ;;  %v395_v59 = vadd.f32 %v3056_v25, %v388_v51  ;;  %v720_v28 = vadd.f32 %v719_v21, %v714_v5  ;;  %v3224_v56 = vmul.f32 %v3197_v12, %v3208_v39  ;;  %v543_v13 = vrot.slane %v3094_v47, 2  ;;  %v3232_v5 = vld [vmem:[#allocation4 + $0x128] sm:$0xff] }
  0x56   : > { %4535 = vst [vmem:[#allocation47_spill] sm:$0xff] %v3215_v60  ;;  %v951_v6 = vmul.f32 %v2994_v58, %v2939_v27  ;;  %v957_v25 = vmul.f32 %v3007_v0, %v2942_v30  ;;  %v550_v21 = vrot.slane %v3094_v47, 3  ;;  %v740_v37 = vmul.f32 %v3047_v20, %v3038_v16 }
  0x57   : > { %4536 = vst [vmem:[#allocation48_spill] sm:$0xff] %v3224_v56  ;;  %v402_v51 = vadd.f32 %v3062_v29, %v395_v59  ;;  %v726_v60 = vadd.f32 %v725_v15, %v720_v28  ;;  %v3240_v56 = vsel %vm276_vm2, %v2920_v4, %v526_v24  ;;  %v3245_v27 = vsel %vm288_vm3, %v536_v54, %v2931_v14  ;;  %v3251_v15 = vld [vmem:[#allocation4 + $0x138] sm:$0xff]  ;;  %v3253_v28 = vld [vmem:[#allocation4 + $0x140] sm:$0xff] }
  0x58   : > { %v952_v30 = vadd.f32 %v951_v6, %v2953_v36  ;;  %v963_v29 = vmul.f32 %v3012_v1, %v2948_v34  ;;  %4537 = vst [vmem:[#allocation49_spill] sm:$0xff] %v3253_v28  ;;  %v561_v16 = vrot.slane %v3220_v61, 5  ;;  %v746_v12 = vmul.f32 %v3091_v46, %v3040_v17 }
  0x59   : > { %v409_v59 = vadd.f32 %v3066_v32, %v402_v51  ;;  %v732_v24 = vadd.f32 %v731_v11, %v726_v60  ;;  %v3260_v54 = vmul.f32 %v3232_v5, %v3240_v56  ;;  %v568_v36 = vrot.slane %v3220_v61, 6 }
  0x5a   : > { %v958_v6 = vadd.f32 %v957_v25, %v952_v30  ;;  %v966_v34 = vmul.f32 %v2957_v38, %v2951_v35  ;;  %v3269_v51 = vsel %vm296_vm4, %v543_v13, %v2933_v18  ;;  %v752_v60 = vmul.f32 %v3140_v40, %v3042_v19  ;;  %v3281_v38 = vld [vmem:[#allocation4 + $0x148] sm:$0xff] }
  0x5b   : > { %4538 = vst [vmem:[#allocation50_spill] sm:$0xff] %v3260_v54  ;;  %v419_v32 = vadd.f32 %v3078_v43, %v409_v59  ;;  %v741_v11 = vadd.f32 %v740_v37, %v732_v24  ;;  %v3275_v54 = vmul.f32 %v3251_v15, %v3245_v27  ;;  %v3279_v25 = vmul.f32 %v3253_v28, %v3269_v51  ;;  %v3291_v59 = vld [vmem:[#allocation4 + $0x150] sm:$0xff] }
  0x5c   : > { %4541 = vst [vmem:[#allocation53_spill] sm:$0xff] %v3281_v38  ;;  %v964_v43 = vadd.f32 %v963_v29, %v958_v6  ;;  %v972_v30 = vmul.f32 %v3021_v8, %v2969_v42  ;;  %v3289_v37 = vsel %vm304_vm5, %v550_v21, %v2936_v22  ;;  %4542 = vst [vmem:[#allocation54_spill] sm:$0xff] %v3291_v59 }
  0x5d   : > { %4539 = vst [vmem:[#allocation51_spill] sm:$0xff] %v3275_v54  ;;  %4540 = vst [vmem:[#allocation52_spill] sm:$0xff] %v3279_v25  ;;  %v426_v13 = vadd.f32 %v3082_v44, %v419_v32  ;;  %v747_v24 = vadd.f32 %v746_v12, %v741_v11  ;;  %v755_v54 = vmul.f32 %v3058_v26, %v2964_v41  ;;  %v3312_v32 = vld [vmem:[#allocation4 + $0x158] sm:$0xff] }
  0x5e   : > { %v3298_v29 = vsel %vm261_vm0, %v2915_v2, %v561_v16  ;;  %v3303_v42 = vsel %vm268_vm1, %v2917_v3, %v568_v36  ;;  %v967_v44 = vadd.f32 %v966_v34, %v964_v43  ;;  %v978_v21 = vmul.f32 %v3026_v9, %v2976_v48  ;;  %4544 = vst [vmem:[#allocation56_spill] sm:$0xff] %v3312_v32  ;;  %v3321_v43 = vld [vmem:[#allocation4 + $0x168] sm:$0xff] }
  0x5f   : > { %v433_v6 = vadd.f32 %v3086_v45, %v426_v13  ;;  %v3310_v12 = vmul.f32 %v3281_v38, %v3289_v37  ;;  %v753_v11 = vadd.f32 %v752_v60, %v747_v24  ;;  %v761_v16 = vmul.f32 %v3159_v53, %v3068_v33  ;;  %4546 = vst [vmem:[#allocation58_spill] sm:$0xff] %v3321_v43  ;;  %v4547_v24 = vld [vmem:[#allocation24_spill] sm:$0xff]  ;;  %v4549_v2 = vld [vmem:[#allocation15_spill] sm:$0xff]  ;;  %v3337_v33 = vld [vmem:[#allocation4 + $0x160] sm:$0xff] }
  0x60   : > { %v3318_v36 = vmul.f32 %v3291_v59, %v3298_v29  ;;  %v575_v34 = vrot.slane %v3220_v61, 7  ;;  %v973_v48 = vadd.f32 %v972_v30, %v967_v44  ;;  %v984_v45 = vmul.f32 %v3031_v10, %v2985_v55  ;;  %v4550_v44 = vld [vmem:[#allocation28_spill] sm:$0xff]  ;;  %4551 = vst [vmem:[#allocation15_spill] sm:$0xff] %v3337_v33 }
  0x61   : > { %4543 = vst [vmem:[#allocation55_spill] sm:$0xff] %v3310_v12  ;;  %v437_v13 = vadd.f32 %v3098_v50, %v433_v6  ;;  %v585_v12 = vrot.slane %v3220_v61, 1  ;;  %v756_v60 = vadd.f32 %v755_v54, %v753_v11  ;;  %v767_v25 = vmul.f32 %v3167_v62, %v4547_v24  ;;  %v4553_v6 = vld [vmem:[#allocation25_spill] sm:$0xff] }
  0x62   : > { %4545 = vst [vmem:[#allocation57_spill] sm:$0xff] %v3318_v36  ;;  %v3331_v59 = vmul.f32 %v3312_v32, %v3303_v42  ;;  %v592_v36 = vrot.slane %v3220_v61, 2  ;;  %v979_v3 = vadd.f32 %v978_v21, %v973_v48  ;;  %v993_v30 = vmul.f32 %v3047_v20, %v4549_v2  ;;  %v3350_v21 = vld [vmem:[#allocation4 + $0x170] sm:$0xff]  ;;  %v4556_v32 = vld [vmem:[#allocation29_spill] sm:$0xff] }
  0x63   : > { %v444_v55 = vadd.f32 %v4550_v44, %v437_v13  ;;  %v3341_v50 = vmul.f32 %v3321_v43, %v3220_v61  ;;  %v762_v54 = vadd.f32 %v761_v16, %v756_v60  ;;  %v773_v11 = vmul.f32 %v3184_v23, %v4553_v6  ;;  %4554 = vst [vmem:[#allocation60_spill] sm:$0xff] %v3350_v21  ;;  %v4555_v13 = vld [vmem:[#allocation16_spill] sm:$0xff]  ;;  %v3361_v60 = vld [vmem:[#allocation4 + $0x178] sm:$0xff] }
  0x64   : > { %4548 = vst [vmem:[#allocation59_spill] sm:$0xff] %v3331_v59  ;;  %v3348_v59 = vsel %vm276_vm2, %v2920_v4, %v575_v34  ;;  %v599_v2 = vrot.slane %v3220_v61, 3  ;;  %v985_v48 = vadd.f32 %v984_v45, %v979_v3  ;;  %v999_v44 = vmul.f32 %v3091_v46, %v4555_v13  ;;  %4557 = vst [vmem:[#allocation16_spill] sm:$0xff] %v3361_v60  ;;  %v4558_v34 = vld [vmem:[#allocation26_spill] sm:$0xff] }
  0x65   : > { %4552 = vst [vmem:[#allocation28_spill] sm:$0xff] %v3341_v50  ;;  %v451_v24 = vadd.f32 %v4556_v32, %v444_v55  ;;  %v3359_v16 = vsel %vm288_vm3, %v585_v12, %v2931_v14  ;;  %v768_v50 = vadd.f32 %v767_v25, %v762_v54  ;;  %v782_v4 = vmul.f32 %v3189_v57, %v4558_v34  ;;  %v3374_v32 = vld [vmem:[#allocation4 + $0x180] sm:$0xff]  ;;  %v4562_v12 = vld [vmem:[#allocation17_spill] sm:$0xff] }
  0x66   : > { %v3367_v6 = vmul.f32 %v3337_v33, %v3348_v59  ;;  %v3372_v3 = vsel %vm296_vm4, %v592_v36, %v2933_v18  ;;  %4561 = vst [vmem:[#allocation62_spill] sm:$0xff] %v3374_v32  ;;  %v994_v45 = vadd.f32 %v993_v30, %v985_v48  ;;  %v1005_v55 = vmul.f32 %v3140_v40, %v4562_v12  ;;  %v4563_v13 = vld [vmem:[#allocation30_spill] sm:$0xff]  ;;  %v3407_v18 = vld [vmem:[#allocation4 + $0x10] sm:$0xff] }
  0x67   : > { %4560 = vst [vmem:[#allocation61_spill] sm:$0xff] %v3372_v3  ;;  %v458_v25 = vadd.f32 %v4563_v13, %v451_v24  ;;  %v3381_v54 = vmul.f32 %v3350_v21, %v3359_v16  ;;  %v774_v14 = vadd.f32 %v773_v11, %v768_v50  ;;  %v3385_v33 = vld [vmem:[#allocation4] sm:$0xff]  ;;  %v3389_v36 = vmul.f32 %v3361_v60, %v3372_v3  ;;  %v3398_v13 = vld [vmem:[#allocation4 + $0x8] sm:$0xff]  ;;  %v4570_v50 = vld [vmem:[#allocation33_spill] sm:$0xff] }
  0x68   : > { %4559 = vst [vmem:[#allocation29_spill] sm:$0xff] %v3367_v6  ;;  %v788_v6 = vmul.f32 %v3208_v39, %v3102_v52  ;;  %4565 = vst [vmem:[#allocation30_spill] sm:$0xff] %v3385_v33  ;;  %v3394_v30 = vsel %vm304_vm5, %v599_v2, %v2936_v22  ;;  %v1000_v24 = vadd.f32 %v999_v44, %v994_v45  ;;  %v4568_v48 = vld [vmem:[#allocation18_spill] sm:$0xff]  ;;  %v4572_v60 = vld [vmem:[#allocation31_spill] sm:$0xff] }
  0x69   : > { %4564 = vst [vmem:[#allocation17_spill] sm:$0xff] %v3381_v54  ;;  %4566 = vst [vmem:[#allocation63_spill] sm:$0xff] %v3389_v36  ;;  %v1008_v12 = vmul.f32 %v4568_v48, %v2964_v41  ;;  %v468_v11 = vadd.f32 %v4570_v50, %v458_v25  ;;  %v3403_v54 = vmul.f32 %v3374_v32, %v3394_v30  ;;  %v4574_v2 = vld [vmem:[#allocation32_spill] sm:$0xff]  ;;  %v4575_v50 = vld [vmem:[#allocation34_spill] sm:$0xff] }
  0x6a   : > { %4567 = vst [vmem:[#allocation64_spill] sm:$0xff] %v3394_v30  ;;  %4569 = vst [vmem:[#allocation18_spill] sm:$0xff] %v3398_v13  ;;  %v783_v21 = vadd.f32 %v782_v4, %v774_v14  ;;  %v794_v36 = vmul.f32 %v3240_v56, %v4572_v60  ;;  %v797_v44 = vmul.f32 %v4574_v2, %v3094_v47  ;;  %v4577_v2 = vld [vmem:[#allocation19_spill] sm:$0xff] }
  0x6b   : > { %4571 = vst [vmem:[#allocation33_spill] sm:$0xff] %v3403_v54  ;;  %4573 = vst [vmem:[#allocation65_spill] sm:$0xff] %v3407_v18  ;;  %v1006_v45 = vadd.f32 %v1005_v55, %v1000_v24  ;;  %v1014_v48 = vmul.f32 %v3159_v53, %v3002_v63  ;;  %v1204_v25 = vmul.f32 %v3385_v33, %v2994_v58  ;;  %v3420_v54 = vld [vmem:[#allocation4 + $0x18] sm:$0xff]  ;;  %v4578_v24 = vld [vmem:[#allocation10_spill] sm:$0xff] }
  0x6c   : > { %v475_v22 = vadd.f32 %v4575_v50, %v468_v11  ;;  %v789_v32 = vadd.f32 %v788_v6, %v783_v21  ;;  %v803_v4 = vmul.f32 %v3245_v27, %v3142_v49  ;;  %v1210_v14 = vmul.f32 %v3398_v13, %v3007_v0  ;;  %4576 = vst [vmem:[#allocation34_spill] sm:$0xff] %v3420_v54  ;;  %v4579_v33 = vld [vmem:[#allocation37_spill] sm:$0xff]  ;;  %v4580_v21 = vld [vmem:[#allocation36_spill] sm:$0xff]  ;;  %v4581_v49 = vld [vmem:[#allocation39_spill] sm:$0xff] }
  0x6d   : > { %v1009_v60 = vadd.f32 %v1008_v12, %v1006_v45  ;;  %v1020_v55 = vmul.f32 %v3167_v62, %v4577_v2  ;;  %v1205_v63 = vadd.f32 %v4578_v24, %v1204_v25  ;;  %v1216_v58 = vmul.f32 %v3407_v18, %v3012_v1  ;;  %v3432_v13 = vld [vmem:[#allocation4 + $0x20] sm:$0xff]  ;;  %v4584_v18 = vld [vmem:[#allocation45_spill] sm:$0xff] }
  0x6e   : > { %v482_v11 = vadd.f32 %v4579_v33, %v475_v22  ;;  %v795_v6 = vadd.f32 %v794_v36, %v789_v32  ;;  %v809_v50 = vmul.f32 %v3269_v51, %v4580_v21  ;;  %v815_v0 = vmul.f32 %v3289_v37, %v4581_v49  ;;  %v4582_v25 = vld [vmem:[#allocation38_spill] sm:$0xff]  ;;  %v4583_v32 = vld [vmem:[#allocation40_spill] sm:$0xff]  ;;  %v3443_v49 = vld [vmem:[#allocation4 + $0x28] sm:$0xff] }
  0x6f   : > { %v1015_v12 = vadd.f32 %v1014_v48, %v1009_v60  ;;  %v1026_v2 = vmul.f32 %v3184_v23, %v3016_v7  ;;  %v1211_v45 = vadd.f32 %v1210_v14, %v1205_v63  ;;  %v1219_v1 = vmul.f32 %v3420_v54, %v2951_v35  ;;  %4585 = vst [vmem:[#allocation19_spill] sm:$0xff] %v3443_v49  ;;  %v4586_v48 = vld [vmem:[#allocation20_spill] sm:$0xff]  ;;  %v4587_v35 = vld [vmem:[#allocation41_spill] sm:$0xff] }
  0x70   : > { %v486_v22 = vadd.f32 %v4582_v25, %v482_v11  ;;  %v798_v33 = vadd.f32 %v797_v44, %v795_v6  ;;  %v824_v36 = vmul.f32 %v3298_v29, %v4583_v32  ;;  %v830_v24 = vmul.f32 %v3303_v42, %v4584_v18  ;;  %v4588_v6 = vld [vmem:[#allocation43_spill] sm:$0xff]  ;;  %v3454_v18 = vld [vmem:[#allocation4 + $0x30] sm:$0xff] }
  0x71   : > { %v1021_v60 = vadd.f32 %v1020_v55, %v1015_v12  ;;  %v1035_v7 = vmul.f32 %v3189_v57, %v4586_v48  ;;  %v1217_v14 = vadd.f32 %v1216_v58, %v1211_v45  ;;  %v1225_v63 = vmul.f32 %v3432_v13, %v3021_v8  ;;  %4589 = vst [vmem:[#allocation37_spill] sm:$0xff] %v3454_v18  ;;  %v3457_v32 = vld [vmem:[%s2907_s6 + $0x21] sm:$0xff]  ;;  %v3468_v48 = vld [vmem:[#allocation4 + $0x38] sm:$0xff] }
  0x72   : > { %v493_v54 = vadd.f32 %v4587_v35, %v486_v22  ;;  %v804_v11 = vadd.f32 %v803_v4, %v798_v33  ;;  %v836_v44 = vmul.f32 %v3348_v59, %v3232_v5  ;;  %v839_v25 = vmul.f32 %v4588_v6, %v3220_v61  ;;  %v4590_v45 = vld [vmem:[#allocation42_spill] sm:$0xff]  ;;  %4591 = vst [vmem:[#allocation38_spill] sm:$0xff] %v3468_v48 }
  0x73   : > { %v1027_v55 = vadd.f32 %v1026_v2, %v1021_v60  ;;  %v1041_v58 = vmul.f32 %v3208_v39, %v3040_v17  ;;  %v1220_v12 = vadd.f32 %v1219_v1, %v1217_v14  ;;  %v1231_v8 = vmul.f32 %v3443_v49, %v3026_v9  ;;  %v4592_v9 = vld [vmem:[#allocation44_spill] sm:$0xff] }
  0x74   : > { %v500_v4 = vadd.f32 %v4590_v45, %v493_v54  ;;  %v810_v22 = vadd.f32 %v809_v50, %v804_v11  ;;  %v845_v33 = vmul.f32 %v3359_v16, %v3251_v15  ;;  %v851_v35 = vmul.f32 %v3372_v3, %v3253_v28  ;;  %v3478_v45 = vld [vmem:[#allocation4 + $0x40] sm:$0xff] }
  0x75   : > { %v1036_v6 = vadd.f32 %v1035_v7, %v1027_v55  ;;  %v1047_v2 = vmul.f32 %v3240_v56, %v3042_v19  ;;  %v1226_v60 = vadd.f32 %v1225_v63, %v1220_v12  ;;  %v1237_v1 = vmul.f32 %v3454_v18, %v3031_v10  ;;  %4593 = vst [vmem:[#allocation41_spill] sm:$0xff] %v3478_v45  ;;  %v4594_v12 = vld [vmem:[#allocation46_spill] sm:$0xff] }
  0x76   : > { %v507_v14 = vadd.f32 %v4592_v9, %v500_v4  ;;  %v816_v54 = vadd.f32 %v815_v0, %v810_v22  ;;  %v857_v50 = vmul.f32 %v3394_v30, %v3281_v38  ;;  %v863_v11 = vrot.slane %v3457_v32, 5  ;;  %v3487_v22 = vld [vmem:[#allocation4 + $0x48] sm:$0xff] }
  0x77   : > { %v1042_v28 = vadd.f32 %v1041_v58, %v1036_v6  ;;  %v1050_v7 = vmul.f32 %v3058_v26, %v3094_v47  ;;  %v1232_v55 = vadd.f32 %v1231_v8, %v1226_v60  ;;  %v1246_v63 = vmul.f32 %v3468_v48, %v3047_v20  ;;  %4595 = vst [vmem:[#allocation42_spill] sm:$0xff] %v3487_v22  ;;  %v4596_v38 = vld [vmem:[#allocation23_spill] sm:$0xff]  ;;  %v4597_v60 = vld [vmem:[#allocation48_spill] sm:$0xff] }
  0x78   : > { %v517_v10 = vadd.f32 %v4594_v12, %v507_v14  ;;  %v825_v19 = vadd.f32 %v824_v36, %v816_v54  ;;  %v869_v0 = vrot.slane %v3457_v32, 6  ;;  %v875_v4 = vrot.slane %v3457_v32, 7  ;;  %v3499_v54 = vld [vmem:[#allocation4 + $0x50] sm:$0xff] }
  0x79   : > { %v1048_v9 = vadd.f32 %v1047_v2, %v1042_v28  ;;  %v1056_v6 = vmul.f32 %v3245_v27, %v4596_v38  ;;  %v1238_v58 = vadd.f32 %v1237_v1, %v1232_v55  ;;  %v1252_v8 = vmul.f32 %v3478_v45, %v3091_v46  ;;  %4598 = vst [vmem:[#allocation44_spill] sm:$0xff] %v3499_v54  ;;  %v4599_v28 = vld [vmem:[#allocation24_spill] sm:$0xff]  ;;  %v4600_v55 = vld [vmem:[#allocation50_spill] sm:$0xff] }
  0x7a   : > { %v524_v26 = vadd.f32 %v4597_v60, %v517_v10  ;;  %v831_v48 = vadd.f32 %v830_v24, %v825_v19  ;;  %v3496_v36 = vmul.f32 %v3321_v43, %v3457_v32  ;;  %v883_v14 = vrot.slane %v3457_v32, 1  ;;  %v4601_v19 = vld [vmem:[#allocation7_spill] sm:$0xff]  ;;  %v4603_v60 = vld [vmem:[#allocation8_spill] sm:$0xff] }
  0x7b   : > { %v1051_v12 = vadd.f32 %v1050_v7, %v1048_v9  ;;  %v1062_v2 = vmul.f32 %v3269_v51, %v4599_v28  ;;  %v1247_v38 = vadd.f32 %v1246_v63, %v1238_v58  ;;  %v1258_v1 = vmul.f32 %v3487_v22, %v3140_v40  ;;  %v3516_v7 = vld [vmem:[#allocation4 + $0x58] sm:$0xff] }
  0x7c   : > { %v531_v45 = vadd.f32 %v4600_v55, %v524_v26  ;;  %v837_v10 = vadd.f32 %v836_v44, %v831_v48  ;;  %v3509_v24 = vsel %vm261_vm0, %v4601_v19, %v863_v11  ;;  %v3514_v43 = vsel %vm268_vm1, %v4603_v60, %v869_v0  ;;  %4604 = vst [vmem:[#allocation48_spill] sm:$0xff] %v3516_v7  ;;  %v4605_v63 = vld [vmem:[#allocation25_spill] sm:$0xff]  ;;  %v4606_v48 = vld [vmem:[#allocation47_spill] sm:$0xff]  ;;  %v3529_v60 = vld [vmem:[#allocation4 + $0x60] sm:$0xff] }
  0x7d   : > { %4602 = vst [vmem:[#allocation46_spill] sm:$0xff] %v3509_v24  ;;  %v1057_v9 = vadd.f32 %v1056_v6, %v1051_v12  ;;  %v1068_v58 = vmul.f32 %v3289_v37, %v4605_v63  ;;  %v1253_v28 = vadd.f32 %v1252_v8, %v1247_v38  ;;  %v1261_v26 = vmul.f32 %v3499_v54, %v2964_v41  ;;  %v4607_v11 = vld [vmem:[#allocation9_spill] sm:$0xff]  ;;  %v4609_v63 = vld [vmem:[#allocation51_spill] sm:$0xff] }
  0x7e   : > { %v535_v44 = vadd.f32 %v4606_v48, %v531_v45  ;;  %v840_v55 = vadd.f32 %v839_v25, %v837_v10  ;;  %v3526_v22 = vsel %vm276_vm2, %v4607_v11, %v875_v4  ;;  %v889_v0 = vrot.slane %v3457_v32, 2  ;;  %4608 = vst [vmem:[#allocation50_spill] sm:$0xff] %v3529_v60  ;;  %v4610_v10 = vld [vmem:[#allocation54_spill] sm:$0xff]  ;;  %v4611_v4 = vld [vmem:[#allocation56_spill] sm:$0xff]  ;;  %v3540_v11 = vld [vmem:[#allocation4 + $0x68] sm:$0xff] }
  0x7f   : > { %v1063_v6 = vadd.f32 %v1062_v2, %v1057_v9  ;;  %v1077_v12 = vmul.f32 %v3298_v29, %v4558_v34  ;;  %v1259_v38 = vadd.f32 %v1258_v1, %v1253_v28  ;;  %v1267_v8 = vmul.f32 %v3516_v7, %v3159_v53  ;;  %4612 = vst [vmem:[#allocation47_spill] sm:$0xff] %v3540_v11  ;;  %v4613_v1 = vld [vmem:[#allocation52_spill] sm:$0xff] }
  0x80   : > { %v542_v45 = vadd.f32 %v4609_v63, %v535_v44  ;;  %v846_v25 = vadd.f32 %v845_v33, %v840_v55  ;;  %v866_v48 = vmul.f32 %v3509_v24, %v4610_v10  ;;  %v872_v54 = vmul.f32 %v3514_v43, %v4611_v4  ;;  %v4614_v33 = vld [vmem:[#allocation15_spill] sm:$0xff]  ;;  %v3550_v7 = vld [vmem:[#allocation4 + $0x70] sm:$0xff] }
  0x81   : > { %v1069_v19 = vadd.f32 %v1068_v58, %v1063_v6  ;;  %v1083_v2 = vmul.f32 %v3303_v42, %v3102_v52  ;;  %v1262_v9 = vadd.f32 %v1261_v26, %v1259_v38  ;;  %v1273_v28 = vmul.f32 %v3529_v60, %v3167_v62  ;;  %4615 = vst [vmem:[#allocation51_spill] sm:$0xff] %v3550_v7  ;;  %v4616_v10 = vld [vmem:[#allocation31_spill] sm:$0xff] }
  0x82   : > { %v549_v34 = vadd.f32 %v4613_v1, %v542_v45  ;;  %v852_v63 = vadd.f32 %v851_v35, %v846_v25  ;;  %v878_v44 = vmul.f32 %v3526_v22, %v4614_v33  ;;  %v895_v55 = vrot.slane %v3457_v32, 3  ;;  %v4617_v38 = vld [vmem:[#allocation55_spill] sm:$0xff]  ;;  %v4619_v25 = vld [vmem:[#allocation12_spill] sm:$0xff] }
  0x83   : > { %v1078_v4 = vadd.f32 %v1077_v12, %v1069_v19  ;;  %v1089_v58 = vmul.f32 %v3348_v59, %v4616_v10  ;;  %v1268_v6 = vadd.f32 %v1267_v8, %v1262_v9  ;;  %v1279_v26 = vmul.f32 %v3540_v11, %v3184_v23  ;;  %v4618_v45 = vld [vmem:[#allocation11_spill] sm:$0xff]  ;;  %v3567_v19 = vld [vmem:[#allocation4 + $0x78] sm:$0xff]  ;;  %v4621_v8 = vld [vmem:[#allocation32_spill] sm:$0xff] }
  0x84   : > { %v556_v52 = vadd.f32 %v4617_v38, %v549_v34  ;;  %v858_v60 = vadd.f32 %v857_v50, %v852_v63  ;;  %v3560_v35 = vsel %vm288_vm3, %v883_v14, %v4618_v45  ;;  %v3565_v1 = vsel %vm296_vm4, %v889_v0, %v4619_v25  ;;  %4620 = vst [vmem:[#allocation52_spill] sm:$0xff] %v3567_v19  ;;  %v4622_v50 = vld [vmem:[#allocation57_spill] sm:$0xff]  ;;  %v4623_v14 = vld [vmem:[#allocation60_spill] sm:$0xff]  ;;  %v3581_v25 = vld [vmem:[#allocation4 + $0x80] sm:$0xff] }
  0x85   : > { %v1084_v12 = vadd.f32 %v1083_v2, %v1078_v4  ;;  %v1092_v9 = vmul.f32 %v4621_v8, %v3220_v61  ;;  %v1274_v10 = vadd.f32 %v1273_v28, %v1268_v6  ;;  %v1288_v34 = vmul.f32 %v3550_v7, %v3189_v57  ;;  %v4624_v45 = vld [vmem:[#allocation13_spill] sm:$0xff]  ;;  %4625 = vst [vmem:[#allocation55_spill] sm:$0xff] %v3581_v25  ;;  %v4626_v2 = vld [vmem:[#allocation35_spill] sm:$0xff] }
  0x86   : > { %v566_v63 = vadd.f32 %v4622_v50, %v556_v52  ;;  %v867_v38 = vadd.f32 %v866_v48, %v858_v60  ;;  %v887_v11 = vmul.f32 %v3560_v35, %v4623_v14  ;;  %v3579_v0 = vsel %vm304_vm5, %v895_v55, %v4624_v45  ;;  %v4627_v52 = vld [vmem:[#allocation59_spill] sm:$0xff]  ;;  %v4628_v50 = vld [vmem:[#allocation16_spill] sm:$0xff]  ;;  %v4629_v14 = vld [vmem:[#allocation62_spill] sm:$0xff] }
  0x87   : > { %v1090_v4 = vadd.f32 %v1089_v58, %v1084_v12  ;;  %v1098_v28 = vmul.f32 %v3359_v16, %v4626_v2  ;;  %v1280_v6 = vadd.f32 %v1279_v26, %v1274_v10  ;;  %v1294_v7 = vmul.f32 %v3567_v19, %v3208_v39  ;;  %v3592_v45 = vld [vmem:[#allocation4 + $0x88] sm:$0xff]  ;;  %v3598_v26 = vld [vmem:[#allocation4 + $0x90] sm:$0xff] }
  0x88   : > { %v573_v60 = vadd.f32 %v4627_v52, %v566_v63  ;;  %v873_v48 = vadd.f32 %v872_v54, %v867_v38  ;;  %v893_v8 = vmul.f32 %v3565_v1, %v4628_v50  ;;  %v899_v55 = vmul.f32 %v3579_v0, %v4629_v14  ;;  %4630 = vst [vmem:[#allocation57_spill] sm:$0xff] %v3592_v45  ;;  %v4632_v63 = vld [vmem:[#allocation29_spill] sm:$0xff]  ;;  %v4633_v52 = vld [vmem:[#allocation39_spill] sm:$0xff]  ;;  %v4634_v2 = vld [vmem:[#allocation40_spill] sm:$0xff] }
  0x89   : > { %v1093_v33 = vadd.f32 %v1092_v9, %v1090_v4  ;;  %v1104_v58 = vmul.f32 %v3372_v3, %v4580_v21  ;;  %v1289_v12 = vadd.f32 %v1288_v34, %v1280_v6  ;;  %v1300_v10 = vmul.f32 %v3581_v25, %v3240_v56  ;;  %4631 = vst [vmem:[#allocation59_spill] sm:$0xff] %v3598_v26  ;;  %v3607_v34 = vld [vmem:[#allocation4 + $0x98] sm:$0xff]  ;;  %v4636_v6 = vld [vmem:[#allocation30_spill] sm:$0xff]  ;;  %v4637_v21 = vld [vmem:[#allocation28_spill] sm:$0xff] }
  0x8a   : > { %v580_v54 = vadd.f32 %v4632_v63, %v573_v60  ;;  %v879_v38 = vadd.f32 %v878_v44, %v873_v48  ;;  %v1110_v19 = vmul.f32 %v3394_v30, %v4633_v52  ;;  %v1119_v14 = vmul.f32 %v3509_v24, %v4634_v2  ;;  %4635 = vst [vmem:[#allocation29_spill] sm:$0xff] %v3607_v34  ;;  %v4638_v48 = vld [vmem:[#allocation18_spill] sm:$0xff]  ;;  %v4641_v2 = vld [vmem:[#allocation65_spill] sm:$0xff] }
  0x8b   : > { %v1099_v50 = vadd.f32 %v1098_v28, %v1093_v33  ;;  %v1295_v9 = vadd.f32 %v1294_v7, %v1289_v12  ;;  %v1303_v4 = vmul.f32 %v3592_v45, %v3094_v47  ;;  %v1499_v25 = vmul.f32 %v4636_v6, %v3047_v20  ;;  %v3617_v28 = vld [vmem:[#allocation4 + $0xa0] sm:$0xff]  ;;  %v4642_v52 = vld [vmem:[#allocation17_spill] sm:$0xff] }
  0x8c   : > { %v584_v3 = vadd.f32 %v4637_v21, %v580_v54  ;;  %v882_v44 = vadd.f32 %v3496_v36, %v879_v38  ;;  %v1309_v60 = vmul.f32 %v3598_v26, %v3245_v27  ;;  %v1505_v63 = vmul.f32 %v4638_v48, %v3091_v46  ;;  %4639 = vst [vmem:[#allocation30_spill] sm:$0xff] %v3617_v28  ;;  %v4640_v12 = vld [vmem:[#allocation10_spill] sm:$0xff]  ;;  %v4643_v36 = vld [vmem:[#allocation45_spill] sm:$0xff]  ;;  %v4645_v48 = vld [vmem:[#allocation63_spill] sm:$0xff] }
  0x8d   : > { %v1105_v33 = vadd.f32 %v1104_v58, %v1099_v50  ;;  %v1301_v7 = vadd.f32 %v1300_v10, %v1295_v9  ;;  %v1500_v45 = vadd.f32 %v4640_v12, %v1499_v25  ;;  %v1511_v20 = vmul.f32 %v4641_v2, %v3140_v40  ;;  %v4644_v10 = vld [vmem:[#allocation34_spill] sm:$0xff] }
  0x8e   : > { %v591_v21 = vadd.f32 %v4642_v52, %v584_v3  ;;  %v888_v54 = vadd.f32 %v887_v11, %v882_v44  ;;  %v1125_v38 = vmul.f32 %v3514_v43, %v4643_v36  ;;  %v1315_v26 = vmul.f32 %v3607_v34, %v3269_v51  ;;  %v3635_v11 = vld [vmem:[%s2907_s6 + $0x29] sm:$0xff] }
  0x8f   : > { %v1111_v46 = vadd.f32 %v1110_v19, %v1105_v33  ;;  %v1304_v50 = vadd.f32 %v1303_v4, %v1301_v7  ;;  %v1506_v58 = vadd.f32 %v1505_v63, %v1500_v45  ;;  %v1514_v9 = vmul.f32 %v4644_v10, %v2964_v41  ;;  %v4646_v41 = vld [vmem:[#allocation33_spill] sm:$0xff]  ;;  %v4648_v33 = vld [vmem:[#allocation20_spill] sm:$0xff] }
  0x90   : > { %v598_v25 = vadd.f32 %v4645_v48, %v591_v21  ;;  %v894_v12 = vadd.f32 %v893_v8, %v888_v54  ;;  %v1131_v40 = vmul.f32 %v3526_v22, %v3232_v5  ;;  %v1321_v3 = vmul.f32 %v3617_v28, %v3289_v37  ;;  %v4647_v8 = vld [vmem:[#allocation43_spill] sm:$0xff] }
  0x91   : > { %v1120_v52 = vadd.f32 %v1119_v14, %v1111_v46  ;;  %v1310_v44 = vadd.f32 %v1309_v60, %v1304_v50  ;;  %v1512_v19 = vadd.f32 %v1511_v20, %v1506_v58  ;;  %v1520_v45 = vmul.f32 %v3432_v13, %v3159_v53  ;;  %v4649_v58 = vld [vmem:[#allocation49_spill] sm:$0xff] }
  0x92   : > { %v605_v4 = vadd.f32 %v4646_v41, %v598_v25  ;;  %v900_v48 = vadd.f32 %v899_v55, %v894_v12  ;;  %v1134_v63 = vmul.f32 %v4647_v8, %v3457_v32  ;;  %v1330_v7 = vmul.f32 %v3298_v29, %v4648_v33  ;;  %v4651_v12 = vld [vmem:[#allocation21_spill] sm:$0xff]  ;;  %v4652_v41 = vld [vmem:[#allocation38_spill] sm:$0xff] }
  0x93   : > { %v1126_v21 = vadd.f32 %v1125_v38, %v1120_v52  ;;  %v1316_v54 = vadd.f32 %v1315_v26, %v1310_v44  ;;  %v1515_v28 = vadd.f32 %v1514_v9, %v1512_v19  ;;  %v1526_v14 = vmul.f32 %v3443_v49, %v3167_v62  ;;  %v4650_v9 = vld [vmem:[#allocation53_spill] sm:$0xff] }
  0x94   : > { %v1140_v60 = vmul.f32 %v3560_v35, %v3251_v15  ;;  %v1158_v53 = vrot.slane %v3635_v11, 5  ;;  %v1164_v20 = vrot.slane %v3635_v11, 6  ;;  %v1336_v55 = vmul.f32 %v3303_v42, %v3040_v17  ;;  %2682 = vst [vmem:[%s2912_s9 + $0x1] sm:$0xff] %v605_v4  ;;  %2683 = vst [vmem:[%s2912_s9 + $0x9] sm:$0xff] %v900_v48  ;;  %v4655_v48 = vld [vmem:[#allocation22_spill] sm:$0xff] }
  0x95   : > { %v1132_v46 = vadd.f32 %v1131_v40, %v1126_v21  ;;  %v1322_v50 = vadd.f32 %v1321_v3, %v1316_v54  ;;  %v1521_v38 = vadd.f32 %v1520_v45, %v1515_v28  ;;  %v1532_v26 = vmul.f32 %v3454_v18, %v3184_v23  ;;  %v4653_v3 = vld [vmem:[#allocation7_spill] sm:$0xff]  ;;  %v4654_v23 = vld [vmem:[#allocation8_spill] sm:$0xff]  ;;  %v4656_v54 = vld [vmem:[#allocation41_spill] sm:$0xff] }
  0x96   : > { %v1146_v62 = vmul.f32 %v3565_v1, %v4649_v58  ;;  %v1152_v25 = vmul.f32 %v3579_v0, %v4650_v9  ;;  %v1342_v52 = vmul.f32 %v3348_v59, %v4651_v12  ;;  %v1541_v40 = vmul.f32 %v4652_v41, %v3189_v57  ;;  %v4659_v12 = vld [vmem:[#allocation23_spill] sm:$0xff] }
  0x97   : > { %v1135_v44 = vadd.f32 %v1134_v63, %v1132_v46  ;;  %v1331_v19 = vadd.f32 %v1330_v7, %v1322_v50  ;;  %v1527_v17 = vadd.f32 %v1526_v14, %v1521_v38  ;;  %v3667_v28 = vsel %vm261_vm0, %v4653_v3, %v1158_v53  ;;  %v4657_v46 = vld [vmem:[#allocation54_spill] sm:$0xff]  ;;  %v4658_v50 = vld [vmem:[#allocation56_spill] sm:$0xff] }
  0x98   : > { %v3672_v45 = vsel %vm268_vm1, %v4654_v23, %v1164_v20  ;;  %v1170_v4 = vrot.slane %v3635_v11, 7  ;;  %v1345_v63 = vmul.f32 %v4655_v48, %v3220_v61  ;;  %v1547_v14 = vmul.f32 %v4656_v54, %v3208_v39  ;;  %v4662_v54 = vld [vmem:[#allocation24_spill] sm:$0xff] }
  0x99   : > { %v1141_v33 = vadd.f32 %v1140_v60, %v1135_v44  ;;  %v1337_v7 = vadd.f32 %v1336_v55, %v1331_v19  ;;  %v1533_v21 = vadd.f32 %v1532_v26, %v1527_v17  ;;  %v1161_v53 = vmul.f32 %v3667_v28, %v4657_v46  ;;  %v4660_v60 = vld [vmem:[#allocation42_spill] sm:$0xff]  ;;  %v4661_v26 = vld [vmem:[#allocation9_spill] sm:$0xff] }
  0x9a   : > { %v1167_v38 = vmul.f32 %v3672_v45, %v4658_v50  ;;  %v1178_v20 = vrot.slane %v3635_v11, 1  ;;  %v1351_v41 = vmul.f32 %v3359_v16, %v4659_v12  ;;  %v1553_v55 = vmul.f32 %v4660_v60, %v3240_v56  ;;  %v4663_v50 = vld [vmem:[#allocation61_spill] sm:$0xff] }
  0x9b   : > { %v1147_v18 = vadd.f32 %v1146_v62, %v1141_v33  ;;  %v1343_v23 = vadd.f32 %v1342_v52, %v1337_v7  ;;  %v1542_v48 = vadd.f32 %v1541_v40, %v1533_v21  ;;  %v3691_v44 = vsel %vm276_vm2, %v4661_v26, %v1170_v4  ;;  %v4664_v52 = vld [vmem:[#allocation44_spill] sm:$0xff]  ;;  %v4665_v33 = vld [vmem:[#allocation15_spill] sm:$0xff]  ;;  %v4666_v21 = vld [vmem:[#allocation58_spill] sm:$0xff] }
  0x9c   : > { %v1184_v19 = vrot.slane %v3635_v11, 2  ;;  %v1190_v17 = vrot.slane %v3635_v11, 3  ;;  %v1357_v46 = vmul.f32 %v4663_v50, %v4662_v54  ;;  %v1556_v40 = vmul.f32 %v4664_v52, %v3094_v47  ;;  %v4667_v60 = vld [vmem:[#allocation25_spill] sm:$0xff]  ;;  %v4668_v54 = vld [vmem:[#allocation48_spill] sm:$0xff] }
  0x9d   : > { %v1153_v3 = vadd.f32 %v1152_v25, %v1147_v18  ;;  %v1346_v12 = vadd.f32 %v1345_v63, %v1343_v23  ;;  %v1548_v62 = vadd.f32 %v1547_v14, %v1542_v48  ;;  %v1173_v7 = vmul.f32 %v3691_v44, %v4665_v33  ;;  %v4669_v25 = vld [vmem:[#allocation11_spill] sm:$0xff]  ;;  %v4670_v63 = vld [vmem:[#allocation12_spill] sm:$0xff]  ;;  %v4671_v48 = vld [vmem:[#allocation13_spill] sm:$0xff] }
  0x9e   : > { %v1176_v4 = vmul.f32 %v4666_v21, %v3635_v11  ;;  %v1363_v26 = vmul.f32 %v3394_v30, %v4667_v60  ;;  %v1562_v18 = vmul.f32 %v4668_v54, %v3245_v27  ;;  %v3710_v23 = vsel %vm288_vm3, %v1178_v20, %v4669_v25  ;;  %v4674_v54 = vld [vmem:[#allocation60_spill] sm:$0xff] }
  0x9f   : > { %v1162_v34 = vadd.f32 %v1161_v53, %v1153_v3  ;;  %v1352_v49 = vadd.f32 %v1351_v41, %v1346_v12  ;;  %v1554_v9 = vadd.f32 %v1553_v55, %v1548_v62  ;;  %v3715_v14 = vsel %vm296_vm4, %v1184_v19, %v4670_v63  ;;  %v4672_v41 = vld [vmem:[#allocation26_spill] sm:$0xff]  ;;  %v4675_v33 = vld [vmem:[#allocation16_spill] sm:$0xff] }
  0xa0   : > { %v3720_v60 = vsel %vm304_vm5, %v1190_v17, %v4671_v48  ;;  %v1372_v3 = vmul.f32 %v3509_v24, %v4672_v41  ;;  %v4673_v62 = vld [vmem:[#allocation50_spill] sm:$0xff]  ;;  %v1182_v52 = vmul.f32 %v3710_v23, %v4674_v54  ;;  %v1188_v19 = vmul.f32 %v3715_v14, %v4675_v33  ;;  %v4677_v17 = vld [vmem:[#allocation27_spill] sm:$0xff] }
  0xa1   : > { %v1168_v53 = vadd.f32 %v1167_v38, %v1162_v34  ;;  %v1358_v55 = vadd.f32 %v1357_v46, %v1352_v49  ;;  %v1557_v12 = vadd.f32 %v1556_v40, %v1554_v9  ;;  %v1568_v20 = vmul.f32 %v4673_v62, %v3269_v51  ;;  %v4676_v63 = vld [vmem:[#allocation62_spill] sm:$0xff]  ;;  %v4678_v49 = vld [vmem:[#allocation47_spill] sm:$0xff]  ;;  %v4680_v40 = vld [vmem:[#allocation32_spill] sm:$0xff] }
  0xa2   : > { %v1194_v25 = vmul.f32 %v3720_v60, %v4676_v63  ;;  %v1378_v48 = vmul.f32 %v3514_v43, %v4677_v17  ;;  %v1574_v9 = vmul.f32 %v4678_v49, %v3289_v37  ;;  %v4679_v46 = vld [vmem:[#allocation31_spill] sm:$0xff]  ;;  %v1387_v62 = vmul.f32 %v4680_v40, %v3457_v32 }
  0xa3   : > { %v1174_v30 = vadd.f32 %v1173_v7, %v1168_v53  ;;  %v1364_v41 = vadd.f32 %v1363_v26, %v1358_v55  ;;  %v1563_v34 = vadd.f32 %v1562_v18, %v1557_v12  ;;  %v1384_v38 = vmul.f32 %v3526_v22, %v4679_v46  ;;  %v4681_v54 = vld [vmem:[#allocation35_spill] sm:$0xff]  ;;  %v4683_v18 = vld [vmem:[#allocation36_spill] sm:$0xff] }
  0xa4   : > { %v1393_v33 = vmul.f32 %v3560_v35, %v4681_v54  ;;  %v4682_v63 = vld [vmem:[#allocation51_spill] sm:$0xff]  ;;  %v1794_v7 = vmul.f32 %v4636_v6, %v3189_v57  ;;  %v1399_v53 = vmul.f32 %v3565_v1, %v4683_v18  ;;  %v4685_v46 = vld [vmem:[#allocation40_spill] sm:$0xff]  ;;  %v4686_v54 = vld [vmem:[#allocation18_spill] sm:$0xff]  ;;  %v1420_v57 = vmul.f32 %v3672_v45, %v4643_v36 }
  0xa5   : > { %v1583_v24 = vmul.f32 %v4682_v63, %v3298_v29  ;;  %v1177_v31 = vadd.f32 %v1176_v4, %v1174_v30  ;;  %v1373_v17 = vadd.f32 %v1372_v3, %v1364_v41  ;;  %v1569_v26 = vadd.f32 %v1568_v20, %v1563_v34  ;;  %v4684_v55 = vld [vmem:[#allocation39_spill] sm:$0xff]  ;;  %v4687_v3 = vld [vmem:[#allocation52_spill] sm:$0xff]  ;;  %v3765_v34 = vld [vmem:[%s4316_s2] ss:$0 sm:$0xff] }
  0xa6   : > { %v1405_v12 = vmul.f32 %v3579_v0, %v4684_v55  ;;  %v1414_v40 = vmul.f32 %v3667_v28, %v4685_v46  ;;  %v1800_v49 = vmul.f32 %v4686_v54, %v3208_v39  ;;  %v1589_v20 = vmul.f32 %v4687_v3, %v3303_v42  ;;  %v4689_v36 = vld [vmem:[#allocation55_spill] sm:$0xff] }
  0xa7   : > { %v1183_v63 = vadd.f32 %v1182_v52, %v1177_v31  ;;  %v1379_v30 = vadd.f32 %v1378_v48, %v1373_v17  ;;  %v1575_v4 = vadd.f32 %v1574_v9, %v1569_v26  ;;  %v3760_v41 = vmul.f32 %v3691_v44, %v3232_v5  ;;  %v3771_v52 = vld [vmem:[%s2907_s6 + $0x31] sm:$0xff] }
  0xa8   : > { %v1795_v39 = vadd.f32 %v3765_v34, %v1794_v7  ;;  %v1806_v31 = vmul.f32 %v4641_v2, %v3240_v56  ;;  %4688 = vst [vmem:[#allocation28_spill] sm:$0xff] %v3771_v52  ;;  %v1595_v26 = vmul.f32 %v4689_v36, %v3348_v59  ;;  %v3777_v5 = vmul.f32 %v4647_v8, %v3635_v11  ;;  %v3849_v36 = vld [vmem:[#allocation4 + $0xb8] sm:$0xff] }
  0xa9   : > { %v1189_v48 = vadd.f32 %v1188_v19, %v1183_v63  ;;  %v1385_v9 = vadd.f32 %v1384_v38, %v1379_v30  ;;  %v1584_v17 = vadd.f32 %v1583_v24, %v1575_v4  ;;  %v3781_v18 = vmul.f32 %v3710_v23, %v3251_v15  ;;  %v4690_v24 = vld [vmem:[#allocation57_spill] sm:$0xff]  ;;  %4710 = vst [vmem:[#allocation34_spill] sm:$0xff] %v3849_v36 }
  0xaa   : > { %v1801_v7 = vadd.f32 %v1800_v49, %v1795_v39  ;;  %v1809_v56 = vmul.f32 %v4644_v10, %v3094_v47  ;;  %v1598_v38 = vmul.f32 %v4690_v24, %v3220_v61  ;;  %v1453_v46 = vrot.slane %v3771_v52, 5  ;;  %v4704_v24 = vld [vmem:[#allocation56_spill] sm:$0xff] }
  0xab   : > { %v1195_v55 = vadd.f32 %v1194_v25, %v1189_v48  ;;  %v1388_v63 = vadd.f32 %v1387_v62, %v1385_v9  ;;  %v1590_v19 = vadd.f32 %v1589_v20, %v1584_v17  ;;  %v1459_v8 = vrot.slane %v3771_v52, 6  ;;  %v4691_v25 = vld [vmem:[#allocation59_spill] sm:$0xff]  ;;  %v4692_v20 = vld [vmem:[#allocation53_spill] sm:$0xff] }
  0xac   : > { %v1807_v30 = vadd.f32 %v1806_v31, %v1801_v7  ;;  %v1815_v4 = vmul.f32 %v3432_v13, %v3245_v27  ;;  %v3793_v49 = vmul.f32 %v3715_v14, %v4649_v58  ;;  %v1604_v62 = vmul.f32 %v4691_v25, %v3359_v16  ;;  %v4693_v9 = vld [vmem:[#allocation19_spill] sm:$0xff]  ;;  %v4702_v25 = vld [vmem:[#allocation30_spill] sm:$0xff] }
  0xad   : > { %v1394_v15 = vadd.f32 %v1393_v33, %v1388_v63  ;;  %v1596_v47 = vadd.f32 %v1595_v26, %v1590_v19  ;;  %2684 = vst [vmem:[%s2912_s9 + $0x11] sm:$0xff] %v1195_v55  ;;  %v3800_v39 = vmul.f32 %v3720_v60, %v4692_v20  ;;  %v1465_v48 = vrot.slane %v3771_v52, 7  ;;  %v4695_v26 = vld [vmem:[#allocation29_spill] sm:$0xff]  ;;  %v4696_v55 = vld [vmem:[#allocation7_spill] sm:$0xff]  ;;  %v4698_v20 = vld [vmem:[#allocation8_spill] sm:$0xff] }
  0xae   : > { %v1810_v31 = vadd.f32 %v1809_v56, %v1807_v30  ;;  %v1821_v27 = vmul.f32 %v4693_v9, %v3269_v51  ;;  %v3807_v58 = vmul.f32 %v4666_v21, %v3771_v52  ;;  %v1610_v7 = vmul.f32 %v4695_v26, %v4663_v50  ;;  %v3821_v51 = vld [vmem:[#allocation4 + $0xa8] sm:$0xff]  ;;  %v4700_v21 = vld [vmem:[#allocation37_spill] sm:$0xff]  ;;  %v4701_v26 = vld [vmem:[#allocation64_spill] sm:$0xff] }
  0xaf   : > { %v1400_v33 = vadd.f32 %v1399_v53, %v1394_v15  ;;  %v1599_v17 = vadd.f32 %v1598_v38, %v1596_v47  ;;  %v3814_v19 = vsel %vm261_vm0, %v4696_v55, %v1453_v46  ;;  %v3819_v56 = vsel %vm268_vm1, %v4698_v20, %v1459_v8  ;;  %4699 = vst [vmem:[#allocation65_spill] sm:$0xff] %v3821_v51  ;;  %v4703_v46 = vld [vmem:[#allocation54_spill] sm:$0xff]  ;;  %v3836_v20 = vld [vmem:[#allocation4 + $0xb0] sm:$0xff] }
  0xb0   : > { %4694 = vst [vmem:[#allocation10_spill] sm:$0xff] %v3807_v58  ;;  %v1816_v53 = vadd.f32 %v1815_v4, %v1810_v31  ;;  %v1827_v30 = vmul.f32 %v4700_v21, %v3289_v37  ;;  %v1473_v15 = vrot.slane %v3771_v52, 1  ;;  %v1616_v58 = vmul.f32 %v4702_v25, %v4701_v26  ;;  %4705 = vst [vmem:[#allocation17_spill] sm:$0xff] %v3836_v20  ;;  %v4706_v37 = vld [vmem:[#allocation38_spill] sm:$0xff]  ;;  %v4708_v21 = vld [vmem:[#allocation9_spill] sm:$0xff] }
  0xb1   : > { %v1406_v38 = vadd.f32 %v1405_v12, %v1400_v33  ;;  %v1605_v47 = vadd.f32 %v1604_v62, %v1599_v17  ;;  %v3830_v55 = vmul.f32 %v3814_v19, %v4703_v46  ;;  %v3834_v8 = vmul.f32 %v3819_v56, %v4704_v24  ;;  %v4707_v17 = vld [vmem:[#allocation46_spill] sm:$0xff] }
  0xb2   : > { %v1822_v4 = vadd.f32 %v1821_v27, %v1816_v53  ;;  %v1836_v12 = vmul.f32 %v4706_v37, %v3298_v29  ;;  %v1479_v62 = vrot.slane %v3771_v52, 2  ;;  %v1625_v25 = vmul.f32 %v3821_v51, %v4707_v17  ;;  %v4711_v53 = vld [vmem:[#allocation41_spill] sm:$0xff] }
  0xb3   : > { %v1415_v31 = vadd.f32 %v1414_v40, %v1406_v38  ;;  %v1611_v33 = vadd.f32 %v1610_v7, %v1605_v47  ;;  %v3846_v46 = vsel %vm276_vm2, %v4708_v21, %v1465_v48  ;;  %v1485_v24 = vrot.slane %v3771_v52, 3  ;;  %v4712_v38 = vld [vmem:[#allocation11_spill] sm:$0xff]  ;;  %v4715_v52 = vld [vmem:[#allocation60_spill] sm:$0xff] }
  0xb4   : > { %4709 = vst [vmem:[#allocation45_spill] sm:$0xff] %v3846_v46  ;;  %v1828_v27 = vadd.f32 %v1827_v30, %v1822_v4  ;;  %v1842_v37 = vmul.f32 %v4711_v53, %v3303_v42  ;;  %v3856_v7 = vsel %vm288_vm3, %v1473_v15, %v4712_v38  ;;  %v1631_v51 = vmul.f32 %v3836_v20, %v3514_v43  ;;  %v4714_v48 = vld [vmem:[#allocation15_spill] sm:$0xff]  ;;  %v3868_v4 = vld [vmem:[#allocation4 + $0xc0] sm:$0xff] }
  0xb5   : > { %v1421_v40 = vadd.f32 %v1420_v57, %v1415_v31  ;;  %4713 = vst [vmem:[#allocation63_spill] sm:$0xff] %v3856_v7  ;;  %v1617_v47 = vadd.f32 %v1616_v58, %v1611_v33  ;;  %v3862_v21 = vmul.f32 %v3846_v46, %v4714_v48  ;;  %v3866_v30 = vmul.f32 %v3856_v7, %v4715_v52  ;;  %v4718_v31 = vld [vmem:[#allocation42_spill] sm:$0xff]  ;;  %v4719_v58 = vld [vmem:[#allocation12_spill] sm:$0xff]  ;;  %v3880_v20 = vld [vmem:[#allocation4 + $0xc8] sm:$0xff] }
  0xb6   : > { %4717 = vst [vmem:[#allocation43_spill] sm:$0xff] %v3868_v4  ;;  %v1837_v57 = vadd.f32 %v1836_v12, %v1828_v27  ;;  %v1848_v53 = vmul.f32 %v4718_v31, %v3348_v59  ;;  %v3876_v33 = vsel %vm296_vm4, %v1479_v62, %v4719_v58  ;;  %v1637_v48 = vmul.f32 %v3849_v36, %v3526_v22  ;;  %v3882_v52 = vld [vmem:[#allocation4 + $0xd0] sm:$0xff]  ;;  %v4725_v27 = vld [vmem:[#allocation13_spill] sm:$0xff]  ;;  %v4729_v36 = vld [vmem:[#allocation62_spill] sm:$0xff] }
  0xb7   : > { %4716 = vst [vmem:[#allocation33_spill] sm:$0xff] %v3866_v30  ;;  %v1427_v15 = vadd.f32 %v3760_v41, %v1421_v40  ;;  %4720 = vst [vmem:[#allocation20_spill] sm:$0xff] %v3876_v33  ;;  %v1626_v38 = vadd.f32 %v1625_v25, %v1617_v47  ;;  %v4723_v30 = vld [vmem:[#allocation16_spill] sm:$0xff]  ;;  %v3891_v41 = vsel %vm304_vm5, %v1485_v24, %v4725_v27  ;;  %v3893_v40 = vld [vmem:[#allocation4 + $0xd8] sm:$0xff] }
  0xb8   : > { %4721 = vst [vmem:[#allocation49_spill] sm:$0xff] %v3880_v20  ;;  %4722 = vst [vmem:[#allocation21_spill] sm:$0xff] %v3882_v52  ;;  %v3886_v12 = vmul.f32 %v3876_v33, %v4723_v30  ;;  %v1843_v62 = vadd.f32 %v1842_v37, %v1837_v57  ;;  %v4728_v25 = vld [vmem:[#allocation44_spill] sm:$0xff]  ;;  %v3900_v31 = vmul.f32 %v3891_v41, %v4729_v36 }
  0xb9   : > { %4726 = vst [vmem:[#allocation23_spill] sm:$0xff] %v3891_v41  ;;  %4727 = vst [vmem:[#allocation24_spill] sm:$0xff] %v3893_v40  ;;  %v1851_v47 = vmul.f32 %v4728_v25, %v3220_v61  ;;  %v1430_v58 = vadd.f32 %v3777_v5, %v1427_v15  ;;  %v1632_v7 = vadd.f32 %v1631_v51, %v1626_v38  ;;  %v4730_v27 = vld [vmem:[#allocation48_spill] sm:$0xff]  ;;  %v3915_v38 = vld [vmem:[#allocation4 + $0xe8] sm:$0xff] }
  0xba   : > { %4724 = vst [vmem:[#allocation22_spill] sm:$0xff] %v3886_v12  ;;  %v1640_v30 = vmul.f32 %v3868_v4, %v3457_v32  ;;  %v3904_v12 = vld [vmem:[#allocation4 + $0xe0] sm:$0xff]  ;;  %v1646_v24 = vmul.f32 %v3880_v20, %v3560_v35  ;;  %v1652_v37 = vmul.f32 %v3882_v52, %v3565_v1  ;;  %v1849_v57 = vadd.f32 %v1848_v53, %v1843_v62  ;;  %v3917_v4 = vld [vmem:[#allocation4 + $0xf0] sm:$0xff] }
  0xbb   : > { %v1857_v5 = vmul.f32 %v4730_v27, %v3359_v16  ;;  %v1436_v15 = vadd.f32 %v3781_v18, %v1430_v58  ;;  %v1638_v36 = vadd.f32 %v1637_v48, %v1632_v7  ;;  %v1658_v51 = vmul.f32 %v3893_v40, %v3579_v0  ;;  %4731 = vst [vmem:[#allocation61_spill] sm:$0xff] %v3915_v38  ;;  %v4733_v62 = vld [vmem:[#allocation50_spill] sm:$0xff]  ;;  %v3928_v48 = vld [vmem:[#allocation4 + $0xf8] sm:$0xff] }
  0xbc   : > { %4732 = vst [vmem:[#allocation58_spill] sm:$0xff] %v3917_v4  ;;  %v2089_v20 = vmul.f32 %v4636_v6, %v3298_v29  ;;  %v1667_v52 = vmul.f32 %v3904_v12, %v3667_v28  ;;  %v1852_v53 = vadd.f32 %v1851_v47, %v1849_v57  ;;  %v1863_v27 = vmul.f32 %v4733_v62, %v4663_v50  ;;  %v3930_v40 = vld [vmem:[#allocation4 + $0x100] sm:$0xff] }
  0xbd   : > { %v2095_v18 = vmul.f32 %v4686_v54, %v3303_v42  ;;  %v1442_v7 = vadd.f32 %v3793_v49, %v1436_v15  ;;  %v1641_v58 = vadd.f32 %v1640_v30, %v1638_v36  ;;  %4734 = vst [vmem:[#allocation25_spill] sm:$0xff] %v3928_v48  ;;  %4735 = vst [vmem:[#allocation26_spill] sm:$0xff] %v3930_v40  ;;  %v4736_v42 = vld [vmem:[#allocation47_spill] sm:$0xff]  ;;  %v3944_v36 = vld [vmem:[#allocation4 + $0x110] sm:$0xff] }
  0xbe   : > { %v2090_v63 = vadd.f32 %v3765_v34, %v2089_v20  ;;  %v2101_v29 = vmul.f32 %v4641_v2, %v3348_v59  ;;  %v1673_v6 = vmul.f32 %v3915_v38, %v3672_v45  ;;  %v1679_v47 = vmul.f32 %v3917_v4, %v3691_v44  ;;  %v3942_v15 = vld [vmem:[#allocation4 + $0x108] sm:$0xff]  ;;  %4738 = vst [vmem:[#allocation31_spill] sm:$0xff] %v3944_v36 }
  0xbf   : > { %v1858_v57 = vadd.f32 %v1857_v5, %v1852_v53  ;;  %v1869_v54 = vmul.f32 %v4736_v42, %v4701_v26  ;;  %v1448_v49 = vadd.f32 %v3800_v39, %v1442_v7  ;;  %v1647_v30 = vadd.f32 %v1646_v24, %v1641_v58  ;;  %4737 = vst [vmem:[#allocation27_spill] sm:$0xff] %v3942_v15  ;;  %v4739_v4 = vld [vmem:[#allocation51_spill] sm:$0xff]  ;;  %v3955_v7 = vld [vmem:[#allocation4 + $0x118] sm:$0xff]  ;;  %v3957_v58 = vld [vmem:[#allocation4 + $0x120] sm:$0xff] }
  0xc0   : > { %v2096_v20 = vadd.f32 %v2095_v18, %v2090_v63  ;;  %v2104_v59 = vmul.f32 %v4644_v10, %v3220_v61  ;;  %v1682_v2 = vmul.f32 %v3928_v48, %v3635_v11  ;;  %v1688_v5 = vmul.f32 %v3930_v40, %v3710_v23  ;;  %4740 = vst [vmem:[#allocation32_spill] sm:$0xff] %v3955_v7 }
  0xc1   : > { %v1864_v53 = vadd.f32 %v1863_v27, %v1858_v57  ;;  %v1878_v38 = vmul.f32 %v4739_v4, %v4707_v17  ;;  %v1457_v39 = vadd.f32 %v3830_v55, %v1448_v49  ;;  %v1653_v24 = vadd.f32 %v1652_v37, %v1647_v30  ;;  %4741 = vst [vmem:[#allocation35_spill] sm:$0xff] %v3957_v58  ;;  %v3970_v49 = vld [vmem:[#allocation4 + $0x128] sm:$0xff] }
  0xc2   : > { %v2102_v63 = vadd.f32 %v2101_v29, %v2096_v20  ;;  %v2110_v61 = vmul.f32 %v3432_v13, %v3359_v16  ;;  %v1694_v10 = vmul.f32 %v3942_v15, %v3715_v14  ;;  %v3965_v27 = vmul.f32 %v3944_v36, %v3720_v60  ;;  %4742 = vst [vmem:[#allocation36_spill] sm:$0xff] %v3970_v49  ;;  %v3972_v29 = vld [vmem:[#allocation4 + $0x130] sm:$0xff]  ;;  %v4753_v15 = vld [vmem:[#allocation63_spill] sm:$0xff] }
  0xc3   : > { %v1870_v18 = vadd.f32 %v1869_v54, %v1864_v53  ;;  %v1884_v55 = vmul.f32 %v4687_v3, %v3514_v43  ;;  %v1463_v37 = vadd.f32 %v3834_v8, %v1457_v39  ;;  %v1659_v57 = vadd.f32 %v1658_v51, %v1653_v24  ;;  %4743 = vst [vmem:[#allocation39_spill] sm:$0xff] %v3972_v29  ;;  %v4744_v8 = vld [vmem:[#allocation55_spill] sm:$0xff]  ;;  %v3989_v24 = vld [vmem:[#allocation4 + $0x140] sm:$0xff] }
  0xc4   : > { %v2105_v30 = vadd.f32 %v2104_v59, %v2102_v63  ;;  %v2116_v16 = vmul.f32 %v4693_v9, %v4663_v50  ;;  %v3978_v13 = vmul.f32 %v3955_v7, %v3814_v19  ;;  %v3982_v54 = vmul.f32 %v3957_v58, %v3819_v56  ;;  %v3987_v59 = vld [vmem:[#allocation4 + $0x138] sm:$0xff]  ;;  %4746 = vst [vmem:[#allocation18_spill] sm:$0xff] %v3989_v24  ;;  %v4748_v58 = vld [vmem:[#allocation28_spill] sm:$0xff] }
  0xc5   : > { %v1879_v20 = vadd.f32 %v1878_v38, %v1870_v18  ;;  %v1890_v51 = vmul.f32 %v4744_v8, %v3526_v22  ;;  %v1469_v53 = vadd.f32 %v3862_v21, %v1463_v37  ;;  %v1668_v39 = vadd.f32 %v1667_v52, %v1659_v57  ;;  %4745 = vst [vmem:[#allocation40_spill] sm:$0xff] %v3987_v59  ;;  %v4747_v9 = vld [vmem:[#allocation37_spill] sm:$0xff]  ;;  %v4750_v57 = vld [vmem:[#allocation10_spill] sm:$0xff] }
  0xc6   : > { %v2111_v50 = vadd.f32 %v2110_v61, %v2105_v30  ;;  %v2122_v63 = vmul.f32 %v4747_v9, %v4701_v26  ;;  %v3995_v7 = vmul.f32 %v3970_v49, %v3846_v46  ;;  %v3999_v38 = vmul.f32 %v3972_v29, %v4748_v58  ;;  %v4749_v21 = vld [vmem:[#allocation57_spill] sm:$0xff]  ;;  %v4007_v30 = vld [vmem:[#allocation4 + $0x148] sm:$0xff]  ;;  %v4752_v9 = vld [vmem:[#allocation38_spill] sm:$0xff] }
  0xc7   : > { %v1885_v18 = vadd.f32 %v1884_v55, %v1879_v20  ;;  %v1893_v52 = vmul.f32 %v4749_v21, %v3457_v32  ;;  %v4004_v37 = vld [vmem:[%s2907_s6 + $0x39] sm:$0xff]  ;;  %v1472_v36 = vadd.f32 %v4750_v57, %v1469_v53  ;;  %v1674_v61 = vadd.f32 %v1673_v6, %v1668_v39  ;;  %4751 = vst [vmem:[#allocation52_spill] sm:$0xff] %v4007_v30  ;;  %v4754_v29 = vld [vmem:[#allocation59_spill] sm:$0xff] }
  0xc8   : > { %v2117_v26 = vadd.f32 %v2116_v16, %v2111_v50  ;;  %v2131_v49 = vmul.f32 %v4752_v9, %v4707_v17  ;;  %v4013_v40 = vmul.f32 %v3987_v59, %v4753_v15  ;;  %v4017_v55 = vmul.f32 %v3989_v24, %v3876_v33  ;;  %v4755_v53 = vld [vmem:[#allocation33_spill] sm:$0xff]  ;;  %v4032_v46 = vld [vmem:[#allocation4 + $0x168] sm:$0xff] }
  0xc9   : > { %v1891_v20 = vadd.f32 %v1890_v51, %v1885_v18  ;;  %v1899_v48 = vmul.f32 %v4754_v29, %v3560_v35  ;;  %v1478_v6 = vadd.f32 %v4755_v53, %v1472_v36  ;;  %v1680_v39 = vadd.f32 %v1679_v47, %v1674_v61  ;;  %v4756_v16 = vld [vmem:[#allocation41_spill] sm:$0xff]  ;;  %v4758_v18 = vld [vmem:[#allocation22_spill] sm:$0xff]  ;;  %4759 = vst [vmem:[#allocation53_spill] sm:$0xff] %v4032_v46 }
  0xca   : > { %v2123_v57 = vadd.f32 %v2122_v63, %v2117_v26  ;;  %v2137_v50 = vmul.f32 %v4756_v16, %v3514_v43  ;;  %v4026_v9 = vmul.f32 %v4007_v30, %v3891_v41  ;;  %v1748_v59 = vrot.slane %v4004_v37, 5  ;;  %v4757_v24 = vld [vmem:[#allocation29_spill] sm:$0xff]  ;;  %v4760_v36 = vld [vmem:[#allocation42_spill] sm:$0xff] }
  0xcb   : > { %v1894_v15 = vadd.f32 %v1893_v52, %v1891_v20  ;;  %v1905_v51 = vmul.f32 %v4757_v24, %v3565_v1  ;;  %v1484_v33 = vadd.f32 %v4758_v18, %v1478_v6  ;;  %v1683_v58 = vadd.f32 %v1682_v2, %v1680_v39  ;;  %v4761_v16 = vld [vmem:[#allocation30_spill] sm:$0xff]  ;;  %v2390_v39 = vld [vmem:[#allocation4 + $0x8] sm:$0xff] }
  0xcc   : > { %v2132_v47 = vadd.f32 %v2131_v49, %v2123_v57  ;;  %v2143_v63 = vmul.f32 %v4760_v36, %v3526_v22  ;;  %v1754_v61 = vrot.slane %v4004_v37, 6  ;;  %v1760_v26 = vrot.slane %v4004_v37, 7  ;;  %v2384_v49 = vld [vmem:[#allocation4] sm:$0xff]  ;;  %v4043_v57 = vld [vmem:[#allocation4 + $0x150] sm:$0xff]  ;;  %v4763_v36 = vld [vmem:[#allocation65_spill] sm:$0xff] }
  0xcd   : > { %v1900_v53 = vadd.f32 %v1899_v48, %v1894_v15  ;;  %v1911_v52 = vmul.f32 %v4761_v16, %v3579_v0  ;;  %v1490_v20 = vadd.f32 %v3900_v31, %v1484_v33  ;;  %v1689_v30 = vadd.f32 %v1688_v5, %v1683_v58  ;;  %v4764_v5 = vld [vmem:[#allocation7_spill] sm:$0xff]  ;;  %v2396_v16 = vld [vmem:[#allocation4 + $0x10] sm:$0xff] }
  0xce   : > { %v2138_v6 = vadd.f32 %v2137_v50, %v2132_v47  ;;  %v2146_v2 = vmul.f32 %v4728_v25, %v3457_v32  ;;  %v4047_v18 = vmul.f32 %v4032_v46, %v4004_v37  ;;  %v1768_v48 = vrot.slane %v4004_v37, 1  ;;  %v4766_v47 = vld [vmem:[#allocation48_spill] sm:$0xff] }
  0xcf   : > { %v1906_v15 = vadd.f32 %v1905_v51, %v1900_v53  ;;  %v1920_v31 = vmul.f32 %v4763_v36, %v3667_v28  ;;  %v1695_v33 = vadd.f32 %v1694_v10, %v1689_v30  ;;  %v4055_v50 = vsel %vm261_vm0, %v4764_v5, %v1748_v59  ;;  %2685 = vst [vmem:[%s2912_s9 + $0x19] sm:$0xff] %v1490_v20 }
  0xd0   : > { %4762 = vst [vmem:[#allocation19_spill] sm:$0xff] %v4047_v18  ;;  %v2144_v25 = vadd.f32 %v2143_v63, %v2138_v6  ;;  %v2152_v41 = vmul.f32 %v4766_v47, %v3560_v35  ;;  %v4767_v18 = vld [vmem:[#allocation17_spill] sm:$0xff]  ;;  %v2385_v51 = vmul.f32 %v2384_v49, %v4707_v17  ;;  %v2391_v53 = vmul.f32 %v2390_v39, %v3514_v43  ;;  %v2405_v39 = vld [vmem:[#allocation4 + $0x20] sm:$0xff] }
  0xd1   : > { %v1912_v46 = vadd.f32 %v1911_v52, %v1906_v15  ;;  %v1926_v24 = vmul.f32 %v4767_v18, %v3672_v45  ;;  %v1701_v10 = vadd.f32 %v3965_v27, %v1695_v33  ;;  %v4067_v59 = vmul.f32 %v4043_v57, %v4055_v50  ;;  %v2399_v6 = vld [vmem:[#allocation4 + $0x18] sm:$0xff]  ;;  %v4768_v52 = vld [vmem:[#allocation34_spill] sm:$0xff]  ;;  %v4769_v27 = vld [vmem:[#allocation8_spill] sm:$0xff] }
  0xd2   : > { %v2147_v30 = vadd.f32 %v2146_v2, %v2144_v25  ;;  %v2158_v63 = vmul.f32 %v4733_v62, %v3565_v1  ;;  %v1932_v15 = vmul.f32 %v4768_v52, %v3691_v44  ;;  %v2386_v47 = vadd.f32 %v3765_v34, %v2385_v51  ;;  %v4094_v51 = vld [vmem:[#allocation4 + $0x158] sm:$0xff] }
  0xd3   : > { %v1921_v20 = vadd.f32 %v1920_v31, %v1912_v46  ;;  %v2397_v17 = vmul.f32 %v2396_v16, %v3526_v22  ;;  %v1710_v43 = vadd.f32 %v3978_v13, %v1701_v10  ;;  %v4079_v49 = vsel %vm268_vm1, %v4769_v27, %v1754_v61  ;;  %v4770_v31 = vld [vmem:[#allocation43_spill] sm:$0xff]  ;;  %v4771_v13 = vld [vmem:[#allocation9_spill] sm:$0xff] }
  0xd4   : > { %v2153_v2 = vadd.f32 %v2152_v41, %v2147_v30  ;;  %v2164_v62 = vmul.f32 %v4736_v42, %v3579_v0  ;;  %v1935_v33 = vmul.f32 %v4770_v31, %v3635_v11  ;;  %v2392_v25 = vadd.f32 %v2391_v53, %v2386_v47  ;;  %v2411_v42 = vld [vmem:[#allocation4 + $0x28] sm:$0xff]  ;;  %v4772_v10 = vld [vmem:[#allocation49_spill] sm:$0xff]  ;;  %v4107_v47 = vld [vmem:[#allocation4 + $0x160] sm:$0xff] }
  0xd5   : > { %v1927_v46 = vadd.f32 %v1926_v24, %v1921_v20  ;;  %v2400_v34 = vmul.f32 %v2399_v6, %v3457_v32  ;;  %v1716_v22 = vadd.f32 %v3982_v54, %v1710_v43  ;;  %v4090_v16 = vsel %vm276_vm2, %v4771_v13, %v1760_v26  ;;  %v4773_v6 = vld [vmem:[#allocation11_spill] sm:$0xff]  ;;  %v2417_v20 = vld [vmem:[#allocation4 + $0x30] sm:$0xff]  ;;  %v4774_v43 = vld [vmem:[#allocation21_spill] sm:$0xff] }
  0xd6   : > { %v2159_v61 = vadd.f32 %v2158_v63, %v2153_v2  ;;  %v2173_v41 = vmul.f32 %v4739_v4, %v3667_v28  ;;  %v1941_v53 = vmul.f32 %v4772_v10, %v3710_v23  ;;  %v2398_v30 = vadd.f32 %v2397_v17, %v2392_v25 }
  0xd7   : > { %v1933_v24 = vadd.f32 %v1932_v15, %v1927_v46  ;;  %v2406_v32 = vmul.f32 %v2405_v39, %v3560_v35  ;;  %v1722_v54 = vadd.f32 %v3995_v7, %v1716_v22  ;;  %v4103_v26 = vsel %vm288_vm3, %v1768_v48, %v4773_v6  ;;  %v4117_v46 = vld [vmem:[#allocation4 + $0x170] sm:$0xff] }
  0xd8   : > { %v2165_v63 = vadd.f32 %v2164_v62, %v2159_v61  ;;  %v2179_v4 = vmul.f32 %v4687_v3, %v3672_v45  ;;  %v1947_v17 = vmul.f32 %v4774_v43, %v3715_v14  ;;  %v2401_v2 = vadd.f32 %v2400_v34, %v2398_v30  ;;  %v2426_v3 = vld [vmem:[#allocation4 + $0x38] sm:$0xff]  ;;  %4775 = vst [vmem:[#allocation64_spill] sm:$0xff] %v4117_v46 }
  0xd9   : > { %v1936_v15 = vadd.f32 %v1935_v33, %v1933_v24  ;;  %v2412_v35 = vmul.f32 %v2411_v42, %v3565_v1  ;;  %v1725_v7 = vadd.f32 %v3999_v38, %v1722_v54  ;;  %v1757_v48 = vmul.f32 %v4094_v51, %v4079_v49  ;;  %v4776_v33 = vld [vmem:[#allocation24_spill] sm:$0xff] }
  0xda   : > { %v2174_v39 = vadd.f32 %v2173_v41, %v2165_v63  ;;  %v2185_v62 = vmul.f32 %v4744_v8, %v3691_v44  ;;  %v1953_v22 = vmul.f32 %v4776_v33, %v3720_v60  ;;  %v2407_v61 = vadd.f32 %v2406_v32, %v2401_v2  ;;  %v2432_v8 = vld [vmem:[#allocation4 + $0x40] sm:$0xff] }
  0xdb   : > { %v1942_v25 = vadd.f32 %v1941_v53, %v1936_v15  ;;  %v2418_v34 = vmul.f32 %v2417_v20, %v3579_v0  ;;  %v1731_v1 = vadd.f32 %v4013_v40, %v1725_v7  ;;  %v1763_v38 = vmul.f32 %v4107_v47, %v4090_v16  ;;  %v4778_v7 = vld [vmem:[#allocation29_spill] sm:$0xff] }
  0xdc   : > { %v2180_v42 = vadd.f32 %v2179_v4, %v2174_v39  ;;  %v2188_v41 = vmul.f32 %v4749_v21, %v3635_v11  ;;  %v1962_v53 = vmul.f32 %v3904_v12, %v3814_v19  ;;  %v2413_v30 = vadd.f32 %v2412_v35, %v2407_v61  ;;  %v2438_v4 = vld [vmem:[#allocation4 + $0x48] sm:$0xff]  ;;  %v4777_v21 = vld [vmem:[#allocation61_spill] sm:$0xff] }
  0xdd   : > { %v1948_v24 = vadd.f32 %v1947_v17, %v1942_v25  ;;  %v2427_v54 = vmul.f32 %v2426_v3, %v3667_v28  ;;  %v1737_v32 = vadd.f32 %v4017_v55, %v1731_v1  ;;  %v1772_v0 = vmul.f32 %v4117_v46, %v4103_v26  ;;  %v4779_v25 = vld [vmem:[#allocation45_spill] sm:$0xff] }
  0xde   : > { %v2186_v40 = vadd.f32 %v2185_v62, %v2180_v42  ;;  %v2194_v63 = vmul.f32 %v4754_v29, %v3710_v23  ;;  %v1968_v15 = vmul.f32 %v4777_v21, %v3819_v56  ;;  %v2419_v17 = vadd.f32 %v2418_v34, %v2413_v30  ;;  %v2441_v62 = vld [vmem:[#allocation4 + $0x50] sm:$0xff]  ;;  %v4780_v29 = vld [vmem:[#allocation58_spill] sm:$0xff] }
  0xdf   : > { %v1954_v20 = vadd.f32 %v1953_v22, %v1948_v24  ;;  %v2433_v2 = vmul.f32 %v2432_v8, %v3672_v45  ;;  %v1743_v35 = vadd.f32 %v4026_v9, %v1737_v32  ;;  %v1774_v28 = vrot.slane %v4004_v37, 2  ;;  %v4781_v9 = vld [vmem:[#allocation30_spill] sm:$0xff]  ;;  %v4782_v30 = vld [vmem:[#allocation28_spill] sm:$0xff]  ;;  %v4783_v32 = vld [vmem:[#allocation25_spill] sm:$0xff] }
  0xe0   : > { %v2189_v55 = vadd.f32 %v2188_v41, %v2186_v40  ;;  %v2200_v39 = vmul.f32 %v4778_v7, %v3715_v14  ;;  %v1974_v61 = vmul.f32 %v4780_v29, %v4779_v25  ;;  %v2428_v22 = vadd.f32 %v2427_v54, %v2419_v17  ;;  %v2447_v41 = vld [vmem:[#allocation4 + $0x58] sm:$0xff]  ;;  %v4784_v54 = vld [vmem:[#allocation12_spill] sm:$0xff] }
  0xe1   : > { %v1963_v3 = vadd.f32 %v1962_v53, %v1954_v20  ;;  %v2439_v1 = vmul.f32 %v2438_v4, %v3691_v44  ;;  %v1752_v34 = vadd.f32 %v4067_v59, %v1743_v35  ;;  %v1780_v45 = vrot.slane %v4004_v37, 3  ;;  %v2453_v4 = vld [vmem:[#allocation4 + $0x60] sm:$0xff]  ;;  %v4159_v17 = vld [vmem:[#allocation4 + $0x178] sm:$0xff]  ;;  %v4786_v35 = vld [vmem:[#allocation63_spill] sm:$0xff] }
  0xe2   : > { %v2195_v42 = vadd.f32 %v2194_v63, %v2189_v55  ;;  %v2206_v8 = vmul.f32 %v4781_v9, %v3720_v60  ;;  %v1977_v40 = vmul.f32 %v4783_v32, %v4782_v30  ;;  %v2434_v53 = vadd.f32 %v2433_v2, %v2428_v22  ;;  %4785 = vst [vmem:[#allocation54_spill] sm:$0xff] %v4159_v17  ;;  %v4787_v55 = vld [vmem:[#allocation26_spill] sm:$0xff]  ;;  %v4789_v9 = vld [vmem:[#allocation20_spill] sm:$0xff] }
  0xe3   : > { %v1969_v24 = vadd.f32 %v1968_v15, %v1963_v3  ;;  %v2442_v20 = vmul.f32 %v2441_v62, %v3635_v11  ;;  %v1758_v7 = vadd.f32 %v1757_v48, %v1752_v34  ;;  %v4155_v44 = vsel %vm296_vm4, %v1774_v28, %v4784_v54  ;;  %v4788_v62 = vld [vmem:[#allocation13_spill] sm:$0xff]  ;;  %v2459_v34 = vld [vmem:[#allocation4 + $0x68] sm:$0xff] }
  0xe4   : > { %v2201_v59 = vadd.f32 %v2200_v39, %v2195_v42  ;;  %v2215_v63 = vmul.f32 %v4763_v36, %v3814_v19  ;;  %v1983_v3 = vmul.f32 %v4787_v55, %v4786_v35  ;;  %v2440_v2 = vadd.f32 %v2439_v1, %v2434_v53  ;;  %v4171_v42 = vld [vmem:[#allocation4 + $0x180] sm:$0xff]  ;;  %v2468_v53 = vld [vmem:[#allocation4 + $0x70] sm:$0xff] }
  0xe5   : > { %v1975_v15 = vadd.f32 %v1974_v61, %v1969_v24  ;;  %v2448_v11 = vmul.f32 %v2447_v41, %v3710_v23  ;;  %v1764_v48 = vadd.f32 %v1763_v38, %v1758_v7  ;;  %v4167_v28 = vsel %vm304_vm5, %v1780_v45, %v4788_v62  ;;  %v4790_v24 = vld [vmem:[#allocation27_spill] sm:$0xff] }
  0xe6   : > { %v2207_v39 = vadd.f32 %v2206_v8, %v2201_v59  ;;  %v2221_v22 = vmul.f32 %v4767_v18, %v3819_v56  ;;  %v1989_v54 = vmul.f32 %v4790_v24, %v4789_v9  ;;  %v2443_v1 = vadd.f32 %v2442_v20, %v2440_v2  ;;  %v4791_v38 = vld [vmem:[#allocation19_spill] sm:$0xff] }
  0xe7   : > { %v1978_v61 = vadd.f32 %v1977_v40, %v1975_v15  ;;  %v2454_v23 = vmul.f32 %v2453_v4, %v3715_v14  ;;  %v1767_v41 = vadd.f32 %v4791_v38, %v1764_v48  ;;  %v1778_v58 = vmul.f32 %v4159_v17, %v4155_v44  ;;  %v4792_v59 = vld [vmem:[#allocation23_spill] sm:$0xff] }
  0xe8   : > { %v2216_v45 = vadd.f32 %v2215_v63, %v2207_v39  ;;  %v2227_v8 = vmul.f32 %v4768_v52, %v4779_v25  ;;  %v4793_v62 = vld [vmem:[#allocation31_spill] sm:$0xff]  ;;  %v2449_v15 = vadd.f32 %v2448_v11, %v2443_v1  ;;  %v2460_v46 = vmul.f32 %v2459_v34, %v3720_v60  ;;  %v2474_v63 = vld [vmem:[#allocation4 + $0x78] sm:$0xff]  ;;  %v4794_v39 = vld [vmem:[#allocation32_spill] sm:$0xff] }
  0xe9   : > { %v1984_v7 = vadd.f32 %v1983_v3, %v1978_v61  ;;  %v1995_v40 = vmul.f32 %v4793_v62, %v4792_v59  ;;  %v1773_v20 = vadd.f32 %v1772_v0, %v1767_v41  ;;  %v1784_v14 = vmul.f32 %v4171_v42, %v4167_v28  ;;  %v2480_v0 = vld [vmem:[#allocation4 + $0x80] sm:$0xff] }
  0xea   : > { %v2222_v4 = vadd.f32 %v2221_v22, %v2216_v45  ;;  %v2230_v2 = vmul.f32 %v4770_v31, %v4782_v30  ;;  %v2004_v38 = vmul.f32 %v4055_v50, %v4794_v39  ;;  %v2455_v3 = vadd.f32 %v2454_v23, %v2449_v15  ;;  %v4795_v22 = vld [vmem:[#allocation35_spill] sm:$0xff] }
  0xeb   : > { %v1990_v48 = vadd.f32 %v1989_v54, %v1984_v7  ;;  %v2469_v61 = vmul.f32 %v2468_v53, %v3814_v19  ;;  %v1779_v17 = vadd.f32 %v1778_v58, %v1773_v20  ;;  %v2236_v60 = vmul.f32 %v4772_v10, %v4786_v35  ;;  %v2483_v19 = vld [vmem:[#allocation4 + $0x88] sm:$0xff] }
  0xec   : > { %v2228_v11 = vadd.f32 %v2227_v8, %v2222_v4  ;;  %v2010_v1 = vmul.f32 %v4079_v49, %v4795_v22  ;;  %v2461_v41 = vadd.f32 %v2460_v46, %v2455_v3  ;;  %v2475_v54 = vmul.f32 %v2474_v63, %v3819_v56  ;;  %v4796_v8 = vld [vmem:[#allocation36_spill] sm:$0xff]  ;;  %v2495_v3 = vld [vmem:[#allocation4 + $0x98] sm:$0xff] }
  0xed   : > { %v1996_v34 = vadd.f32 %v1995_v40, %v1990_v48  ;;  %v1785_v45 = vadd.f32 %v1784_v14, %v1779_v17  ;;  %v2242_v23 = vmul.f32 %v4774_v43, %v4789_v9  ;;  %v2016_v53 = vmul.f32 %v4090_v16, %v4796_v8  ;;  %v2489_v46 = vld [vmem:[#allocation4 + $0x90] sm:$0xff]  ;;  %v4797_v17 = vld [vmem:[#allocation39_spill] sm:$0xff] }
  0xee   : > { %v2231_v7 = vadd.f32 %v2230_v2, %v2228_v11  ;;  %v2470_v15 = vadd.f32 %v2469_v61, %v2461_v41  ;;  %v2481_v20 = vmul.f32 %v2480_v0, %v4779_v25  ;;  %v2248_v4 = vmul.f32 %v4776_v33, %v4792_v59  ;;  %v4798_v25 = vld [vmem:[#allocation40_spill] sm:$0xff]  ;;  %v2501_v41 = vld [vmem:[#allocation4 + $0xa0] sm:$0xff] }
  0xef   : > { %v2005_v58 = vadd.f32 %v2004_v38, %v1996_v34  ;;  %2686 = vst [vmem:[%s2912_s9 + $0x21] sm:$0xff] %v1785_v45  ;;  %v2019_v14 = vmul.f32 %v4797_v17, %v4004_v37  ;;  %v2484_v63 = vmul.f32 %v2483_v19, %v4782_v30  ;;  %v2257_v38 = vmul.f32 %v4055_v50, %v3904_v12  ;;  %v4799_v45 = vld [vmem:[#allocation18_spill] sm:$0xff] }
  0xf0   : > { %v2237_v40 = vadd.f32 %v2236_v60, %v2231_v7  ;;  %v2476_v2 = vadd.f32 %v2475_v54, %v2470_v15  ;;  %v2025_v11 = vmul.f32 %v4103_v26, %v4798_v25  ;;  %v2490_v0 = vmul.f32 %v2489_v46, %v4786_v35  ;;  %v4800_v15 = vld [vmem:[#allocation52_spill] sm:$0xff] }
  0xf1   : > { %v2011_v56 = vadd.f32 %v2010_v1, %v2005_v58  ;;  %v2263_v1 = vmul.f32 %v4079_v49, %v4777_v21  ;;  %v2031_v30 = vmul.f32 %v4155_v44, %v4799_v45  ;;  %v2269_v58 = vmul.f32 %v4090_v16, %v4780_v29 }
  0xf2   : > { %v2243_v48 = vadd.f32 %v2242_v23, %v2237_v40  ;;  %v2482_v60 = vadd.f32 %v2481_v20, %v2476_v2  ;;  %v2496_v23 = vmul.f32 %v2495_v3, %v4789_v9  ;;  %v2037_v35 = vmul.f32 %v4167_v28, %v4800_v15 }
  0xf3   : > { %v2017_v61 = vadd.f32 %v2016_v53, %v2011_v56  ;;  %v2502_v40 = vmul.f32 %v2501_v41, %v4792_v59  ;;  %v2272_v46 = vmul.f32 %v4783_v32, %v4004_v37  ;;  %v2511_v2 = vmul.f32 %v4055_v50, %v4763_v36 }
  0xf4   : > { %v2249_v34 = vadd.f32 %v2248_v4, %v2243_v48  ;;  %v2485_v7 = vadd.f32 %v2484_v63, %v2482_v60  ;;  %v2278_v48 = vmul.f32 %v4103_v26, %v4787_v55  ;;  %v4234_v59 = vmul.f32 %v4094_v51, %v4769_v27 }
  0xf5   : > { %v2020_v54 = vadd.f32 %v2019_v14, %v2017_v61  ;;  %v4226_v14 = vmul.f32 %v4043_v57, %v4764_v5  ;;  %v2517_v61 = vmul.f32 %v4079_v49, %v4767_v18  ;;  %v2284_v57 = vmul.f32 %v4155_v44, %v4790_v24  ;;  %v4801_v49 = vld [vmem:[#allocation53_spill] sm:$0xff] }
  0xf6   : > { %v2258_v19 = vadd.f32 %v2257_v38, %v2249_v34  ;;  %v2491_v20 = vadd.f32 %v2490_v0, %v2485_v7  ;;  %v4243_v36 = vmul.f32 %v4107_v47, %v4771_v13  ;;  %v2523_v0 = vmul.f32 %v4090_v16, %v4768_v52  ;;  %v4802_v52 = vld [vmem:[#allocation64_spill] sm:$0xff] }
  0xf7   : > { %v2026_v53 = vadd.f32 %v2025_v11, %v2020_v54  ;;  %v2290_v34 = vmul.f32 %v4167_v28, %v4793_v62  ;;  %v2526_v54 = vmul.f32 %v4770_v31, %v4004_v37  ;;  %v2299_v47 = vmul.f32 %v4794_v39, %v4764_v5  ;;  %v4803_v31 = vld [vmem:[#allocation12_spill] sm:$0xff] }
  0xf8   : > { %v2264_v4 = vadd.f32 %v2263_v1, %v2258_v19  ;;  %v2497_v9 = vadd.f32 %v2496_v23, %v2491_v20  ;;  %v4251_v1 = vmul.f32 0.0, %v4801_v49  ;;  %v4260_v16 = vmul.f32 %v4802_v52, %v4773_v6 }
  0xf9   : > { %v2032_v56 = vadd.f32 %v2031_v30, %v2026_v53  ;;  %v2532_v19 = vmul.f32 %v4103_v26, %v4772_v10  ;;  %v2305_v53 = vmul.f32 %v4795_v22, %v4769_v27  ;;  %v4805_v10 = vld [vmem:[#allocation13_spill] sm:$0xff]  ;;  %v2544_v22 = vmul.f32 %v4167_v28, %v4776_v33 }
  0xfa   : > { %v2270_v63 = vadd.f32 %v2269_v58, %v2264_v4  ;;  %v2503_v3 = vadd.f32 %v2502_v40, %v2497_v9  ;;  %v2538_v40 = vmul.f32 %v4155_v44, %v4774_v43  ;;  %v2079_v26 = vmul.f32 %v4171_v42, %v4805_v10 }
  0xfb   : > { %v2038_v38 = vadd.f32 %v2037_v35, %v2032_v56  ;;  %v4804_v35 = vld [vmem:[#allocation54_spill] sm:$0xff]  ;;  %v2553_v43 = vmul.f32 %v3904_v12, %v4764_v5  ;;  %v2559_v42 = vmul.f32 %v4777_v21, %v4769_v27  ;;  %v2326_v33 = vmul.f32 %v4799_v45, %v4803_v31 }
  0xfc   : > { %v2273_v11 = vadd.f32 %v2272_v46, %v2270_v63  ;;  %v2512_v50 = vadd.f32 %v2511_v2, %v2503_v3  ;;  %v2073_v20 = vmul.f32 %v4804_v35, %v4803_v31  ;;  %v2311_v46 = vmul.f32 %v4796_v8, %v4771_v13 }
  0xfd   : > { %v2047_v60 = vadd.f32 %v4226_v14, %v2038_v38  ;;  %v2314_v63 = vmul.f32 0.0, %v4797_v17  ;;  %v2320_v8 = vmul.f32 %v4798_v25, %v4773_v6  ;;  %v2565_v17 = vmul.f32 %v4780_v29, %v4771_v13 }
  0xfe   : > { %v2279_v51 = vadd.f32 %v2278_v48, %v2273_v11  ;;  %v2518_v41 = vadd.f32 %v2517_v61, %v2512_v50  ;;  %v2332_v12 = vmul.f32 %v4800_v15, %v4805_v10  ;;  %v2568_v25 = vmul.f32 0.0, %v4783_v32 }
  0xff   : > { %v2053_v18 = vadd.f32 %v4234_v59, %v2047_v60  ;;  %v2574_v27 = vmul.f32 %v4787_v55, %v4773_v6  ;;  %v2580_v45 = vmul.f32 %v4790_v24, %v4803_v31  ;;  %v2586_v15 = vmul.f32 %v4793_v62, %v4805_v10 }
 0x100   : > { %v2285_v30 = vadd.f32 %v2284_v57, %v2279_v51  ;;  %v2524_v23 = vadd.f32 %v2523_v0, %v2518_v41 }
 0x101   : > { %v2059_v7 = vadd.f32 %v4243_v36, %v2053_v18 }
 0x102   : > { %v2291_v58 = vadd.f32 %v2290_v34, %v2285_v30  ;;  %v2527_v39 = vadd.f32 %v2526_v54, %v2524_v23 }
 0x103   : > { %v2062_v37 = vadd.f32 %v4251_v1, %v2059_v7 }
 0x104   : > { %v2300_v4 = vadd.f32 %v2299_v47, %v2291_v58  ;;  %v2533_v9 = vadd.f32 %v2532_v19, %v2527_v39 }
 0x105   : > { %v2068_v56 = vadd.f32 %v4260_v16, %v2062_v37 }
 0x106   : > { %v2306_v2 = vadd.f32 %v2305_v53, %v2300_v4  ;;  %v2539_v38 = vadd.f32 %v2538_v40, %v2533_v9 }
 0x107   : > { %v2074_v48 = vadd.f32 %v2073_v20, %v2068_v56 }
 0x108   : > { %v2312_v44 = vadd.f32 %v2311_v46, %v2306_v2  ;;  %v2545_v61 = vadd.f32 %v2544_v22, %v2539_v38 }
 0x109   : > { %v2080_v3 = vadd.f32 %v2079_v26, %v2074_v48 }
 0x10a   : > { %v2315_v11 = vadd.f32 %v2314_v63, %v2312_v44  ;;  %v2554_v28 = vadd.f32 %v2553_v43, %v2545_v61 }
 0x10b   : > { %2687 = vst [vmem:[%s2912_s9 + $0x29] sm:$0xff] %v2080_v3 }
 0x10c   : > { %v2321_v57 = vadd.f32 %v2320_v8, %v2315_v11  ;;  %v2560_v5 = vadd.f32 %v2559_v42, %v2554_v28 }
 0x10e   : > { %v2327_v60 = vadd.f32 %v2326_v33, %v2321_v57  ;;  %v2566_v50 = vadd.f32 %v2565_v17, %v2560_v5 }
 0x110   : > { %v2333_v21 = vadd.f32 %v2332_v12, %v2327_v60  ;;  %v2569_v0 = vadd.f32 %v2568_v25, %v2566_v50 }
 0x112   : > { %v2343_v13 = vadd.f32 %v2333_v21, %v4226_v14  ;;  %v2575_v29 = vadd.f32 %v2574_v27, %v2569_v0 }
 0x114   : > { %v2349_v51 = vadd.f32 %v2343_v13, %v4234_v59  ;;  %v2581_v32 = vadd.f32 %v2580_v45, %v2575_v29 }
 0x116   : > { %v2355_v34 = vadd.f32 %v2349_v51, %v4243_v36  ;;  %v2587_v18 = vadd.f32 %v2586_v15, %v2581_v32 }
 0x118   : > { %v2358_v6 = vadd.f32 %v2355_v34, %v4251_v1  ;;  %v2596_v55 = vadd.f32 %v2587_v18, %v2299_v47 }
 0x11a   : > { %v2364_v49 = vadd.f32 %v2358_v6, %v4260_v16  ;;  %v2602_v41 = vadd.f32 %v2596_v55, %v2305_v53 }
 0x11c   : > { %v2370_v24 = vadd.f32 %v2364_v49, %v2073_v20  ;;  %v2608_v54 = vadd.f32 %v2602_v41, %v2311_v46 }
 0x11e   : > { %v2376_v30 = vadd.f32 %v2370_v24, %v2079_v26  ;;  %v2611_v7 = vadd.f32 %v2608_v54, %v2314_v63 }
 0x120   : > { %2688 = vst [vmem:[%s2912_s9 + $0x31] sm:$0xff] %v2376_v30  ;;  %v2617_v52 = vadd.f32 %v2611_v7, %v2320_v8 }
 0x122   : > { %v2623_v62 = vadd.f32 %v2617_v52, %v2326_v33 }
 0x124   : > { %v2629_v23 = vadd.f32 %v2623_v62, %v2332_v12 }
 0x126   : > { %v2639_v19 = vadd.f32 %v2629_v23, %v4226_v14 }
 0x128   : > { %v2645_v58 = vadd.f32 %v2639_v19, %v4234_v59 }
 0x12a   : > { %v2651_v37 = vadd.f32 %v2645_v58, %v4243_v36 }
 0x12c   : > { %v2654_v47 = vadd.f32 %v2651_v37, %v4251_v1 }
 0x12e   : > { %v2660_v31 = vadd.f32 %v2654_v47, %v4260_v16 }
 0x130   : > { %v2666_v53 = vadd.f32 %v2660_v31, %v2073_v20 }
 0x132   : > { %v2672_v35 = vadd.f32 %v2666_v53, %v2079_v26 }
 0x134   : > { %2689 = vst [vmem:[%s2912_s9 + $0x39] sm:$0xff] %v2672_v35 }
 0x135 PF: > { %s14_s12 = sadd.s32 1, %s2831_s12  }
 0x136   : > { %p11_p3 = scmp.ge.s32.totalorder %s14_s12, 4  }
 0x138   :  { %13 = sbr.rel (!%p11_p3) target bundleno = 1 (0x1), region = 128 }
 0x13f   :  { %2711 = vsyncpa [#allocation5], 1 }
 0x140   :  { %2713 = vsyncpa [#allocation5 + $0x1], 1 }

</bundles_post_ra>
